<compile_context>
chip_gen: v6e
topology: v6e:2x2x1
jax: 0.10.0
libtpu: 0.0.40
codegen_flags: <defaults>
</compile_context>

<pallas_src>
from functools import partial

import numpy as np
import jax
import jax.numpy as jnp
from jax.experimental import pallas as pl
from jax.experimental.pallas import tpu as pltpu

EPS = 1e-5  # AdaptiveInstanceNorm2d / F.batch_norm eps


# ----------------------------------------------------------------------------
# Reflect-pad gather matrices: conv shift s=(dy,dx) as a (HW,HW) 0/1 matmul
# ----------------------------------------------------------------------------
def build_reflect_gather(H, W):
    HW = H * W
    ys, xs = np.meshgrid(np.arange(H), np.arange(W), indexing="ij")
    q = (ys * W + xs).reshape(-1)
    G = np.zeros((9, HW, HW), np.float32)
    s = 0
    for dy in range(3):
        for dx in range(3):
            ry = np.abs(ys + dy - 1)
            ry = np.where(ry > H - 1, 2 * (H - 1) - ry, ry)
            rx = np.abs(xs + dx - 1)
            rx = np.where(rx > W - 1, 2 * (W - 1) - rx, rx)
            p = (ry * W + rx).reshape(-1)
            G[s, p, q] = 1.0
            s += 1
    return jnp.asarray(G)


# ----------------------------------------------------------------------------
# Pallas kernels
# ----------------------------------------------------------------------------
def _mlp_bank_kernel(x_ref, w0_ref, b0_ref, w1_ref, b1_ref, w2_ref, b2_ref, o_ref):
    """All 7 MLPs (Lin+ReLU, Lin+ReLU, Lin) fused into one kernel."""
    x = x_ref[...]
    for i in range(o_ref.shape[0]):
        h = jnp.maximum(
            jnp.dot(x, w0_ref[i], preferred_element_type=jnp.float32) + b0_ref[i], 0.0)
        h = jnp.maximum(
            jnp.dot(h, w1_ref[i], preferred_element_type=jnp.float32) + b1_ref[i], 0.0)
        o_ref[i] = jnp.dot(h, w2_ref[i], preferred_element_type=jnp.float32) + b2_ref[i]


def mlp_bank_forward(text_feat, mlp_list):
    """Run the 7 MLPs in a single pallas_call.  Last layers are zero-padded to a
    common output width so weights stack; callers slice the valid columns."""
    B, D = text_feat.shape
    dmax = max(m[2][0].shape[1] for m in mlp_list)
    w0 = jnp.stack([m[0][0] for m in mlp_list])                       # (7, D, D)
    b0 = jnp.stack([m[0][1] for m in mlp_list])[:, None, :]           # (7, 1, D)
    w1 = jnp.stack([m[1][0] for m in mlp_list])
    b1 = jnp.stack([m[1][1] for m in mlp_list])[:, None, :]
    w2 = jnp.stack([jnp.pad(m[2][0], ((0, 0), (0, dmax - m[2][0].shape[1])))
                    for m in mlp_list])                               # (7, D, dmax)
    b2 = jnp.stack([jnp.pad(m[2][1], (0, dmax - m[2][1].shape[0]))
                    for m in mlp_list])[:, None, :]                   # (7, 1, dmax)
    return pl.pallas_call(
        _mlp_bank_kernel,
        out_shape=jax.ShapeDtypeStruct((len(mlp_list), B, dmax), jnp.float32),
    )(text_feat.astype(jnp.float32), w0, b0, w1, b1, w2, b2)


def _stage_kernel(x_ref, g_ref, w_ref, b_ref, gm_ref, bt_ref, gate_ref, o_ref,
                  *, n_res, eps):
    """One routing branch (grid axis): n_res ResBlocks of
    [3x3 conv + AdaIN + ReLU, 3x3 conv + AdaIN] + residual, then gate scaling.

    Shapes (per grid step / branch):
      x_ref    : (B*C, HW)          input feature map (shared across branches)
      g_ref    : (9, HW, HW)        reflect-pad shift-gather matrices (shared)
      w_ref    : (4*n_res*9, BC, BC) block-diag (kron over batch) conv weights
      b_ref    : (2*n_res, BC, 1)   conv bias
      gm_ref   : (2*n_res, BC, 1)   AdaIN gamma (std params, per batch*channel)
      bt_ref   : (2*n_res, BC, 1)   AdaIN beta  (mean params)
      gate_ref : (BC, 1)            gumbel gate for this branch, per batch row
      o_ref    : (BC, HW)           gated branch output
    """
    h = x_ref[...]                                            # (BC, HW)
    for blk in range(n_res):
        residual = h
        for ci in range(2):
            j = blk * 2 + ci
            # 3x3 reflect-pad conv: sum_s (W_s_blockdiag @ h) @ G_s
            acc = jnp.zeros_like(h)
            for s in range(9):
                t = jnp.dot(w_ref[j * 9 + s], h,
                            preferred_element_type=jnp.float32)       # (BC, HW)
                acc = acc + jnp.dot(t, g_ref[s],
                                    preferred_element_type=jnp.float32)
            y = acc + b_ref[j]
            # AdaIN: instance norm over the spatial (lane) axis, biased variance
            mean = jnp.mean(y, axis=1, keepdims=True)
            var = jnp.mean(jnp.square(y - mean), axis=1, keepdims=True)
            y = gm_ref[j] * ((y - mean) * jax.lax.rsqrt(var + eps)) + bt_ref[j]
            if ci == 0:
                y = jnp.maximum(y, 0.0)                        # ReLU only after conv1
            h = y
        h = residual + h
    o_ref[...] = gate_ref[...] * h


def _prep_stage_params(res_list, adain_list, B, dim, n_res):
    """Pack 3 branches worth of conv weights / biases / AdaIN params for one stage."""
    eyeB = jnp.eye(B, dtype=jnp.float32)
    w_s, b_c, gm, bt = [], [], [], []
    for br in range(3):
        adain = adain_list[br]
        off = 0
        for blk in range(n_res):
            for (w, bias) in res_list[br][blk]:
                # w: (3,3,Cin,Cout) HWIO -> per-shift block-diag (B*Cout, B*Cin)
                for dy in range(3):
                    for dx in range(3):
                        w_s.append(jnp.kron(eyeB, jnp.transpose(w[dy, dx])))
                b_c.append(jnp.tile(bias, B))
                # AdaptiveInstanceNorm2d order: first C = mean (bias), next C = std (weight)
                bt.append(adain[:, off:off + dim].reshape(-1))
                gm.append(adain[:, off + dim:off + 2 * dim].reshape(-1))
                off += 2 * dim
    BC = B * dim
    n_conv = 2 * n_res
    Wc = jnp.stack(w_s).reshape(3, n_conv * 9, BC, BC)
    bc = jnp.stack(b_c).reshape(3, n_conv, BC, 1)
    gmc = jnp.stack(gm).reshape(3, n_conv, BC, 1)
    btc = jnp.stack(bt).reshape(3, n_conv, BC, 1)
    return Wc, bc, gmc, btc


def stage_forward(x_flat, G, res_list, adain_list, gate_cols, B, dim, n_res):
    """One routing stage: 3 gated branches fused into a single pallas_call."""
    BC, HW = x_flat.shape
    n_conv = 2 * n_res
    Wc, bc, gmc, btc = _prep_stage_params(res_list, adain_list, B, dim, n_res)
    out = pl.pallas_call(
        partial(_stage_kernel, n_res=n_res, eps=EPS),
        out_shape=jax.ShapeDtypeStruct((3, BC, HW), jnp.float32),
        grid=(3,),
        in_specs=[
            pl.BlockSpec((BC, HW), lambda br: (0, 0)),                       # x (shared)
            pl.BlockSpec((9, HW, HW), lambda br: (0, 0, 0)),                 # gather (shared)
            pl.BlockSpec((pl.Squeezed(), n_conv * 9, BC, BC), lambda br: (br, 0, 0, 0)),
            pl.BlockSpec((pl.Squeezed(), n_conv, BC, 1), lambda br: (br, 0, 0, 0)),
            pl.BlockSpec((pl.Squeezed(), n_conv, BC, 1), lambda br: (br, 0, 0, 0)),
            pl.BlockSpec((pl.Squeezed(), n_conv, BC, 1), lambda br: (br, 0, 0, 0)),
            pl.BlockSpec((pl.Squeezed(), BC, 1), lambda br: (br, 0, 0)),
        ],
        out_specs=pl.BlockSpec((pl.Squeezed(), BC, HW), lambda br: (br, 0, 0)),
        compiler_params=pltpu.CompilerParams(dimension_semantics=("parallel",)),
    )(x_flat, G, Wc, bc, gmc, btc, gate_cols)
    # 3-way gated sum (gates already applied in-kernel) -- tiny XLA reduce.
    return out.sum(axis=0)


# ----------------------------------------------------------------------------
# Model forward
# ----------------------------------------------------------------------------
def gumbel_softmax(logits, key, tau):
    # F.gumbel_softmax(..., hard=False): softmax((logits + Gumbel noise) / tau, dim=-1)
    u = jax.random.uniform(key, logits.shape, minval=1e-10, maxval=1.0)
    g = -jnp.log(-jnp.log(u))
    return jax.nn.softmax((logits + g) / tau, axis=-1)


def adaptive_routing_forward(img_feat_nchw, text_feat, params, gumbel_key,
                             temperature_rate=None, *, T=1.0, n_res=2, dim=4):
    # temperature_rate is unused in the reference forward (kept for signature parity)
    del temperature_rate
    B, C, H, W = img_feat_nchw.shape
    HW = H * W
    x_flat = img_feat_nchw.reshape(B * C, HW).astype(jnp.float32)   # pure reshape of NCHW
    G = params["gather"]

    # All 7 MLPs in one kernel.  (mlpencoder uses text_feat.detach() in torch;
    # forward values are identical, the detach only affects gradients.)
    mlp_out = mlp_bank_forward(text_feat, params["mlps"])           # (7, B, dmax)
    num_adain = 4 * n_res * dim
    adain = [mlp_out[k, :, :num_adain] for k in range(6)]
    logits = mlp_out[6, :, :6].reshape(B, 2, 3)
    gates = gumbel_softmax(logits, gumbel_key, T)                   # (B, 2, 3)

    # Per-branch gate column, replicated over the C channel rows of each batch.
    gate_cols = [jnp.repeat(gates[:, st, :].T, dim, axis=1)[..., None]  # (3, B*C, 1)
                 for st in range(2)]

    res1 = [params["res"], params["res2"], params["res3"]]
    res2 = [params["res_2"], params["res2_2"], params["res3_2"]]

    feat = stage_forward(x_flat, G, res1, adain[0:3], gate_cols[0], B, dim, n_res)
    final = stage_forward(feat, G, res2, adain[3:6], gate_cols[1], B, dim, n_res)

    return final.reshape(B, C, H, W), gates.reshape(B, 2, 3, 1, 1, 1)


# ----------------------------------------------------------------------------
# Pure-JAX reference (same math, NCHW) for a numerical self-check
# ----------------------------------------------------------------------------
def _reference_forward(img_feat, text_feat, params, key, T, n_res, dim):
    def mlp_ref(x, layers):
        (w0, b0), (w1, b1), (w2, b2) = layers
        h = jnp.maximum(x @ w0 + b0, 0.0)
        h = jnp.maximum(h @ w1 + b1, 0.0)
        return h @ w2 + b2

    def conv_block(x, w, b, gamma, beta, relu):
        Bb, Cc, Hh, Ww = x.shape
        xp = jnp.pad(x, ((0, 0), (0, 0), (1, 1), (1, 1)), mode="reflect")
        out = jnp.zeros((Bb, w.shape[-1], Hh, Ww), jnp.float32)
        for dy in range(3):
            for dx in range(3):
                patch = xp[:, :, dy:dy + Hh, dx:dx + Ww]
                out = out + jnp.einsum("bihw,io->bohw", patch, w[dy, dx])
        out = out + b[None, :, None, None]
        mean = out.mean(axis=(2, 3), keepdims=True)
        var = ((out - mean) ** 2).mean(axis=(2, 3), keepdims=True)
        out = (out - mean) * jax.lax.rsqrt(var + EPS)
        out = gamma[:, :, None, None] * out + beta[:, :, None, None]
        return jnp.maximum(out, 0.0) if relu else out

    def resblocks(x, blocks, adain):
        off, h = 0, x
        for (w1, b1), (w2, b2) in blocks:
            beta1 = adain[:, off:off + dim]; gamma1 = adain[:, off + dim:off + 2 * dim]; off += 2 * dim
            beta2 = adain[:, off:off + dim]; gamma2 = adain[:, off + dim:off + 2 * dim]; off += 2 * dim
            r = h
            h = conv_block(h, w1, b1, gamma1, beta1, True)
            h = conv_block(h, w2, b2, gamma2, beta2, False)
            h = h + r
        return h

    mlps = params["mlps"]
    logits = mlp_ref(text_feat, mlps[6]).reshape(-1, 2, 3)
    u = jax.random.uniform(key, logits.shape, minval=1e-10, maxval=1.0)
    gates = jax.nn.softmax((logits + (-jnp.log(-jnp.log(u)))) / T, axis=-1)

    outs1 = [resblocks(img_feat, params[nm], mlp_ref(text_feat, mlps[i]))
             for i, nm in enumerate(["res", "res2", "res3"])]
    feat = sum(o * gates[:, 0, i][:, None, None, None] for i, o in enumerate(outs1))
    outs2 = [resblocks(feat, params[nm], mlp_ref(text_feat, mlps[3 + i]))
             for i, nm in enumerate(["res_2", "res2_2", "res3_2"])]
    final = sum(o * gates[:, 1, i][:, None, None, None] for i, o in enumerate(outs2))
    return final, gates.reshape(-1, 2, 3, 1, 1, 1)


# ----------------------------------------------------------------------------
# Deterministic parameter init (synthetic; shapes follow the PyTorch __init__)
# ----------------------------------------------------------------------------
def _conv_init(key, cin, cout):
    k1, k2 = jax.random.split(key)
    w = jax.random.normal(k1, (3, 3, cin, cout), jnp.float32) * (1.0 / (9 * cin) ** 0.5)
    b = jax.random.normal(k2, (cout,), jnp.float32) * 0.01
    return w, b


def _resblocks_init(key, n_res, dim):
    ks = jax.random.split(key, 2 * n_res)
    return [(_conv_init(ks[2 * i], dim, dim), _conv_init(ks[2 * i + 1], dim, dim))
            for i in range(n_res)]


def _mlp_init(key, din, dhid, dout):
    dims = [(din, dhid), (dhid, dhid), (dhid, dout)]
    ks = jax.random.split(key, 2 * len(dims))
    return [(jax.random.normal(ks[2 * i], (a, b), jnp.float32) * (1.0 / a ** 0.5),
             jax.random.normal(ks[2 * i + 1], (b,), jnp.float32) * 0.01)
            for i, (a, b) in enumerate(dims)]


def init_params(key, n_res, dim, text_dim):
    num_adain = 4 * n_res * dim
    res_names = ["res", "res2", "res3", "res_2", "res2_2", "res3_2"]
    ks = jax.random.split(key, 13)
    params = {nm: _resblocks_init(ks[i], n_res, dim) for i, nm in enumerate(res_names)}
    mlps = [_mlp_init(ks[6 + i], text_dim, text_dim, num_adain) for i in range(6)]
    mlps.append(_mlp_init(ks[12], text_dim, text_dim, 3 * 2))   # mlpencoder
    params["mlps"] = mlps
    return params


# ----------------------------------------------------------------------------
if __name__ == "__main__":
    B, dim, H, W = 2, 4, 16, 16
    n_res, text_dim = 2, 32

    key = jax.random.PRNGKey(0)
    kp, kimg, ktxt, kgum = jax.random.split(key, 4)

    params = init_params(kp, n_res, dim, text_dim)
    params["gather"] = build_reflect_gather(H, W)

    img_feat = jax.random.normal(kimg, (B, dim, H, W), jnp.float32)   # NCHW like PyTorch
    text_feat = jax.random.normal(ktxt, (B, text_dim), jnp.float32)

    fwd = jax.jit(partial(adaptive_routing_forward, T=1.0, n_res=n_res, dim=dim))
    out, gates = fwd(img_feat, text_feat, params, kgum, 1.0)
    out = jax.block_until_ready(out)
    gates = jax.block_until_ready(gates)

    assert out.shape == (B, dim, H, W), out.shape
    assert gates.shape == (B, 2, 3, 1, 1, 1), gates.shape
    assert bool(jnp.all(jnp.isfinite(out))) and bool(jnp.all(jnp.isfinite(gates)))

    # Numerical self-check against a pure-JAX reference of the PyTorch forward.
    ref_out, ref_gates = _reference_forward(img_feat, text_feat, params, kgum,
                                            1.0, n_res, dim)
    max_err = float(jnp.max(jnp.abs(out - ref_out)))
    assert max_err < 1e-3, f"output mismatch: {max_err}"
    assert float(jnp.max(jnp.abs(gates - ref_gates))) < 1e-3

    print("KERNEL_OK")
</pallas_src>

<mosaic_0001>
module attributes {stable_mosaic.version = 11 : i64} {
  func.func @_mlp_bank_kernel(%arg0: memref<2x32xf32, #tpu.memory_space<vmem>>, %arg1: memref<7x32x32xf32, #tpu.memory_space<vmem>>, %arg2: memref<7x1x32xf32, #tpu.memory_space<vmem>>, %arg3: memref<7x32x32xf32, #tpu.memory_space<vmem>>, %arg4: memref<7x1x32xf32, #tpu.memory_space<vmem>>, %arg5: memref<7x32x32xf32, #tpu.memory_space<vmem>>, %arg6: memref<7x1x32xf32, #tpu.memory_space<vmem>>, %arg7: memref<7x2x32xf32, #tpu.memory_space<vmem>>) attributes {dimension_semantics = [], scalar_prefetch = 0 : i64, scratch_operands = 0 : i64, tpu.core_type = #tpu.core_type<tc>} {
    %c0 = arith.constant 0 : index
    %c0_0 = arith.constant 0 : index
    %0 = vector.load %arg0[%c0, %c0_0] : memref<2x32xf32, #tpu.memory_space<vmem>>, vector<2x32xf32>
    %c0_1 = arith.constant 0 : index
    %c0_2 = arith.constant 0 : index
    %c0_3 = arith.constant 0 : index
    %1 = vector.load %arg1[%c0_1, %c0_2, %c0_3] : memref<7x32x32xf32, #tpu.memory_space<vmem>>, vector<1x32x32xf32>
    %2 = vector.shape_cast %1 : vector<1x32x32xf32> to vector<32x32xf32>
    %cst = arith.constant dense<0.000000e+00> : vector<2x32xf32>
    %3 = tpu.matmul %0, %2, %cst {dimension_numbers = #tpu.dot_dimension_numbers<[1], [0], [0], [1], [0, 0, 1, 1], [], []>} : vector<2x32xf32>, vector<32x32xf32>, vector<2x32xf32> -> vector<2x32xf32>
    %c0_4 = arith.constant 0 : index
    %c0_5 = arith.constant 0 : index
    %c0_6 = arith.constant 0 : index
    %4 = vector.load %arg2[%c0_4, %c0_5, %c0_6] : memref<7x1x32xf32, #tpu.memory_space<vmem>>, vector<1x1x32xf32>
    %5 = vector.shape_cast %4 : vector<1x1x32xf32> to vector<1x32xf32>
    %6 = vector.broadcast %5 : vector<1x32xf32> to vector<2x32xf32>
    %7 = arith.addf %3, %6 : vector<2x32xf32>
    %cst_7 = arith.constant 0.000000e+00 : f32
    %8 = vector.broadcast %cst_7 : f32 to vector<2x32xf32>
    %9 = arith.maximumf %7, %8 : vector<2x32xf32>
    %c0_8 = arith.constant 0 : index
    %c0_9 = arith.constant 0 : index
    %c0_10 = arith.constant 0 : index
    %10 = vector.load %arg3[%c0_8, %c0_9, %c0_10] : memref<7x32x32xf32, #tpu.memory_space<vmem>>, vector<1x32x32xf32>
    %11 = vector.shape_cast %10 : vector<1x32x32xf32> to vector<32x32xf32>
    %cst_11 = arith.constant dense<0.000000e+00> : vector<2x32xf32>
    %12 = tpu.matmul %9, %11, %cst_11 {dimension_numbers = #tpu.dot_dimension_numbers<[1], [0], [0], [1], [0, 0, 1, 1], [], []>} : vector<2x32xf32>, vector<32x32xf32>, vector<2x32xf32> -> vector<2x32xf32>
    %c0_12 = arith.constant 0 : index
    %c0_13 = arith.constant 0 : index
    %c0_14 = arith.constant 0 : index
    %13 = vector.load %arg4[%c0_12, %c0_13, %c0_14] : memref<7x1x32xf32, #tpu.memory_space<vmem>>, vector<1x1x32xf32>
    %14 = vector.shape_cast %13 : vector<1x1x32xf32> to vector<1x32xf32>
    %15 = vector.broadcast %14 : vector<1x32xf32> to vector<2x32xf32>
    %16 = arith.addf %12, %15 : vector<2x32xf32>
    %cst_15 = arith.constant 0.000000e+00 : f32
    %17 = vector.broadcast %cst_15 : f32 to vector<2x32xf32>
    %18 = arith.maximumf %16, %17 : vector<2x32xf32>
    %c0_16 = arith.constant 0 : index
    %c0_17 = arith.constant 0 : index
    %c0_18 = arith.constant 0 : index
    %19 = vector.load %arg5[%c0_16, %c0_17, %c0_18] : memref<7x32x32xf32, #tpu.memory_space<vmem>>, vector<1x32x32xf32>
    %20 = vector.shape_cast %19 : vector<1x32x32xf32> to vector<32x32xf32>
    %cst_19 = arith.constant dense<0.000000e+00> : vector<2x32xf32>
    %21 = tpu.matmul %18, %20, %cst_19 {dimension_numbers = #tpu.dot_dimension_numbers<[1], [0], [0], [1], [0, 0, 1, 1], [], []>} : vector<2x32xf32>, vector<32x32xf32>, vector<2x32xf32> -> vector<2x32xf32>
    %c0_20 = arith.constant 0 : index
    %c0_21 = arith.constant 0 : index
    %c0_22 = arith.constant 0 : index
    %22 = vector.load %arg6[%c0_20, %c0_21, %c0_22] : memref<7x1x32xf32, #tpu.memory_space<vmem>>, vector<1x1x32xf32>
    %23 = vector.shape_cast %22 : vector<1x1x32xf32> to vector<1x32xf32>
    %24 = vector.broadcast %23 : vector<1x32xf32> to vector<2x32xf32>
    %25 = arith.addf %21, %24 : vector<2x32xf32>
    %c0_23 = arith.constant 0 : index
    %c0_24 = arith.constant 0 : index
    %c0_25 = arith.constant 0 : index
    %26 = vector.load %arg7[%c0_23, %c0_24, %c0_25] : memref<7x2x32xf32, #tpu.memory_space<vmem>>, vector<1x2x32xf32>
    %27 = vector.shape_cast %26 : vector<1x2x32xf32> to vector<2x32xf32>
    %28 = vector.shape_cast %25 : vector<2x32xf32> to vector<1x2x32xf32>
    tpu.vector_store %arg7[%c0_23, %c0_24, %c0_25], %28 {strides = array<i32>} : memref<7x2x32xf32, #tpu.memory_space<vmem>>, vector<1x2x32xf32>,
    %c1 = arith.constant 1 : index
    %c0_26 = arith.constant 0 : index
    %c0_27 = arith.constant 0 : index
    %29 = vector.load %arg1[%c1, %c0_26, %c0_27] : memref<7x32x32xf32, #tpu.memory_space<vmem>>, vector<1x32x32xf32>
    %30 = vector.shape_cast %29 : vector<1x32x32xf32> to vector<32x32xf32>
    %cst_28 = arith.constant dense<0.000000e+00> : vector<2x32xf32>
    %31 = tpu.matmul %0, %30, %cst_28 {dimension_numbers = #tpu.dot_dimension_numbers<[1], [0], [0], [1], [0, 0, 1, 1], [], []>} : vector<2x32xf32>, vector<32x32xf32>, vector<2x32xf32> -> vector<2x32xf32>
    %c1_29 = arith.constant 1 : index
    %c0_30 = arith.constant 0 : index
    %c0_31 = arith.constant 0 : index
    %32 = vector.load %arg2[%c1_29, %c0_30, %c0_31] : memref<7x1x32xf32, #tpu.memory_space<vmem>>, vector<1x1x32xf32>
    %33 = vector.shape_cast %32 : vector<1x1x32xf32> to vector<1x32xf32>
    %34 = vector.broadcast %33 : vector<1x32xf32> to vector<2x32xf32>
    %35 = arith.addf %31, %34 : vector<2x32xf32>
    %cst_32 = arith.constant 0.000000e+00 : f32
    %36 = vector.broadcast %cst_32 : f32 to vector<2x32xf32>
    %37 = arith.maximumf %35, %36 : vector<2x32xf32>
    %c1_33 = arith.constant 1 : index
    %c0_34 = arith.constant 0 : index
    %c0_35 = arith.constant 0 : index
    %38 = vector.load %arg3[%c1_33, %c0_34, %c0_35] : memref<7x32x32xf32, #tpu.memory_space<vmem>>, vector<1x32x32xf32>
    %39 = vector.shape_cast %38 : vector<1x32x32xf32> to vector<32x32xf32>
    %cst_36 = arith.constant dense<0.000000e+00> : vector<2x32xf32>
    %40 = tpu.matmul %37, %39, %cst_36 {dimension_numbers = #tpu.dot_dimension_numbers<[1], [0], [0], [1], [0, 0, 1, 1], [], []>} : vector<2x32xf32>, vector<32x32xf32>, vector<2x32xf32> -> vector<2x32xf32>
    %c1_37 = arith.constant 1 : index
    %c0_38 = arith.constant 0 : index
    %c0_39 = arith.constant 0 : index
    %41 = vector.load %arg4[%c1_37, %c0_38, %c0_39] : memref<7x1x32xf32, #tpu.memory_space<vmem>>, vector<1x1x32xf32>
    %42 = vector.shape_cast %41 : vector<1x1x32xf32> to vector<1x32xf32>
    %43 = vector.broadcast %42 : vector<1x32xf32> to vector<2x32xf32>
    %44 = arith.addf %40, %43 : vector<2x32xf32>
    %cst_40 = arith.constant 0.000000e+00 : f32
    %45 = vector.broadcast %cst_40 : f32 to vector<2x32xf32>
    %46 = arith.maximumf %44, %45 : vector<2x32xf32>
    %c1_41 = arith.constant 1 : index
    %c0_42 = arith.constant 0 : index
    %c0_43 = arith.constant 0 : index
    %47 = vector.load %arg5[%c1_41, %c0_42, %c0_43] : memref<7x32x32xf32, #tpu.memory_space<vmem>>, vector<1x32x32xf32>
    %48 = vector.shape_cast %47 : vector<1x32x32xf32> to vector<32x32xf32>
    %cst_44 = arith.constant dense<0.000000e+00> : vector<2x32xf32>
    %49 = tpu.matmul %46, %48, %cst_44 {dimension_numbers = #tpu.dot_dimension_numbers<[1], [0], [0], [1], [0, 0, 1, 1], [], []>} : vector<2x32xf32>, vector<32x32xf32>, vector<2x32xf32> -> vector<2x32xf32>
    %c1_45 = arith.constant 1 : index
    %c0_46 = arith.constant 0 : index
    %c0_47 = arith.constant 0 : index
    %50 = vector.load %arg6[%c1_45, %c0_46, %c0_47] : memref<7x1x32xf32, #tpu.memory_space<vmem>>, vector<1x1x32xf32>
    %51 = vector.shape_cast %50 : vector<1x1x32xf32> to vector<1x32xf32>
    %52 = vector.broadcast %51 : vector<1x32xf32> to vector<2x32xf32>
    %53 = arith.addf %49, %52 : vector<2x32xf32>
    %c1_48 = arith.constant 1 : index
    %c0_49 = arith.constant 0 : index
    %c0_50 = arith.constant 0 : index
    %54 = vector.load %arg7[%c1_48, %c0_49, %c0_50] : memref<7x2x32xf32, #tpu.memory_space<vmem>>, vector<1x2x32xf32>
    %55 = vector.shape_cast %54 : vector<1x2x32xf32> to vector<2x32xf32>
    %56 = vector.shape_cast %53 : vector<2x32xf32> to vector<1x2x32xf32>
    tpu.vector_store %arg7[%c1_48, %c0_49, %c0_50], %56 {strides = array<i32>} : memref<7x2x32xf32, #tpu.memory_space<vmem>>, vector<1x2x32xf32>,
    %c2 = arith.constant 2 : index
    %c0_51 = arith.constant 0 : index
    %c0_52 = arith.constant 0 : index
    %57 = vector.load %arg1[%c2, %c0_51, %c0_52] : memref<7x32x32xf32, #tpu.memory_space<vmem>>, vector<1x32x32xf32>
    %58 = vector.shape_cast %57 : vector<1x32x32xf32> to vector<32x32xf32>
    %cst_53 = arith.constant dense<0.000000e+00> : vector<2x32xf32>
    %59 = tpu.matmul %0, %58, %cst_53 {dimension_numbers = #tpu.dot_dimension_numbers<[1], [0], [0], [1], [0, 0, 1, 1], [], []>} : vector<2x32xf32>, vector<32x32xf32>, vector<2x32xf32> -> vector<2x32xf32>
    %c2_54 = arith.constant 2 : index
    %c0_55 = arith.constant 0 : index
    %c0_56 = arith.constant 0 : index
    %60 = vector.load %arg2[%c2_54, %c0_55, %c0_56] : memref<7x1x32xf32, #tpu.memory_space<vmem>>, vector<1x1x32xf32>
    %61 = vector.shape_cast %60 : vector<1x1x32xf32> to vector<1x32xf32>
    %62 = vector.broadcast %61 : vector<1x32xf32> to vector<2x32xf32>
    %63 = arith.addf %59, %62 : vector<2x32xf32>
    %cst_57 = arith.constant 0.000000e+00 : f32
    %64 = vector.broadcast %cst_57 : f32 to vector<2x32xf32>
    %65 = arith.maximumf %63, %64 : vector<2x32xf32>
    %c2_58 = arith.constant 2 : index
    %c0_59 = arith.constant 0 : index
    %c0_60 = arith.constant 0 : index
    %66 = vector.load %arg3[%c2_58, %c0_59, %c0_60] : memref<7x32x32xf32, #tpu.memory_space<vmem>>, vector<1x32x32xf32>
    %67 = vector.shape_cast %66 : vector<1x32x32xf32> to vector<32x32xf32>
    %cst_61 = arith.constant dense<0.000000e+00> : vector<2x32xf32>
    %68 = tpu.matmul %65, %67, %cst_61 {dimension_numbers = #tpu.dot_dimension_numbers<[1], [0], [0], [1], [0, 0, 1, 1], [], []>} : vector<2x32xf32>, vector<32x32xf32>, vector<2x32xf32> -> vector<2x32xf32>
    %c2_62 = arith.constant 2 : index
    %c0_63 = arith.constant 0 : index
    %c0_64 = arith.constant 0 : index
    %69 = vector.load %arg4[%c2_62, %c0_63, %c0_64] : memref<7x1x32xf32, #tpu.memory_space<vmem>>, vector<1x1x32xf32>
    %70 = vector.shape_cast %69 : vector<1x1x32xf32> to vector<1x32xf32>
    %71 = vector.broadcast %70 : vector<1x32xf32> to vector<2x32xf32>
    %72 = arith.addf %68, %71 : vector<2x32xf32>
    %cst_65 = arith.constant 0.000000e+00 : f32
    %73 = vector.broadcast %cst_65 : f32 to vector<2x32xf32>
    %74 = arith.maximumf %72, %73 : vector<2x32xf32>
    %c2_66 = arith.constant 2 : index
    %c0_67 = arith.constant 0 : index
    %c0_68 = arith.constant 0 : index
    %75 = vector.load %arg5[%c2_66, %c0_67, %c0_68] : memref<7x32x32xf32, #tpu.memory_space<vmem>>, vector<1x32x32xf32>
    %76 = vector.shape_cast %75 : vector<1x32x32xf32> to vector<32x32xf32>
    %cst_69 = arith.constant dense<0.000000e+00> : vector<2x32xf32>
    %77 = tpu.matmul %74, %76, %cst_69 {dimension_numbers = #tpu.dot_dimension_numbers<[1], [0], [0], [1], [0, 0, 1, 1], [], []>} : vector<2x32xf32>, vector<32x32xf32>, vector<2x32xf32> -> vector<2x32xf32>
    %c2_70 = arith.constant 2 : index
    %c0_71 = arith.constant 0 : index
    %c0_72 = arith.constant 0 : index
    %78 = vector.load %arg6[%c2_70, %c0_71, %c0_72] : memref<7x1x32xf32, #tpu.memory_space<vmem>>, vector<1x1x32xf32>
    %79 = vector.shape_cast %78 : vector<1x1x32xf32> to vector<1x32xf32>
    %80 = vector.broadcast %79 : vector<1x32xf32> to vector<2x32xf32>
    %81 = arith.addf %77, %80 : vector<2x32xf32>
    %c2_73 = arith.constant 2 : index
    %c0_74 = arith.constant 0 : index
    %c0_75 = arith.constant 0 : index
    %82 = vector.load %arg7[%c2_73, %c0_74, %c0_75] : memref<7x2x32xf32, #tpu.memory_space<vmem>>, vector<1x2x32xf32>
    %83 = vector.shape_cast %82 : vector<1x2x32xf32> to vector<2x32xf32>
    %84 = vector.shape_cast %81 : vector<2x32xf32> to vector<1x2x32xf32>
    tpu.vector_store %arg7[%c2_73, %c0_74, %c0_75], %84 {strides = array<i32>} : memref<7x2x32xf32, #tpu.memory_space<vmem>>, vector<1x2x32xf32>,
    %c3 = arith.constant 3 : index
    %c0_76 = arith.constant 0 : index
    %c0_77 = arith.constant 0 : index
    %85 = vector.load %arg1[%c3, %c0_76, %c0_77] : memref<7x32x32xf32, #tpu.memory_space<vmem>>, vector<1x32x32xf32>
    %86 = vector.shape_cast %85 : vector<1x32x32xf32> to vector<32x32xf32>
    %cst_78 = arith.constant dense<0.000000e+00> : vector<2x32xf32>
    %87 = tpu.matmul %0, %86, %cst_78 {dimension_numbers = #tpu.dot_dimension_numbers<[1], [0], [0], [1], [0, 0, 1, 1], [], []>} : vector<2x32xf32>, vector<32x32xf32>, vector<2x32xf32> -> vector<2x32xf32>
    %c3_79 = arith.constant 3 : index
    %c0_80 = arith.constant 0 : index
    %c0_81 = arith.constant 0 : index
    %88 = vector.load %arg2[%c3_79, %c0_80, %c0_81] : memref<7x1x32xf32, #tpu.memory_space<vmem>>, vector<1x1x32xf32>
    %89 = vector.shape_cast %88 : vector<1x1x32xf32> to vector<1x32xf32>
    %90 = vector.broadcast %89 : vector<1x32xf32> to vector<2x32xf32>
    %91 = arith.addf %87, %90 : vector<2x32xf32>
    %cst_82 = arith.constant 0.000000e+00 : f32
    %92 = vector.broadcast %cst_82 : f32 to vector<2x32xf32>
    %93 = arith.maximumf %91, %92 : vector<2x32xf32>
    %c3_83 = arith.constant 3 : index
    %c0_84 = arith.constant 0 : index
    %c0_85 = arith.constant 0 : index
    %94 = vector.load %arg3[%c3_83, %c0_84, %c0_85] : memref<7x32x32xf32, #tpu.memory_space<vmem>>, vector<1x32x32xf32>
    %95 = vector.shape_cast %94 : vector<1x32x32xf32> to vector<32x32xf32>
    %cst_86 = arith.constant dense<0.000000e+00> : vector<2x32xf32>
    %96 = tpu.matmul %93, %95, %cst_86 {dimension_numbers = #tpu.dot_dimension_numbers<[1], [0], [0], [1], [0, 0, 1, 1], [], []>} : vector<2x32xf32>, vector<32x32xf32>, vector<2x32xf32> -> vector<2x32xf32>
    %c3_87 = arith.constant 3 : index
    %c0_88 = arith.constant 0 : index
    %c0_89 = arith.constant 0 : index
    %97 = vector.load %arg4[%c3_87, %c0_88, %c0_89] : memref<7x1x32xf32, #tpu.memory_space<vmem>>, vector<1x1x32xf32>
    %98 = vector.shape_cast %97 : vector<1x1x32xf32> to vector<1x32xf32>
    %99 = vector.broadcast %98 : vector<1x32xf32> to vector<2x32xf32>
    %100 = arith.addf %96, %99 : vector<2x32xf32>
    %cst_90 = arith.constant 0.000000e+00 : f32
    %101 = vector.broadcast %cst_90 : f32 to vector<2x32xf32>
    %102 = arith.maximumf %100, %101 : vector<2x32xf32>
    %c3_91 = arith.constant 3 : index
    %c0_92 = arith.constant 0 : index
    %c0_93 = arith.constant 0 : index
    %103 = vector.load %arg5[%c3_91, %c0_92, %c0_93] : memref<7x32x32xf32, #tpu.memory_space<vmem>>, vector<1x32x32xf32>
    %104 = vector.shape_cast %103 : vector<1x32x32xf32> to vector<32x32xf32>
    %cst_94 = arith.constant dense<0.000000e+00> : vector<2x32xf32>
    %105 = tpu.matmul %102, %104, %cst_94 {dimension_numbers = #tpu.dot_dimension_numbers<[1], [0], [0], [1], [0, 0, 1, 1], [], []>} : vector<2x32xf32>, vector<32x32xf32>, vector<2x32xf32> -> vector<2x32xf32>
    %c3_95 = arith.constant 3 : index
    %c0_96 = arith.constant 0 : index
    %c0_97 = arith.constant 0 : index
    %106 = vector.load %arg6[%c3_95, %c0_96, %c0_97] : memref<7x1x32xf32, #tpu.memory_space<vmem>>, vector<1x1x32xf32>
    %107 = vector.shape_cast %106 : vector<1x1x32xf32> to vector<1x32xf32>
    %108 = vector.broadcast %107 : vector<1x32xf32> to vector<2x32xf32>
    %109 = arith.addf %105, %108 : vector<2x32xf32>
    %c3_98 = arith.constant 3 : index
    %c0_99 = arith.constant 0 : index
    %c0_100 = arith.constant 0 : index
    %110 = vector.load %arg7[%c3_98, %c0_99, %c0_100] : memref<7x2x32xf32, #tpu.memory_space<vmem>>, vector<1x2x32xf32>
    %111 = vector.shape_cast %110 : vector<1x2x32xf32> to vector<2x32xf32>
    %112 = vector.shape_cast %109 : vector<2x32xf32> to vector<1x2x32xf32>
    tpu.vector_store %arg7[%c3_98, %c0_99, %c0_100], %112 {strides = array<i32>} : memref<7x2x32xf32, #tpu.memory_space<vmem>>, vector<1x2x32xf32>,
    %c4 = arith.constant 4 : index
    %c0_101 = arith.constant 0 : index
    %c0_102 = arith.constant 0 : index
    %113 = vector.load %arg1[%c4, %c0_101, %c0_102] : memref<7x32x32xf32, #tpu.memory_space<vmem>>, vector<1x32x32xf32>
    %114 = vector.shape_cast %113 : vector<1x32x32xf32> to vector<32x32xf32>
    %cst_103 = arith.constant dense<0.000000e+00> : vector<2x32xf32>
    %115 = tpu.matmul %0, %114, %cst_103 {dimension_numbers = #tpu.dot_dimension_numbers<[1], [0], [0], [1], [0, 0, 1, 1], [], []>} : vector<2x32xf32>, vector<32x32xf32>, vector<2x32xf32> -> vector<2x32xf32>
    %c4_104 = arith.constant 4 : index
    %c0_105 = arith.constant 0 : index
    %c0_106 = arith.constant 0 : index
    %116 = vector.load %arg2[%c4_104, %c0_105, %c0_106] : memref<7x1x32xf32, #tpu.memory_space<vmem>>, vector<1x1x32xf32>
    %117 = vector.shape_cast %116 : vector<1x1x32xf32> to vector<1x32xf32>
    %118 = vector.broadcast %117 : vector<1x32xf32> to vector<2x32xf32>
    %119 = arith.addf %115, %118 : vector<2x32xf32>
    %cst_107 = arith.constant 0.000000e+00 : f32
    %120 = vector.broadcast %cst_107 : f32 to vector<2x32xf32>
    %121 = arith.maximumf %119, %120 : vector<2x32xf32>
    %c4_108 = arith.constant 4 : index
    %c0_109 = arith.constant 0 : index
    %c0_110 = arith.constant 0 : index
    %122 = vector.load %arg3[%c4_108, %c0_109, %c0_110] : memref<7x32x32xf32, #tpu.memory_space<vmem>>, vector<1x32x32xf32>
    %123 = vector.shape_cast %122 : vector<1x32x32xf32> to vector<32x32xf32>
    %cst_111 = arith.constant dense<0.000000e+00> : vector<2x32xf32>
    %124 = tpu.matmul %121, %123, %cst_111 {dimension_numbers = #tpu.dot_dimension_numbers<[1], [0], [0], [1], [0, 0, 1, 1], [], []>} : vector<2x32xf32>, vector<32x32xf32>, vector<2x32xf32> -> vector<2x32xf32>
    %c4_112 = arith.constant 4 : index
    %c0_113 = arith.constant 0 : index
    %c0_114 = arith.constant 0 : index
    %125 = vector.load %arg4[%c4_112, %c0_113, %c0_114] : memref<7x1x32xf32, #tpu.memory_space<vmem>>, vector<1x1x32xf32>
    %126 = vector.shape_cast %125 : vector<1x1x32xf32> to vector<1x32xf32>
    %127 = vector.broadcast %126 : vector<1x32xf32> to vector<2x32xf32>
    %128 = arith.addf %124, %127 : vector<2x32xf32>
    %cst_115 = arith.constant 0.000000e+00 : f32
    %129 = vector.broadcast %cst_115 : f32 to vector<2x32xf32>
    %130 = arith.maximumf %128, %129 : vector<2x32xf32>
    %c4_116 = arith.constant 4 : index
    %c0_117 = arith.constant 0 : index
    %c0_118 = arith.constant 0 : index
    %131 = vector.load %arg5[%c4_116, %c0_117, %c0_118] : memref<7x32x32xf32, #tpu.memory_space<vmem>>, vector<1x32x32xf32>
    %132 = vector.shape_cast %131 : vector<1x32x32xf32> to vector<32x32xf32>
    %cst_119 = arith.constant dense<0.000000e+00> : vector<2x32xf32>
    %133 = tpu.matmul %130, %132, %cst_119 {dimension_numbers = #tpu.dot_dimension_numbers<[1], [0], [0], [1], [0, 0, 1, 1], [], []>} : vector<2x32xf32>, vector<32x32xf32>, vector<2x32xf32> -> vector<2x32xf32>
    %c4_120 = arith.constant 4 : index
    %c0_121 = arith.constant 0 : index
    %c0_122 = arith.constant 0 : index
    %134 = vector.load %arg6[%c4_120, %c0_121, %c0_122] : memref<7x1x32xf32, #tpu.memory_space<vmem>>, vector<1x1x32xf32>
    %135 = vector.shape_cast %134 : vector<1x1x32xf32> to vector<1x32xf32>
    %136 = vector.broadcast %135 : vector<1x32xf32> to vector<2x32xf32>
    %137 = arith.addf %133, %136 : vector<2x32xf32>
    %c4_123 = arith.constant 4 : index
    %c0_124 = arith.constant 0 : index
    %c0_125 = arith.constant 0 : index
    %138 = vector.load %arg7[%c4_123, %c0_124, %c0_125] : memref<7x2x32xf32, #tpu.memory_space<vmem>>, vector<1x2x32xf32>
    %139 = vector.shape_cast %138 : vector<1x2x32xf32> to vector<2x32xf32>
    %140 = vector.shape_cast %137 : vector<2x32xf32> to vector<1x2x32xf32>
    tpu.vector_store %arg7[%c4_123, %c0_124, %c0_125], %140 {strides = array<i32>} : memref<7x2x32xf32, #tpu.memory_space<vmem>>, vector<1x2x32xf32>,
    %c5 = arith.constant 5 : index
    %c0_126 = arith.constant 0 : index
    %c0_127 = arith.constant 0 : index
    %141 = vector.load %arg1[%c5, %c0_126, %c0_127] : memref<7x32x32xf32, #tpu.memory_space<vmem>>, vector<1x32x32xf32>
    %142 = vector.shape_cast %141 : vector<1x32x32xf32> to vector<32x32xf32>
    %cst_128 = arith.constant dense<0.000000e+00> : vector<2x32xf32>
    %143 = tpu.matmul %0, %142, %cst_128 {dimension_numbers = #tpu.dot_dimension_numbers<[1], [0], [0], [1], [0, 0, 1, 1], [], []>} : vector<2x32xf32>, vector<32x32xf32>, vector<2x32xf32> -> vector<2x32xf32>
    %c5_129 = arith.constant 5 : index
    %c0_130 = arith.constant 0 : index
    %c0_131 = arith.constant 0 : index
    %144 = vector.load %arg2[%c5_129, %c0_130, %c0_131] : memref<7x1x32xf32, #tpu.memory_space<vmem>>, vector<1x1x32xf32>
    %145 = vector.shape_cast %144 : vector<1x1x32xf32> to vector<1x32xf32>
    %146 = vector.broadcast %145 : vector<1x32xf32> to vector<2x32xf32>
    %147 = arith.addf %143, %146 : vector<2x32xf32>
    %cst_132 = arith.constant 0.000000e+00 : f32
    %148 = vector.broadcast %cst_132 : f32 to vector<2x32xf32>
    %149 = arith.maximumf %147, %148 : vector<2x32xf32>
    %c5_133 = arith.constant 5 : index
    %c0_134 = arith.constant 0 : index
    %c0_135 = arith.constant 0 : index
    %150 = vector.load %arg3[%c5_133, %c0_134, %c0_135] : memref<7x32x32xf32, #tpu.memory_space<vmem>>, vector<1x32x32xf32>
    %151 = vector.shape_cast %150 : vector<1x32x32xf32> to vector<32x32xf32>
    %cst_136 = arith.constant dense<0.000000e+00> : vector<2x32xf32>
    %152 = tpu.matmul %149, %151, %cst_136 {dimension_numbers = #tpu.dot_dimension_numbers<[1], [0], [0], [1], [0, 0, 1, 1], [], []>} : vector<2x32xf32>, vector<32x32xf32>, vector<2x32xf32> -> vector<2x32xf32>
    %c5_137 = arith.constant 5 : index
    %c0_138 = arith.constant 0 : index
    %c0_139 = arith.constant 0 : index
    %153 = vector.load %arg4[%c5_137, %c0_138, %c0_139] : memref<7x1x32xf32, #tpu.memory_space<vmem>>, vector<1x1x32xf32>
    %154 = vector.shape_cast %153 : vector<1x1x32xf32> to vector<1x32xf32>
    %155 = vector.broadcast %154 : vector<1x32xf32> to vector<2x32xf32>
    %156 = arith.addf %152, %155 : vector<2x32xf32>
    %cst_140 = arith.constant 0.000000e+00 : f32
    %157 = vector.broadcast %cst_140 : f32 to vector<2x32xf32>
    %158 = arith.maximumf %156, %157 : vector<2x32xf32>
    %c5_141 = arith.constant 5 : index
    %c0_142 = arith.constant 0 : index
    %c0_143 = arith.constant 0 : index
    %159 = vector.load %arg5[%c5_141, %c0_142, %c0_143] : memref<7x32x32xf32, #tpu.memory_space<vmem>>, vector<1x32x32xf32>
    %160 = vector.shape_cast %159 : vector<1x32x32xf32> to vector<32x32xf32>
    %cst_144 = arith.constant dense<0.000000e+00> : vector<2x32xf32>
    %161 = tpu.matmul %158, %160, %cst_144 {dimension_numbers = #tpu.dot_dimension_numbers<[1], [0], [0], [1], [0, 0, 1, 1], [], []>} : vector<2x32xf32>, vector<32x32xf32>, vector<2x32xf32> -> vector<2x32xf32>
    %c5_145 = arith.constant 5 : index
    %c0_146 = arith.constant 0 : index
    %c0_147 = arith.constant 0 : index
    %162 = vector.load %arg6[%c5_145, %c0_146, %c0_147] : memref<7x1x32xf32, #tpu.memory_space<vmem>>, vector<1x1x32xf32>
    %163 = vector.shape_cast %162 : vector<1x1x32xf32> to vector<1x32xf32>
    %164 = vector.broadcast %163 : vector<1x32xf32> to vector<2x32xf32>
    %165 = arith.addf %161, %164 : vector<2x32xf32>
    %c5_148 = arith.constant 5 : index
    %c0_149 = arith.constant 0 : index
    %c0_150 = arith.constant 0 : index
    %166 = vector.load %arg7[%c5_148, %c0_149, %c0_150] : memref<7x2x32xf32, #tpu.memory_space<vmem>>, vector<1x2x32xf32>
    %167 = vector.shape_cast %166 : vector<1x2x32xf32> to vector<2x32xf32>
    %168 = vector.shape_cast %165 : vector<2x32xf32> to vector<1x2x32xf32>
    tpu.vector_store %arg7[%c5_148, %c0_149, %c0_150], %168 {strides = array<i32>} : memref<7x2x32xf32, #tpu.memory_space<vmem>>, vector<1x2x32xf32>,
    %c6 = arith.constant 6 : index
    %c0_151 = arith.constant 0 : index
    %c0_152 = arith.constant 0 : index
    %169 = vector.load %arg1[%c6, %c0_151, %c0_152] : memref<7x32x32xf32, #tpu.memory_space<vmem>>, vector<1x32x32xf32>
    %170 = vector.shape_cast %169 : vector<1x32x32xf32> to vector<32x32xf32>
    %cst_153 = arith.constant dense<0.000000e+00> : vector<2x32xf32>
    %171 = tpu.matmul %0, %170, %cst_153 {dimension_numbers = #tpu.dot_dimension_numbers<[1], [0], [0], [1], [0, 0, 1, 1], [], []>} : vector<2x32xf32>, vector<32x32xf32>, vector<2x32xf32> -> vector<2x32xf32>
    %c6_154 = arith.constant 6 : index
    %c0_155 = arith.constant 0 : index
    %c0_156 = arith.constant 0 : index
    %172 = vector.load %arg2[%c6_154, %c0_155, %c0_156] : memref<7x1x32xf32, #tpu.memory_space<vmem>>, vector<1x1x32xf32>
    %173 = vector.shape_cast %172 : vector<1x1x32xf32> to vector<1x32xf32>
    %174 = vector.broadcast %173 : vector<1x32xf32> to vector<2x32xf32>
    %175 = arith.addf %171, %174 : vector<2x32xf32>
    %cst_157 = arith.constant 0.000000e+00 : f32
    %176 = vector.broadcast %cst_157 : f32 to vector<2x32xf32>
    %177 = arith.maximumf %175, %176 : vector<2x32xf32>
    %c6_158 = arith.constant 6 : index
    %c0_159 = arith.constant 0 : index
    %c0_160 = arith.constant 0 : index
    %178 = vector.load %arg3[%c6_158, %c0_159, %c0_160] : memref<7x32x32xf32, #tpu.memory_space<vmem>>, vector<1x32x32xf32>
    %179 = vector.shape_cast %178 : vector<1x32x32xf32> to vector<32x32xf32>
    %cst_161 = arith.constant dense<0.000000e+00> : vector<2x32xf32>
    %180 = tpu.matmul %177, %179, %cst_161 {dimension_numbers = #tpu.dot_dimension_numbers<[1], [0], [0], [1], [0, 0, 1, 1], [], []>} : vector<2x32xf32>, vector<32x32xf32>, vector<2x32xf32> -> vector<2x32xf32>
    %c6_162 = arith.constant 6 : index
    %c0_163 = arith.constant 0 : index
    %c0_164 = arith.constant 0 : index
    %181 = vector.load %arg4[%c6_162, %c0_163, %c0_164] : memref<7x1x32xf32, #tpu.memory_space<vmem>>, vector<1x1x32xf32>
    %182 = vector.shape_cast %181 : vector<1x1x32xf32> to vector<1x32xf32>
    %183 = vector.broadcast %182 : vector<1x32xf32> to vector<2x32xf32>
    %184 = arith.addf %180, %183 : vector<2x32xf32>
    %cst_165 = arith.constant 0.000000e+00 : f32
    %185 = vector.broadcast %cst_165 : f32 to vector<2x32xf32>
    %186 = arith.maximumf %184, %185 : vector<2x32xf32>
    %c6_166 = arith.constant 6 : index
    %c0_167 = arith.constant 0 : index
    %c0_168 = arith.constant 0 : index
    %187 = vector.load %arg5[%c6_166, %c0_167, %c0_168] : memref<7x32x32xf32, #tpu.memory_space<vmem>>, vector<1x32x32xf32>
    %188 = vector.shape_cast %187 : vector<1x32x32xf32> to vector<32x32xf32>
    %cst_169 = arith.constant dense<0.000000e+00> : vector<2x32xf32>
    %189 = tpu.matmul %186, %188, %cst_169 {dimension_numbers = #tpu.dot_dimension_numbers<[1], [0], [0], [1], [0, 0, 1, 1], [], []>} : vector<2x32xf32>, vector<32x32xf32>, vector<2x32xf32> -> vector<2x32xf32>
    %c6_170 = arith.constant 6 : index
    %c0_171 = arith.constant 0 : index
    %c0_172 = arith.constant 0 : index
    %190 = vector.load %arg6[%c6_170, %c0_171, %c0_172] : memref<7x1x32xf32, #tpu.memory_space<vmem>>, vector<1x1x32xf32>
    %191 = vector.shape_cast %190 : vector<1x1x32xf32> to vector<1x32xf32>
    %192 = vector.broadcast %191 : vector<1x32xf32> to vector<2x32xf32>
    %193 = arith.addf %189, %192 : vector<2x32xf32>
    %c6_173 = arith.constant 6 : index
    %c0_174 = arith.constant 0 : index
    %c0_175 = arith.constant 0 : index
    %194 = vector.load %arg7[%c6_173, %c0_174, %c0_175] : memref<7x2x32xf32, #tpu.memory_space<vmem>>, vector<1x2x32xf32>
    %195 = vector.shape_cast %194 : vector<1x2x32xf32> to vector<2x32xf32>
    %196 = vector.shape_cast %193 : vector<2x32xf32> to vector<1x2x32xf32>
    tpu.vector_store %arg7[%c6_173, %c0_174, %c0_175], %196 {strides = array<i32>} : memref<7x2x32xf32, #tpu.memory_space<vmem>>, vector<1x2x32xf32>,
    return
  }
}

module attributes {stable_mosaic.version = 11 : i64} {
  func.func @_stage_kernel(%arg0: i32, %arg1: memref<8x256xf32, #tpu.memory_space<vmem>>, %arg2: memref<9x256x256xf32, #tpu.memory_space<vmem>>, %arg3: memref<1x36x8x8xf32, #tpu.memory_space<vmem>>, %arg4: memref<1x4x8x1xf32, #tpu.memory_space<vmem>>, %arg5: memref<1x4x8x1xf32, #tpu.memory_space<vmem>>, %arg6: memref<1x4x8x1xf32, #tpu.memory_space<vmem>>, %arg7: memref<1x8x1xf32, #tpu.memory_space<vmem>>, %arg8: memref<1x8x256xf32, #tpu.memory_space<vmem>>) attributes {dimension_semantics = [#tpu.dimension_semantics<parallel>], iteration_bounds = array<i64: 3>, scalar_prefetch = 0 : i64, scratch_operands = 0 : i64, tpu.core_type = #tpu.core_type<tc>, window_params = [{pipeline_mode = #tpu.pipeline_mode<synchronous>, transform_indices = @transform_0, window_bounds = array<i64: 8, 256>}, {pipeline_mode = #tpu.pipeline_mode<synchronous>, transform_indices = @transform_1, window_bounds = array<i64: 9, 256, 256>}, {transform_indices = @transform_2, window_bounds = array<i64: 1, 36, 8, 8>}, {transform_indices = @transform_3, window_bounds = array<i64: 1, 4, 8, 1>}, {transform_indices = @transform_4, window_bounds = array<i64: 1, 4, 8, 1>}, {transform_indices = @transform_5, window_bounds = array<i64: 1, 4, 8, 1>}, {transform_indices = @transform_6, window_bounds = array<i64: 1, 8, 1>}, {transform_indices = @transform_7, window_bounds = array<i64: 1, 8, 256>}]} {
    %c0 = arith.constant 0 : index
    %c0_0 = arith.constant 0 : index
    %0 = vector.load %arg1[%c0, %c0_0] : memref<8x256xf32, #tpu.memory_space<vmem>>, vector<8x256xf32>
    %cst = arith.constant 0.000000e+00 : f32
    %1 = vector.broadcast %cst : f32 to vector<8x256xf32>
    %c0_1 = arith.constant 0 : index
    %c0_2 = arith.constant 0 : index
    %c0_3 = arith.constant 0 : index
    %c0_4 = arith.constant 0 : index
    %2 = vector.load %arg3[%c0_1, %c0_2, %c0_3, %c0_4] : memref<1x36x8x8xf32, #tpu.memory_space<vmem>>, vector<1x1x8x8xf32>
    %3 = vector.shape_cast %2 : vector<1x1x8x8xf32> to vector<8x8xf32>
    %cst_5 = arith.constant dense<0.000000e+00> : vector<8x256xf32>
    %4 = tpu.matmul %3, %0, %cst_5 {dimension_numbers = #tpu.dot_dimension_numbers<[1], [0], [0], [1], [0, 0, 1, 1], [], []>} : vector<8x8xf32>, vector<8x256xf32>, vector<8x256xf32> -> vector<8x256xf32>
    %c0_6 = arith.constant 0 : index
    %c0_7 = arith.constant 0 : index
    %c0_8 = arith.constant 0 : index
    %5 = vector.load %arg2[%c0_6, %c0_7, %c0_8] : memref<9x256x256xf32, #tpu.memory_space<vmem>>, vector<1x256x256xf32>
    %6 = vector.shape_cast %5 : vector<1x256x256xf32> to vector<256x256xf32>
    %cst_9 = arith.constant dense<0.000000e+00> : vector<8x256xf32>
    %7 = tpu.matmul %4, %6, %cst_9 {dimension_numbers = #tpu.dot_dimension_numbers<[1], [0], [0], [1], [0, 0, 1, 1], [], []>} : vector<8x256xf32>, vector<256x256xf32>, vector<8x256xf32> -> vector<8x256xf32>
    %8 = arith.addf %1, %7 : vector<8x256xf32>
    %c0_10 = arith.constant 0 : index
    %c1 = arith.constant 1 : index
    %c0_11 = arith.constant 0 : index
    %c0_12 = arith.constant 0 : index
    %9 = vector.load %arg3[%c0_10, %c1, %c0_11, %c0_12] : memref<1x36x8x8xf32, #tpu.memory_space<vmem>>, vector<1x1x8x8xf32>
    %10 = vector.shape_cast %9 : vector<1x1x8x8xf32> to vector<8x8xf32>
    %cst_13 = arith.constant dense<0.000000e+00> : vector<8x256xf32>
    %11 = tpu.matmul %10, %0, %cst_13 {dimension_numbers = #tpu.dot_dimension_numbers<[1], [0], [0], [1], [0, 0, 1, 1], [], []>} : vector<8x8xf32>, vector<8x256xf32>, vector<8x256xf32> -> vector<8x256xf32>
    %c1_14 = arith.constant 1 : index
    %c0_15 = arith.constant 0 : index
    %c0_16 = arith.constant 0 : index
    %12 = vector.load %arg2[%c1_14, %c0_15, %c0_16] : memref<9x256x256xf32, #tpu.memory_space<vmem>>, vector<1x256x256xf32>
    %13 = vector.shape_cast %12 : vector<1x256x256xf32> to vector<256x256xf32>
    %cst_17 = arith.constant dense<0.000000e+00> : vector<8x256xf32>
    %14 = tpu.matmul %11, %13, %cst_17 {dimension_numbers = #tpu.dot_dimension_numbers<[1], [0], [0], [1], [0, 0, 1, 1], [], []>} : vector<8x256xf32>, vector<256x256xf32>, vector<8x256xf32> -> vector<8x256xf32>
    %15 = arith.addf %8, %14 : vector<8x256xf32>
    %c0_18 = arith.constant 0 : index
    %c2 = arith.constant 2 : index
    %c0_19 = arith.constant 0 : index
    %c0_20 = arith.constant 0 : index
    %16 = vector.load %arg3[%c0_18, %c2, %c0_19, %c0_20] : memref<1x36x8x8xf32, #tpu.memory_space<vmem>>, vector<1x1x8x8xf32>
    %17 = vector.shape_cast %16 : vector<1x1x8x8xf32> to vector<8x8xf32>
    %cst_21 = arith.constant dense<0.000000e+00> : vector<8x256xf32>
    %18 = tpu.matmul %17, %0, %cst_21 {dimension_numbers = #tpu.dot_dimension_numbers<[1], [0], [0], [1], [0, 0, 1, 1], [], []>} : vector<8x8xf32>, vector<8x256xf32>, vector<8x256xf32> -> vector<8x256xf32>
    %c2_22 = arith.constant 2 : index
    %c0_23 = arith.constant 0 : index
    %c0_24 = arith.constant 0 : index
    %19 = vector.load %arg2[%c2_22, %c0_23, %c0_24] : memref<9x256x256xf32, #tpu.memory_space<vmem>>, vector<1x256x256xf32>
    %20 = vector.shape_cast %19 : vector<1x256x256xf32> to vector<256x256xf32>
    %cst_25 = arith.constant dense<0.000000e+00> : vector<8x256xf32>
    %21 = tpu.matmul %18, %20, %cst_25 {dimension_numbers = #tpu.dot_dimension_numbers<[1], [0], [0], [1], [0, 0, 1, 1], [], []>} : vector<8x256xf32>, vector<256x256xf32>, vector<8x256xf32> -> vector<8x256xf32>
    %22 = arith.addf %15, %21 : vector<8x256xf32>
    %c0_26 = arith.constant 0 : index
    %c3 = arith.constant 3 : index
    %c0_27 = arith.constant 0 : index
    %c0_28 = arith.constant 0 : index
    %23 = vector.load %arg3[%c0_26, %c3, %c0_27, %c0_28] : memref<1x36x8x8xf32, #tpu.memory_space<vmem>>, vector<1x1x8x8xf32>
    %24 = vector.shape_cast %23 : vector<1x1x8x8xf32> to vector<8x8xf32>
    %cst_29 = arith.constant dense<0.000000e+00> : vector<8x256xf32>
    %25 = tpu.matmul %24, %0, %cst_29 {dimension_numbers = #tpu.dot_dimension_numbers<[1], [0], [0], [1], [0, 0, 1, 1], [], []>} : vector<8x8xf32>, vector<8x256xf32>, vector<8x256xf32> -> vector<8x256xf32>
    %c3_30 = arith.constant 3 : index
    %c0_31 = arith.constant 0 : index
    %c0_32 = arith.constant 0 : index
    %26 = vector.load %arg2[%c3_30, %c0_31, %c0_32] : memref<9x256x256xf32, #tpu.memory_space<vmem>>, vector<1x256x256xf32>
    %27 = vector.shape_cast %26 : vector<1x256x256xf32> to vector<256x256xf32>
    %cst_33 = arith.constant dense<0.000000e+00> : vector<8x256xf32>
    %28 = tpu.matmul %25, %27, %cst_33 {dimension_numbers = #tpu.dot_dimension_numbers<[1], [0], [0], [1], [0, 0, 1, 1], [], []>} : vector<8x256xf32>, vector<256x256xf32>, vector<8x256xf32> -> vector<8x256xf32>
    %29 = arith.addf %22, %28 : vector<8x256xf32>
    %c0_34 = arith.constant 0 : index
    %c4 = arith.constant 4 : index
    %c0_35 = arith.constant 0 : index
    %c0_36 = arith.constant 0 : index
    %30 = vector.load %arg3[%c0_34, %c4, %c0_35, %c0_36] : memref<1x36x8x8xf32, #tpu.memory_space<vmem>>, vector<1x1x8x8xf32>
    %31 = vector.shape_cast %30 : vector<1x1x8x8xf32> to vector<8x8xf32>
    %cst_37 = arith.constant dense<0.000000e+00> : vector<8x256xf32>
    %32 = tpu.matmul %31, %0, %cst_37 {dimension_numbers = #tpu.dot_dimension_numbers<[1], [0], [0], [1], [0, 0, 1, 1], [], []>} : vector<8x8xf32>, vector<8x256xf32>, vector<8x256xf32> -> vector<8x256xf32>
    %c4_38 = arith.constant 4 : index
    %c0_39 = arith.constant 0 : index
    %c0_40 = arith.constant 0 : index
    %33 = vector.load %arg2[%c4_38, %c0_39, %c0_40] : memref<9x256x256xf32, #tpu.memory_space<vmem>>, vector<1x256x256xf32>
    %34 = vector.shape_cast %33 : vector<1x256x256xf32> to vector<256x256xf32>
    %cst_41 = arith.constant dense<0.000000e+00> : vector<8x256xf32>
    %35 = tpu.matmul %32, %34, %cst_41 {dimension_numbers = #tpu.dot_dimension_numbers<[1], [0], [0], [1], [0, 0, 1, 1], [], []>} : vector<8x256xf32>, vector<256x256xf32>, vector<8x256xf32> -> vector<8x256xf32>
    %36 = arith.addf %29, %35 : vector<8x256xf32>
    %c0_42 = arith.constant 0 : index
    %c5 = arith.constant 5 : index
    %c0_43 = arith.constant 0 : index
    %c0_44 = arith.constant 0 : index
    %37 = vector.load %arg3[%c0_42, %c5, %c0_43, %c0_44] : memref<1x36x8x8xf32, #tpu.memory_space<vmem>>, vector<1x1x8x8xf32>
    %38 = vector.shape_cast %37 : vector<1x1x8x8xf32> to vector<8x8xf32>
    %cst_45 = arith.constant dense<0.000000e+00> : vector<8x256xf32>
    %39 = tpu.matmul %38, %0, %cst_45 {dimension_numbers = #tpu.dot_dimension_numbers<[1], [0], [0], [1], [0, 0, 1, 1], [], []>} : vector<8x8xf32>, vector<8x256xf32>, vector<8x256xf32> -> vector<8x256xf32>
    %c5_46 = arith.constant 5 : index
    %c0_47 = arith.constant 0 : index
    %c0_48 = arith.constant 0 : index
    %40 = vector.load %arg2[%c5_46, %c0_47, %c0_48] : memref<9x256x256xf32, #tpu.memory_space<vmem>>, vector<1x256x256xf32>
    %41 = vector.shape_cast %40 : vector<1x256x256xf32> to vector<256x256xf32>
    %cst_49 = arith.constant dense<0.000000e+00> : vector<8x256xf32>
    %42 = tpu.matmul %39, %41, %cst_49 {dimension_numbers = #tpu.dot_dimension_numbers<[1], [0], [0], [1], [0, 0, 1, 1], [], []>} : vector<8x256xf32>, vector<256x256xf32>, vector<8x256xf32> -> vector<8x256xf32>
    %43 = arith.addf %36, %42 : vector<8x256xf32>
    %c0_50 = arith.constant 0 : index
    %c6 = arith.constant 6 : index
    %c0_51 = arith.constant 0 : index
    %c0_52 = arith.constant 0 : index
    %44 = vector.load %arg3[%c0_50, %c6, %c0_51, %c0_52] : memref<1x36x8x8xf32, #tpu.memory_space<vmem>>, vector<1x1x8x8xf32>
    %45 = vector.shape_cast %44 : vector<1x1x8x8xf32> to vector<8x8xf32>
    %cst_53 = arith.constant dense<0.000000e+00> : vector<8x256xf32>
    %46 = tpu.matmul %45, %0, %cst_53 {dimension_numbers = #tpu.dot_dimension_numbers<[1], [0], [0], [1], [0, 0, 1, 1], [], []>} : vector<8x8xf32>, vector<8x256xf32>, vector<8x256xf32> -> vector<8x256xf32>
    %c6_54 = arith.constant 6 : index
    %c0_55 = arith.constant 0 : index
    %c0_56 = arith.constant 0 : index
    %47 = vector.load %arg2[%c6_54, %c0_55, %c0_56] : memref<9x256x256xf32, #tpu.memory_space<vmem>>, vector<1x256x256xf32>
    %48 = vector.shape_cast %47 : vector<1x256x256xf32> to vector<256x256xf32>
    %cst_57 = arith.constant dense<0.000000e+00> : vector<8x256xf32>
    %49 = tpu.matmul %46, %48, %cst_57 {dimension_numbers = #tpu.dot_dimension_numbers<[1], [0], [0], [1], [0, 0, 1, 1], [], []>} : vector<8x256xf32>, vector<256x256xf32>, vector<8x256xf32> -> vector<8x256xf32>
    %50 = arith.addf %43, %49 : vector<8x256xf32>
    %c0_58 = arith.constant 0 : index
    %c7 = arith.constant 7 : index
    %c0_59 = arith.constant 0 : index
    %c0_60 = arith.constant 0 : index
    %51 = vector.load %arg3[%c0_58, %c7, %c0_59, %c0_60] : memref<1x36x8x8xf32, #tpu.memory_space<vmem>>, vector<1x1x8x8xf32>
    %52 = vector.shape_cast %51 : vector<1x1x8x8xf32> to vector<8x8xf32>
    %cst_61 = arith.constant dense<0.000000e+00> : vector<8x256xf32>
    %53 = tpu.matmul %52, %0, %cst_61 {dimension_numbers = #tpu.dot_dimension_numbers<[1], [0], [0], [1], [0, 0, 1, 1], [], []>} : vector<8x8xf32>, vector<8x256xf32>, vector<8x256xf32> -> vector<8x256xf32>
    %c7_62 = arith.constant 7 : index
    %c0_63 = arith.constant 0 : index
    %c0_64 = arith.constant 0 : index
    %54 = vector.load %arg2[%c7_62, %c0_63, %c0_64] : memref<9x256x256xf32, #tpu.memory_space<vmem>>, vector<1x256x256xf32>
    %55 = vector.shape_cast %54 : vector<1x256x256xf32> to vector<256x256xf32>
    %cst_65 = arith.constant dense<0.000000e+00> : vector<8x256xf32>
    %56 = tpu.matmul %53, %55, %cst_65 {dimension_numbers = #tpu.dot_dimension_numbers<[1], [0], [0], [1], [0, 0, 1, 1], [], []>} : vector<8x256xf32>, vector<256x256xf32>, vector<8x256xf32> -> vector<8x256xf32>
    %57 = arith.addf %50, %56 : vector<8x256xf32>
    %c0_66 = arith.constant 0 : index
    %c8 = arith.constant 8 : index
    %c0_67 = arith.constant 0 : index
    %c0_68 = arith.constant 0 : index
    %58 = vector.load %arg3[%c0_66, %c8, %c0_67, %c0_68] : memref<1x36x8x8xf32, #tpu.memory_space<vmem>>, vector<1x1x8x8xf32>
    %59 = vector.shape_cast %58 : vector<1x1x8x8xf32> to vector<8x8xf32>
    %cst_69 = arith.constant dense<0.000000e+00> : vector<8x256xf32>
    %60 = tpu.matmul %59, %0, %cst_69 {dimension_numbers = #tpu.dot_dimension_numbers<[1], [0], [0], [1], [0, 0, 1, 1], [], []>} : vector<8x8xf32>, vector<8x256xf32>, vector<8x256xf32> -> vector<8x256xf32>
    %c8_70 = arith.constant 8 : index
    %c0_71 = arith.constant 0 : index
    %c0_72 = arith.constant 0 : index
    %61 = vector.load %arg2[%c8_70, %c0_71, %c0_72] : memref<9x256x256xf32, #tpu.memory_space<vmem>>, vector<1x256x256xf32>
    %62 = vector.shape_cast %61 : vector<1x256x256xf32> to vector<256x256xf32>
    %cst_73 = arith.constant dense<0.000000e+00> : vector<8x256xf32>
    %63 = tpu.matmul %60, %62, %cst_73 {dimension_numbers = #tpu.dot_dimension_numbers<[1], [0], [0], [1], [0, 0, 1, 1], [], []>} : vector<8x256xf32>, vector<256x256xf32>, vector<8x256xf32> -> vector<8x256xf32>
    %64 = arith.addf %57, %63 : vector<8x256xf32>
    %c0_74 = arith.constant 0 : index
    %c0_75 = arith.constant 0 : index
    %c0_76 = arith.constant 0 : index
    %c0_77 = arith.constant 0 : index
    %65 = vector.load %arg4[%c0_74, %c0_75, %c0_76, %c0_77] : memref<1x4x8x1xf32, #tpu.memory_space<vmem>>, vector<1x1x8x1xf32>
    %66 = vector.shape_cast %65 : vector<1x1x8x1xf32> to vector<8x1xf32>
    %67 = vector.broadcast %66 : vector<8x1xf32> to vector<8x256xf32>
    %68 = arith.addf %64, %67 : vector<8x256xf32>
    %cst_78 = arith.constant dense<0.000000e+00> : vector<8xf32>
    %69 = vector.multi_reduction <add>, %68, %cst_78 [1] : vector<8x256xf32> to vector<8xf32>
    %70 = vector.shape_cast %69 : vector<8xf32> to vector<8x1xf32>
    %cst_79 = arith.constant 2.560000e+02 : f32
    %71 = vector.broadcast %cst_79 : f32 to vector<8x1xf32>
    %72 = arith.divf %70, %71 : vector<8x1xf32>
    %73 = vector.broadcast %72 : vector<8x1xf32> to vector<8x256xf32>
    %74 = arith.subf %68, %73 : vector<8x256xf32>
    %75 = arith.mulf %74, %74 : vector<8x256xf32>
    %cst_80 = arith.constant dense<0.000000e+00> : vector<8xf32>
    %76 = vector.multi_reduction <add>, %75, %cst_80 [1] : vector<8x256xf32> to vector<8xf32>
    %77 = vector.shape_cast %76 : vector<8xf32> to vector<8x1xf32>
    %cst_81 = arith.constant 2.560000e+02 : f32
    %78 = vector.broadcast %cst_81 : f32 to vector<8x1xf32>
    %79 = arith.divf %77, %78 : vector<8x1xf32>
    %c0_82 = arith.constant 0 : index
    %c0_83 = arith.constant 0 : index
    %c0_84 = arith.constant 0 : index
    %c0_85 = arith.constant 0 : index
    %80 = vector.load %arg5[%c0_82, %c0_83, %c0_84, %c0_85] : memref<1x4x8x1xf32, #tpu.memory_space<vmem>>, vector<1x1x8x1xf32>
    %81 = vector.shape_cast %80 : vector<1x1x8x1xf32> to vector<8x1xf32>
    %82 = vector.broadcast %72 : vector<8x1xf32> to vector<8x256xf32>
    %83 = arith.subf %68, %82 : vector<8x256xf32>
    %cst_86 = arith.constant 9.99999974E-6 : f32
    %84 = vector.broadcast %cst_86 : f32 to vector<8x1xf32>
    %85 = arith.addf %79, %84 : vector<8x1xf32>
    %86 = math.rsqrt %85 : vector<8x1xf32>
    %87 = vector.broadcast %86 : vector<8x1xf32> to vector<8x256xf32>
    %88 = arith.mulf %83, %87 : vector<8x256xf32>
    %89 = vector.broadcast %81 : vector<8x1xf32> to vector<8x256xf32>
    %90 = arith.mulf %89, %88 : vector<8x256xf32>
    %c0_87 = arith.constant 0 : index
    %c0_88 = arith.constant 0 : index
    %c0_89 = arith.constant 0 : index
    %c0_90 = arith.constant 0 : index
    %91 = vector.load %arg6[%c0_87, %c0_88, %c0_89, %c0_90] : memref<1x4x8x1xf32, #tpu.memory_space<vmem>>, vector<1x1x8x1xf32>
    %92 = vector.shape_cast %91 : vector<1x1x8x1xf32> to vector<8x1xf32>
    %93 = vector.broadcast %92 : vector<8x1xf32> to vector<8x256xf32>
    %94 = arith.addf %90, %93 : vector<8x256xf32>
    %cst_91 = arith.constant 0.000000e+00 : f32
    %95 = vector.broadcast %cst_91 : f32 to vector<8x256xf32>
    %96 = arith.maximumf %94, %95 : vector<8x256xf32>
    %cst_92 = arith.constant 0.000000e+00 : f32
    %97 = vector.broadcast %cst_92 : f32 to vector<8x256xf32>
    %c0_93 = arith.constant 0 : index
    %c9 = arith.constant 9 : index
    %c0_94 = arith.constant 0 : index
    %c0_95 = arith.constant 0 : index
    %98 = vector.load %arg3[%c0_93, %c9, %c0_94, %c0_95] : memref<1x36x8x8xf32, #tpu.memory_space<vmem>>, vector<1x1x8x8xf32>
    %99 = vector.shape_cast %98 : vector<1x1x8x8xf32> to vector<8x8xf32>
    %cst_96 = arith.constant dense<0.000000e+00> : vector<8x256xf32>
    %100 = tpu.matmul %99, %96, %cst_96 {dimension_numbers = #tpu.dot_dimension_numbers<[1], [0], [0], [1], [0, 0, 1, 1], [], []>} : vector<8x8xf32>, vector<8x256xf32>, vector<8x256xf32> -> vector<8x256xf32>
    %c0_97 = arith.constant 0 : index
    %c0_98 = arith.constant 0 : index
    %c0_99 = arith.constant 0 : index
    %101 = vector.load %arg2[%c0_97, %c0_98, %c0_99] : memref<9x256x256xf32, #tpu.memory_space<vmem>>, vector<1x256x256xf32>
    %102 = vector.shape_cast %101 : vector<1x256x256xf32> to vector<256x256xf32>
    %cst_100 = arith.constant dense<0.000000e+00> : vector<8x256xf32>
    %103 = tpu.matmul %100, %102, %cst_100 {dimension_numbers = #tpu.dot_dimension_numbers<[1], [0], [0], [1], [0, 0, 1, 1], [], []>} : vector<8x256xf32>, vector<256x256xf32>, vector<8x256xf32> -> vector<8x256xf32>
    %104 = arith.addf %97, %103 : vector<8x256xf32>
    %c0_101 = arith.constant 0 : index
    %c10 = arith.constant 10 : index
    %c0_102 = arith.constant 0 : index
    %c0_103 = arith.constant 0 : index
    %105 = vector.load %arg3[%c0_101, %c10, %c0_102, %c0_103] : memref<1x36x8x8xf32, #tpu.memory_space<vmem>>, vector<1x1x8x8xf32>
    %106 = vector.shape_cast %105 : vector<1x1x8x8xf32> to vector<8x8xf32>
    %cst_104 = arith.constant dense<0.000000e+00> : vector<8x256xf32>
    %107 = tpu.matmul %106, %96, %cst_104 {dimension_numbers = #tpu.dot_dimension_numbers<[1], [0], [0], [1], [0, 0, 1, 1], [], []>} : vector<8x8xf32>, vector<8x256xf32>, vector<8x256xf32> -> vector<8x256xf32>
    %c1_105 = arith.constant 1 : index
    %c0_106 = arith.constant 0 : index
    %c0_107 = arith.constant 0 : index
    %108 = vector.load %arg2[%c1_105, %c0_106, %c0_107] : memref<9x256x256xf32, #tpu.memory_space<vmem>>, vector<1x256x256xf32>
    %109 = vector.shape_cast %108 : vector<1x256x256xf32> to vector<256x256xf32>
    %cst_108 = arith.constant dense<0.000000e+00> : vector<8x256xf32>
    %110 = tpu.matmul %107, %109, %cst_108 {dimension_numbers = #tpu.dot_dimension_numbers<[1], [0], [0], [1], [0, 0, 1, 1], [], []>} : vector<8x256xf32>, vector<256x256xf32>, vector<8x256xf32> -> vector<8x256xf32>
    %111 = arith.addf %104, %110 : vector<8x256xf32>
    %c0_109 = arith.constant 0 : index
    %c11 = arith.constant 11 : index
    %c0_110 = arith.constant 0 : index
    %c0_111 = arith.constant 0 : index
    %112 = vector.load %arg3[%c0_109, %c11, %c0_110, %c0_111] : memref<1x36x8x8xf32, #tpu.memory_space<vmem>>, vector<1x1x8x8xf32>
    %113 = vector.shape_cast %112 : vector<1x1x8x8xf32> to vector<8x8xf32>
    %cst_112 = arith.constant dense<0.000000e+00> : vector<8x256xf32>
    %114 = tpu.matmul %113, %96, %cst_112 {dimension_numbers = #tpu.dot_dimension_numbers<[1], [0], [0], [1], [0, 0, 1, 1], [], []>} : vector<8x8xf32>, vector<8x256xf32>, vector<8x256xf32> -> vector<8x256xf32>
    %c2_113 = arith.constant 2 : index
    %c0_114 = arith.constant 0 : index
    %c0_115 = arith.constant 0 : index
    %115 = vector.load %arg2[%c2_113, %c0_114, %c0_115] : memref<9x256x256xf32, #tpu.memory_space<vmem>>, vector<1x256x256xf32>
    %116 = vector.shape_cast %115 : vector<1x256x256xf32> to vector<256x256xf32>
    %cst_116 = arith.constant dense<0.000000e+00> : vector<8x256xf32>
    %117 = tpu.matmul %114, %116, %cst_116 {dimension_numbers = #tpu.dot_dimension_numbers<[1], [0], [0], [1], [0, 0, 1, 1], [], []>} : vector<8x256xf32>, vector<256x256xf32>, vector<8x256xf32> -> vector<8x256xf32>
    %118 = arith.addf %111, %117 : vector<8x256xf32>
    %c0_117 = arith.constant 0 : index
    %c12 = arith.constant 12 : index
    %c0_118 = arith.constant 0 : index
    %c0_119 = arith.constant 0 : index
    %119 = vector.load %arg3[%c0_117, %c12, %c0_118, %c0_119] : memref<1x36x8x8xf32, #tpu.memory_space<vmem>>, vector<1x1x8x8xf32>
    %120 = vector.shape_cast %119 : vector<1x1x8x8xf32> to vector<8x8xf32>
    %cst_120 = arith.constant dense<0.000000e+00> : vector<8x256xf32>
    %121 = tpu.matmul %120, %96, %cst_120 {dimension_numbers = #tpu.dot_dimension_numbers<[1], [0], [0], [1], [0, 0, 1, 1], [], []>} : vector<8x8xf32>, vector<8x256xf32>, vector<8x256xf32> -> vector<8x256xf32>
    %c3_121 = arith.constant 3 : index
    %c0_122 = arith.constant 0 : index
    %c0_123 = arith.constant 0 : index
    %122 = vector.load %arg2[%c3_121, %c0_122, %c0_123] : memref<9x256x256xf32, #tpu.memory_space<vmem>>, vector<1x256x256xf32>
    %123 = vector.shape_cast %122 : vector<1x256x256xf32> to vector<256x256xf32>
    %cst_124 = arith.constant dense<0.000000e+00> : vector<8x256xf32>
    %124 = tpu.matmul %121, %123, %cst_124 {dimension_numbers = #tpu.dot_dimension_numbers<[1], [0], [0], [1], [0, 0, 1, 1], [], []>} : vector<8x256xf32>, vector<256x256xf32>, vector<8x256xf32> -> vector<8x256xf32>
    %125 = arith.addf %118, %124 : vector<8x256xf32>
    %c0_125 = arith.constant 0 : index
    %c13 = arith.constant 13 : index
    %c0_126 = arith.constant 0 : index
    %c0_127 = arith.constant 0 : index
    %126 = vector.load %arg3[%c0_125, %c13, %c0_126, %c0_127] : memref<1x36x8x8xf32, #tpu.memory_space<vmem>>, vector<1x1x8x8xf32>
    %127 = vector.shape_cast %126 : vector<1x1x8x8xf32> to vector<8x8xf32>
    %cst_128 = arith.constant dense<0.000000e+00> : vector<8x256xf32>
    %128 = tpu.matmul %127, %96, %cst_128 {dimension_numbers = #tpu.dot_dimension_numbers<[1], [0], [0], [1], [0, 0, 1, 1], [], []>} : vector<8x8xf32>, vector<8x256xf32>, vector<8x256xf32> -> vector<8x256xf32>
    %c4_129 = arith.constant 4 : index
    %c0_130 = arith.constant 0 : index
    %c0_131 = arith.constant 0 : index
    %129 = vector.load %arg2[%c4_129, %c0_130, %c0_131] : memref<9x256x256xf32, #tpu.memory_space<vmem>>, vector<1x256x256xf32>
    %130 = vector.shape_cast %129 : vector<1x256x256xf32> to vector<256x256xf32>
    %cst_132 = arith.constant dense<0.000000e+00> : vector<8x256xf32>
    %131 = tpu.matmul %128, %130, %cst_132 {dimension_numbers = #tpu.dot_dimension_numbers<[1], [0], [0], [1], [0, 0, 1, 1], [], []>} : vector<8x256xf32>, vector<256x256xf32>, vector<8x256xf32> -> vector<8x256xf32>
    %132 = arith.addf %125, %131 : vector<8x256xf32>
    %c0_133 = arith.constant 0 : index
    %c14 = arith.constant 14 : index
    %c0_134 = arith.constant 0 : index
    %c0_135 = arith.constant 0 : index
    %133 = vector.load %arg3[%c0_133, %c14, %c0_134, %c0_135] : memref<1x36x8x8xf32, #tpu.memory_space<vmem>>, vector<1x1x8x8xf32>
    %134 = vector.shape_cast %133 : vector<1x1x8x8xf32> to vector<8x8xf32>
    %cst_136 = arith.constant dense<0.000000e+00> : vector<8x256xf32>
    %135 = tpu.matmul %134, %96, %cst_136 {dimension_numbers = #tpu.dot_dimension_numbers<[1], [0], [0], [1], [0, 0, 1, 1], [], []>} : vector<8x8xf32>, vector<8x256xf32>, vector<8x256xf32> -> vector<8x256xf32>
    %c5_137 = arith.constant 5 : index
    %c0_138 = arith.constant 0 : index
    %c0_139 = arith.constant 0 : index
    %136 = vector.load %arg2[%c5_137, %c0_138, %c0_139] : memref<9x256x256xf32, #tpu.memory_space<vmem>>, vector<1x256x256xf32>
    %137 = vector.shape_cast %136 : vector<1x256x256xf32> to vector<256x256xf32>
    %cst_140 = arith.constant dense<0.000000e+00> : vector<8x256xf32>
    %138 = tpu.matmul %135, %137, %cst_140 {dimension_numbers = #tpu.dot_dimension_numbers<[1], [0], [0], [1], [0, 0, 1, 1], [], []>} : vector<8x256xf32>, vector<256x256xf32>, vector<8x256xf32> -> vector<8x256xf32>
    %139 = arith.addf %132, %138 : vector<8x256xf32>
    %c0_141 = arith.constant 0 : index
    %c15 = arith.constant 15 : index
    %c0_142 = arith.constant 0 : index
    %c0_143 = arith.constant 0 : index
    %140 = vector.load %arg3[%c0_141, %c15, %c0_142, %c0_143] : memref<1x36x8x8xf32, #tpu.memory_space<vmem>>, vector<1x1x8x8xf32>
    %141 = vector.shape_cast %140 : vector<1x1x8x8xf32> to vector<8x8xf32>
    %cst_144 = arith.constant dense<0.000000e+00> : vector<8x256xf32>
    %142 = tpu.matmul %141, %96, %cst_144 {dimension_numbers = #tpu.dot_dimension_numbers<[1], [0], [0], [1], [0, 0, 1, 1], [], []>} : vector<8x8xf32>, vector<8x256xf32>, vector<8x256xf32> -> vector<8x256xf32>
    %c6_145 = arith.constant 6 : index
    %c0_146 = arith.constant 0 : index
    %c0_147 = arith.constant 0 : index
    %143 = vector.load %arg2[%c6_145, %c0_146, %c0_147] : memref<9x256x256xf32, #tpu.memory_space<vmem>>, vector<1x256x256xf32>
    %144 = vector.shape_cast %143 : vector<1x256x256xf32> to vector<256x256xf32>
    %cst_148 = arith.constant dense<0.000000e+00> : vector<8x256xf32>
    %145 = tpu.matmul %142, %144, %cst_148 {dimension_numbers = #tpu.dot_dimension_numbers<[1], [0], [0], [1], [0, 0, 1, 1], [], []>} : vector<8x256xf32>, vector<256x256xf32>, vector<8x256xf32> -> vector<8x256xf32>
    %146 = arith.addf %139, %145 : vector<8x256xf32>
    %c0_149 = arith.constant 0 : index
    %c16 = arith.constant 16 : index
    %c0_150 = arith.constant 0 : index
    %c0_151 = arith.constant 0 : index
    %147 = vector.load %arg3[%c0_149, %c16, %c0_150, %c0_151] : memref<1x36x8x8xf32, #tpu.memory_space<vmem>>, vector<1x1x8x8xf32>
    %148 = vector.shape_cast %147 : vector<1x1x8x8xf32> to vector<8x8xf32>
    %cst_152 = arith.constant dense<0.000000e+00> : vector<8x256xf32>
    %149 = tpu.matmul %148, %96, %cst_152 {dimension_numbers = #tpu.dot_dimension_numbers<[1], [0], [0], [1], [0, 0, 1, 1], [], []>} : vector<8x8xf32>, vector<8x256xf32>, vector<8x256xf32> -> vector<8x256xf32>
    %c7_153 = arith.constant 7 : index
    %c0_154 = arith.constant 0 : index
    %c0_155 = arith.constant 0 : index
    %150 = vector.load %arg2[%c7_153, %c0_154, %c0_155] : memref<9x256x256xf32, #tpu.memory_space<vmem>>, vector<1x256x256xf32>
    %151 = vector.shape_cast %150 : vector<1x256x256xf32> to vector<256x256xf32>
    %cst_156 = arith.constant dense<0.000000e+00> : vector<8x256xf32>
    %152 = tpu.matmul %149, %151, %cst_156 {dimension_numbers = #tpu.dot_dimension_numbers<[1], [0], [0], [1], [0, 0, 1, 1], [], []>} : vector<8x256xf32>, vector<256x256xf32>, vector<8x256xf32> -> vector<8x256xf32>
    %153 = arith.addf %146, %152 : vector<8x256xf32>
    %c0_157 = arith.constant 0 : index
    %c17 = arith.constant 17 : index
    %c0_158 = arith.constant 0 : index
    %c0_159 = arith.constant 0 : index
    %154 = vector.load %arg3[%c0_157, %c17, %c0_158, %c0_159] : memref<1x36x8x8xf32, #tpu.memory_space<vmem>>, vector<1x1x8x8xf32>
    %155 = vector.shape_cast %154 : vector<1x1x8x8xf32> to vector<8x8xf32>
    %cst_160 = arith.constant dense<0.000000e+00> : vector<8x256xf32>
    %156 = tpu.matmul %155, %96, %cst_160 {dimension_numbers = #tpu.dot_dimension_numbers<[1], [0], [0], [1], [0, 0, 1, 1], [], []>} : vector<8x8xf32>, vector<8x256xf32>, vector<8x256xf32> -> vector<8x256xf32>
    %c8_161 = arith.constant 8 : index
    %c0_162 = arith.constant 0 : index
    %c0_163 = arith.constant 0 : index
    %157 = vector.load %arg2[%c8_161, %c0_162, %c0_163] : memref<9x256x256xf32, #tpu.memory_space<vmem>>, vector<1x256x256xf32>
    %158 = vector.shape_cast %157 : vector<1x256x256xf32> to vector<256x256xf32>
    %cst_164 = arith.constant dense<0.000000e+00> : vector<8x256xf32>
    %159 = tpu.matmul %156, %158, %cst_164 {dimension_numbers = #tpu.dot_dimension_numbers<[1], [0], [0], [1], [0, 0, 1, 1], [], []>} : vector<8x256xf32>, vector<256x256xf32>, vector<8x256xf32> -> vector<8x256xf32>
    %160 = arith.addf %153, %159 : vector<8x256xf32>
    %c0_165 = arith.constant 0 : index
    %c1_166 = arith.constant 1 : index
    %c0_167 = arith.constant 0 : index
    %c0_168 = arith.constant 0 : index
    %161 = vector.load %arg4[%c0_165, %c1_166, %c0_167, %c0_168] : memref<1x4x8x1xf32, #tpu.memory_space<vmem>>, vector<1x1x8x1xf32>
    %162 = vector.shape_cast %161 : vector<1x1x8x1xf32> to vector<8x1xf32>
    %163 = vector.broadcast %162 : vector<8x1xf32> to vector<8x256xf32>
    %164 = arith.addf %160, %163 : vector<8x256xf32>
    %cst_169 = arith.constant dense<0.000000e+00> : vector<8xf32>
    %165 = vector.multi_reduction <add>, %164, %cst_169 [1] : vector<8x256xf32> to vector<8xf32>
    %166 = vector.shape_cast %165 : vector<8xf32> to vector<8x1xf32>
    %cst_170 = arith.constant 2.560000e+02 : f32
    %167 = vector.broadcast %cst_170 : f32 to vector<8x1xf32>
    %168 = arith.divf %166, %167 : vector<8x1xf32>
    %169 = vector.broadcast %168 : vector<8x1xf32> to vector<8x256xf32>
    %170 = arith.subf %164, %169 : vector<8x256xf32>
    %171 = arith.mulf %170, %170 : vector<8x256xf32>
    %cst_171 = arith.constant dense<0.000000e+00> : vector<8xf32>
    %172 = vector.multi_reduction <add>, %171, %cst_171 [1] : vector<8x256xf32> to vector<8xf32>
    %173 = vector.shape_cast %172 : vector<8xf32> to vector<8x1xf32>
    %cst_172 = arith.constant 2.560000e+02 : f32
    %174 = vector.broadcast %cst_172 : f32 to vector<8x1xf32>
    %175 = arith.divf %173, %174 : vector<8x1xf32>
    %c0_173 = arith.constant 0 : index
    %c1_174 = arith.constant 1 : index
    %c0_175 = arith.constant 0 : index
    %c0_176 = arith.constant 0 : index
    %176 = vector.load %arg5[%c0_173, %c1_174, %c0_175, %c0_176] : memref<1x4x8x1xf32, #tpu.memory_space<vmem>>, vector<1x1x8x1xf32>
    %177 = vector.shape_cast %176 : vector<1x1x8x1xf32> to vector<8x1xf32>
    %178 = vector.broadcast %168 : vector<8x1xf32> to vector<8x256xf32>
    %179 = arith.subf %164, %178 : vector<8x256xf32>
    %cst_177 = arith.constant 9.99999974E-6 : f32
    %180 = vector.broadcast %cst_177 : f32 to vector<8x1xf32>
    %181 = arith.addf %175, %180 : vector<8x1xf32>
    %182 = math.rsqrt %181 : vector<8x1xf32>
    %183 = vector.broadcast %182 : vector<8x1xf32> to vector<8x256xf32>
    %184 = arith.mulf %179, %183 : vector<8x256xf32>
    %185 = vector.broadcast %177 : vector<8x1xf32> to vector<8x256xf32>
    %186 = arith.mulf %185, %184 : vector<8x256xf32>
    %c0_178 = arith.constant 0 : index
    %c1_179 = arith.constant 1 : index
    %c0_180 = arith.constant 0 : index
    %c0_181 = arith.constant 0 : index
    %187 = vector.load %arg6[%c0_178, %c1_179, %c0_180, %c0_181] : memref<1x4x8x1xf32, #tpu.memory_space<vmem>>, vector<1x1x8x1xf32>
    %188 = vector.shape_cast %187 : vector<1x1x8x1xf32> to vector<8x1xf32>
    %189 = vector.broadcast %188 : vector<8x1xf32> to vector<8x256xf32>
    %190 = arith.addf %186, %189 : vector<8x256xf32>
    %191 = arith.addf %0, %190 : vector<8x256xf32>
    %cst_182 = arith.constant 0.000000e+00 : f32
    %192 = vector.broadcast %cst_182 : f32 to vector<8x256xf32>
    %c0_183 = arith.constant 0 : index
    %c18 = arith.constant 18 : index
    %c0_184 = arith.constant 0 : index
    %c0_185 = arith.constant 0 : index
    %193 = vector.load %arg3[%c0_183, %c18, %c0_184, %c0_185] : memref<1x36x8x8xf32, #tpu.memory_space<vmem>>, vector<1x1x8x8xf32>
    %194 = vector.shape_cast %193 : vector<1x1x8x8xf32> to vector<8x8xf32>
    %cst_186 = arith.constant dense<0.000000e+00> : vector<8x256xf32>
    %195 = tpu.matmul %194, %191, %cst_186 {dimension_numbers = #tpu.dot_dimension_numbers<[1], [0], [0], [1], [0, 0, 1, 1], [], []>} : vector<8x8xf32>, vector<8x256xf32>, vector<8x256xf32> -> vector<8x256xf32>
    %c0_187 = arith.constant 0 : index
    %c0_188 = arith.constant 0 : index
    %c0_189 = arith.constant 0 : index
    %196 = vector.load %arg2[%c0_187, %c0_188, %c0_189] : memref<9x256x256xf32, #tpu.memory_space<vmem>>, vector<1x256x256xf32>
    %197 = vector.shape_cast %196 : vector<1x256x256xf32> to vector<256x256xf32>
    %cst_190 = arith.constant dense<0.000000e+00> : vector<8x256xf32>
    %198 = tpu.matmul %195, %197, %cst_190 {dimension_numbers = #tpu.dot_dimension_numbers<[1], [0], [0], [1], [0, 0, 1, 1], [], []>} : vector<8x256xf32>, vector<256x256xf32>, vector<8x256xf32> -> vector<8x256xf32>
    %199 = arith.addf %192, %198 : vector<8x256xf32>
    %c0_191 = arith.constant 0 : index
    %c19 = arith.constant 19 : index
    %c0_192 = arith.constant 0 : index
    %c0_193 = arith.constant 0 : index
    %200 = vector.load %arg3[%c0_191, %c19, %c0_192, %c0_193] : memref<1x36x8x8xf32, #tpu.memory_space<vmem>>, vector<1x1x8x8xf32>
    %201 = vector.shape_cast %200 : vector<1x1x8x8xf32> to vector<8x8xf32>
    %cst_194 = arith.constant dense<0.000000e+00> : vector<8x256xf32>
    %202 = tpu.matmul %201, %191, %cst_194 {dimension_numbers = #tpu.dot_dimension_numbers<[1], [0], [0], [1], [0, 0, 1, 1], [], []>} : vector<8x8xf32>, vector<8x256xf32>, vector<8x256xf32> -> vector<8x256xf32>
    %c1_195 = arith.constant 1 : index
    %c0_196 = arith.constant 0 : index
    %c0_197 = arith.constant 0 : index
    %203 = vector.load %arg2[%c1_195, %c0_196, %c0_197] : memref<9x256x256xf32, #tpu.memory_space<vmem>>, vector<1x256x256xf32>
    %204 = vector.shape_cast %203 : vector<1x256x256xf32> to vector<256x256xf32>
    %cst_198 = arith.constant dense<0.000000e+00> : vector<8x256xf32>
    %205 = tpu.matmul %202, %204, %cst_198 {dimension_numbers = #tpu.dot_dimension_numbers<[1], [0], [0], [1], [0, 0, 1, 1], [], []>} : vector<8x256xf32>, vector<256x256xf32>, vector<8x256xf32> -> vector<8x256xf32>
    %206 = arith.addf %199, %205 : vector<8x256xf32>
    %c0_199 = arith.constant 0 : index
    %c20 = arith.constant 20 : index
    %c0_200 = arith.constant 0 : index
    %c0_201 = arith.constant 0 : index
    %207 = vector.load %arg3[%c0_199, %c20, %c0_200, %c0_201] : memref<1x36x8x8xf32, #tpu.memory_space<vmem>>, vector<1x1x8x8xf32>
    %208 = vector.shape_cast %207 : vector<1x1x8x8xf32> to vector<8x8xf32>
    %cst_202 = arith.constant dense<0.000000e+00> : vector<8x256xf32>
    %209 = tpu.matmul %208, %191, %cst_202 {dimension_numbers = #tpu.dot_dimension_numbers<[1], [0], [0], [1], [0, 0, 1, 1], [], []>} : vector<8x8xf32>, vector<8x256xf32>, vector<8x256xf32> -> vector<8x256xf32>
    %c2_203 = arith.constant 2 : index
    %c0_204 = arith.constant 0 : index
    %c0_205 = arith.constant 0 : index
    %210 = vector.load %arg2[%c2_203, %c0_204, %c0_205] : memref<9x256x256xf32, #tpu.memory_space<vmem>>, vector<1x256x256xf32>
    %211 = vector.shape_cast %210 : vector<1x256x256xf32> to vector<256x256xf32>
    %cst_206 = arith.constant dense<0.000000e+00> : vector<8x256xf32>
    %212 = tpu.matmul %209, %211, %cst_206 {dimension_numbers = #tpu.dot_dimension_numbers<[1], [0], [0], [1], [0, 0, 1, 1], [], []>} : vector<8x256xf32>, vector<256x256xf32>, vector<8x256xf32> -> vector<8x256xf32>
    %213 = arith.addf %206, %212 : vector<8x256xf32>
    %c0_207 = arith.constant 0 : index
    %c21 = arith.constant 21 : index
    %c0_208 = arith.constant 0 : index
    %c0_209 = arith.constant 0 : index
    %214 = vector.load %arg3[%c0_207, %c21, %c0_208, %c0_209] : memref<1x36x8x8xf32, #tpu.memory_space<vmem>>, vector<1x1x8x8xf32>
    %215 = vector.shape_cast %214 : vector<1x1x8x8xf32> to vector<8x8xf32>
    %cst_210 = arith.constant dense<0.000000e+00> : vector<8x256xf32>
    %216 = tpu.matmul %215, %191, %cst_210 {dimension_numbers = #tpu.dot_dimension_numbers<[1], [0], [0], [1], [0, 0, 1, 1], [], []>} : vector<8x8xf32>, vector<8x256xf32>, vector<8x256xf32> -> vector<8x256xf32>
    %c3_211 = arith.constant 3 : index
    %c0_212 = arith.constant 0 : index
    %c0_213 = arith.constant 0 : index
    %217 = vector.load %arg2[%c3_211, %c0_212, %c0_213] : memref<9x256x256xf32, #tpu.memory_space<vmem>>, vector<1x256x256xf32>
    %218 = vector.shape_cast %217 : vector<1x256x256xf32> to vector<256x256xf32>
    %cst_214 = arith.constant dense<0.000000e+00> : vector<8x256xf32>
    %219 = tpu.matmul %216, %218, %cst_214 {dimension_numbers = #tpu.dot_dimension_numbers<[1], [0], [0], [1], [0, 0, 1, 1], [], []>} : vector<8x256xf32>, vector<256x256xf32>, vector<8x256xf32> -> vector<8x256xf32>
    %220 = arith.addf %213, %219 : vector<8x256xf32>
    %c0_215 = arith.constant 0 : index
    %c22 = arith.constant 22 : index
    %c0_216 = arith.constant 0 : index
    %c0_217 = arith.constant 0 : index
    %221 = vector.load %arg3[%c0_215, %c22, %c0_216, %c0_217] : memref<1x36x8x8xf32, #tpu.memory_space<vmem>>, vector<1x1x8x8xf32>
    %222 = vector.shape_cast %221 : vector<1x1x8x8xf32> to vector<8x8xf32>
    %cst_218 = arith.constant dense<0.000000e+00> : vector<8x256xf32>
    %223 = tpu.matmul %222, %191, %cst_218 {dimension_numbers = #tpu.dot_dimension_numbers<[1], [0], [0], [1], [0, 0, 1, 1], [], []>} : vector<8x8xf32>, vector<8x256xf32>, vector<8x256xf32> -> vector<8x256xf32>
    %c4_219 = arith.constant 4 : index
    %c0_220 = arith.constant 0 : index
    %c0_221 = arith.constant 0 : index
    %224 = vector.load %arg2[%c4_219, %c0_220, %c0_221] : memref<9x256x256xf32, #tpu.memory_space<vmem>>, vector<1x256x256xf32>
    %225 = vector.shape_cast %224 : vector<1x256x256xf32> to vector<256x256xf32>
    %cst_222 = arith.constant dense<0.000000e+00> : vector<8x256xf32>
    %226 = tpu.matmul %223, %225, %cst_222 {dimension_numbers = #tpu.dot_dimension_numbers<[1], [0], [0], [1], [0, 0, 1, 1], [], []>} : vector<8x256xf32>, vector<256x256xf32>, vector<8x256xf32> -> vector<8x256xf32>
    %227 = arith.addf %220, %226 : vector<8x256xf32>
    %c0_223 = arith.constant 0 : index
    %c23 = arith.constant 23 : index
    %c0_224 = arith.constant 0 : index
    %c0_225 = arith.constant 0 : index
    %228 = vector.load %arg3[%c0_223, %c23, %c0_224, %c0_225] : memref<1x36x8x8xf32, #tpu.memory_space<vmem>>, vector<1x1x8x8xf32>
    %229 = vector.shape_cast %228 : vector<1x1x8x8xf32> to vector<8x8xf32>
    %cst_226 = arith.constant dense<0.000000e+00> : vector<8x256xf32>
    %230 = tpu.matmul %229, %191, %cst_226 {dimension_numbers = #tpu.dot_dimension_numbers<[1], [0], [0], [1], [0, 0, 1, 1], [], []>} : vector<8x8xf32>, vector<8x256xf32>, vector<8x256xf32> -> vector<8x256xf32>
    %c5_227 = arith.constant 5 : index
    %c0_228 = arith.constant 0 : index
    %c0_229 = arith.constant 0 : index
    %231 = vector.load %arg2[%c5_227, %c0_228, %c0_229] : memref<9x256x256xf32, #tpu.memory_space<vmem>>, vector<1x256x256xf32>
    %232 = vector.shape_cast %231 : vector<1x256x256xf32> to vector<256x256xf32>
    %cst_230 = arith.constant dense<0.000000e+00> : vector<8x256xf32>
    %233 = tpu.matmul %230, %232, %cst_230 {dimension_numbers = #tpu.dot_dimension_numbers<[1], [0], [0], [1], [0, 0, 1, 1], [], []>} : vector<8x256xf32>, vector<256x256xf32>, vector<8x256xf32> -> vector<8x256xf32>
    %234 = arith.addf %227, %233 : vector<8x256xf32>
    %c0_231 = arith.constant 0 : index
    %c24 = arith.constant 24 : index
    %c0_232 = arith.constant 0 : index
    %c0_233 = arith.constant 0 : index
    %235 = vector.load %arg3[%c0_231, %c24, %c0_232, %c0_233] : memref<1x36x8x8xf32, #tpu.memory_space<vmem>>, vector<1x1x8x8xf32>
    %236 = vector.shape_cast %235 : vector<1x1x8x8xf32> to vector<8x8xf32>
    %cst_234 = arith.constant dense<0.000000e+00> : vector<8x256xf32>
    %237 = tpu.matmul %236, %191, %cst_234 {dimension_numbers = #tpu.dot_dimension_numbers<[1], [0], [0], [1], [0, 0, 1, 1], [], []>} : vector<8x8xf32>, vector<8x256xf32>, vector<8x256xf32> -> vector<8x256xf32>
    %c6_235 = arith.constant 6 : index
    %c0_236 = arith.constant 0 : index
    %c0_237 = arith.constant 0 : index
    %238 = vector.load %arg2[%c6_235, %c0_236, %c0_237] : memref<9x256x256xf32, #tpu.memory_space<vmem>>, vector<1x256x256xf32>
    %239 = vector.shape_cast %238 : vector<1x256x256xf32> to vector<256x256xf32>
    %cst_238 = arith.constant dense<0.000000e+00> : vector<8x256xf32>
    %240 = tpu.matmul %237, %239, %cst_238 {dimension_numbers = #tpu.dot_dimension_numbers<[1], [0], [0], [1], [0, 0, 1, 1], [], []>} : vector<8x256xf32>, vector<256x256xf32>, vector<8x256xf32> -> vector<8x256xf32>
    %241 = arith.addf %234, %240 : vector<8x256xf32>
    %c0_239 = arith.constant 0 : index
    %c25 = arith.constant 25 : index
    %c0_240 = arith.constant 0 : index
    %c0_241 = arith.constant 0 : index
    %242 = vector.load %arg3[%c0_239, %c25, %c0_240, %c0_241] : memref<1x36x8x8xf32, #tpu.memory_space<vmem>>, vector<1x1x8x8xf32>
    %243 = vector.shape_cast %242 : vector<1x1x8x8xf32> to vector<8x8xf32>
    %cst_242 = arith.constant dense<0.000000e+00> : vector<8x256xf32>
    %244 = tpu.matmul %243, %191, %cst_242 {dimension_numbers = #tpu.dot_dimension_numbers<[1], [0], [0], [1], [0, 0, 1, 1], [], []>} : vector<8x8xf32>, vector<8x256xf32>, vector<8x256xf32> -> vector<8x256xf32>
    %c7_243 = arith.constant 7 : index
    %c0_244 = arith.constant 0 : index
    %c0_245 = arith.constant 0 : index
    %245 = vector.load %arg2[%c7_243, %c0_244, %c0_245] : memref<9x256x256xf32, #tpu.memory_space<vmem>>, vector<1x256x256xf32>
    %246 = vector.shape_cast %245 : vector<1x256x256xf32> to vector<256x256xf32>
    %cst_246 = arith.constant dense<0.000000e+00> : vector<8x256xf32>
    %247 = tpu.matmul %244, %246, %cst_246 {dimension_numbers = #tpu.dot_dimension_numbers<[1], [0], [0], [1], [0, 0, 1, 1], [], []>} : vector<8x256xf32>, vector<256x256xf32>, vector<8x256xf32> -> vector<8x256xf32>
    %248 = arith.addf %241, %247 : vector<8x256xf32>
    %c0_247 = arith.constant 0 : index
    %c26 = arith.constant 26 : index
    %c0_248 = arith.constant 0 : index
    %c0_249 = arith.constant 0 : index
    %249 = vector.load %arg3[%c0_247, %c26, %c0_248, %c0_249] : memref<1x36x8x8xf32, #tpu.memory_space<vmem>>, vector<1x1x8x8xf32>
    %250 = vector.shape_cast %249 : vector<1x1x8x8xf32> to vector<8x8xf32>
    %cst_250 = arith.constant dense<0.000000e+00> : vector<8x256xf32>
    %251 = tpu.matmul %250, %191, %cst_250 {dimension_numbers = #tpu.dot_dimension_numbers<[1], [0], [0], [1], [0, 0, 1, 1], [], []>} : vector<8x8xf32>, vector<8x256xf32>, vector<8x256xf32> -> vector<8x256xf32>
    %c8_251 = arith.constant 8 : index
    %c0_252 = arith.constant 0 : index
    %c0_253 = arith.constant 0 : index
    %252 = vector.load %arg2[%c8_251, %c0_252, %c0_253] : memref<9x256x256xf32, #tpu.memory_space<vmem>>, vector<1x256x256xf32>
    %253 = vector.shape_cast %252 : vector<1x256x256xf32> to vector<256x256xf32>
    %cst_254 = arith.constant dense<0.000000e+00> : vector<8x256xf32>
    %254 = tpu.matmul %251, %253, %cst_254 {dimension_numbers = #tpu.dot_dimension_numbers<[1], [0], [0], [1], [0, 0, 1, 1], [], []>} : vector<8x256xf32>, vector<256x256xf32>, vector<8x256xf32> -> vector<8x256xf32>
    %255 = arith.addf %248, %254 : vector<8x256xf32>
    %c0_255 = arith.constant 0 : index
    %c2_256 = arith.constant 2 : index
    %c0_257 = arith.constant 0 : index
    %c0_258 = arith.constant 0 : index
    %256 = vector.load %arg4[%c0_255, %c2_256, %c0_257, %c0_258] : memref<1x4x8x1xf32, #tpu.memory_space<vmem>>, vector<1x1x8x1xf32>
    %257 = vector.shape_cast %256 : vector<1x1x8x1xf32> to vector<8x1xf32>
    %258 = vector.broadcast %257 : vector<8x1xf32> to vector<8x256xf32>
    %259 = arith.addf %255, %258 : vector<8x256xf32>
    %cst_259 = arith.constant dense<0.000000e+00> : vector<8xf32>
    %260 = vector.multi_reduction <add>, %259, %cst_259 [1] : vector<8x256xf32> to vector<8xf32>
    %261 = vector.shape_cast %260 : vector<8xf32> to vector<8x1xf32>
    %cst_260 = arith.constant 2.560000e+02 : f32
    %262 = vector.broadcast %cst_260 : f32 to vector<8x1xf32>
    %263 = arith.divf %261, %262 : vector<8x1xf32>
    %264 = vector.broadcast %263 : vector<8x1xf32> to vector<8x256xf32>
    %265 = arith.subf %259, %264 : vector<8x256xf32>
    %266 = arith.mulf %265, %265 : vector<8x256xf32>
    %cst_261 = arith.constant dense<0.000000e+00> : vector<8xf32>
    %267 = vector.multi_reduction <add>, %266, %cst_261 [1] : vector<8x256xf32> to vector<8xf32>
    %268 = vector.shape_cast %267 : vector<8xf32> to vector<8x1xf32>
    %cst_262 = arith.constant 2.560000e+02 : f32
    %269 = vector.broadcast %cst_262 : f32 to vector<8x1xf32>
    %270 = arith.divf %268, %269 : vector<8x1xf32>
    %c0_263 = arith.constant 0 : index
    %c2_264 = arith.constant 2 : index
    %c0_265 = arith.constant 0 : index
    %c0_266 = arith.constant 0 : index
    %271 = vector.load %arg5[%c0_263, %c2_264, %c0_265, %c0_266] : memref<1x4x8x1xf32, #tpu.memory_space<vmem>>, vector<1x1x8x1xf32>
    %272 = vector.shape_cast %271 : vector<1x1x8x1xf32> to vector<8x1xf32>
    %273 = vector.broadcast %263 : vector<8x1xf32> to vector<8x256xf32>
    %274 = arith.subf %259, %273 : vector<8x256xf32>
    %cst_267 = arith.constant 9.99999974E-6 : f32
    %275 = vector.broadcast %cst_267 : f32 to vector<8x1xf32>
    %276 = arith.addf %270, %275 : vector<8x1xf32>
    %277 = math.rsqrt %276 : vector<8x1xf32>
    %278 = vector.broadcast %277 : vector<8x1xf32> to vector<8x256xf32>
    %279 = arith.mulf %274, %278 : vector<8x256xf32>
    %280 = vector.broadcast %272 : vector<8x1xf32> to vector<8x256xf32>
    %281 = arith.mulf %280, %279 : vector<8x256xf32>
    %c0_268 = arith.constant 0 : index
    %c2_269 = arith.constant 2 : index
    %c0_270 = arith.constant 0 : index
    %c0_271 = arith.constant 0 : index
    %282 = vector.load %arg6[%c0_268, %c2_269, %c0_270, %c0_271] : memref<1x4x8x1xf32, #tpu.memory_space<vmem>>, vector<1x1x8x1xf32>
    %283 = vector.shape_cast %282 : vector<1x1x8x1xf32> to vector<8x1xf32>
    %284 = vector.broadcast %283 : vector<8x1xf32> to vector<8x256xf32>
    %285 = arith.addf %281, %284 : vector<8x256xf32>
    %cst_272 = arith.constant 0.000000e+00 : f32
    %286 = vector.broadcast %cst_272 : f32 to vector<8x256xf32>
    %287 = arith.maximumf %285, %286 : vector<8x256xf32>
    %cst_273 = arith.constant 0.000000e+00 : f32
    %288 = vector.broadcast %cst_273 : f32 to vector<8x256xf32>
    %c0_274 = arith.constant 0 : index
    %c27 = arith.constant 27 : index
    %c0_275 = arith.constant 0 : index
    %c0_276 = arith.constant 0 : index
    %289 = vector.load %arg3[%c0_274, %c27, %c0_275, %c0_276] : memref<1x36x8x8xf32, #tpu.memory_space<vmem>>, vector<1x1x8x8xf32>
    %290 = vector.shape_cast %289 : vector<1x1x8x8xf32> to vector<8x8xf32>
    %cst_277 = arith.constant dense<0.000000e+00> : vector<8x256xf32>
    %291 = tpu.matmul %290, %287, %cst_277 {dimension_numbers = #tpu.dot_dimension_numbers<[1], [0], [0], [1], [0, 0, 1, 1], [], []>} : vector<8x8xf32>, vector<8x256xf32>, vector<8x256xf32> -> vector<8x256xf32>
    %c0_278 = arith.constant 0 : index
    %c0_279 = arith.constant 0 : index
    %c0_280 = arith.constant 0 : index
    %292 = vector.load %arg2[%c0_278, %c0_279, %c0_280] : memref<9x256x256xf32, #tpu.memory_space<vmem>>, vector<1x256x256xf32>
    %293 = vector.shape_cast %292 : vector<1x256x256xf32> to vector<256x256xf32>
    %cst_281 = arith.constant dense<0.000000e+00> : vector<8x256xf32>
    %294 = tpu.matmul %291, %293, %cst_281 {dimension_numbers = #tpu.dot_dimension_numbers<[1], [0], [0], [1], [0, 0, 1, 1], [], []>} : vector<8x256xf32>, vector<256x256xf32>, vector<8x256xf32> -> vector<8x256xf32>
    %295 = arith.addf %288, %294 : vector<8x256xf32>
    %c0_282 = arith.constant 0 : index
    %c28 = arith.constant 28 : index
    %c0_283 = arith.constant 0 : index
    %c0_284 = arith.constant 0 : index
    %296 = vector.load %arg3[%c0_282, %c28, %c0_283, %c0_284] : memref<1x36x8x8xf32, #tpu.memory_space<vmem>>, vector<1x1x8x8xf32>
    %297 = vector.shape_cast %296 : vector<1x1x8x8xf32> to vector<8x8xf32>
    %cst_285 = arith.constant dense<0.000000e+00> : vector<8x256xf32>
    %298 = tpu.matmul %297, %287, %cst_285 {dimension_numbers = #tpu.dot_dimension_numbers<[1], [0], [0], [1], [0, 0, 1, 1], [], []>} : vector<8x8xf32>, vector<8x256xf32>, vector<8x256xf32> -> vector<8x256xf32>
    %c1_286 = arith.constant 1 : index
    %c0_287 = arith.constant 0 : index
    %c0_288 = arith.constant 0 : index
    %299 = vector.load %arg2[%c1_286, %c0_287, %c0_288] : memref<9x256x256xf32, #tpu.memory_space<vmem>>, vector<1x256x256xf32>
    %300 = vector.shape_cast %299 : vector<1x256x256xf32> to vector<256x256xf32>
    %cst_289 = arith.constant dense<0.000000e+00> : vector<8x256xf32>
    %301 = tpu.matmul %298, %300, %cst_289 {dimension_numbers = #tpu.dot_dimension_numbers<[1], [0], [0], [1], [0, 0, 1, 1], [], []>} : vector<8x256xf32>, vector<256x256xf32>, vector<8x256xf32> -> vector<8x256xf32>
    %302 = arith.addf %295, %301 : vector<8x256xf32>
    %c0_290 = arith.constant 0 : index
    %c29 = arith.constant 29 : index
    %c0_291 = arith.constant 0 : index
    %c0_292 = arith.constant 0 : index
    %303 = vector.load %arg3[%c0_290, %c29, %c0_291, %c0_292] : memref<1x36x8x8xf32, #tpu.memory_space<vmem>>, vector<1x1x8x8xf32>
    %304 = vector.shape_cast %303 : vector<1x1x8x8xf32> to vector<8x8xf32>
    %cst_293 = arith.constant dense<0.000000e+00> : vector<8x256xf32>
    %305 = tpu.matmul %304, %287, %cst_293 {dimension_numbers = #tpu.dot_dimension_numbers<[1], [0], [0], [1], [0, 0, 1, 1], [], []>} : vector<8x8xf32>, vector<8x256xf32>, vector<8x256xf32> -> vector<8x256xf32>
    %c2_294 = arith.constant 2 : index
    %c0_295 = arith.constant 0 : index
    %c0_296 = arith.constant 0 : index
    %306 = vector.load %arg2[%c2_294, %c0_295, %c0_296] : memref<9x256x256xf32, #tpu.memory_space<vmem>>, vector<1x256x256xf32>
    %307 = vector.shape_cast %306 : vector<1x256x256xf32> to vector<256x256xf32>
    %cst_297 = arith.constant dense<0.000000e+00> : vector<8x256xf32>
    %308 = tpu.matmul %305, %307, %cst_297 {dimension_numbers = #tpu.dot_dimension_numbers<[1], [0], [0], [1], [0, 0, 1, 1], [], []>} : vector<8x256xf32>, vector<256x256xf32>, vector<8x256xf32> -> vector<8x256xf32>
    %309 = arith.addf %302, %308 : vector<8x256xf32>
    %c0_298 = arith.constant 0 : index
    %c30 = arith.constant 30 : index
    %c0_299 = arith.constant 0 : index
    %c0_300 = arith.constant 0 : index
    %310 = vector.load %arg3[%c0_298, %c30, %c0_299, %c0_300] : memref<1x36x8x8xf32, #tpu.memory_space<vmem>>, vector<1x1x8x8xf32>
    %311 = vector.shape_cast %310 : vector<1x1x8x8xf32> to vector<8x8xf32>
    %cst_301 = arith.constant dense<0.000000e+00> : vector<8x256xf32>
    %312 = tpu.matmul %311, %287, %cst_301 {dimension_numbers = #tpu.dot_dimension_numbers<[1], [0], [0], [1], [0, 0, 1, 1], [], []>} : vector<8x8xf32>, vector<8x256xf32>, vector<8x256xf32> -> vector<8x256xf32>
    %c3_302 = arith.constant 3 : index
    %c0_303 = arith.constant 0 : index
    %c0_304 = arith.constant 0 : index
    %313 = vector.load %arg2[%c3_302, %c0_303, %c0_304] : memref<9x256x256xf32, #tpu.memory_space<vmem>>, vector<1x256x256xf32>
    %314 = vector.shape_cast %313 : vector<1x256x256xf32> to vector<256x256xf32>
    %cst_305 = arith.constant dense<0.000000e+00> : vector<8x256xf32>
    %315 = tpu.matmul %312, %314, %cst_305 {dimension_numbers = #tpu.dot_dimension_numbers<[1], [0], [0], [1], [0, 0, 1, 1], [], []>} : vector<8x256xf32>, vector<256x256xf32>, vector<8x256xf32> -> vector<8x256xf32>
    %316 = arith.addf %309, %315 : vector<8x256xf32>
    %c0_306 = arith.constant 0 : index
    %c31 = arith.constant 31 : index
    %c0_307 = arith.constant 0 : index
    %c0_308 = arith.constant 0 : index
    %317 = vector.load %arg3[%c0_306, %c31, %c0_307, %c0_308] : memref<1x36x8x8xf32, #tpu.memory_space<vmem>>, vector<1x1x8x8xf32>
    %318 = vector.shape_cast %317 : vector<1x1x8x8xf32> to vector<8x8xf32>
    %cst_309 = arith.constant dense<0.000000e+00> : vector<8x256xf32>
    %319 = tpu.matmul %318, %287, %cst_309 {dimension_numbers = #tpu.dot_dimension_numbers<[1], [0], [0], [1], [0, 0, 1, 1], [], []>} : vector<8x8xf32>, vector<8x256xf32>, vector<8x256xf32> -> vector<8x256xf32>
    %c4_310 = arith.constant 4 : index
    %c0_311 = arith.constant 0 : index
    %c0_312 = arith.constant 0 : index
    %320 = vector.load %arg2[%c4_310, %c0_311, %c0_312] : memref<9x256x256xf32, #tpu.memory_space<vmem>>, vector<1x256x256xf32>
    %321 = vector.shape_cast %320 : vector<1x256x256xf32> to vector<256x256xf32>
    %cst_313 = arith.constant dense<0.000000e+00> : vector<8x256xf32>
    %322 = tpu.matmul %319, %321, %cst_313 {dimension_numbers = #tpu.dot_dimension_numbers<[1], [0], [0], [1], [0, 0, 1, 1], [], []>} : vector<8x256xf32>, vector<256x256xf32>, vector<8x256xf32> -> vector<8x256xf32>
    %323 = arith.addf %316, %322 : vector<8x256xf32>
    %c0_314 = arith.constant 0 : index
    %c32 = arith.constant 32 : index
    %c0_315 = arith.constant 0 : index
    %c0_316 = arith.constant 0 : index
    %324 = vector.load %arg3[%c0_314, %c32, %c0_315, %c0_316] : memref<1x36x8x8xf32, #tpu.memory_space<vmem>>, vector<1x1x8x8xf32>
    %325 = vector.shape_cast %324 : vector<1x1x8x8xf32> to vector<8x8xf32>
    %cst_317 = arith.constant dense<0.000000e+00> : vector<8x256xf32>
    %326 = tpu.matmul %325, %287, %cst_317 {dimension_numbers = #tpu.dot_dimension_numbers<[1], [0], [0], [1], [0, 0, 1, 1], [], []>} : vector<8x8xf32>, vector<8x256xf32>, vector<8x256xf32> -> vector<8x256xf32>
    %c5_318 = arith.constant 5 : index
    %c0_319 = arith.constant 0 : index
    %c0_320 = arith.constant 0 : index
    %327 = vector.load %arg2[%c5_318, %c0_319, %c0_320] : memref<9x256x256xf32, #tpu.memory_space<vmem>>, vector<1x256x256xf32>
    %328 = vector.shape_cast %327 : vector<1x256x256xf32> to vector<256x256xf32>
    %cst_321 = arith.constant dense<0.000000e+00> : vector<8x256xf32>
    %329 = tpu.matmul %326, %328, %cst_321 {dimension_numbers = #tpu.dot_dimension_numbers<[1], [0], [0], [1], [0, 0, 1, 1], [], []>} : vector<8x256xf32>, vector<256x256xf32>, vector<8x256xf32> -> vector<8x256xf32>
    %330 = arith.addf %323, %329 : vector<8x256xf32>
    %c0_322 = arith.constant 0 : index
    %c33 = arith.constant 33 : index
    %c0_323 = arith.constant 0 : index
    %c0_324 = arith.constant 0 : index
    %331 = vector.load %arg3[%c0_322, %c33, %c0_323, %c0_324] : memref<1x36x8x8xf32, #tpu.memory_space<vmem>>, vector<1x1x8x8xf32>
    %332 = vector.shape_cast %331 : vector<1x1x8x8xf32> to vector<8x8xf32>
    %cst_325 = arith.constant dense<0.000000e+00> : vector<8x256xf32>
    %333 = tpu.matmul %332, %287, %cst_325 {dimension_numbers = #tpu.dot_dimension_numbers<[1], [0], [0], [1], [0, 0, 1, 1], [], []>} : vector<8x8xf32>, vector<8x256xf32>, vector<8x256xf32> -> vector<8x256xf32>
    %c6_326 = arith.constant 6 : index
    %c0_327 = arith.constant 0 : index
    %c0_328 = arith.constant 0 : index
    %334 = vector.load %arg2[%c6_326, %c0_327, %c0_328] : memref<9x256x256xf32, #tpu.memory_space<vmem>>, vector<1x256x256xf32>
    %335 = vector.shape_cast %334 : vector<1x256x256xf32> to vector<256x256xf32>
    %cst_329 = arith.constant dense<0.000000e+00> : vector<8x256xf32>
    %336 = tpu.matmul %333, %335, %cst_329 {dimension_numbers = #tpu.dot_dimension_numbers<[1], [0], [0], [1], [0, 0, 1, 1], [], []>} : vector<8x256xf32>, vector<256x256xf32>, vector<8x256xf32> -> vector<8x256xf32>
    %337 = arith.addf %330, %336 : vector<8x256xf32>
    %c0_330 = arith.constant 0 : index
    %c34 = arith.constant 34 : index
    %c0_331 = arith.constant 0 : index
    %c0_332 = arith.constant 0 : index
    %338 = vector.load %arg3[%c0_330, %c34, %c0_331, %c0_332] : memref<1x36x8x8xf32, #tpu.memory_space<vmem>>, vector<1x1x8x8xf32>
    %339 = vector.shape_cast %338 : vector<1x1x8x8xf32> to vector<8x8xf32>
    %cst_333 = arith.constant dense<0.000000e+00> : vector<8x256xf32>
    %340 = tpu.matmul %339, %287, %cst_333 {dimension_numbers = #tpu.dot_dimension_numbers<[1], [0], [0], [1], [0, 0, 1, 1], [], []>} : vector<8x8xf32>, vector<8x256xf32>, vector<8x256xf32> -> vector<8x256xf32>
    %c7_334 = arith.constant 7 : index
    %c0_335 = arith.constant 0 : index
    %c0_336 = arith.constant 0 : index
    %341 = vector.load %arg2[%c7_334, %c0_335, %c0_336] : memref<9x256x256xf32, #tpu.memory_space<vmem>>, vector<1x256x256xf32>
    %342 = vector.shape_cast %341 : vector<1x256x256xf32> to vector<256x256xf32>
    %cst_337 = arith.constant dense<0.000000e+00> : vector<8x256xf32>
    %343 = tpu.matmul %340, %342, %cst_337 {dimension_numbers = #tpu.dot_dimension_numbers<[1], [0], [0], [1], [0, 0, 1, 1], [], []>} : vector<8x256xf32>, vector<256x256xf32>, vector<8x256xf32> -> vector<8x256xf32>
    %344 = arith.addf %337, %343 : vector<8x256xf32>
    %c0_338 = arith.constant 0 : index
    %c35 = arith.constant 35 : index
    %c0_339 = arith.constant 0 : index
    %c0_340 = arith.constant 0 : index
    %345 = vector.load %arg3[%c0_338, %c35, %c0_339, %c0_340] : memref<1x36x8x8xf32, #tpu.memory_space<vmem>>, vector<1x1x8x8xf32>
    %346 = vector.shape_cast %345 : vector<1x1x8x8xf32> to vector<8x8xf32>
    %cst_341 = arith.constant dense<0.000000e+00> : vector<8x256xf32>
    %347 = tpu.matmul %346, %287, %cst_341 {dimension_numbers = #tpu.dot_dimension_numbers<[1], [0], [0], [1], [0, 0, 1, 1], [], []>} : vector<8x8xf32>, vector<8x256xf32>, vector<8x256xf32> -> vector<8x256xf32>
    %c8_342 = arith.constant 8 : index
    %c0_343 = arith.constant 0 : index
    %c0_344 = arith.constant 0 : index
    %348 = vector.load %arg2[%c8_342, %c0_343, %c0_344] : memref<9x256x256xf32, #tpu.memory_space<vmem>>, vector<1x256x256xf32>
    %349 = vector.shape_cast %348 : vector<1x256x256xf32> to vector<256x256xf32>
    %cst_345 = arith.constant dense<0.000000e+00> : vector<8x256xf32>
    %350 = tpu.matmul %347, %349, %cst_345 {dimension_numbers = #tpu.dot_dimension_numbers<[1], [0], [0], [1], [0, 0, 1, 1], [], []>} : vector<8x256xf32>, vector<256x256xf32>, vector<8x256xf32> -> vector<8x256xf32>
    %351 = arith.addf %344, %350 : vector<8x256xf32>
    %c0_346 = arith.constant 0 : index
    %c3_347 = arith.constant 3 : index
    %c0_348 = arith.constant 0 : index
    %c0_349 = arith.constant 0 : index
    %352 = vector.load %arg4[%c0_346, %c3_347, %c0_348, %c0_349] : memref<1x4x8x1xf32, #tpu.memory_space<vmem>>, vector<1x1x8x1xf32>
    %353 = vector.shape_cast %352 : vector<1x1x8x1xf32> to vector<8x1xf32>
    %354 = vector.broadcast %353 : vector<8x1xf32> to vector<8x256xf32>
    %355 = arith.addf %351, %354 : vector<8x256xf32>
    %cst_350 = arith.constant dense<0.000000e+00> : vector<8xf32>
    %356 = vector.multi_reduction <add>, %355, %cst_350 [1] : vector<8x256xf32> to vector<8xf32>
    %357 = vector.shape_cast %356 : vector<8xf32> to vector<8x1xf32>
    %cst_351 = arith.constant 2.560000e+02 : f32
    %358 = vector.broadcast %cst_351 : f32 to vector<8x1xf32>
    %359 = arith.divf %357, %358 : vector<8x1xf32>
    %360 = vector.broadcast %359 : vector<8x1xf32> to vector<8x256xf32>
    %361 = arith.subf %355, %360 : vector<8x256xf32>
    %362 = arith.mulf %361, %361 : vector<8x256xf32>
    %cst_352 = arith.constant dense<0.000000e+00> : vector<8xf32>
    %363 = vector.multi_reduction <add>, %362, %cst_352 [1] : vector<8x256xf32> to vector<8xf32>
    %364 = vector.shape_cast %363 : vector<8xf32> to vector<8x1xf32>
    %cst_353 = arith.constant 2.560000e+02 : f32
    %365 = vector.broadcast %cst_353 : f32 to vector<8x1xf32>
    %366 = arith.divf %364, %365 : vector<8x1xf32>
    %c0_354 = arith.constant 0 : index
    %c3_355 = arith.constant 3 : index
    %c0_356 = arith.constant 0 : index
    %c0_357 = arith.constant 0 : index
    %367 = vector.load %arg5[%c0_354, %c3_355, %c0_356, %c0_357] : memref<1x4x8x1xf32, #tpu.memory_space<vmem>>, vector<1x1x8x1xf32>
    %368 = vector.shape_cast %367 : vector<1x1x8x1xf32> to vector<8x1xf32>
    %369 = vector.broadcast %359 : vector<8x1xf32> to vector<8x256xf32>
    %370 = arith.subf %355, %369 : vector<8x256xf32>
    %cst_358 = arith.constant 9.99999974E-6 : f32
    %371 = vector.broadcast %cst_358 : f32 to vector<8x1xf32>
    %372 = arith.addf %366, %371 : vector<8x1xf32>
    %373 = math.rsqrt %372 : vector<8x1xf32>
    %374 = vector.broadcast %373 : vector<8x1xf32> to vector<8x256xf32>
    %375 = arith.mulf %370, %374 : vector<8x256xf32>
    %376 = vector.broadcast %368 : vector<8x1xf32> to vector<8x256xf32>
    %377 = arith.mulf %376, %375 : vector<8x256xf32>
    %c0_359 = arith.constant 0 : index
    %c3_360 = arith.constant 3 : index
    %c0_361 = arith.constant 0 : index
    %c0_362 = arith.constant 0 : index
    %378 = vector.load %arg6[%c0_359, %c3_360, %c0_361, %c0_362] : memref<1x4x8x1xf32, #tpu.memory_space<vmem>>, vector<1x1x8x1xf32>
    %379 = vector.shape_cast %378 : vector<1x1x8x1xf32> to vector<8x1xf32>
    %380 = vector.broadcast %379 : vector<8x1xf32> to vector<8x256xf32>
    %381 = arith.addf %377, %380 : vector<8x256xf32>
    %382 = arith.addf %191, %381 : vector<8x256xf32>
    %c0_363 = arith.constant 0 : index
    %c0_364 = arith.constant 0 : index
    %c0_365 = arith.constant 0 : index
    %383 = vector.load %arg7[%c0_363, %c0_364, %c0_365] : memref<1x8x1xf32, #tpu.memory_space<vmem>>, vector<1x8x1xf32>
    %384 = vector.shape_cast %383 : vector<1x8x1xf32> to vector<8x1xf32>
    %385 = vector.broadcast %384 : vector<8x1xf32> to vector<8x256xf32>
    %386 = arith.mulf %385, %382 : vector<8x256xf32>
    %c0_366 = arith.constant 0 : index
    %c0_367 = arith.constant 0 : index
    %c0_368 = arith.constant 0 : index
    %387 = vector.load %arg8[%c0_366, %c0_367, %c0_368] : memref<1x8x256xf32, #tpu.memory_space<vmem>>, vector<1x8x256xf32>
    %388 = vector.shape_cast %387 : vector<1x8x256xf32> to vector<8x256xf32>
    %389 = vector.shape_cast %386 : vector<8x256xf32> to vector<1x8x256xf32>
    tpu.vector_store %arg8[%c0_366, %c0_367, %c0_368], %389 {strides = array<i32>} : memref<1x8x256xf32, #tpu.memory_space<vmem>>, vector<1x8x256xf32>,
    return
  }
  func.func @transform_0(%arg0: i32) -> (i32, i32) {
    %c0_i32 = arith.constant 0 : i32
    %c0_i32_0 = arith.constant 0 : i32
    %c0_i32_1 = arith.constant 0 : i32
    return %c0_i32, %c0_i32_0 : i32, i32
  }
  func.func @transform_1(%arg0: i32) -> (i32, i32, i32) {
    %c0_i32 = arith.constant 0 : i32
    %c0_i32_0 = arith.constant 0 : i32
    %c0_i32_1 = arith.constant 0 : i32
    %c0_i32_2 = arith.constant 0 : i32
    return %c0_i32, %c0_i32_0, %c0_i32_1 : i32, i32, i32
  }
  func.func @transform_2(%arg0: i32) -> (i32, i32, i32, i32) {
    %c0_i32 = arith.constant 0 : i32
    %c0_i32_0 = arith.constant 0 : i32
    %c0_i32_1 = arith.constant 0 : i32
    %c0_i32_2 = arith.constant 0 : i32
    return %arg0, %c0_i32, %c0_i32_0, %c0_i32_1 : i32, i32, i32, i32
  }
  func.func @transform_3(%arg0: i32) -> (i32, i32, i32, i32) {
    %c0_i32 = arith.constant 0 : i32
    %c0_i32_0 = arith.constant 0 : i32
    %c0_i32_1 = arith.constant 0 : i32
    %c0_i32_2 = arith.constant 0 : i32
    return %arg0, %c0_i32, %c0_i32_0, %c0_i32_1 : i32, i32, i32, i32
  }
  func.func @transform_4(%arg0: i32) -> (i32, i32, i32, i32) {
    %c0_i32 = arith.constant 0 : i32
    %c0_i32_0 = arith.constant 0 : i32
    %c0_i32_1 = arith.constant 0 : i32
    %c0_i32_2 = arith.constant 0 : i32
    return %arg0, %c0_i32, %c0_i32_0, %c0_i32_1 : i32, i32, i32, i32
  }
  func.func @transform_5(%arg0: i32) -> (i32, i32, i32, i32) {
    %c0_i32 = arith.constant 0 : i32
    %c0_i32_0 = arith.constant 0 : i32
    %c0_i32_1 = arith.constant 0 : i32
    %c0_i32_2 = arith.constant 0 : i32
    return %arg0, %c0_i32, %c0_i32_0, %c0_i32_1 : i32, i32, i32, i32
  }
  func.func @transform_6(%arg0: i32) -> (i32, i32, i32) {
    %c0_i32 = arith.constant 0 : i32
    %c0_i32_0 = arith.constant 0 : i32
    %c0_i32_1 = arith.constant 0 : i32
    return %arg0, %c0_i32, %c0_i32_0 : i32, i32, i32
  }
  func.func @transform_7(%arg0: i32) -> (i32, i32, i32) {
    %c0_i32 = arith.constant 0 : i32
    %c0_i32_0 = arith.constant 0 : i32
    %c0_i32_1 = arith.constant 0 : i32
    return %arg0, %c0_i32, %c0_i32_0 : i32, i32, i32
  }
}

</mosaic_0001>

<bundles_post_ra>
// kernel: tile.123
= control target key start
LH: loop header
LB: loop body
LE: loop exit
PB: predicated region body
PF: predicated region fallthrough
CT: control target
= control target key end

     0   :  { %s22_s0 = inlined_call_operand.vmem [shape: f32[4], index: 0, kind: input, shape index: {}]   ;;  %s23_s1 = inlined_call_operand.vmem [shape: f32[2,4], index: 1, kind: output, shape index: {}]  }
   0x1   :  { %v4_v0 = vld [vmem:[%s22_s0] ss:$0 sm:$0xff] }
   0x2   :  { %5 = vst [vmem:[%s23_s1] sm:$0x3] %v4_v0 }

// kernel: tile.159
= control target key start
LH: loop header
LB: loop body
LE: loop exit
PB: predicated region body
PF: predicated region fallthrough
CT: control target
= control target key end

     0   :  { %2 = vsyncpa [#allocation1], 0  ;;  %s42_s6 = smov [#allocation0]   ;;  %s59_s0 = inlined_call_operand.hbm [shape: f32[4], index: 0, kind: input, shape index: {}]   ;;  %s60_s1 = inlined_call_operand.vmem [shape: f32[2,4], index: 1, kind: output, shape index: {}]  }
   0x1   :  { %s9_s7 = sshll.u32 %s42_s6, 4  ;;  %s10_s7 = int_to_ptr.vmem [resolvable:$true] %s9_s7 }
   0x2   :  { %s28_s8 = scalar_lea.vmem %s10_s7, 16  ;;  %s32_s9 = scalar_lea.vmem %s10_s7, 32 }
   0x3   :  { %p29_p0 = scmp.ne.s32.totalorder %s10_s7, %s28_s8  ;;  %p33_p1 = scmp.lt.s32.totalorder %s10_s7, %s10_s7 }
   0x4   :  { %p34_p2 = scmp.lt.s32.totalorder %s32_s9, %s28_s8 }
   0x6   :  { %p35_p3 = por %p34_p2, %p33_p1 }
   0x8   :  { %p36_p4 = pnand %p35_p3, %p29_p0 }
   0xa   :  { %39 = shalt.err (!%p36_p4)
}
   0xb   :  { %12 = dma.hbm_to_vmem [thread:$0]  %s59_s0, 16, %s10_s7, [#allocation1]  }
   0xc   :  { %40 = dma.done.wait [#allocation1], 16  }
   0xd   :  { %41 = vsyncadd [#allocation1], 4294967280  ;;  %v16_v0 = vld [vmem:[#allocation0] ss:$0 sm:$0xff] }
   0xe   :  { %17 = vst [vmem:[%s60_s1] sm:$0x3] %v16_v0 }
   0xf   :  { %18 = vsyncpa [#allocation1], 1 }

// kernel: tile.168
= control target key start
LH: loop header
LB: loop body
LE: loop exit
PB: predicated region body
PF: predicated region fallthrough
CT: control target
= control target key end

     0   :  { %vm8_vm0 = vcmask 31744   ;;  %vm14_vm1 = vcmask 64544   ;;  %s42_s0 = inlined_call_operand.vmem [shape: f32[2,4], index: 0, kind: input, shape index: {}]   ;;  %s43_s1 = inlined_call_operand.vmem [shape: f32[1,8], index: 1, kind: output, shape index: {}]  }
   0x1   :  { %v5_v0 = vld [vmem:[%s42_s0] sm:$0x3]  ;;  %s25_s0 = smov 4  }
   0x2   :  { %6 = vst [vmem:[#allocation1] sm:$0x3] %v5_v0 }
   0x9   :  { %v11_v1 = vld [vmem:[#allocation1 + $0x1] sm:$0x1]   ;;  %v7_v2 = vld [vmem:[#allocation1] sm:$0x1]  }
   0xa   :  { %12 = vrot.lane.b32.xlu0 %v11_v1, %s25_s0  ;;  %9 = vst.msk [vmem:[#allocation0] sm:$0x1] %vm8_vm0, %v7_v2  }
  0x7c   :  { %v13_v3 = vpop.permute.xlu0 %12  }
  0x7d   :  { %15 = vst.msk [vmem:[#allocation0] sm:$0x1] %vm14_vm1, %v13_v3  }
  0x84   :  { %v20_v4 = vld [vmem:[#allocation0] sm:$0x1] }
  0x85   :  { %23 = vst [vmem:[%s43_s1] sm:$0x1] %v20_v4 }

// kernel: squeeze.235
= control target key start
LH: loop header
LB: loop body
LE: loop exit
PB: predicated region body
PF: predicated region fallthrough
CT: control target
= control target key end

     0   :  { %vm8_vm0 = vcmask 23552   ;;  %s52_s0 = inlined_call_operand.vmem [shape: f32[1,2,6], index: 0, kind: input, shape index: {}]   ;;  %s53_s1 = inlined_call_operand.vmem [shape: f32[2,2,3], index: 1, kind: output, shape index: {}]  }
   0x1   :  { %v5_v0 = vld [vmem:[%s52_s0] sm:$0x3]  ;;  %s32_s0 = smov 125  }
   0x2   :  { %6 = vst [vmem:[#allocation1] sm:$0x3] %v5_v0 }
   0x9   :  { %v10_v1 = vld [vmem:[#allocation1] sm:$0x3]  }
   0xa   :  { %v7_v2 = vld [vmem:[#allocation1] sm:$0x3]   ;;  %11 = vrot.lane.b32.xlu0 %v10_v1, %s32_s0 }
   0xb   :  { %9 = vst.msk [vmem:[#allocation0] ss:$8 sm:$0x3] %vm8_vm0, %v7_v2  }
  0x7c   :  { %v12_v3 = vpop.permute.xlu0 %11  }
  0x7d   :  { %15 = vst.msk [vmem:[#allocation0 + $0x1] ss:$8 sm:$0x3] %vm8_vm0, %v12_v3  }
  0x84   :  { %v20_v4 = vld [vmem:[#allocation0] sm:$0x3]  ;;  %v25_v5 = vld [vmem:[#allocation0 + $0x8] sm:$0x3] }
  0x85   :  { %23 = vst [vmem:[%s53_s1] sm:$0x3] %v20_v4  ;;  %30 = vst [vmem:[%s53_s1 + $0x2] sm:$0x3] %v25_v5 }

// kernel: adaptive_routing_forward.3
= control target key start
LH: loop header
LB: loop body
LE: loop exit
PB: predicated region body
PF: predicated region fallthrough
CT: control target
= control target key end

     0   :  { %v2318_v0 = vmov 0.0   ;;  %vm2319_vm0 = vmmov 0   ;;  %vm38_vm1 = vcmask 261120   ;;  %vm282_vm2 = vcmask 254976   ;;  %s2862_s1 = inlined_call_operand.vmem [shape: f32[7,32,32], index: 1, kind: input, shape index: {}]   ;;  %s2863_s3 = inlined_call_operand.vmem [shape: f32[7,32,32], index: 3, kind: input, shape index: {}]   ;;  %s2864_s0 = inlined_call_operand.vmem [shape: f32[2,32], index: 0, kind: input, shape index: {}]   ;;  %s2865_s5 = inlined_call_operand.vmem [shape: f32[7,32,32], index: 5, kind: input, shape index: {}]   ;;  %s2866_s2 = inlined_call_operand.vmem [shape: f32[7,1,32], index: 2, kind: input, shape index: {}]   ;;  %s2867_s4 = inlined_call_operand.vmem [shape: f32[7,1,32], index: 4, kind: input, shape index: {}]   ;;  %s2868_s6 = inlined_call_operand.vmem [shape: f32[7,1,32], index: 6, kind: input, shape index: {}]   ;;  %s2869_s7 = inlined_call_operand.vmem [shape: f32[7,2,32], index: 7, kind: output, shape index: {}]  }
   0x1   :  { %2085 = vmatprep.subr.mxu0 %v2318_v0  ;;  %v30_v1 = vld [vmem:[%s2862_s1 + $0x18] sm:$0xff]  ;;  %v29_v2 = vld [vmem:[%s2862_s1 + $0x10] sm:$0xff]  ;;  %2093 = vmatprep.mubr.msk.f32.mxu0 %vm2319_vm0, %v2318_v0  ;;  %v28_v4 = vld [vmem:[%s2862_s1 + $0x8] sm:$0xff] }
   0x2   :  { %2086 = vmatpush3.msra.mxu0 %v30_v1  ;;  %2096 = vmatprep.subr.mxu1 %v2318_v0  ;;  %v116_v3 = vld [vmem:[%s2863_s3 + $0x18] sm:$0xff]  ;;  %v115_v5 = vld [vmem:[%s2863_s3 + $0x10] sm:$0xff]  ;;  %v27_v6 = vld [vmem:[%s2862_s1] sm:$0xff] }
   0x3   :  { %2087 = vmatprep.subr.mxu0 %v2318_v0  ;;  %2097 = vmatpush3.msra.mxu1 %v116_v3  ;;  %v2388_v7 = vld [vmem:[%s2864_s0] sm:$0x3]  ;;  %v114_v8 = vld [vmem:[%s2863_s3 + $0x8] sm:$0xff]  ;;  %v201_v10 = vld [vmem:[%s2865_s5 + $0x18] sm:$0xff] }
   0x4   :  { %2088 = vmatpush3.msra.mxu0 %v29_v2  ;;  %2098 = vmatprep.subr.mxu1 %v2318_v0  ;;  %v113_v9 = vld [vmem:[%s2863_s3] sm:$0xff]  ;;  %v200_v11 = vld [vmem:[%s2865_s5 + $0x10] sm:$0xff]  ;;  %v1851_v17 = vld [vmem:[%s2862_s1 + $0x38] sm:$0xff] }
   0x5   :  { %2089 = vmatprep.subr.mxu0 %v2318_v0  ;;  %2099 = vmatpush3.msra.mxu1 %v115_v5  ;;  %v1842_v12 = vld [vmem:[%s2866_s2] ss:$0 sm:$0xff]  ;;  %v1850_v18 = vld [vmem:[%s2862_s1 + $0x30] sm:$0xff]  ;;  %v1849_v19 = vld [vmem:[%s2862_s1 + $0x28] sm:$0xff] }
   0x6   :  { %2090 = vmatpush3.msra.mxu0 %v28_v4  ;;  %2100 = vmatprep.subr.mxu1 %v2318_v0  ;;  %v1848_v20 = vld [vmem:[%s2862_s1 + $0x20] sm:$0xff]  ;;  %v199_v21 = vld [vmem:[%s2865_s5 + $0x8] sm:$0xff]  ;;  %v1858_v28 = vld [vmem:[%s2863_s3 + $0x38] sm:$0xff] }
   0x7   :  { %2091 = vmatprep.subr.mxu0 %v2318_v0  ;;  %2104 = vmatprep.mubr.msk.f32.mxu1 %vm2319_vm0, %v2318_v0  ;;  %v198_v22 = vld [vmem:[%s2865_s5] sm:$0xff]  ;;  %v1857_v29 = vld [vmem:[%s2863_s3 + $0x30] sm:$0xff]  ;;  %v1856_v31 = vld [vmem:[%s2863_s3 + $0x28] sm:$0xff] }
   0x8   :  { %2092 = vmatpush3.msra.mxu0 %v27_v6  ;;  %2101 = vmatpush3.msra.mxu1 %v114_v8  ;;  %v1844_v23 = vld [vmem:[%s2867_s4] ss:$0 sm:$0xff]  ;;  %v1853_v30 = vld [vmem:[%s2866_s2 + $0x1] ss:$0 sm:$0xff]  ;;  %v1873_v37 = vld [vmem:[%s2862_s1 + $0x58] sm:$0xff] }
   0x9   :  { %2094 = vmatmul.mubr.msk.f32.vlgmr.msra.gmra.mxu0 %vm38_vm1, %v2388_v7  ;;  %2107 = vmatprep.subr.mxu0 %v2318_v0  ;;  %v1855_v34 = vld [vmem:[%s2863_s3 + $0x20] sm:$0xff]  ;;  %v1872_v38 = vld [vmem:[%s2862_s1 + $0x50] sm:$0xff]  ;;  %v1871_v39 = vld [vmem:[%s2862_s1 + $0x48] sm:$0xff] }
   0xa   :  { %2115 = vmatprep.mubr.msk.f32.mxu0 %vm2319_vm0, %v2318_v0  ;;  %2102 = vmatprep.subr.mxu1 %v2318_v0  ;;  %v1870_v40 = vld [vmem:[%s2862_s1 + $0x40] sm:$0xff]  ;;  %v1865_v41 = vld [vmem:[%s2865_s5 + $0x38] sm:$0xff]  ;;  %v1864_v42 = vld [vmem:[%s2865_s5 + $0x30] sm:$0xff] }
   0xb   :  { %2103 = vmatpush3.msra.mxu1 %v113_v9  ;;  %2108 = vmatpush3.msra.mxu0 %v201_v10  ;;  %v1863_v43 = vld [vmem:[%s2865_s5 + $0x28] sm:$0xff]  ;;  %v1862_v44 = vld [vmem:[%s2865_s5 + $0x20] sm:$0xff]  ;;  %v1880_v54 = vld [vmem:[%s2863_s3 + $0x58] sm:$0xff] }
   0xc   :  { %2118 = vmatprep.subr.mxu1 %v2318_v0  ;;  %2109 = vmatprep.subr.mxu0 %v2318_v0  ;;  %v1846_v45 = vld [vmem:[%s2868_s6] ss:$0 sm:$0xff]  ;;  %v1860_v49 = vld [vmem:[%s2867_s4 + $0x1] ss:$0 sm:$0xff]  ;;  %v1879_v55 = vld [vmem:[%s2863_s3 + $0x50] sm:$0xff] }
   0xd   :  { %2110 = vmatpush3.msra.mxu0 %v200_v11  ;;  %v1875_v56 = vld [vmem:[%s2866_s2 + $0x2] ss:$0 sm:$0xff]  ;;  %v1878_v57 = vld [vmem:[%s2863_s3 + $0x48] sm:$0xff]  ;;  %v1895_v63 = vld [vmem:[%s2862_s1 + $0x78] sm:$0xff] }
   0xe   :  { %2111 = vmatprep.subr.mxu0 %v2318_v0  ;;  %v1877_v60 = vld [vmem:[%s2863_s3 + $0x40] sm:$0xff]  ;;  %v1894_v1 = vld [vmem:[%s2862_s1 + $0x70] sm:$0xff]  ;;  %v1893_v2 = vld [vmem:[%s2862_s1 + $0x68] sm:$0xff] }
   0xf   :  { %2112 = vmatpush3.msra.mxu0 %v199_v21  ;;  %v1892_v3 = vld [vmem:[%s2862_s1 + $0x60] sm:$0xff]  ;;  %v1887_v4 = vld [vmem:[%s2865_s5 + $0x58] sm:$0xff]  ;;  %v1886_v5 = vld [vmem:[%s2865_s5 + $0x50] sm:$0xff] }
  0x10   :  { %2113 = vmatprep.subr.mxu0 %v2318_v0  ;;  %v1885_v6 = vld [vmem:[%s2865_s5 + $0x48] sm:$0xff]  ;;  %v1884_v8 = vld [vmem:[%s2865_s5 + $0x40] sm:$0xff] }
  0x11   :  { %2114 = vmatpush3.msra.mxu0 %v198_v22  ;;  %v1867_v9 = vld [vmem:[%s2868_s6 + $0x1] ss:$0 sm:$0xff]  ;;  %v1900_v21 = vld [vmem:[%s2863_s3 + $0x68] sm:$0xff] }
  0x12   :  { %2129 = vmatprep.subr.mxu0 %v2318_v0 }
  0xc9   :  { %v108_v13 = vpop.f32.mrf.mxu0 }
  0xca   :  { %v109_v14 = vadd.f32 %v1842_v12, %v108_v13  ;;  %v1882_v13 = vld [vmem:[%s2867_s4 + $0x2] ss:$0 sm:$0xff] }
  0xcb   :  { %v2095_v15 = vpop.f32.mrf.mxu0 }
  0xcc   :  { %v112_v16 = vmax.f32 %v109_v14, 0.0 }
  0xce   :  { %2105 = vmatmul.mubr.msk.f32.vlgmr.msra.gmra.mxu1 %vm38_vm1, %v112_v16 }
  0xcf   :  { %2119 = vmatpush3.msra.mxu1 %v1851_v17  ;;  %2126 = vmatprep.mubr.msk.f32.mxu1 %vm2319_vm0, %v2318_v0 }
  0xd0   :  { %2120 = vmatprep.subr.mxu1 %v2318_v0 }
  0xd1   :  { %2121 = vmatpush3.msra.mxu1 %v1850_v18  ;;  %v1902_v18 = vld [vmem:[%s2863_s3 + $0x78] sm:$0xff] }
  0xd2   :  { %2122 = vmatprep.subr.mxu1 %v2318_v0 }
  0xd3   :  { %2123 = vmatpush3.msra.mxu1 %v1849_v19  ;;  %v1901_v19 = vld [vmem:[%s2863_s3 + $0x70] sm:$0xff] }
  0xd4   :  { %2124 = vmatprep.subr.mxu1 %v2318_v0 }
  0xd5   :  { %2125 = vmatpush3.msra.mxu1 %v1848_v20  ;;  %v1897_v20 = vld [vmem:[%s2866_s2 + $0x3] ss:$0 sm:$0xff] }
  0xd6   :  { %2127 = vmatmul.mubr.msk.f32.vlgmr.msra.gmra.mxu1 %vm38_vm1, %v2388_v7  ;;  %2140 = vmatprep.subr.mxu1 %v2318_v0 }
  0xd7   :  { %2148 = vmatprep.mubr.msk.f32.mxu1 %vm2319_vm0, %v2318_v0  ;;  %2141 = vmatpush3.msra.mxu1 %v1865_v41 }
  0xd8   :  { %2142 = vmatprep.subr.mxu1 %v2318_v0 }
  0xd9   :  { %2143 = vmatpush3.msra.mxu1 %v1864_v42 }
  0xda   :  { %2144 = vmatprep.subr.mxu1 %v2318_v0 }
  0xdb   :  { %2145 = vmatpush3.msra.mxu1 %v1863_v43 }
  0xdc   :  { %2146 = vmatprep.subr.mxu1 %v2318_v0 }
  0xdd   :  { %2147 = vmatpush3.msra.mxu1 %v1862_v44  ;;  %v1924_v44 = vld [vmem:[%s2863_s3 + $0x98] sm:$0xff] }
  0xde   :  { %2162 = vmatprep.subr.mxu1 %v2318_v0 }
 0x18e   :  { %v193_v24 = vpop.f32.mrf.mxu1 }
 0x18f   :  { %v194_v25 = vadd.f32 %v1844_v23, %v193_v24  ;;  %v1899_v24 = vld [vmem:[%s2863_s3 + $0x60] sm:$0xff] }
 0x190   :  { %v2106_v26 = vpop.f32.mrf.mxu1 }
 0x191   :  { %v197_v27 = vmax.f32 %v194_v25, 0.0 }
 0x193   :  { %2116 = vmatmul.mubr.msk.f32.vlgmr.msra.gmra.mxu0 %vm38_vm1, %v197_v27  ;;  %v1917_v27 = vld [vmem:[%s2862_s1 + $0x98] sm:$0xff] }
 0x194   :  { %2130 = vmatpush3.msra.mxu0 %v1858_v28  ;;  %2137 = vmatprep.mubr.msk.f32.mxu0 %vm2319_vm0, %v2318_v0  ;;  %v1916_v28 = vld [vmem:[%s2862_s1 + $0x90] sm:$0xff] }
 0x195   :  { %2131 = vmatprep.subr.mxu0 %v2318_v0 }
 0x196   :  { %v363_v32 = vpop.f32.mrf.mxu1  ;;  %2132 = vmatpush3.msra.mxu0 %v1857_v29  ;;  %v1915_v29 = vld [vmem:[%s2862_s1 + $0x88] sm:$0xff] }
 0x197   :  { %v364_v33 = vadd.f32 %v1853_v30, %v363_v32  ;;  %2133 = vmatprep.subr.mxu0 %v2318_v0  ;;  %v1914_v30 = vld [vmem:[%s2862_s1 + $0x80] sm:$0xff]  ;;  %v1908_v32 = vld [vmem:[%s2865_s5 + $0x70] sm:$0xff] }
 0x198   :  { %v2128_v35 = vpop.f32.mrf.mxu1  ;;  %2134 = vmatpush3.msra.mxu0 %v1856_v31  ;;  %v1909_v31 = vld [vmem:[%s2865_s5 + $0x78] sm:$0xff] }
 0x199   :  { %v367_v36 = vmax.f32 %v364_v33, 0.0  ;;  %2135 = vmatprep.subr.mxu0 %v2318_v0  ;;  %v1907_v33 = vld [vmem:[%s2865_s5 + $0x68] sm:$0xff]  ;;  %v1889_v35 = vld [vmem:[%s2868_s6 + $0x2] ss:$0 sm:$0xff] }
 0x19a   :  { %2136 = vmatpush3.msra.mxu0 %v1855_v34  ;;  %v1906_v34 = vld [vmem:[%s2865_s5 + $0x60] sm:$0xff] }
 0x19b   :  { %2138 = vmatmul.mubr.msk.f32.vlgmr.msra.gmra.mxu0 %vm38_vm1, %v367_v36  ;;  %2151 = vmatprep.subr.mxu0 %v2318_v0 }
 0x19c   :  { %2152 = vmatpush3.msra.mxu0 %v1873_v37  ;;  %2159 = vmatprep.mubr.msk.f32.mxu0 %vm2319_vm0, %v2318_v0 }
 0x19d   :  { %2153 = vmatprep.subr.mxu0 %v2318_v0 }
 0x19e   :  { %2154 = vmatpush3.msra.mxu0 %v1872_v38 }
 0x19f   :  { %2155 = vmatprep.subr.mxu0 %v2318_v0 }
 0x1a0   :  { %2156 = vmatpush3.msra.mxu0 %v1871_v39  ;;  %v1904_v39 = vld [vmem:[%s2867_s4 + $0x3] ss:$0 sm:$0xff] }
 0x1a1   :  { %2157 = vmatprep.subr.mxu0 %v2318_v0 }
 0x1a2   :  { %2158 = vmatpush3.msra.mxu0 %v1870_v40 }
 0x1a3   :  { %2160 = vmatmul.mubr.msk.f32.vlgmr.msra.gmra.mxu0 %vm38_vm1, %v2388_v7  ;;  %2173 = vmatprep.subr.mxu0 %v2318_v0 }
 0x1a4   :  { %2181 = vmatprep.mubr.msk.f32.mxu0 %vm2319_vm0, %v2318_v0  ;;  %2174 = vmatpush3.msra.mxu0 %v1887_v4 }
 0x1a5   :  { %2175 = vmatprep.subr.mxu0 %v2318_v0 }
 0x1a6   :  { %2176 = vmatpush3.msra.mxu0 %v1886_v5 }
 0x1a7   :  { %2177 = vmatprep.subr.mxu0 %v2318_v0 }
 0x1a8   :  { %2178 = vmatpush3.msra.mxu0 %v1885_v6 }
 0x1a9   :  { %2179 = vmatprep.subr.mxu0 %v2318_v0 }
 0x1aa   :  { %2180 = vmatpush3.msra.mxu0 %v1884_v8  ;;  %v1946_v8 = vld [vmem:[%s2863_s3 + $0xb8] sm:$0xff] }
 0x1ab   :  { %2195 = vmatprep.subr.mxu0 %v2318_v0 }
 0x253   :  { %v278_v46 = vpop.f32.mrf.mxu0 }
 0x254   :  { %v279_v47 = vadd.f32 %v1846_v45, %v278_v46  ;;  %v1923_v45 = vld [vmem:[%s2863_s3 + $0x90] sm:$0xff]  ;;  %v1919_v46 = vld [vmem:[%s2866_s2 + $0x4] ss:$0 sm:$0xff] }
 0x255   :  { %v2117_v48 = vpop.f32.mrf.mxu0 }
 0x256   :  { %283 = vst.msk [vmem:[%s2869_s7] sm:$0x3] %vm282_vm2, %v279_v47  ;;  %v1922_v47 = vld [vmem:[%s2863_s3 + $0x88] sm:$0xff] }
 0x25b   :  { %v450_v50 = vpop.f32.mrf.mxu0 }
 0x25c   :  { %v451_v51 = vadd.f32 %v1860_v49, %v450_v50  ;;  %v1921_v50 = vld [vmem:[%s2863_s3 + $0x80] sm:$0xff] }
 0x25d   :  { %v2139_v52 = vpop.f32.mrf.mxu0 }
 0x25e   :  { %v454_v53 = vmax.f32 %v451_v51, 0.0 }
 0x260   :  { %2149 = vmatmul.mubr.msk.f32.vlgmr.msra.gmra.mxu1 %vm38_vm1, %v454_v53  ;;  %v1939_v53 = vld [vmem:[%s2862_s1 + $0xb8] sm:$0xff] }
 0x261   :  { %2163 = vmatpush3.msra.mxu1 %v1880_v54  ;;  %2170 = vmatprep.mubr.msk.f32.mxu1 %vm2319_vm0, %v2318_v0  ;;  %v1938_v54 = vld [vmem:[%s2862_s1 + $0xb0] sm:$0xff] }
 0x262   :  { %2164 = vmatprep.subr.mxu1 %v2318_v0 }
 0x263   :  { %2165 = vmatpush3.msra.mxu1 %v1879_v55  ;;  %v622_v58 = vpop.f32.mrf.mxu0  ;;  %v1937_v55 = vld [vmem:[%s2862_s1 + $0xa8] sm:$0xff] }
 0x264   :  { %v623_v59 = vadd.f32 %v1875_v56, %v622_v58  ;;  %2166 = vmatprep.subr.mxu1 %v2318_v0  ;;  %v1936_v56 = vld [vmem:[%s2862_s1 + $0xa0] sm:$0xff]  ;;  %v1930_v58 = vld [vmem:[%s2865_s5 + $0x90] sm:$0xff] }
 0x265   :  { %2167 = vmatpush3.msra.mxu1 %v1878_v57  ;;  %v2161_v61 = vpop.f32.mrf.mxu0  ;;  %v1931_v57 = vld [vmem:[%s2865_s5 + $0x98] sm:$0xff] }
 0x266   :  { %v626_v62 = vmax.f32 %v623_v59, 0.0  ;;  %2168 = vmatprep.subr.mxu1 %v2318_v0  ;;  %v1929_v59 = vld [vmem:[%s2865_s5 + $0x88] sm:$0xff]  ;;  %v1911_v61 = vld [vmem:[%s2868_s6 + $0x3] ss:$0 sm:$0xff] }
 0x267   :  { %2169 = vmatpush3.msra.mxu1 %v1877_v60  ;;  %v1928_v60 = vld [vmem:[%s2865_s5 + $0x80] sm:$0xff] }
 0x268   :  { %2184 = vmatprep.subr.mxu1 %v2318_v0  ;;  %2171 = vmatmul.mubr.msk.f32.vlgmr.msra.gmra.mxu1 %vm38_vm1, %v626_v62 }
 0x269   :  { %2185 = vmatpush3.msra.mxu1 %v1895_v63  ;;  %2192 = vmatprep.mubr.msk.f32.mxu1 %vm2319_vm0, %v2318_v0 }
 0x26a   :  { %2186 = vmatprep.subr.mxu1 %v2318_v0 }
 0x26b   :  { %2187 = vmatpush3.msra.mxu1 %v1894_v1 }
 0x26c   :  { %2188 = vmatprep.subr.mxu1 %v2318_v0 }
 0x26d   :  { %2189 = vmatpush3.msra.mxu1 %v1893_v2  ;;  %v1926_v2 = vld [vmem:[%s2867_s4 + $0x4] ss:$0 sm:$0xff] }
 0x26e   :  { %2190 = vmatprep.subr.mxu1 %v2318_v0 }
 0x26f   :  { %2191 = vmatpush3.msra.mxu1 %v1892_v3 }
 0x270   :  { %2193 = vmatmul.mubr.msk.f32.vlgmr.msra.gmra.mxu1 %vm38_vm1, %v2388_v7  ;;  %2206 = vmatprep.subr.mxu1 %v2318_v0 }
 0x271   :  { %2214 = vmatprep.mubr.msk.f32.mxu1 %vm2319_vm0, %v2318_v0  ;;  %2207 = vmatpush3.msra.mxu1 %v1909_v31 }
 0x272   :  { %2208 = vmatprep.subr.mxu1 %v2318_v0 }
 0x273   :  { %2209 = vmatpush3.msra.mxu1 %v1908_v32 }
 0x274   :  { %2210 = vmatprep.subr.mxu1 %v2318_v0 }
 0x275   :  { %2211 = vmatpush3.msra.mxu1 %v1907_v33  ;;  %v1968_v33 = vld [vmem:[%s2863_s3 + $0xd8] sm:$0xff] }
 0x276   :  { %2212 = vmatprep.subr.mxu1 %v2318_v0 }
 0x277   :  { %2213 = vmatpush3.msra.mxu1 %v1906_v34  ;;  %v1967_v34 = vld [vmem:[%s2863_s3 + $0xd0] sm:$0xff] }
 0x278   :  { %2228 = vmatprep.subr.mxu1 %v2318_v0 }
 0x320   :  { %v537_v10 = vpop.f32.mrf.mxu1 }
 0x321   :  { %v538_v11 = vadd.f32 %v1867_v9, %v537_v10  ;;  %v1945_v9 = vld [vmem:[%s2863_s3 + $0xb0] sm:$0xff]  ;;  %v1941_v10 = vld [vmem:[%s2866_s2 + $0x5] ss:$0 sm:$0xff] }
 0x322   :  { %v2150_v12 = vpop.f32.mrf.mxu1 }
 0x323   :  { %1869 = vst.msk [vmem:[%s2869_s7 + $0x2] sm:$0x3] %vm282_vm2, %v538_v11  ;;  %v1944_v11 = vld [vmem:[%s2863_s3 + $0xa8] sm:$0xff] }
 0x328   :  { %v709_v14 = vpop.f32.mrf.mxu1 }
 0x329   :  { %v710_v15 = vadd.f32 %v1882_v13, %v709_v14  ;;  %v1943_v14 = vld [vmem:[%s2863_s3 + $0xa0] sm:$0xff] }
 0x32a   :  { %v2172_v16 = vpop.f32.mrf.mxu1 }
 0x32b   :  { %v713_v17 = vmax.f32 %v710_v15, 0.0 }
 0x32d   :  { %2182 = vmatmul.mubr.msk.f32.vlgmr.msra.gmra.mxu0 %vm38_vm1, %v713_v17  ;;  %v1961_v17 = vld [vmem:[%s2862_s1 + $0xd8] sm:$0xff] }
 0x32e   :  { %2196 = vmatpush3.msra.mxu0 %v1902_v18  ;;  %2203 = vmatprep.mubr.msk.f32.mxu0 %vm2319_vm0, %v2318_v0  ;;  %v1960_v18 = vld [vmem:[%s2862_s1 + $0xd0] sm:$0xff] }
 0x32f   :  { %2197 = vmatprep.subr.mxu0 %v2318_v0 }
 0x330   :  { %v881_v22 = vpop.f32.mrf.mxu1  ;;  %2198 = vmatpush3.msra.mxu0 %v1901_v19  ;;  %v1959_v19 = vld [vmem:[%s2862_s1 + $0xc8] sm:$0xff] }
 0x331   :  { %v882_v23 = vadd.f32 %v1897_v20, %v881_v22  ;;  %2199 = vmatprep.subr.mxu0 %v2318_v0  ;;  %v1958_v20 = vld [vmem:[%s2862_s1 + $0xc0] sm:$0xff]  ;;  %v1952_v22 = vld [vmem:[%s2865_s5 + $0xb0] sm:$0xff] }
 0x332   :  { %v2194_v25 = vpop.f32.mrf.mxu1  ;;  %2200 = vmatpush3.msra.mxu0 %v1900_v21  ;;  %v1953_v21 = vld [vmem:[%s2865_s5 + $0xb8] sm:$0xff] }
 0x333   :  { %v885_v26 = vmax.f32 %v882_v23, 0.0  ;;  %2201 = vmatprep.subr.mxu0 %v2318_v0  ;;  %v1950_v23 = vld [vmem:[%s2865_s5 + $0xa0] sm:$0xff] }
 0x334   :  { %2202 = vmatpush3.msra.mxu0 %v1899_v24  ;;  %v1933_v24 = vld [vmem:[%s2868_s6 + $0x4] ss:$0 sm:$0xff] }
 0x335   :  { %2204 = vmatmul.mubr.msk.f32.vlgmr.msra.gmra.mxu0 %vm38_vm1, %v885_v26  ;;  %2217 = vmatprep.subr.mxu0 %v2318_v0 }
 0x336   :  { %2218 = vmatpush3.msra.mxu0 %v1917_v27  ;;  %2225 = vmatprep.mubr.msk.f32.mxu0 %vm2319_vm0, %v2318_v0 }
 0x337   :  { %2219 = vmatprep.subr.mxu0 %v2318_v0 }
 0x338   :  { %2220 = vmatpush3.msra.mxu0 %v1916_v28  ;;  %v1948_v28 = vld [vmem:[%s2867_s4 + $0x5] ss:$0 sm:$0xff] }
 0x339   :  { %2221 = vmatprep.subr.mxu0 %v2318_v0 }
 0x33a   :  { %2222 = vmatpush3.msra.mxu0 %v1915_v29 }
 0x33b   :  { %2223 = vmatprep.subr.mxu0 %v2318_v0 }
 0x33c   :  { %2224 = vmatpush3.msra.mxu0 %v1914_v30 }
 0x33d   :  { %2226 = vmatmul.mubr.msk.f32.vlgmr.msra.gmra.mxu0 %vm38_vm1, %v2388_v7  ;;  %2239 = vmatprep.subr.mxu0 %v2318_v0 }
 0x33e   :  { %2247 = vmatprep.mubr.msk.f32.mxu0 %vm2319_vm0, %v2318_v0  ;;  %2240 = vmatpush3.msra.mxu0 %v1931_v57 }
 0x33f   :  { %2241 = vmatprep.subr.mxu0 %v2318_v0 }
 0x340   :  { %2242 = vmatpush3.msra.mxu0 %v1930_v58 }
 0x341   :  { %2243 = vmatprep.subr.mxu0 %v2318_v0 }
 0x342   :  { %2244 = vmatpush3.msra.mxu0 %v1929_v59 }
 0x343   :  { %2245 = vmatprep.subr.mxu0 %v2318_v0 }
 0x344   :  { %2246 = vmatpush3.msra.mxu0 %v1928_v60 }
 0x345   :  { %2261 = vmatprep.subr.mxu0 %v2318_v0 }
 0x3ed   :  { %v796_v36 = vpop.f32.mrf.mxu0 }
 0x3ee   :  { %v797_v37 = vadd.f32 %v1889_v35, %v796_v36  ;;  %v1963_v35 = vld [vmem:[%s2866_s2 + $0x6] ss:$0 sm:$0xff]  ;;  %v1966_v36 = vld [vmem:[%s2863_s3 + $0xc8] sm:$0xff] }
 0x3ef   :  { %v2183_v38 = vpop.f32.mrf.mxu0 }
 0x3f0   :  { %1891 = vst.msk [vmem:[%s2869_s7 + $0x4] sm:$0x3] %vm282_vm2, %v797_v37 }
 0x3f5   :  { %v968_v40 = vpop.f32.mrf.mxu0 }
 0x3f6   :  { %v969_v41 = vadd.f32 %v1904_v39, %v968_v40  ;;  %v1965_v39 = vld [vmem:[%s2863_s3 + $0xc0] sm:$0xff] }
 0x3f7   :  { %v2205_v42 = vpop.f32.mrf.mxu0 }
 0x3f8   :  { %v972_v43 = vmax.f32 %v969_v41, 0.0  ;;  %v1975_v42 = vld [vmem:[%s2865_s5 + $0xd8] sm:$0xff] }
 0x3fa   :  { %2215 = vmatmul.mubr.msk.f32.vlgmr.msra.gmra.mxu1 %vm38_vm1, %v972_v43  ;;  %v1974_v43 = vld [vmem:[%s2865_s5 + $0xd0] sm:$0xff] }
 0x3fb   :  { %2229 = vmatpush3.msra.mxu1 %v1924_v44  ;;  %2236 = vmatprep.mubr.msk.f32.mxu1 %vm2319_vm0, %v2318_v0  ;;  %v1973_v44 = vld [vmem:[%s2865_s5 + $0xc8] sm:$0xff] }
 0x3fc   :  { %2230 = vmatprep.subr.mxu1 %v2318_v0 }
 0x3fd   :  { %2231 = vmatpush3.msra.mxu1 %v1923_v45  ;;  %v1140_v48 = vpop.f32.mrf.mxu0  ;;  %v1972_v45 = vld [vmem:[%s2865_s5 + $0xc0] sm:$0xff] }
 0x3fe   :  { %v1141_v49 = vadd.f32 %v1919_v46, %v1140_v48  ;;  %2232 = vmatprep.subr.mxu1 %v2318_v0  ;;  %v1955_v46 = vld [vmem:[%s2868_s6 + $0x5] ss:$0 sm:$0xff] }
 0x3ff   :  { %2233 = vmatpush3.msra.mxu1 %v1922_v47  ;;  %v2227_v51 = vpop.f32.mrf.mxu0 }
 0x400   :  { %v1144_v52 = vmax.f32 %v1141_v49, 0.0  ;;  %2234 = vmatprep.subr.mxu1 %v2318_v0 }
 0x401   :  { %2235 = vmatpush3.msra.mxu1 %v1921_v50 }
 0x402   :  { %2250 = vmatprep.subr.mxu1 %v2318_v0  ;;  %2237 = vmatmul.mubr.msk.f32.vlgmr.msra.gmra.mxu1 %vm38_vm1, %v1144_v52 }
 0x403   :  { %2251 = vmatpush3.msra.mxu1 %v1939_v53  ;;  %2258 = vmatprep.mubr.msk.f32.mxu1 %vm2319_vm0, %v2318_v0 }
 0x404   :  { %2252 = vmatprep.subr.mxu1 %v2318_v0 }
 0x405   :  { %2253 = vmatpush3.msra.mxu1 %v1938_v54  ;;  %v1977_v54 = vld [vmem:[%s2868_s6 + $0x6] ss:$0 sm:$0xff] }
 0x406   :  { %2254 = vmatprep.subr.mxu1 %v2318_v0 }
 0x407   :  { %2255 = vmatpush3.msra.mxu1 %v1937_v55 }
 0x408   :  { %2256 = vmatprep.subr.mxu1 %v2318_v0 }
 0x409   :  { %2257 = vmatpush3.msra.mxu1 %v1936_v56 }
 0x40a   :  { %2259 = vmatmul.mubr.msk.f32.vlgmr.msra.gmra.mxu1 %vm38_vm1, %v2388_v7  ;;  %2272 = vmatprep.subr.mxu1 %v2318_v0 }
 0x40b   :  { %2280 = vmatprep.mubr.msk.f32.mxu1 %vm2319_vm0, %v2318_v0  ;;  %2273 = vmatpush3.msra.mxu1 %v1953_v21 }
 0x40c   :  { %2274 = vmatprep.subr.mxu1 %v2318_v0 }
 0x40d   :  { %2275 = vmatpush3.msra.mxu1 %v1952_v22 }
 0x40e   :  { %2276 = vmatprep.subr.mxu1 %v2318_v0 }
 0x4ba   :  { %v1055_v62 = vpop.f32.mrf.mxu1 }
 0x4bb   :  { %v1056_v63 = vadd.f32 %v1911_v61, %v1055_v62 }
 0x4bc   :  { %v2216_v1 = vpop.f32.mrf.mxu1 }
 0x4bd   :  { %1913 = vst.msk [vmem:[%s2869_s7 + $0x6] sm:$0x3] %vm282_vm2, %v1056_v63 }
 0x4c2   :  { %v1227_v3 = vpop.f32.mrf.mxu1 }
 0x4c3   :  { %v1228_v4 = vadd.f32 %v1926_v2, %v1227_v3 }
 0x4c4   :  { %v2238_v5 = vpop.f32.mrf.mxu1 }
 0x4c5   :  { %v1231_v6 = vmax.f32 %v1228_v4, 0.0 }
 0x4c7   :  { %2248 = vmatmul.mubr.msk.f32.vlgmr.msra.gmra.mxu0 %vm38_vm1, %v1231_v6 }
 0x4c8   :  { %2262 = vmatpush3.msra.mxu0 %v1946_v8  ;;  %2269 = vmatprep.mubr.msk.f32.mxu0 %vm2319_vm0, %v2318_v0 }
 0x4c9   :  { %2263 = vmatprep.subr.mxu0 %v2318_v0 }
 0x4ca   :  { %v1399_v12 = vpop.f32.mrf.mxu1  ;;  %2264 = vmatpush3.msra.mxu0 %v1945_v9 }
 0x4cb   :  { %v1400_v13 = vadd.f32 %v1941_v10, %v1399_v12  ;;  %2265 = vmatprep.subr.mxu0 %v2318_v0 }
 0x4cc   :  { %v2260_v15 = vpop.f32.mrf.mxu1  ;;  %2266 = vmatpush3.msra.mxu0 %v1944_v11 }
 0x4cd   :  { %v1403_v16 = vmax.f32 %v1400_v13, 0.0  ;;  %2267 = vmatprep.subr.mxu0 %v2318_v0 }
 0x4ce   :  { %2268 = vmatpush3.msra.mxu0 %v1943_v14 }
 0x4cf   :  { %2270 = vmatmul.mubr.msk.f32.vlgmr.msra.gmra.mxu0 %vm38_vm1, %v1403_v16  ;;  %2283 = vmatprep.subr.mxu0 %v2318_v0 }
 0x4d0   :  { %2284 = vmatpush3.msra.mxu0 %v1961_v17  ;;  %2291 = vmatprep.mubr.msk.f32.mxu0 %vm2319_vm0, %v2318_v0 }
 0x4d1   :  { %2285 = vmatprep.subr.mxu0 %v2318_v0 }
 0x4d2   :  { %2286 = vmatpush3.msra.mxu0 %v1960_v18 }
 0x4d3   :  { %2287 = vmatprep.subr.mxu0 %v2318_v0 }
 0x4d4   :  { %2288 = vmatpush3.msra.mxu0 %v1959_v19 }
 0x4d5   :  { %2289 = vmatprep.subr.mxu0 %v2318_v0 }
 0x4d6   :  { %2290 = vmatpush3.msra.mxu0 %v1958_v20 }
 0x4d7   :  { %2292 = vmatmul.mubr.msk.f32.vlgmr.msra.gmra.mxu0 %vm38_vm1, %v2388_v7  ;;  %2305 = vmatprep.subr.mxu0 %v2318_v0  ;;  %v1951_v7 = vld [vmem:[%s2865_s5 + $0xa8] sm:$0xff] }
 0x4d8   :  { %2313 = vmatprep.mubr.msk.f32.mxu0 %vm2319_vm0, %v2318_v0  ;;  %2277 = vmatpush3.msra.mxu1 %v1951_v7 }
 0x4d9   :  { %2278 = vmatprep.subr.mxu1 %v2318_v0  ;;  %2306 = vmatpush3.msra.mxu0 %v1975_v42 }
 0x4da   :  { %2279 = vmatpush3.msra.mxu1 %v1950_v23  ;;  %2307 = vmatprep.subr.mxu0 %v2318_v0 }
 0x4db   :  { %2294 = vmatprep.subr.mxu1 %v2318_v0  ;;  %2308 = vmatpush3.msra.mxu0 %v1974_v43 }
 0x4dc   :  { %2309 = vmatprep.subr.mxu0 %v2318_v0 }
 0x4dd   :  { %2310 = vmatpush3.msra.mxu0 %v1973_v44 }
 0x4de   :  { %2311 = vmatprep.subr.mxu0 %v2318_v0 }
 0x4df   :  { %2312 = vmatpush3.msra.mxu0 %v1972_v45 }
 0x587   :  { %v1314_v25 = vpop.f32.mrf.mxu0 }
 0x588   :  { %v1315_v26 = vadd.f32 %v1933_v24, %v1314_v25 }
 0x589   :  { %v2249_v27 = vpop.f32.mrf.mxu0 }
 0x58a   :  { %1935 = vst.msk [vmem:[%s2869_s7 + $0x8] sm:$0x3] %vm282_vm2, %v1315_v26 }
 0x58f   :  { %v1486_v29 = vpop.f32.mrf.mxu0 }
 0x590   :  { %v1487_v30 = vadd.f32 %v1948_v28, %v1486_v29 }
 0x591   :  { %v2271_v31 = vpop.f32.mrf.mxu0 }
 0x592   :  { %v1490_v32 = vmax.f32 %v1487_v30, 0.0 }
 0x594   :  { %2281 = vmatmul.mubr.msk.f32.vlgmr.msra.gmra.mxu1 %vm38_vm1, %v1490_v32 }
 0x595   :  { %2295 = vmatpush3.msra.mxu1 %v1968_v33  ;;  %2302 = vmatprep.mubr.msk.f32.mxu1 %vm2319_vm0, %v2318_v0 }
 0x596   :  { %2296 = vmatprep.subr.mxu1 %v2318_v0 }
 0x597   :  { %v1658_v37 = vpop.f32.mrf.mxu0  ;;  %2297 = vmatpush3.msra.mxu1 %v1967_v34 }
 0x598   :  { %v1659_v38 = vadd.f32 %v1963_v35, %v1658_v37  ;;  %2298 = vmatprep.subr.mxu1 %v2318_v0 }
 0x599   :  { %v2293_v40 = vpop.f32.mrf.mxu0  ;;  %2299 = vmatpush3.msra.mxu1 %v1966_v36 }
 0x59a   :  { %v1662_v41 = vmax.f32 %v1659_v38, 0.0  ;;  %2300 = vmatprep.subr.mxu1 %v2318_v0  ;;  %v1970_v0 = vld [vmem:[%s2867_s4 + $0x6] ss:$0 sm:$0xff] }
 0x59b   :  { %2301 = vmatpush3.msra.mxu1 %v1965_v39 }
 0x59c   :  { %2303 = vmatmul.mubr.msk.f32.vlgmr.msra.gmra.mxu1 %vm38_vm1, %v1662_v41 }
 0x654   :  { %v1573_v47 = vpop.f32.mrf.mxu1 }
 0x655   :  { %v1574_v48 = vadd.f32 %v1955_v46, %v1573_v47 }
 0x656   :  { %v2282_v49 = vpop.f32.mrf.mxu1 }
 0x657   :  { %1957 = vst.msk [vmem:[%s2869_s7 + $0xa] sm:$0x3] %vm282_vm2, %v1574_v48 }
 0x65c   :  { %v1745_v50 = vpop.f32.mrf.mxu1 }
 0x65d   :  { %v1746_v51 = vadd.f32 %v1970_v0, %v1745_v50 }
 0x65e   :  { %v2304_v52 = vpop.f32.mrf.mxu1 }
 0x65f   :  { %v1749_v53 = vmax.f32 %v1746_v51, 0.0 }
 0x661   :  { %2314 = vmatmul.mubr.msk.f32.vlgmr.msra.gmra.mxu0 %vm38_vm1, %v1749_v53 }
 0x721   :  { %v1832_v55 = vpop.f32.mrf.mxu0 }
 0x722   :  { %v1833_v56 = vadd.f32 %v1977_v54, %v1832_v55 }
 0x723   :  { %v2315_v57 = vpop.f32.mrf.mxu0 }
 0x724   :  { %1979 = vst.msk [vmem:[%s2869_s7 + $0xc] sm:$0x3] %vm282_vm2, %v1833_v56 }

// kernel: adaptive_routing_forward.4
= control target key start
LH: loop header
LB: loop body
LE: loop exit
PB: predicated region body
PF: predicated region fallthrough
CT: control target
= control target key end

     0   :  { %s8997_s24 = smov 0   ;;  %s16279_s0 = inlined_call_operand.vmem [shape: f32[8,256], index: 0, kind: input, shape index: {}]   ;;  %s16280_s1 = inlined_call_operand.vmem [shape: f32[9,256,256], index: 1, kind: input, shape index: {}]   ;;  %s16281_s2 = inlined_call_operand.vmem [shape: f32[3,36,8,8], index: 2, kind: input, shape index: {}]   ;;  %s16282_s3 = inlined_call_operand.vmem [shape: f32[3,4,8,1], index: 3, kind: input, shape index: {}]   ;;  %s16283_s4 = inlined_call_operand.vmem [shape: f32[3,4,8,1], index: 4, kind: input, shape index: {}]   ;;  %s16284_s5 = inlined_call_operand.vmem [shape: f32[3,4,8,1], index: 5, kind: input, shape index: {}]   ;;  %s16285_s6 = inlined_call_operand.vmem [shape: f32[3,8,1], index: 6, kind: input, shape index: {}]   ;;  %s16286_s7 = inlined_call_operand.vmem [shape: f32[3,8,256], index: 7, kind: output, shape index: {}]  }
   0x1 LB: > { %s6581_s25 = sadd.s32 4294967295, %s8953_s24   ;;  %p6585_p0 = scmp.ge.s32.totalorder %s8953_s24, 1  ;;  %s8953_s24 = sphi %s8997_s24, %s17_s24  }
   0x2   : > { %p276_p1 = scmp.lt.s32.totalorder %s8953_s24, 4 }
   0x4   : > { %p277_p2 = pnand %p6585_p0, %p276_p1 }
   0x5   : > { %p327_p3 = scmp.lt.s32.totalorder (!%p277_p2), %s6581_s25, 2 }
   0x6   : > { %280 = sbr.rel (%p277_p2) target bundleno = 6069 (0x17b5), region = 48 }
   0xb   : > { %v9008_v0 = vld [vmem:[%s16279_s0 + $0x8] sm:$0xff]  ;;  %v9013_v1 = vld [vmem:[%s16279_s0] sm:$0xff]  ;;  %v6630_v2 = vld [vmem:[%s16280_s1 + $0x2f8] sm:$0xff]  ;;  %v8955_v4 = vmov 0.0   ;;  %s16288_s25 = smov (!%p327_p3, %s6581_s25), 2  ;;  %vm359_vm0 = vcmask 64512  }
   0xc   : > { %393 = vmatprep.subr.mxu0 %v9008_v0  ;;  %533 = vmatprep.subr.mxu1 %v9008_v0  ;;  %v465_v3 = vld [vmem:[%s16280_s1 + $0xf8] sm:$0xff]  ;;  %s7194_s11 = smul.u32 288, %s16288_s25  ;;  %v6629_v5 = vld [vmem:[%s16280_s1 + $0x2f0] sm:$0xff]  ;;  %v6628_v7 = vld [vmem:[%s16280_s1 + $0x2e8] sm:$0xff]  ;;  %s10823_s29 = sshll.u32 %s16288_s25, 5 }
   0xd   : > { %394 = vmatpush1.msra.mxu0 %v9013_v1  ;;  %427 = vmatprep.mubr.f32.mxu0 %v8955_v4  ;;  %v464_v6 = vld [vmem:[%s16280_s1 + $0xf0] sm:$0xff]  ;;  %v463_v10 = vld [vmem:[%s16280_s1 + $0xe8] sm:$0xff]  ;;  %v6627_v11 = vld [vmem:[%s16280_s1 + $0x2e0] sm:$0xff]  ;;  %s11035_s15 = scalar_lea.vmem %s16283_s4, %s10823_s29  ;;  %s11045_s18 = scalar_lea.vmem %s16284_s5, %s10823_s29 }
   0xe   : > { %534 = vmatpush1.msra.mxu1 %v9013_v1  ;;  %567 = vmatprep.mubr.f32.mxu1 %v8955_v4  ;;  %s9033_s14 = scalar_lea.vmem %s16281_s2, %s7194_s11  ;;  %v462_v12 = vld [vmem:[%s16280_s1 + $0xe0] sm:$0xff]  ;;  %v6626_v13 = vld [vmem:[%s16280_s1 + $0x2d8] sm:$0xff]  ;;  %v6625_v15 = vld [vmem:[%s16280_s1 + $0x2d0] sm:$0xff]  ;;  %s10832_s11 = scalar_lea.vmem %s16282_s3, %s10823_s29 }
   0xf   : > { %639 = vmatprep.subr.mxu0 %v6630_v2  ;;  %710 = vmatprep.subr.mxu1 %v465_v3  ;;  %v358_v8 = vld [vmem:[%s9033_s14] sm:$0xff]  ;;  %v6597_v9 = vld [vmem:[%s9033_s14 + $0x8] sm:$0xff]  ;;  %v461_v14 = vld [vmem:[%s16280_s1 + $0xd8] sm:$0xff] }
  0x10   : > { %6596 = vmatmul.mubr.msk.f32.vlgmr.msra.gmra.mxu0 %vm359_vm0, %v358_v8  ;;  %6598 = vmatmul.mubr.msk.f32.vlgmr.msra.gmra.mxu1 %vm359_vm0, %v6597_v9  ;;  %v460_v16 = vld [vmem:[%s16280_s1 + $0xd0] sm:$0xff]  ;;  %v6624_v17 = vld [vmem:[%s16280_s1 + $0x2c8] sm:$0xff]  ;;  %v6623_v19 = vld [vmem:[%s16280_s1 + $0x2c0] sm:$0xff] }
  0x11   : > { %640 = vmatpush1.msra.mxu0 %v6629_v5  ;;  %711 = vmatpush1.msra.mxu1 %v464_v6  ;;  %v459_v18 = vld [vmem:[%s16280_s1 + $0xc8] sm:$0xff]  ;;  %v458_v20 = vld [vmem:[%s16280_s1 + $0xc0] sm:$0xff]  ;;  %v6622_v21 = vld [vmem:[%s16280_s1 + $0x2b8] sm:$0xff] }
  0x12   : > { %641 = vmatprep.subr.mxu0 %v6628_v7  ;;  %712 = vmatprep.subr.mxu1 %v463_v10  ;;  %v457_v22 = vld [vmem:[%s16280_s1 + $0xb8] sm:$0xff]  ;;  %v6621_v23 = vld [vmem:[%s16280_s1 + $0x2b0] sm:$0xff]  ;;  %v6620_v25 = vld [vmem:[%s16280_s1 + $0x2a8] sm:$0xff] }
  0x13   : > { %642 = vmatpush1.msra.mxu0 %v6627_v11  ;;  %713 = vmatpush1.msra.mxu1 %v462_v12  ;;  %v456_v24 = vld [vmem:[%s16280_s1 + $0xb0] sm:$0xff]  ;;  %v455_v26 = vld [vmem:[%s16280_s1 + $0xa8] sm:$0xff]  ;;  %v6619_v27 = vld [vmem:[%s16280_s1 + $0x2a0] sm:$0xff] }
  0x14   : > { %643 = vmatprep.subr.mxu0 %v6626_v13  ;;  %714 = vmatprep.subr.mxu1 %v461_v14  ;;  %v454_v28 = vld [vmem:[%s16280_s1 + $0xa0] sm:$0xff]  ;;  %v6618_v29 = vld [vmem:[%s16280_s1 + $0x298] sm:$0xff]  ;;  %v6617_v31 = vld [vmem:[%s16280_s1 + $0x290] sm:$0xff] }
  0x15   : > { %644 = vmatpush1.msra.mxu0 %v6625_v15  ;;  %715 = vmatpush1.msra.mxu1 %v460_v16  ;;  %v453_v30 = vld [vmem:[%s16280_s1 + $0x98] sm:$0xff]  ;;  %v452_v32 = vld [vmem:[%s16280_s1 + $0x90] sm:$0xff]  ;;  %v6616_v33 = vld [vmem:[%s16280_s1 + $0x288] sm:$0xff] }
  0x16   : > { %645 = vmatprep.subr.mxu0 %v6624_v17  ;;  %716 = vmatprep.subr.mxu1 %v459_v18  ;;  %v451_v34 = vld [vmem:[%s16280_s1 + $0x88] sm:$0xff]  ;;  %v6615_v35 = vld [vmem:[%s16280_s1 + $0x280] sm:$0xff]  ;;  %v6614_v37 = vld [vmem:[%s16280_s1 + $0x278] sm:$0xff] }
  0x17   : > { %646 = vmatpush1.msra.mxu0 %v6623_v19  ;;  %717 = vmatpush1.msra.mxu1 %v458_v20  ;;  %v450_v36 = vld [vmem:[%s16280_s1 + $0x80] sm:$0xff]  ;;  %v449_v38 = vld [vmem:[%s16280_s1 + $0x78] sm:$0xff]  ;;  %v6613_v39 = vld [vmem:[%s16280_s1 + $0x270] sm:$0xff] }
  0x18   : > { %647 = vmatprep.subr.mxu0 %v6622_v21  ;;  %718 = vmatprep.subr.mxu1 %v457_v22  ;;  %v448_v40 = vld [vmem:[%s16280_s1 + $0x70] sm:$0xff]  ;;  %v6612_v41 = vld [vmem:[%s16280_s1 + $0x268] sm:$0xff]  ;;  %v6611_v43 = vld [vmem:[%s16280_s1 + $0x260] sm:$0xff] }
  0x19   : > { %648 = vmatpush1.msra.mxu0 %v6621_v23  ;;  %719 = vmatpush1.msra.mxu1 %v456_v24  ;;  %v447_v42 = vld [vmem:[%s16280_s1 + $0x68] sm:$0xff]  ;;  %v446_v44 = vld [vmem:[%s16280_s1 + $0x60] sm:$0xff]  ;;  %v6610_v45 = vld [vmem:[%s16280_s1 + $0x258] sm:$0xff] }
  0x1a   : > { %649 = vmatprep.subr.mxu0 %v6620_v25  ;;  %720 = vmatprep.subr.mxu1 %v455_v26  ;;  %v445_v46 = vld [vmem:[%s16280_s1 + $0x58] sm:$0xff]  ;;  %v6609_v47 = vld [vmem:[%s16280_s1 + $0x250] sm:$0xff]  ;;  %v6608_v49 = vld [vmem:[%s16280_s1 + $0x248] sm:$0xff] }
  0x1b   : > { %650 = vmatpush1.msra.mxu0 %v6619_v27  ;;  %721 = vmatpush1.msra.mxu1 %v454_v28  ;;  %v444_v48 = vld [vmem:[%s16280_s1 + $0x50] sm:$0xff]  ;;  %v443_v50 = vld [vmem:[%s16280_s1 + $0x48] sm:$0xff]  ;;  %v6607_v51 = vld [vmem:[%s16280_s1 + $0x240] sm:$0xff] }
  0x1c   : > { %651 = vmatprep.subr.mxu0 %v6618_v29  ;;  %722 = vmatprep.subr.mxu1 %v453_v30  ;;  %v442_v52 = vld [vmem:[%s16280_s1 + $0x40] sm:$0xff]  ;;  %v6606_v53 = vld [vmem:[%s16280_s1 + $0x238] sm:$0xff]  ;;  %v6605_v55 = vld [vmem:[%s16280_s1 + $0x230] sm:$0xff] }
  0x1d   : > { %652 = vmatpush1.msra.mxu0 %v6617_v31  ;;  %723 = vmatpush1.msra.mxu1 %v452_v32  ;;  %v441_v54 = vld [vmem:[%s16280_s1 + $0x38] sm:$0xff]  ;;  %v440_v56 = vld [vmem:[%s16280_s1 + $0x30] sm:$0xff]  ;;  %v6604_v57 = vld [vmem:[%s16280_s1 + $0x228] sm:$0xff] }
  0x1e   : > { %653 = vmatprep.subr.mxu0 %v6616_v33  ;;  %724 = vmatprep.subr.mxu1 %v451_v34  ;;  %v439_v58 = vld [vmem:[%s16280_s1 + $0x28] sm:$0xff]  ;;  %v6603_v59 = vld [vmem:[%s16280_s1 + $0x220] sm:$0xff]  ;;  %v6602_v61 = vld [vmem:[%s16280_s1 + $0x218] sm:$0xff] }
  0x1f   : > { %654 = vmatpush1.msra.mxu0 %v6615_v35  ;;  %725 = vmatpush1.msra.mxu1 %v450_v36  ;;  %v438_v60 = vld [vmem:[%s16280_s1 + $0x20] sm:$0xff]  ;;  %v437_v62 = vld [vmem:[%s16280_s1 + $0x18] sm:$0xff]  ;;  %v6601_v63 = vld [vmem:[%s16280_s1 + $0x210] sm:$0xff] }
  0x20   : > { %655 = vmatprep.subr.mxu0 %v6614_v37  ;;  %726 = vmatprep.subr.mxu1 %v449_v38  ;;  %v436_v2 = vld [vmem:[%s16280_s1 + $0x10] sm:$0xff]  ;;  %v6600_v3 = vld [vmem:[%s16280_s1 + $0x208] sm:$0xff]  ;;  %v6599_v6 = vld [vmem:[%s16280_s1 + $0x200] sm:$0xff] }
  0x21   : > { %656 = vmatpush1.msra.mxu0 %v6613_v39  ;;  %727 = vmatpush1.msra.mxu1 %v448_v40  ;;  %v435_v5 = vld [vmem:[%s16280_s1 + $0x8] sm:$0xff]  ;;  %v434_v7 = vld [vmem:[%s16280_s1] sm:$0xff]  ;;  %v6662_v8 = vld [vmem:[%s16280_s1 + $0x3f8] sm:$0xff] }
  0x22   : > { %657 = vmatprep.subr.mxu0 %v6612_v41  ;;  %728 = vmatprep.subr.mxu1 %v447_v42  ;;  %v497_v9 = vld [vmem:[%s16280_s1 + $0x1f8] sm:$0xff]  ;;  %v6661_v10 = vld [vmem:[%s16280_s1 + $0x3f0] sm:$0xff]  ;;  %v6660_v12 = vld [vmem:[%s16280_s1 + $0x3e8] sm:$0xff] }
  0x23   : > { %658 = vmatpush1.msra.mxu0 %v6611_v43  ;;  %729 = vmatpush1.msra.mxu1 %v446_v44  ;;  %v496_v11 = vld [vmem:[%s16280_s1 + $0x1f0] sm:$0xff]  ;;  %v495_v13 = vld [vmem:[%s16280_s1 + $0x1e8] sm:$0xff]  ;;  %v6659_v14 = vld [vmem:[%s16280_s1 + $0x3e0] sm:$0xff] }
  0x24   : > { %659 = vmatprep.subr.mxu0 %v6610_v45  ;;  %730 = vmatprep.subr.mxu1 %v445_v46  ;;  %v494_v15 = vld [vmem:[%s16280_s1 + $0x1e0] sm:$0xff]  ;;  %v6658_v16 = vld [vmem:[%s16280_s1 + $0x3d8] sm:$0xff]  ;;  %v6657_v18 = vld [vmem:[%s16280_s1 + $0x3d0] sm:$0xff] }
  0x25   : > { %660 = vmatpush1.msra.mxu0 %v6609_v47  ;;  %731 = vmatpush1.msra.mxu1 %v444_v48  ;;  %v493_v17 = vld [vmem:[%s16280_s1 + $0x1d8] sm:$0xff]  ;;  %v492_v19 = vld [vmem:[%s16280_s1 + $0x1d0] sm:$0xff]  ;;  %v6656_v20 = vld [vmem:[%s16280_s1 + $0x3c8] sm:$0xff] }
  0x26   : > { %661 = vmatprep.subr.mxu0 %v6608_v49  ;;  %732 = vmatprep.subr.mxu1 %v443_v50  ;;  %v491_v21 = vld [vmem:[%s16280_s1 + $0x1c8] sm:$0xff]  ;;  %v6655_v22 = vld [vmem:[%s16280_s1 + $0x3c0] sm:$0xff]  ;;  %v6654_v24 = vld [vmem:[%s16280_s1 + $0x3b8] sm:$0xff] }
  0x27   : > { %662 = vmatpush1.msra.mxu0 %v6607_v51  ;;  %733 = vmatpush1.msra.mxu1 %v442_v52  ;;  %v490_v23 = vld [vmem:[%s16280_s1 + $0x1c0] sm:$0xff]  ;;  %v489_v25 = vld [vmem:[%s16280_s1 + $0x1b8] sm:$0xff]  ;;  %v6653_v26 = vld [vmem:[%s16280_s1 + $0x3b0] sm:$0xff] }
  0x28   : > { %663 = vmatprep.subr.mxu0 %v6606_v53  ;;  %734 = vmatprep.subr.mxu1 %v441_v54  ;;  %v488_v27 = vld [vmem:[%s16280_s1 + $0x1b0] sm:$0xff]  ;;  %v6652_v28 = vld [vmem:[%s16280_s1 + $0x3a8] sm:$0xff]  ;;  %v6651_v30 = vld [vmem:[%s16280_s1 + $0x3a0] sm:$0xff] }
  0x29   : > { %664 = vmatpush1.msra.mxu0 %v6605_v55  ;;  %735 = vmatpush1.msra.mxu1 %v440_v56  ;;  %v487_v29 = vld [vmem:[%s16280_s1 + $0x1a8] sm:$0xff]  ;;  %v486_v31 = vld [vmem:[%s16280_s1 + $0x1a0] sm:$0xff]  ;;  %v6650_v32 = vld [vmem:[%s16280_s1 + $0x398] sm:$0xff] }
  0x2a   : > { %665 = vmatprep.subr.mxu0 %v6604_v57  ;;  %736 = vmatprep.subr.mxu1 %v439_v58  ;;  %v485_v33 = vld [vmem:[%s16280_s1 + $0x198] sm:$0xff]  ;;  %v6649_v34 = vld [vmem:[%s16280_s1 + $0x390] sm:$0xff]  ;;  %v6648_v36 = vld [vmem:[%s16280_s1 + $0x388] sm:$0xff] }
  0x2b   : > { %666 = vmatpush1.msra.mxu0 %v6603_v59  ;;  %737 = vmatpush1.msra.mxu1 %v438_v60  ;;  %v484_v35 = vld [vmem:[%s16280_s1 + $0x190] sm:$0xff]  ;;  %v483_v37 = vld [vmem:[%s16280_s1 + $0x188] sm:$0xff]  ;;  %v6647_v38 = vld [vmem:[%s16280_s1 + $0x380] sm:$0xff] }
  0x2c   : > { %667 = vmatprep.subr.mxu0 %v6602_v61  ;;  %738 = vmatprep.subr.mxu1 %v437_v62  ;;  %v482_v39 = vld [vmem:[%s16280_s1 + $0x180] sm:$0xff]  ;;  %v6646_v40 = vld [vmem:[%s16280_s1 + $0x378] sm:$0xff]  ;;  %v6645_v42 = vld [vmem:[%s16280_s1 + $0x370] sm:$0xff] }
  0x2d   : > { %668 = vmatpush1.msra.mxu0 %v6601_v63  ;;  %739 = vmatpush1.msra.mxu1 %v436_v2  ;;  %v481_v41 = vld [vmem:[%s16280_s1 + $0x178] sm:$0xff]  ;;  %v480_v43 = vld [vmem:[%s16280_s1 + $0x170] sm:$0xff]  ;;  %v6644_v44 = vld [vmem:[%s16280_s1 + $0x368] sm:$0xff] }
  0x2e   : > { %669 = vmatprep.subr.mxu0 %v6600_v3  ;;  %740 = vmatprep.subr.mxu1 %v435_v5  ;;  %v479_v45 = vld [vmem:[%s16280_s1 + $0x168] sm:$0xff]  ;;  %v6643_v46 = vld [vmem:[%s16280_s1 + $0x360] sm:$0xff]  ;;  %v6642_v48 = vld [vmem:[%s16280_s1 + $0x358] sm:$0xff] }
  0x2f   : > { %670 = vmatpush1.msra.mxu0 %v6599_v6  ;;  %741 = vmatpush1.msra.mxu1 %v434_v7  ;;  %v478_v47 = vld [vmem:[%s16280_s1 + $0x160] sm:$0xff]  ;;  %v477_v49 = vld [vmem:[%s16280_s1 + $0x158] sm:$0xff]  ;;  %v6641_v50 = vld [vmem:[%s16280_s1 + $0x350] sm:$0xff] }
  0x30   : > { %671 = vmatprep.subr.mxu0 %v6662_v8  ;;  %742 = vmatprep.subr.mxu1 %v497_v9  ;;  %v476_v51 = vld [vmem:[%s16280_s1 + $0x150] sm:$0xff]  ;;  %v6640_v52 = vld [vmem:[%s16280_s1 + $0x348] sm:$0xff]  ;;  %v6639_v54 = vld [vmem:[%s16280_s1 + $0x340] sm:$0xff] }
  0x31   : > { %672 = vmatpush2.msra.mxu0 %v6661_v10  ;;  %743 = vmatpush2.msra.mxu1 %v496_v11  ;;  %v475_v53 = vld [vmem:[%s16280_s1 + $0x148] sm:$0xff]  ;;  %v474_v55 = vld [vmem:[%s16280_s1 + $0x140] sm:$0xff]  ;;  %v6638_v56 = vld [vmem:[%s16280_s1 + $0x338] sm:$0xff] }
  0x32   : > { %673 = vmatprep.subr.mxu0 %v6660_v12  ;;  %744 = vmatprep.subr.mxu1 %v495_v13  ;;  %v473_v57 = vld [vmem:[%s16280_s1 + $0x138] sm:$0xff]  ;;  %v6637_v58 = vld [vmem:[%s16280_s1 + $0x330] sm:$0xff]  ;;  %v6636_v60 = vld [vmem:[%s16280_s1 + $0x328] sm:$0xff] }
  0x33   : > { %674 = vmatpush2.msra.mxu0 %v6659_v14  ;;  %745 = vmatpush2.msra.mxu1 %v494_v15  ;;  %v472_v59 = vld [vmem:[%s16280_s1 + $0x130] sm:$0xff]  ;;  %v471_v61 = vld [vmem:[%s16280_s1 + $0x128] sm:$0xff]  ;;  %v6635_v62 = vld [vmem:[%s16280_s1 + $0x320] sm:$0xff] }
  0x34   : > { %675 = vmatprep.subr.mxu0 %v6658_v16  ;;  %746 = vmatprep.subr.mxu1 %v493_v17  ;;  %v470_v63 = vld [vmem:[%s16280_s1 + $0x120] sm:$0xff]  ;;  %v6634_v2 = vld [vmem:[%s16280_s1 + $0x318] sm:$0xff]  ;;  %v6633_v5 = vld [vmem:[%s16280_s1 + $0x310] sm:$0xff] }
  0x35   : > { %676 = vmatpush2.msra.mxu0 %v6657_v18  ;;  %747 = vmatpush2.msra.mxu1 %v492_v19  ;;  %v469_v3 = vld [vmem:[%s16280_s1 + $0x118] sm:$0xff]  ;;  %v468_v6 = vld [vmem:[%s16280_s1 + $0x110] sm:$0xff]  ;;  %v6632_v7 = vld [vmem:[%s16280_s1 + $0x308] sm:$0xff] }
  0x36   : > { %677 = vmatprep.subr.mxu0 %v6656_v20  ;;  %748 = vmatprep.subr.mxu1 %v491_v21  ;;  %v467_v8 = vld [vmem:[%s16280_s1 + $0x108] sm:$0xff]  ;;  %v6631_v9 = vld [vmem:[%s16280_s1 + $0x300] sm:$0xff]  ;;  %v6696_v15 = vld [vmem:[%s16280_s1 + $0x4f8] sm:$0xff] }
  0x37   : > { %678 = vmatpush2.msra.mxu0 %v6655_v22  ;;  %749 = vmatpush2.msra.mxu1 %v490_v23  ;;  %v466_v10 = vld [vmem:[%s16280_s1 + $0x100] sm:$0xff]  ;;  %v6663_v16 = vld [vmem:[%s9033_s14 + $0x10] sm:$0xff]  ;;  %v6694_v18 = vld [vmem:[%s16280_s1 + $0x4e8] sm:$0xff] }
  0x38   : > { %679 = vmatprep.subr.mxu0 %v6654_v24  ;;  %750 = vmatprep.subr.mxu1 %v489_v25  ;;  %v6695_v17 = vld [vmem:[%s16280_s1 + $0x4f0] sm:$0xff]  ;;  %v6693_v19 = vld [vmem:[%s16280_s1 + $0x4e0] sm:$0xff]  ;;  %v6690_v21 = vld [vmem:[%s16280_s1 + $0x4c8] sm:$0xff] }
  0x39   : > { %680 = vmatpush2.msra.mxu0 %v6653_v26  ;;  %751 = vmatpush2.msra.mxu1 %v488_v27  ;;  %v6691_v20 = vld [vmem:[%s16280_s1 + $0x4d0] sm:$0xff]  ;;  %v6689_v22 = vld [vmem:[%s16280_s1 + $0x4c0] sm:$0xff]  ;;  %v6688_v23 = vld [vmem:[%s16280_s1 + $0x4b8] sm:$0xff] }
  0x3a   : > { %681 = vmatprep.subr.mxu0 %v6652_v28  ;;  %752 = vmatprep.subr.mxu1 %v487_v29  ;;  %v6687_v24 = vld [vmem:[%s16280_s1 + $0x4b0] sm:$0xff]  ;;  %v6686_v25 = vld [vmem:[%s16280_s1 + $0x4a8] sm:$0xff]  ;;  %v6685_v26 = vld [vmem:[%s16280_s1 + $0x4a0] sm:$0xff] }
  0x3b   : > { %682 = vmatpush2.msra.mxu0 %v6651_v30  ;;  %753 = vmatpush2.msra.mxu1 %v486_v31  ;;  %v6684_v27 = vld [vmem:[%s16280_s1 + $0x498] sm:$0xff]  ;;  %v6683_v28 = vld [vmem:[%s16280_s1 + $0x490] sm:$0xff]  ;;  %v6682_v29 = vld [vmem:[%s16280_s1 + $0x488] sm:$0xff] }
  0x3c   : > { %683 = vmatprep.subr.mxu0 %v6650_v32  ;;  %754 = vmatprep.subr.mxu1 %v485_v33  ;;  %v6681_v30 = vld [vmem:[%s16280_s1 + $0x480] sm:$0xff]  ;;  %v6680_v31 = vld [vmem:[%s16280_s1 + $0x478] sm:$0xff]  ;;  %v6679_v32 = vld [vmem:[%s16280_s1 + $0x470] sm:$0xff] }
  0x3d   : > { %684 = vmatpush2.msra.mxu0 %v6649_v34  ;;  %755 = vmatpush2.msra.mxu1 %v484_v35  ;;  %v6678_v33 = vld [vmem:[%s16280_s1 + $0x468] sm:$0xff]  ;;  %v6677_v34 = vld [vmem:[%s16280_s1 + $0x460] sm:$0xff]  ;;  %v6676_v35 = vld [vmem:[%s16280_s1 + $0x458] sm:$0xff] }
  0x3e   : > { %685 = vmatprep.subr.mxu0 %v6648_v36  ;;  %756 = vmatprep.subr.mxu1 %v483_v37  ;;  %v6675_v36 = vld [vmem:[%s16280_s1 + $0x450] sm:$0xff]  ;;  %v6674_v37 = vld [vmem:[%s16280_s1 + $0x448] sm:$0xff] }
  0x3f   : > { %686 = vmatpush2.msra.mxu0 %v6647_v38  ;;  %757 = vmatpush2.msra.mxu1 %v482_v39  ;;  %v6673_v38 = vld [vmem:[%s16280_s1 + $0x440] sm:$0xff]  ;;  %v6672_v39 = vld [vmem:[%s16280_s1 + $0x438] sm:$0xff] }
  0x40   : > { %687 = vmatprep.subr.mxu0 %v6646_v40  ;;  %758 = vmatprep.subr.mxu1 %v481_v41  ;;  %v6671_v40 = vld [vmem:[%s16280_s1 + $0x430] sm:$0xff]  ;;  %v6670_v41 = vld [vmem:[%s16280_s1 + $0x428] sm:$0xff] }
  0x41   : > { %688 = vmatpush2.msra.mxu0 %v6645_v42  ;;  %759 = vmatpush2.msra.mxu1 %v480_v43  ;;  %v6669_v42 = vld [vmem:[%s16280_s1 + $0x420] sm:$0xff]  ;;  %v6668_v43 = vld [vmem:[%s16280_s1 + $0x418] sm:$0xff] }
  0x42   : > { %689 = vmatprep.subr.mxu0 %v6644_v44  ;;  %760 = vmatprep.subr.mxu1 %v479_v45  ;;  %v6667_v44 = vld [vmem:[%s16280_s1 + $0x410] sm:$0xff]  ;;  %v6666_v45 = vld [vmem:[%s16280_s1 + $0x408] sm:$0xff] }
  0x43   : > { %690 = vmatpush2.msra.mxu0 %v6643_v46  ;;  %761 = vmatpush2.msra.mxu1 %v478_v47  ;;  %v6665_v46 = vld [vmem:[%s16280_s1 + $0x400] sm:$0xff]  ;;  %v6728_v47 = vld [vmem:[%s16280_s1 + $0x5f8] sm:$0xff] }
  0x44   : > { %691 = vmatprep.subr.mxu0 %v6642_v48  ;;  %762 = vmatprep.subr.mxu1 %v477_v49  ;;  %v6727_v48 = vld [vmem:[%s16280_s1 + $0x5f0] sm:$0xff]  ;;  %v6726_v49 = vld [vmem:[%s16280_s1 + $0x5e8] sm:$0xff] }
  0x45   : > { %692 = vmatpush2.msra.mxu0 %v6641_v50  ;;  %763 = vmatpush2.msra.mxu1 %v476_v51  ;;  %v6725_v50 = vld [vmem:[%s16280_s1 + $0x5e0] sm:$0xff]  ;;  %v6724_v51 = vld [vmem:[%s16280_s1 + $0x5d8] sm:$0xff] }
  0x46   : > { %693 = vmatprep.subr.mxu0 %v6640_v52  ;;  %764 = vmatprep.subr.mxu1 %v475_v53  ;;  %v6723_v52 = vld [vmem:[%s16280_s1 + $0x5d0] sm:$0xff]  ;;  %v6722_v53 = vld [vmem:[%s16280_s1 + $0x5c8] sm:$0xff] }
  0x47   : > { %694 = vmatpush2.msra.mxu0 %v6639_v54  ;;  %765 = vmatpush2.msra.mxu1 %v474_v55  ;;  %v6721_v54 = vld [vmem:[%s16280_s1 + $0x5c0] sm:$0xff]  ;;  %v6720_v55 = vld [vmem:[%s16280_s1 + $0x5b8] sm:$0xff] }
  0x48   : > { %695 = vmatprep.subr.mxu0 %v6638_v56  ;;  %766 = vmatprep.subr.mxu1 %v473_v57  ;;  %v6719_v56 = vld [vmem:[%s16280_s1 + $0x5b0] sm:$0xff]  ;;  %v6718_v57 = vld [vmem:[%s16280_s1 + $0x5a8] sm:$0xff] }
  0x49   : > { %696 = vmatpush2.msra.mxu0 %v6637_v58  ;;  %767 = vmatpush2.msra.mxu1 %v472_v59  ;;  %v6717_v58 = vld [vmem:[%s16280_s1 + $0x5a0] sm:$0xff]  ;;  %v6716_v59 = vld [vmem:[%s16280_s1 + $0x598] sm:$0xff] }
  0x4a   : > { %697 = vmatprep.subr.mxu0 %v6636_v60  ;;  %768 = vmatprep.subr.mxu1 %v471_v61  ;;  %v6715_v60 = vld [vmem:[%s16280_s1 + $0x590] sm:$0xff]  ;;  %v6714_v61 = vld [vmem:[%s16280_s1 + $0x588] sm:$0xff] }
  0x4b   : > { %698 = vmatpush2.msra.mxu0 %v6635_v62  ;;  %769 = vmatpush2.msra.mxu1 %v470_v63  ;;  %v6713_v62 = vld [vmem:[%s16280_s1 + $0x580] sm:$0xff]  ;;  %v6712_v63 = vld [vmem:[%s16280_s1 + $0x578] sm:$0xff] }
  0x4c   : > { %699 = vmatprep.subr.mxu0 %v6634_v2  ;;  %770 = vmatprep.subr.mxu1 %v469_v3  ;;  %v6711_v2 = vld [vmem:[%s16280_s1 + $0x570] sm:$0xff]  ;;  %v6710_v3 = vld [vmem:[%s16280_s1 + $0x568] sm:$0xff] }
  0x4d   : > { %700 = vmatpush2.msra.mxu0 %v6633_v5  ;;  %771 = vmatpush2.msra.mxu1 %v468_v6  ;;  %v6709_v5 = vld [vmem:[%s16280_s1 + $0x560] sm:$0xff]  ;;  %v6708_v6 = vld [vmem:[%s16280_s1 + $0x558] sm:$0xff] }
  0x4e   : > { %701 = vmatprep.subr.mxu0 %v6632_v7  ;;  %772 = vmatprep.subr.mxu1 %v467_v8  ;;  %v6707_v7 = vld [vmem:[%s16280_s1 + $0x550] sm:$0xff]  ;;  %v6706_v8 = vld [vmem:[%s16280_s1 + $0x548] sm:$0xff] }
  0x4f   : > { %702 = vmatpush2.msra.mxu0 %v6631_v9  ;;  %773 = vmatpush2.msra.mxu1 %v466_v10  ;;  %v6705_v9 = vld [vmem:[%s16280_s1 + $0x540] sm:$0xff]  ;;  %v6704_v10 = vld [vmem:[%s16280_s1 + $0x538] sm:$0xff] }
  0x50   : > { %816 = vmatprep.subr.mxu1 %v9008_v0 }
  0xd0   : > { %v429_v11 = vpop.f32.mrf.mxu0  ;;  %v569_v12 = vpop.f32.mrf.mxu1 }
  0xd2   : > { %v431_v13 = vpop.f32.mrf.mxu0  ;;  %v571_v14 = vpop.f32.mrf.mxu1 }
  0xd3   : > { %703 = vmatprep.mubr.f32.mxu0 %v571_v14  ;;  %774 = vmatprep.mubr.f32.mxu1 %v431_v13  ;;  %v6701_v13 = vld [vmem:[%s16280_s1 + $0x520] sm:$0xff]  ;;  %v6700_v14 = vld [vmem:[%s16280_s1 + $0x518] sm:$0xff] }
  0xd4   : > { %704 = vmatmul.mubr.f32.vlgmr.msra.gmra.mxu0 %v569_v12  ;;  %775 = vmatmul.mubr.f32.vlgmr.msra.gmra.mxu1 %v429_v11  ;;  %v6703_v11 = vld [vmem:[%s16280_s1 + $0x530] sm:$0xff]  ;;  %v6702_v12 = vld [vmem:[%s16280_s1 + $0x528] sm:$0xff] }
  0xd5   : > { %817 = vmatpush1.msra.mxu1 %v9013_v1  ;;  %850 = vmatprep.mubr.f32.mxu1 %v8955_v4  ;;  %v6692_v1 = vld [vmem:[%s16280_s1 + $0x4d8] sm:$0xff] }
  0xd6   : > { %922 = vmatprep.subr.mxu1 %v6696_v15  ;;  %v6699_v15 = vld [vmem:[%s16280_s1 + $0x510] sm:$0xff] }
  0xd8   : > { %6664 = vmatmul.mubr.msk.f32.vlgmr.msra.gmra.mxu1 %vm359_vm0, %v6663_v16  ;;  %v6698_v16 = vld [vmem:[%s16280_s1 + $0x508] sm:$0xff] }
  0xd9   : > { %923 = vmatpush1.msra.mxu1 %v6695_v17  ;;  %v6697_v17 = vld [vmem:[%s16280_s1 + $0x500] sm:$0xff] }
  0xda   : > { %924 = vmatprep.subr.mxu1 %v6694_v18  ;;  %v6762_v18 = vld [vmem:[%s16280_s1 + $0x6f8] sm:$0xff] }
  0xdb   : > { %925 = vmatpush1.msra.mxu1 %v6693_v19  ;;  %v6761_v19 = vld [vmem:[%s16280_s1 + $0x6f0] sm:$0xff]  ;;  %1136 = vmatprep.subr.mxu0 %v6762_v18  ;;  %v6729_v18 = vld [vmem:[%s9033_s14 + $0x18] sm:$0xff] }
  0xdc   : > { %926 = vmatprep.subr.mxu1 %v6692_v1  ;;  %v6760_v1 = vld [vmem:[%s16280_s1 + $0x6e8] sm:$0xff]  ;;  %1137 = vmatpush1.msra.mxu0 %v6761_v19 }
  0xdd   : > { %927 = vmatpush1.msra.mxu1 %v6691_v20  ;;  %v6759_v20 = vld [vmem:[%s16280_s1 + $0x6e0] sm:$0xff]  ;;  %1138 = vmatprep.subr.mxu0 %v6760_v1  ;;  %v9798_v19 = vld [vmem:[%s16279_s0 + $0x8] sm:$0xff]  ;;  %v6828_v1 = vld [vmem:[%s16280_s1 + $0x8f8] sm:$0xff] }
  0xde   : > { %928 = vmatprep.subr.mxu1 %v6690_v21  ;;  %v6757_v21 = vld [vmem:[%s16280_s1 + $0x6d0] sm:$0xff]  ;;  %1139 = vmatpush1.msra.mxu0 %v6759_v20  ;;  %v6795_v20 = vld [vmem:[%s9033_s14 + $0x20] sm:$0xff] }
  0xdf   : > { %929 = vmatpush1.msra.mxu1 %v6689_v22  ;;  %v6756_v22 = vld [vmem:[%s16280_s1 + $0x6c8] sm:$0xff] }
  0xe0   : > { %930 = vmatprep.subr.mxu1 %v6688_v23  ;;  %v6755_v23 = vld [vmem:[%s16280_s1 + $0x6c0] sm:$0xff] }
  0xe1   : > { %931 = vmatpush1.msra.mxu1 %v6687_v24  ;;  %v6754_v24 = vld [vmem:[%s16280_s1 + $0x6b8] sm:$0xff] }
  0xe2   : > { %932 = vmatprep.subr.mxu1 %v6686_v25  ;;  %v6753_v25 = vld [vmem:[%s16280_s1 + $0x6b0] sm:$0xff] }
  0xe3   : > { %933 = vmatpush1.msra.mxu1 %v6685_v26  ;;  %v6752_v26 = vld [vmem:[%s16280_s1 + $0x6a8] sm:$0xff] }
  0xe4   : > { %934 = vmatprep.subr.mxu1 %v6684_v27  ;;  %v6751_v27 = vld [vmem:[%s16280_s1 + $0x6a0] sm:$0xff] }
  0xe5   : > { %935 = vmatpush1.msra.mxu1 %v6683_v28  ;;  %v6750_v28 = vld [vmem:[%s16280_s1 + $0x698] sm:$0xff] }
  0xe6   : > { %936 = vmatprep.subr.mxu1 %v6682_v29  ;;  %v6749_v29 = vld [vmem:[%s16280_s1 + $0x690] sm:$0xff] }
  0xe7   : > { %937 = vmatpush1.msra.mxu1 %v6681_v30  ;;  %v6748_v30 = vld [vmem:[%s16280_s1 + $0x688] sm:$0xff] }
  0xe8   : > { %938 = vmatprep.subr.mxu1 %v6680_v31  ;;  %v6747_v31 = vld [vmem:[%s16280_s1 + $0x680] sm:$0xff] }
  0xe9   : > { %939 = vmatpush1.msra.mxu1 %v6679_v32  ;;  %v6746_v32 = vld [vmem:[%s16280_s1 + $0x678] sm:$0xff] }
  0xea   : > { %940 = vmatprep.subr.mxu1 %v6678_v33  ;;  %v6745_v33 = vld [vmem:[%s16280_s1 + $0x670] sm:$0xff] }
  0xeb   : > { %941 = vmatpush1.msra.mxu1 %v6677_v34  ;;  %v6744_v34 = vld [vmem:[%s16280_s1 + $0x668] sm:$0xff] }
  0xec   : > { %942 = vmatprep.subr.mxu1 %v6676_v35  ;;  %v6743_v35 = vld [vmem:[%s16280_s1 + $0x660] sm:$0xff] }
  0xed   : > { %943 = vmatpush1.msra.mxu1 %v6675_v36  ;;  %v6742_v36 = vld [vmem:[%s16280_s1 + $0x658] sm:$0xff] }
  0xee   : > { %944 = vmatprep.subr.mxu1 %v6674_v37  ;;  %v6741_v37 = vld [vmem:[%s16280_s1 + $0x650] sm:$0xff] }
  0xef   : > { %945 = vmatpush1.msra.mxu1 %v6673_v38  ;;  %v6740_v38 = vld [vmem:[%s16280_s1 + $0x648] sm:$0xff] }
  0xf0   : > { %946 = vmatprep.subr.mxu1 %v6672_v39  ;;  %v6739_v39 = vld [vmem:[%s16280_s1 + $0x640] sm:$0xff] }
  0xf1   : > { %947 = vmatpush1.msra.mxu1 %v6671_v40  ;;  %v6738_v40 = vld [vmem:[%s16280_s1 + $0x638] sm:$0xff] }
  0xf2   : > { %948 = vmatprep.subr.mxu1 %v6670_v41  ;;  %v6737_v41 = vld [vmem:[%s16280_s1 + $0x630] sm:$0xff] }
  0xf3   : > { %949 = vmatpush1.msra.mxu1 %v6669_v42  ;;  %v6736_v42 = vld [vmem:[%s16280_s1 + $0x628] sm:$0xff] }
  0xf4   : > { %950 = vmatprep.subr.mxu1 %v6668_v43  ;;  %v6735_v43 = vld [vmem:[%s16280_s1 + $0x620] sm:$0xff] }
  0xf5   : > { %951 = vmatpush1.msra.mxu1 %v6667_v44  ;;  %v6734_v44 = vld [vmem:[%s16280_s1 + $0x618] sm:$0xff] }
  0xf6   : > { %952 = vmatprep.subr.mxu1 %v6666_v45  ;;  %v6733_v45 = vld [vmem:[%s16280_s1 + $0x610] sm:$0xff] }
  0xf7   : > { %953 = vmatpush1.msra.mxu1 %v6665_v46  ;;  %v6732_v46 = vld [vmem:[%s16280_s1 + $0x608] sm:$0xff] }
  0xf8   : > { %954 = vmatprep.subr.mxu1 %v6728_v47  ;;  %v6731_v47 = vld [vmem:[%s16280_s1 + $0x600] sm:$0xff] }
  0xf9   : > { %955 = vmatpush2.msra.mxu1 %v6727_v48  ;;  %v6794_v48 = vld [vmem:[%s16280_s1 + $0x7f8] sm:$0xff] }
  0xfa   : > { %956 = vmatprep.subr.mxu1 %v6726_v49  ;;  %v6793_v49 = vld [vmem:[%s16280_s1 + $0x7f0] sm:$0xff] }
  0xfb   : > { %957 = vmatpush2.msra.mxu1 %v6725_v50  ;;  %v6792_v50 = vld [vmem:[%s16280_s1 + $0x7e8] sm:$0xff] }
  0xfc   : > { %958 = vmatprep.subr.mxu1 %v6724_v51  ;;  %v6791_v51 = vld [vmem:[%s16280_s1 + $0x7e0] sm:$0xff] }
  0xfd   : > { %959 = vmatpush2.msra.mxu1 %v6723_v52  ;;  %v6790_v52 = vld [vmem:[%s16280_s1 + $0x7d8] sm:$0xff] }
  0xfe   : > { %960 = vmatprep.subr.mxu1 %v6722_v53  ;;  %v6789_v53 = vld [vmem:[%s16280_s1 + $0x7d0] sm:$0xff] }
  0xff   : > { %961 = vmatpush2.msra.mxu1 %v6721_v54  ;;  %v6788_v54 = vld [vmem:[%s16280_s1 + $0x7c8] sm:$0xff] }
 0x100   : > { %962 = vmatprep.subr.mxu1 %v6720_v55  ;;  %v6787_v55 = vld [vmem:[%s16280_s1 + $0x7c0] sm:$0xff] }
 0x101   : > { %963 = vmatpush2.msra.mxu1 %v6719_v56  ;;  %v6786_v56 = vld [vmem:[%s16280_s1 + $0x7b8] sm:$0xff] }
 0x102   : > { %964 = vmatprep.subr.mxu1 %v6718_v57  ;;  %v6785_v57 = vld [vmem:[%s16280_s1 + $0x7b0] sm:$0xff] }
 0x103   : > { %965 = vmatpush2.msra.mxu1 %v6717_v58  ;;  %v6784_v58 = vld [vmem:[%s16280_s1 + $0x7a8] sm:$0xff] }
 0x104   : > { %966 = vmatprep.subr.mxu1 %v6716_v59  ;;  %v6783_v59 = vld [vmem:[%s16280_s1 + $0x7a0] sm:$0xff] }
 0x105   : > { %967 = vmatpush2.msra.mxu1 %v6715_v60  ;;  %v6782_v60 = vld [vmem:[%s16280_s1 + $0x798] sm:$0xff] }
 0x106   : > { %968 = vmatprep.subr.mxu1 %v6714_v61  ;;  %v6781_v61 = vld [vmem:[%s16280_s1 + $0x790] sm:$0xff] }
 0x107   : > { %969 = vmatpush2.msra.mxu1 %v6713_v62  ;;  %v6780_v62 = vld [vmem:[%s16280_s1 + $0x788] sm:$0xff] }
 0x108   : > { %970 = vmatprep.subr.mxu1 %v6712_v63  ;;  %v6779_v63 = vld [vmem:[%s16280_s1 + $0x780] sm:$0xff] }
 0x109   : > { %971 = vmatpush2.msra.mxu1 %v6711_v2  ;;  %v6778_v2 = vld [vmem:[%s16280_s1 + $0x778] sm:$0xff] }
 0x10a   : > { %972 = vmatprep.subr.mxu1 %v6710_v3  ;;  %v6777_v3 = vld [vmem:[%s16280_s1 + $0x770] sm:$0xff] }
 0x10b   : > { %973 = vmatpush2.msra.mxu1 %v6709_v5  ;;  %v6776_v5 = vld [vmem:[%s16280_s1 + $0x768] sm:$0xff] }
 0x10c   : > { %974 = vmatprep.subr.mxu1 %v6708_v6  ;;  %v6775_v6 = vld [vmem:[%s16280_s1 + $0x760] sm:$0xff] }
 0x10d   : > { %975 = vmatpush2.msra.mxu1 %v6707_v7  ;;  %v6774_v7 = vld [vmem:[%s16280_s1 + $0x758] sm:$0xff] }
 0x10e   : > { %976 = vmatprep.subr.mxu1 %v6706_v8  ;;  %v6773_v8 = vld [vmem:[%s16280_s1 + $0x750] sm:$0xff] }
 0x10f   : > { %977 = vmatpush2.msra.mxu1 %v6705_v9  ;;  %v6772_v9 = vld [vmem:[%s16280_s1 + $0x748] sm:$0xff] }
 0x110   : > { %978 = vmatprep.subr.mxu1 %v6704_v10  ;;  %v6771_v10 = vld [vmem:[%s16280_s1 + $0x740] sm:$0xff] }
 0x111   : > { %979 = vmatpush2.msra.mxu1 %v6703_v11 }
 0x112   : > { %980 = vmatprep.subr.mxu1 %v6702_v12 }
 0x113   : > { %981 = vmatpush2.msra.mxu1 %v6701_v13 }
 0x114   : > { %982 = vmatprep.subr.mxu1 %v6700_v14 }
 0x115   : > { %983 = vmatpush2.msra.mxu1 %v6699_v15 }
 0x116   : > { %984 = vmatprep.subr.mxu1 %v6698_v16 }
 0x117   : > { %985 = vmatpush2.msra.mxu1 %v6697_v17  ;;  %v9790_v17 = vld [vmem:[%s16279_s0] sm:$0xff] }
 0x118   : > { %1030 = vmatprep.subr.mxu1 %v9008_v0  ;;  %v6758_v0 = vld [vmem:[%s16280_s1 + $0x6d8] sm:$0xff] }
 0x119   : > { %1140 = vmatprep.subr.mxu0 %v6758_v0  ;;  %v6827_v0 = vld [vmem:[%s16280_s1 + $0x8f0] sm:$0xff] }
 0x11a   : > { %1141 = vmatpush1.msra.mxu0 %v6757_v21  ;;  %v6826_v21 = vld [vmem:[%s16280_s1 + $0x8e8] sm:$0xff] }
 0x11b   : > { %1142 = vmatprep.subr.mxu0 %v6756_v22  ;;  %v6825_v22 = vld [vmem:[%s16280_s1 + $0x8e0] sm:$0xff] }
 0x11c   : > { %1143 = vmatpush1.msra.mxu0 %v6755_v23  ;;  %v6824_v23 = vld [vmem:[%s16280_s1 + $0x8d8] sm:$0xff] }
 0x11d   : > { %1144 = vmatprep.subr.mxu0 %v6754_v24  ;;  %v6823_v24 = vld [vmem:[%s16280_s1 + $0x8d0] sm:$0xff] }
 0x11e   : > { %1145 = vmatpush1.msra.mxu0 %v6753_v25  ;;  %v6822_v25 = vld [vmem:[%s16280_s1 + $0x8c8] sm:$0xff] }
 0x11f   : > { %1146 = vmatprep.subr.mxu0 %v6752_v26  ;;  %v6821_v26 = vld [vmem:[%s16280_s1 + $0x8c0] sm:$0xff] }
 0x120   : > { %1147 = vmatpush1.msra.mxu0 %v6751_v27  ;;  %v6820_v27 = vld [vmem:[%s16280_s1 + $0x8b8] sm:$0xff] }
 0x121   : > { %1148 = vmatprep.subr.mxu0 %v6750_v28  ;;  %v6819_v28 = vld [vmem:[%s16280_s1 + $0x8b0] sm:$0xff] }
 0x122   : > { %1149 = vmatpush1.msra.mxu0 %v6749_v29  ;;  %v6818_v29 = vld [vmem:[%s16280_s1 + $0x8a8] sm:$0xff] }
 0x123   : > { %1150 = vmatprep.subr.mxu0 %v6748_v30  ;;  %v6817_v30 = vld [vmem:[%s16280_s1 + $0x8a0] sm:$0xff] }
 0x124   : > { %1151 = vmatpush1.msra.mxu0 %v6747_v31  ;;  %v6816_v31 = vld [vmem:[%s16280_s1 + $0x898] sm:$0xff] }
 0x125   : > { %1152 = vmatprep.subr.mxu0 %v6746_v32  ;;  %v6815_v32 = vld [vmem:[%s16280_s1 + $0x890] sm:$0xff] }
 0x126   : > { %1153 = vmatpush1.msra.mxu0 %v6745_v33  ;;  %v6814_v33 = vld [vmem:[%s16280_s1 + $0x888] sm:$0xff] }
 0x127   : > { %1154 = vmatprep.subr.mxu0 %v6744_v34  ;;  %v6813_v34 = vld [vmem:[%s16280_s1 + $0x880] sm:$0xff] }
 0x128   : > { %1155 = vmatpush1.msra.mxu0 %v6743_v35  ;;  %v6812_v35 = vld [vmem:[%s16280_s1 + $0x878] sm:$0xff] }
 0x129   : > { %1156 = vmatprep.subr.mxu0 %v6742_v36  ;;  %v6811_v36 = vld [vmem:[%s16280_s1 + $0x870] sm:$0xff] }
 0x12a   : > { %1157 = vmatpush1.msra.mxu0 %v6741_v37  ;;  %v6810_v37 = vld [vmem:[%s16280_s1 + $0x868] sm:$0xff] }
 0x12b   : > { %1158 = vmatprep.subr.mxu0 %v6740_v38  ;;  %v6809_v38 = vld [vmem:[%s16280_s1 + $0x860] sm:$0xff] }
 0x12c   : > { %1159 = vmatpush1.msra.mxu0 %v6739_v39  ;;  %v6808_v39 = vld [vmem:[%s16280_s1 + $0x858] sm:$0xff] }
 0x12d   : > { %1160 = vmatprep.subr.mxu0 %v6738_v40  ;;  %v6807_v40 = vld [vmem:[%s16280_s1 + $0x850] sm:$0xff] }
 0x12e   : > { %1161 = vmatpush1.msra.mxu0 %v6737_v41  ;;  %v6806_v41 = vld [vmem:[%s16280_s1 + $0x848] sm:$0xff] }
 0x12f   : > { %1162 = vmatprep.subr.mxu0 %v6736_v42  ;;  %v6805_v42 = vld [vmem:[%s16280_s1 + $0x840] sm:$0xff] }
 0x130   : > { %1163 = vmatpush1.msra.mxu0 %v6735_v43  ;;  %v6804_v43 = vld [vmem:[%s16280_s1 + $0x838] sm:$0xff] }
 0x131   : > { %1164 = vmatprep.subr.mxu0 %v6734_v44  ;;  %v6803_v44 = vld [vmem:[%s16280_s1 + $0x830] sm:$0xff] }
 0x132   : > { %1165 = vmatpush1.msra.mxu0 %v6733_v45  ;;  %v6802_v45 = vld [vmem:[%s16280_s1 + $0x828] sm:$0xff] }
 0x133   : > { %1166 = vmatprep.subr.mxu0 %v6732_v46  ;;  %v6801_v46 = vld [vmem:[%s16280_s1 + $0x820] sm:$0xff] }
 0x134   : > { %1167 = vmatpush1.msra.mxu0 %v6731_v47  ;;  %v6800_v47 = vld [vmem:[%s16280_s1 + $0x818] sm:$0xff] }
 0x135   : > { %1168 = vmatprep.subr.mxu0 %v6794_v48  ;;  %v6799_v48 = vld [vmem:[%s16280_s1 + $0x810] sm:$0xff] }
 0x136   : > { %1169 = vmatpush2.msra.mxu0 %v6793_v49  ;;  %v6798_v49 = vld [vmem:[%s16280_s1 + $0x808] sm:$0xff] }
 0x137   : > { %1170 = vmatprep.subr.mxu0 %v6792_v50  ;;  %v6797_v50 = vld [vmem:[%s16280_s1 + $0x800] sm:$0xff] }
 0x138   : > { %1171 = vmatpush2.msra.mxu0 %v6791_v51  ;;  %v6860_v51 = vld [vmem:[%s16280_s1 + $0x9f8] sm:$0xff] }
 0x139   : > { %1172 = vmatprep.subr.mxu0 %v6790_v52  ;;  %v6859_v52 = vld [vmem:[%s16280_s1 + $0x9f0] sm:$0xff] }
 0x13a   : > { %1173 = vmatpush2.msra.mxu0 %v6789_v53  ;;  %v6858_v53 = vld [vmem:[%s16280_s1 + $0x9e8] sm:$0xff] }
 0x13b   : > { %1174 = vmatprep.subr.mxu0 %v6788_v54  ;;  %v6857_v54 = vld [vmem:[%s16280_s1 + $0x9e0] sm:$0xff] }
 0x13c   : > { %1175 = vmatpush2.msra.mxu0 %v6787_v55  ;;  %v6856_v55 = vld [vmem:[%s16280_s1 + $0x9d8] sm:$0xff] }
 0x13d   : > { %1176 = vmatprep.subr.mxu0 %v6786_v56  ;;  %v6855_v56 = vld [vmem:[%s16280_s1 + $0x9d0] sm:$0xff] }
 0x13e   : > { %1177 = vmatpush2.msra.mxu0 %v6785_v57  ;;  %v6854_v57 = vld [vmem:[%s16280_s1 + $0x9c8] sm:$0xff] }
 0x13f   : > { %1178 = vmatprep.subr.mxu0 %v6784_v58  ;;  %v6853_v58 = vld [vmem:[%s16280_s1 + $0x9c0] sm:$0xff] }
 0x140   : > { %1179 = vmatpush2.msra.mxu0 %v6783_v59  ;;  %v6852_v59 = vld [vmem:[%s16280_s1 + $0x9b8] sm:$0xff] }
 0x141   : > { %1180 = vmatprep.subr.mxu0 %v6782_v60  ;;  %v6851_v60 = vld [vmem:[%s16280_s1 + $0x9b0] sm:$0xff] }
 0x142   : > { %1181 = vmatpush2.msra.mxu0 %v6781_v61  ;;  %v6850_v61 = vld [vmem:[%s16280_s1 + $0x9a8] sm:$0xff] }
 0x143   : > { %1182 = vmatprep.subr.mxu0 %v6780_v62  ;;  %v6849_v62 = vld [vmem:[%s16280_s1 + $0x9a0] sm:$0xff] }
 0x144   : > { %1183 = vmatpush2.msra.mxu0 %v6779_v63  ;;  %v6848_v63 = vld [vmem:[%s16280_s1 + $0x998] sm:$0xff] }
 0x145   : > { %1184 = vmatprep.subr.mxu0 %v6778_v2  ;;  %v6847_v2 = vld [vmem:[%s16280_s1 + $0x990] sm:$0xff] }
 0x146   : > { %1185 = vmatpush2.msra.mxu0 %v6777_v3  ;;  %v6846_v3 = vld [vmem:[%s16280_s1 + $0x988] sm:$0xff] }
 0x147   : > { %1186 = vmatprep.subr.mxu0 %v6776_v5  ;;  %v6845_v5 = vld [vmem:[%s16280_s1 + $0x980] sm:$0xff] }
 0x148   : > { %1187 = vmatpush2.msra.mxu0 %v6775_v6  ;;  %v6844_v6 = vld [vmem:[%s16280_s1 + $0x978] sm:$0xff] }
 0x149   : > { %1188 = vmatprep.subr.mxu0 %v6774_v7  ;;  %v6843_v7 = vld [vmem:[%s16280_s1 + $0x970] sm:$0xff] }
 0x14a   : > { %1189 = vmatpush2.msra.mxu0 %v6773_v8  ;;  %v6842_v8 = vld [vmem:[%s16280_s1 + $0x968] sm:$0xff] }
 0x14b   : > { %1190 = vmatprep.subr.mxu0 %v6772_v9  ;;  %v6841_v9 = vld [vmem:[%s16280_s1 + $0x960] sm:$0xff] }
 0x14c   : > { %1191 = vmatpush2.msra.mxu0 %v6771_v10  ;;  %v6770_v10 = vld [vmem:[%s16280_s1 + $0x738] sm:$0xff] }
 0x14d   : > { %1192 = vmatprep.subr.mxu0 %v6770_v10  ;;  %v6878_v10 = vld [vmem:[%s16280_s1 + $0xa78] sm:$0xff] }
 0x194   : > { %v705_v11 = vpop.f32.mrf.mxu0  ;;  %v776_v12 = vpop.f32.mrf.mxu1 }
 0x195   : > { %v9783_v13 = vadd.f32 %v776_v12, %v705_v11  ;;  %v6840_v11 = vld [vmem:[%s16280_s1 + $0x958] sm:$0xff]  ;;  %v6769_v12 = vld [vmem:[%s16280_s1 + $0x730] sm:$0xff] }
 0x196   : > { %v9785_v14 = vpop.f32.mrf.mxu1  ;;  %1193 = vmatpush2.msra.mxu0 %v6769_v12  ;;  %v6877_v12 = vld [vmem:[%s16280_s1 + $0xa70] sm:$0xff] }
 0x198   : > { %v852_v15 = vpop.f32.mrf.mxu1 }
 0x19a   : > { %v854_v16 = vpop.f32.mrf.mxu1 }
 0x19b   : > { %986 = vmatprep.mubr.f32.mxu1 %v854_v16  ;;  %v6768_v16 = vld [vmem:[%s16280_s1 + $0x728] sm:$0xff] }
 0x19c   : > { %987 = vmatmul.mubr.f32.vlgmr.msra.gmra.mxu1 %v852_v15  ;;  %v6839_v15 = vld [vmem:[%s16280_s1 + $0x950] sm:$0xff]  ;;  %1194 = vmatprep.subr.mxu0 %v6768_v16  ;;  %v6876_v16 = vld [vmem:[%s16280_s1 + $0xa68] sm:$0xff] }
 0x19d   : > { %1031 = vmatpush1.msra.mxu1 %v9790_v17  ;;  %1064 = vmatprep.mubr.f32.mxu1 %v8955_v4 }
 0x19e   : > { %1244 = vmatprep.subr.mxu1 %v9798_v19 }
 0x1a0   : > { %6730 = vmatmul.mubr.msk.f32.vlgmr.msra.gmra.mxu1 %vm359_vm0, %v6729_v18  ;;  %v6838_v18 = vld [vmem:[%s16280_s1 + $0x948] sm:$0xff] }
 0x1a1   : > { %1245 = vmatpush1.msra.mxu1 %v9790_v17  ;;  %1278 = vmatprep.mubr.f32.mxu1 %v8955_v4 }
 0x1a2   : > { %1350 = vmatprep.subr.mxu1 %v6828_v1  ;;  %v6767_v1 = vld [vmem:[%s16280_s1 + $0x720] sm:$0xff] }
 0x1a3   : > { %1195 = vmatpush2.msra.mxu0 %v6767_v1  ;;  %v6875_v1 = vld [vmem:[%s16280_s1 + $0xa60] sm:$0xff] }
 0x1a4   : > { %6796 = vmatmul.mubr.msk.f32.vlgmr.msra.gmra.mxu1 %vm359_vm0, %v6795_v20  ;;  %v6837_v20 = vld [vmem:[%s16280_s1 + $0x940] sm:$0xff] }
 0x1a5   : > { %1351 = vmatpush1.msra.mxu1 %v6827_v0  ;;  %v6766_v0 = vld [vmem:[%s16280_s1 + $0x718] sm:$0xff] }
 0x1a6   : > { %1352 = vmatprep.subr.mxu1 %v6826_v21  ;;  %v6836_v21 = vld [vmem:[%s16280_s1 + $0x938] sm:$0xff]  ;;  %1196 = vmatprep.subr.mxu0 %v6766_v0 }
 0x1a7   : > { %1353 = vmatpush1.msra.mxu1 %v6825_v22  ;;  %v6765_v22 = vld [vmem:[%s16280_s1 + $0x710] sm:$0xff]  ;;  %v6874_v0 = vld [vmem:[%s16280_s1 + $0xa58] sm:$0xff] }
 0x1a8   : > { %1354 = vmatprep.subr.mxu1 %v6824_v23  ;;  %v6835_v23 = vld [vmem:[%s16280_s1 + $0x930] sm:$0xff]  ;;  %1197 = vmatpush2.msra.mxu0 %v6765_v22 }
 0x1a9   : > { %1355 = vmatpush1.msra.mxu1 %v6823_v24  ;;  %v6764_v24 = vld [vmem:[%s16280_s1 + $0x708] sm:$0xff]  ;;  %v6873_v22 = vld [vmem:[%s16280_s1 + $0xa50] sm:$0xff] }
 0x1aa   : > { %1356 = vmatprep.subr.mxu1 %v6822_v25  ;;  %v6834_v25 = vld [vmem:[%s16280_s1 + $0x928] sm:$0xff]  ;;  %1198 = vmatprep.subr.mxu0 %v6764_v24 }
 0x1ab   : > { %1357 = vmatpush1.msra.mxu1 %v6821_v26  ;;  %v6763_v26 = vld [vmem:[%s16280_s1 + $0x700] sm:$0xff]  ;;  %v6872_v24 = vld [vmem:[%s16280_s1 + $0xa48] sm:$0xff] }
 0x1ac   : > { %1358 = vmatprep.subr.mxu1 %v6820_v27  ;;  %v6833_v27 = vld [vmem:[%s16280_s1 + $0x920] sm:$0xff]  ;;  %1199 = vmatpush2.msra.mxu0 %v6763_v26 }
 0x1ad   : > { %1359 = vmatpush1.msra.mxu1 %v6819_v28  ;;  %v6832_v28 = vld [vmem:[%s16280_s1 + $0x918] sm:$0xff]  ;;  %1458 = vmatprep.subr.mxu0 %v9798_v19  ;;  %v6871_v26 = vld [vmem:[%s16280_s1 + $0xa40] sm:$0xff] }
 0x1ae   : > { %1360 = vmatprep.subr.mxu1 %v6818_v29  ;;  %v6831_v29 = vld [vmem:[%s16280_s1 + $0x910] sm:$0xff] }
 0x1af   : > { %1361 = vmatpush1.msra.mxu1 %v6817_v30  ;;  %v6830_v30 = vld [vmem:[%s16280_s1 + $0x908] sm:$0xff] }
 0x1b0   : > { %1362 = vmatprep.subr.mxu1 %v6816_v31  ;;  %v6829_v31 = vld [vmem:[%s16280_s1 + $0x900] sm:$0xff] }
 0x1b1   : > { %1363 = vmatpush1.msra.mxu1 %v6815_v32  ;;  %v707_v32 = vpop.f32.mrf.mxu0 }
 0x1b2   : > { %1364 = vmatprep.subr.mxu1 %v6814_v33 }
 0x1b3   : > { %1365 = vmatpush1.msra.mxu1 %v6813_v34  ;;  %v779_v34 = vadd.f32 %v9785_v14, %v707_v32  ;;  %v6861_v14 = vld [vmem:[%s9033_s14 + $0x28] sm:$0xff] }
 0x1b4   : > { %1366 = vmatprep.subr.mxu1 %v6812_v35  ;;  %v6868_v32 = vld [vmem:[%s16280_s1 + $0xa28] sm:$0xff] }
 0x1b5   : > { %1367 = vmatpush1.msra.mxu1 %v6811_v36 }
 0x1b6   : > { %1368 = vmatprep.subr.mxu1 %v6810_v37 }
 0x1b7   : > { %1369 = vmatpush1.msra.mxu1 %v6809_v38 }
 0x1b8   : > { %1370 = vmatprep.subr.mxu1 %v6808_v39 }
 0x1b9   : > { %1371 = vmatpush1.msra.mxu1 %v6807_v40  ;;  %v6894_v40 = vld [vmem:[%s16280_s1 + $0xaf8] sm:$0xff] }
 0x1ba   : > { %1372 = vmatprep.subr.mxu1 %v6806_v41 }
 0x1bb   : > { %1373 = vmatpush1.msra.mxu1 %v6805_v42  ;;  %v6893_v42 = vld [vmem:[%s16280_s1 + $0xaf0] sm:$0xff] }
 0x1bc   : > { %1374 = vmatprep.subr.mxu1 %v6804_v43  ;;  %v6960_v43 = vld [vmem:[%s16280_s1 + $0xcf8] sm:$0xff] }
 0x1bd   : > { %1375 = vmatpush1.msra.mxu1 %v6803_v44  ;;  %v6892_v44 = vld [vmem:[%s16280_s1 + $0xae8] sm:$0xff] }
 0x1be   : > { %1376 = vmatprep.subr.mxu1 %v6802_v45  ;;  %v6927_v45 = vld [vmem:[%s9033_s14 + $0x30] sm:$0xff] }
 0x1bf   : > { %1377 = vmatpush1.msra.mxu1 %v6801_v46  ;;  %v6891_v46 = vld [vmem:[%s16280_s1 + $0xae0] sm:$0xff] }
 0x1c0   : > { %1378 = vmatprep.subr.mxu1 %v6800_v47  ;;  %v6890_v47 = vld [vmem:[%s16280_s1 + $0xad8] sm:$0xff] }
 0x1c1   : > { %1379 = vmatpush1.msra.mxu1 %v6799_v48  ;;  %v6959_v48 = vld [vmem:[%s16280_s1 + $0xcf0] sm:$0xff] }
 0x1c2   : > { %1380 = vmatprep.subr.mxu1 %v6798_v49  ;;  %v6889_v49 = vld [vmem:[%s16280_s1 + $0xad0] sm:$0xff] }
 0x1c3   : > { %1381 = vmatpush1.msra.mxu1 %v6797_v50  ;;  %v6958_v50 = vld [vmem:[%s16280_s1 + $0xce8] sm:$0xff] }
 0x1c4   : > { %1382 = vmatprep.subr.mxu1 %v6860_v51  ;;  %v6888_v51 = vld [vmem:[%s16280_s1 + $0xac8] sm:$0xff] }
 0x1c5   : > { %1383 = vmatpush2.msra.mxu1 %v6859_v52  ;;  %v6957_v52 = vld [vmem:[%s16280_s1 + $0xce0] sm:$0xff] }
 0x1c6   : > { %1384 = vmatprep.subr.mxu1 %v6858_v53  ;;  %v6887_v53 = vld [vmem:[%s16280_s1 + $0xac0] sm:$0xff] }
 0x1c7   : > { %1385 = vmatpush2.msra.mxu1 %v6857_v54  ;;  %v6956_v54 = vld [vmem:[%s16280_s1 + $0xcd8] sm:$0xff] }
 0x1c8   : > { %1386 = vmatprep.subr.mxu1 %v6856_v55  ;;  %v6886_v55 = vld [vmem:[%s16280_s1 + $0xab8] sm:$0xff] }
 0x1c9   : > { %1387 = vmatpush2.msra.mxu1 %v6855_v56  ;;  %v6955_v56 = vld [vmem:[%s16280_s1 + $0xcd0] sm:$0xff] }
 0x1ca   : > { %1388 = vmatprep.subr.mxu1 %v6854_v57  ;;  %v6885_v57 = vld [vmem:[%s16280_s1 + $0xab0] sm:$0xff] }
 0x1cb   : > { %1389 = vmatpush2.msra.mxu1 %v6853_v58  ;;  %v6954_v58 = vld [vmem:[%s16280_s1 + $0xcc8] sm:$0xff] }
 0x1cc   : > { %1390 = vmatprep.subr.mxu1 %v6852_v59  ;;  %v6884_v59 = vld [vmem:[%s16280_s1 + $0xaa8] sm:$0xff] }
 0x1cd   : > { %1391 = vmatpush2.msra.mxu1 %v6851_v60  ;;  %v6953_v60 = vld [vmem:[%s16280_s1 + $0xcc0] sm:$0xff] }
 0x1ce   : > { %1392 = vmatprep.subr.mxu1 %v6850_v61  ;;  %v6883_v61 = vld [vmem:[%s16280_s1 + $0xaa0] sm:$0xff] }
 0x1cf   : > { %1393 = vmatpush2.msra.mxu1 %v6849_v62  ;;  %v6952_v62 = vld [vmem:[%s16280_s1 + $0xcb8] sm:$0xff] }
 0x1d0   : > { %1394 = vmatprep.subr.mxu1 %v6848_v63  ;;  %v6882_v63 = vld [vmem:[%s16280_s1 + $0xa98] sm:$0xff] }
 0x1d1   : > { %1395 = vmatpush2.msra.mxu1 %v6847_v2  ;;  %v6951_v2 = vld [vmem:[%s16280_s1 + $0xcb0] sm:$0xff] }
 0x1d2   : > { %1396 = vmatprep.subr.mxu1 %v6846_v3  ;;  %v6881_v3 = vld [vmem:[%s16280_s1 + $0xa90] sm:$0xff] }
 0x1d3   : > { %1397 = vmatpush2.msra.mxu1 %v6845_v5  ;;  %v6950_v5 = vld [vmem:[%s16280_s1 + $0xca8] sm:$0xff] }
 0x1d4   : > { %1398 = vmatprep.subr.mxu1 %v6844_v6  ;;  %v6880_v6 = vld [vmem:[%s16280_s1 + $0xa88] sm:$0xff] }
 0x1d5   : > { %1399 = vmatpush2.msra.mxu1 %v6843_v7  ;;  %v6949_v7 = vld [vmem:[%s16280_s1 + $0xca0] sm:$0xff] }
 0x1d6   : > { %1400 = vmatprep.subr.mxu1 %v6842_v8  ;;  %v6879_v8 = vld [vmem:[%s16280_s1 + $0xa80] sm:$0xff] }
 0x1d7   : > { %1401 = vmatpush2.msra.mxu1 %v6841_v9  ;;  %v6948_v9 = vld [vmem:[%s16280_s1 + $0xc98] sm:$0xff] }
 0x1d8   : > { %1402 = vmatprep.subr.mxu1 %v6840_v11  ;;  %v6947_v11 = vld [vmem:[%s16280_s1 + $0xc90] sm:$0xff] }
 0x1d9   : > { %1403 = vmatpush2.msra.mxu1 %v6839_v15  ;;  %v6946_v15 = vld [vmem:[%s16280_s1 + $0xc88] sm:$0xff] }
 0x1da   : > { %1404 = vmatprep.subr.mxu1 %v6838_v18  ;;  %v6945_v18 = vld [vmem:[%s16280_s1 + $0xc80] sm:$0xff] }
 0x1db   : > { %1405 = vmatpush2.msra.mxu1 %v6837_v20  ;;  %v6944_v20 = vld [vmem:[%s16280_s1 + $0xc78] sm:$0xff] }
 0x1dc   : > { %1406 = vmatprep.subr.mxu1 %v6836_v21  ;;  %v6943_v21 = vld [vmem:[%s16280_s1 + $0xc70] sm:$0xff] }
 0x1dd   : > { %1407 = vmatpush2.msra.mxu1 %v6835_v23  ;;  %v6942_v23 = vld [vmem:[%s16280_s1 + $0xc68] sm:$0xff] }
 0x1de   : > { %1408 = vmatprep.subr.mxu1 %v6834_v25  ;;  %v6941_v25 = vld [vmem:[%s16280_s1 + $0xc60] sm:$0xff] }
 0x1df   : > { %1409 = vmatpush2.msra.mxu1 %v6833_v27  ;;  %v6940_v27 = vld [vmem:[%s16280_s1 + $0xc58] sm:$0xff] }
 0x1e0   : > { %1410 = vmatprep.subr.mxu1 %v6832_v28  ;;  %v6870_v28 = vld [vmem:[%s16280_s1 + $0xa38] sm:$0xff] }
 0x1e1   : > { %1411 = vmatpush2.msra.mxu1 %v6831_v29  ;;  %v6939_v29 = vld [vmem:[%s16280_s1 + $0xc50] sm:$0xff] }
 0x1e2   : > { %1412 = vmatprep.subr.mxu1 %v6830_v30  ;;  %v6869_v30 = vld [vmem:[%s16280_s1 + $0xa30] sm:$0xff] }
 0x1e3   : > { %1413 = vmatpush2.msra.mxu1 %v6829_v31  ;;  %v6938_v31 = vld [vmem:[%s16280_s1 + $0xc48] sm:$0xff] }
 0x1e4   : > { %1672 = vmatprep.subr.mxu1 %v9798_v19 }
 0x25c   : > { %v988_v33 = vpop.f32.mrf.mxu1 }
 0x25d   : > { %v10026_v35 = vadd.f32 %v988_v33, %v9783_v13  ;;  %v6937_v33 = vld [vmem:[%s16280_s1 + $0xc40] sm:$0xff] }
 0x25e   : > { %v990_v36 = vpop.f32.mrf.mxu1 }
 0x25f   : > { %v10028_v37 = vadd.f32 %v990_v36, %v779_v34  ;;  %v6867_v34 = vld [vmem:[%s16280_s1 + $0xa20] sm:$0xff]  ;;  %v6936_v36 = vld [vmem:[%s16280_s1 + $0xc38] sm:$0xff] }
 0x260   : > { %v1066_v38 = vpop.f32.mrf.mxu1 }
 0x262   : > { %v1068_v39 = vpop.f32.mrf.mxu1 }
 0x263   : > { %1200 = vmatprep.mubr.f32.mxu0 %v1068_v39  ;;  %v6935_v39 = vld [vmem:[%s16280_s1 + $0xc30] sm:$0xff] }
 0x264   : > { %1201 = vmatmul.mubr.f32.vlgmr.msra.gmra.mxu0 %v1066_v38  ;;  %v1280_v41 = vpop.f32.mrf.mxu1  ;;  %v6866_v38 = vld [vmem:[%s16280_s1 + $0xa18] sm:$0xff] }
 0x265   : > { %1459 = vmatpush1.msra.mxu0 %v9790_v17  ;;  %1492 = vmatprep.mubr.f32.mxu0 %v8955_v4 }
 0x266   : > { %v1282_v13 = vpop.f32.mrf.mxu1  ;;  %1564 = vmatprep.subr.mxu0 %v6894_v40  ;;  %v6865_v40 = vld [vmem:[%s16280_s1 + $0xa10] sm:$0xff] }
 0x267   : > { %1414 = vmatprep.mubr.f32.mxu1 %v1282_v13  ;;  %v6933_v13 = vld [vmem:[%s16280_s1 + $0xc20] sm:$0xff] }
 0x268   : > { %1415 = vmatmul.mubr.f32.vlgmr.msra.gmra.mxu1 %v1280_v41  ;;  %6862 = vmatmul.mubr.msk.f32.vlgmr.msra.gmra.mxu0 %vm359_vm0, %v6861_v14  ;;  %v6934_v41 = vld [vmem:[%s16280_s1 + $0xc28] sm:$0xff] }
 0x269   : > { %1673 = vmatpush1.msra.mxu1 %v9790_v17  ;;  %1706 = vmatprep.mubr.f32.mxu1 %v8955_v4  ;;  %v6864_v14 = vld [vmem:[%s16280_s1 + $0xa08] sm:$0xff] }
 0x26a   : > { %1565 = vmatpush1.msra.mxu0 %v6893_v42  ;;  %1778 = vmatprep.subr.mxu1 %v6960_v43  ;;  %v6863_v42 = vld [vmem:[%s16280_s1 + $0xa00] sm:$0xff]  ;;  %v6932_v43 = vld [vmem:[%s16280_s1 + $0xc18] sm:$0xff] }
 0x26b   : > { %1566 = vmatprep.subr.mxu0 %v6892_v44  ;;  %v6926_v44 = vld [vmem:[%s16280_s1 + $0xbf8] sm:$0xff] }
 0x26c   : > { %6928 = vmatmul.mubr.msk.f32.vlgmr.msra.gmra.mxu1 %vm359_vm0, %v6927_v45  ;;  %1567 = vmatpush1.msra.mxu0 %v6891_v46  ;;  %v6931_v45 = vld [vmem:[%s16280_s1 + $0xc10] sm:$0xff] }
 0x26d   : > { %1568 = vmatprep.subr.mxu0 %v6890_v47  ;;  %1779 = vmatpush1.msra.mxu1 %v6959_v48  ;;  %v6925_v46 = vld [vmem:[%s16280_s1 + $0xbf0] sm:$0xff]  ;;  %v6930_v47 = vld [vmem:[%s16280_s1 + $0xc08] sm:$0xff] }
 0x26e   : > { %1569 = vmatpush1.msra.mxu0 %v6889_v49  ;;  %1780 = vmatprep.subr.mxu1 %v6958_v50  ;;  %v6924_v48 = vld [vmem:[%s16280_s1 + $0xbe8] sm:$0xff]  ;;  %v6929_v49 = vld [vmem:[%s16280_s1 + $0xc00] sm:$0xff] }
 0x26f   : > { %1570 = vmatprep.subr.mxu0 %v6888_v51  ;;  %1781 = vmatpush1.msra.mxu1 %v6957_v52  ;;  %v6923_v50 = vld [vmem:[%s16280_s1 + $0xbe0] sm:$0xff]  ;;  %v6992_v51 = vld [vmem:[%s16280_s1 + $0xdf8] sm:$0xff] }
 0x270   : > { %1571 = vmatpush1.msra.mxu0 %v6887_v53  ;;  %1782 = vmatprep.subr.mxu1 %v6956_v54  ;;  %v6922_v52 = vld [vmem:[%s16280_s1 + $0xbd8] sm:$0xff]  ;;  %v6991_v53 = vld [vmem:[%s16280_s1 + $0xdf0] sm:$0xff] }
 0x271   : > { %1572 = vmatprep.subr.mxu0 %v6886_v55  ;;  %1783 = vmatpush1.msra.mxu1 %v6955_v56  ;;  %v6921_v54 = vld [vmem:[%s16280_s1 + $0xbd0] sm:$0xff]  ;;  %v6990_v55 = vld [vmem:[%s16280_s1 + $0xde8] sm:$0xff] }
 0x272   : > { %1573 = vmatpush1.msra.mxu0 %v6885_v57  ;;  %1784 = vmatprep.subr.mxu1 %v6954_v58  ;;  %v6920_v56 = vld [vmem:[%s16280_s1 + $0xbc8] sm:$0xff]  ;;  %v6989_v57 = vld [vmem:[%s16280_s1 + $0xde0] sm:$0xff] }
 0x273   : > { %1574 = vmatprep.subr.mxu0 %v6884_v59  ;;  %1785 = vmatpush1.msra.mxu1 %v6953_v60  ;;  %v6919_v58 = vld [vmem:[%s16280_s1 + $0xbc0] sm:$0xff]  ;;  %v6988_v59 = vld [vmem:[%s16280_s1 + $0xdd8] sm:$0xff] }
 0x274   : > { %1575 = vmatpush1.msra.mxu0 %v6883_v61  ;;  %1786 = vmatprep.subr.mxu1 %v6952_v62  ;;  %v6918_v60 = vld [vmem:[%s16280_s1 + $0xbb8] sm:$0xff]  ;;  %v6987_v61 = vld [vmem:[%s16280_s1 + $0xdd0] sm:$0xff] }
 0x275   : > { %1576 = vmatprep.subr.mxu0 %v6882_v63  ;;  %1787 = vmatpush1.msra.mxu1 %v6951_v2  ;;  %v6917_v62 = vld [vmem:[%s16280_s1 + $0xbb0] sm:$0xff]  ;;  %v6986_v63 = vld [vmem:[%s16280_s1 + $0xdc8] sm:$0xff] }
 0x276   : > { %1577 = vmatpush1.msra.mxu0 %v6881_v3  ;;  %1788 = vmatprep.subr.mxu1 %v6950_v5  ;;  %v6916_v2 = vld [vmem:[%s16280_s1 + $0xba8] sm:$0xff]  ;;  %v6985_v3 = vld [vmem:[%s16280_s1 + $0xdc0] sm:$0xff] }
 0x277   : > { %1578 = vmatprep.subr.mxu0 %v6880_v6  ;;  %1789 = vmatpush1.msra.mxu1 %v6949_v7  ;;  %v6915_v5 = vld [vmem:[%s16280_s1 + $0xba0] sm:$0xff]  ;;  %v6984_v6 = vld [vmem:[%s16280_s1 + $0xdb8] sm:$0xff] }
 0x278   : > { %1579 = vmatpush1.msra.mxu0 %v6879_v8  ;;  %1790 = vmatprep.subr.mxu1 %v6948_v9  ;;  %v6914_v7 = vld [vmem:[%s16280_s1 + $0xb98] sm:$0xff]  ;;  %v6983_v8 = vld [vmem:[%s16280_s1 + $0xdb0] sm:$0xff] }
 0x279   : > { %1580 = vmatprep.subr.mxu0 %v6878_v10  ;;  %1791 = vmatpush1.msra.mxu1 %v6947_v11  ;;  %v6913_v9 = vld [vmem:[%s16280_s1 + $0xb90] sm:$0xff]  ;;  %v6982_v10 = vld [vmem:[%s16280_s1 + $0xda8] sm:$0xff] }
 0x27a   : > { %1581 = vmatpush1.msra.mxu0 %v6877_v12  ;;  %1792 = vmatprep.subr.mxu1 %v6946_v15  ;;  %v6912_v11 = vld [vmem:[%s16280_s1 + $0xb88] sm:$0xff]  ;;  %v6981_v12 = vld [vmem:[%s16280_s1 + $0xda0] sm:$0xff] }
 0x27b   : > { %1582 = vmatprep.subr.mxu0 %v6876_v16  ;;  %1793 = vmatpush1.msra.mxu1 %v6945_v18  ;;  %v6911_v15 = vld [vmem:[%s16280_s1 + $0xb80] sm:$0xff]  ;;  %v6980_v16 = vld [vmem:[%s16280_s1 + $0xd98] sm:$0xff] }
 0x27c   : > { %1583 = vmatpush1.msra.mxu0 %v6875_v1  ;;  %1794 = vmatprep.subr.mxu1 %v6944_v20  ;;  %v6910_v18 = vld [vmem:[%s16280_s1 + $0xb78] sm:$0xff]  ;;  %v6979_v1 = vld [vmem:[%s16280_s1 + $0xd90] sm:$0xff] }
 0x27d   : > { %1584 = vmatprep.subr.mxu0 %v6874_v0  ;;  %1795 = vmatpush1.msra.mxu1 %v6943_v21  ;;  %v6909_v20 = vld [vmem:[%s16280_s1 + $0xb70] sm:$0xff]  ;;  %v6978_v0 = vld [vmem:[%s16280_s1 + $0xd88] sm:$0xff] }
 0x27e   : > { %1585 = vmatpush1.msra.mxu0 %v6873_v22  ;;  %1796 = vmatprep.subr.mxu1 %v6942_v23  ;;  %v6908_v21 = vld [vmem:[%s16280_s1 + $0xb68] sm:$0xff]  ;;  %v6977_v22 = vld [vmem:[%s16280_s1 + $0xd80] sm:$0xff] }
 0x27f   : > { %1586 = vmatprep.subr.mxu0 %v6872_v24  ;;  %1797 = vmatpush1.msra.mxu1 %v6941_v25  ;;  %v6907_v23 = vld [vmem:[%s16280_s1 + $0xb60] sm:$0xff]  ;;  %v6976_v24 = vld [vmem:[%s16280_s1 + $0xd78] sm:$0xff] }
 0x280   : > { %1587 = vmatpush1.msra.mxu0 %v6871_v26  ;;  %1798 = vmatprep.subr.mxu1 %v6940_v27  ;;  %v6906_v25 = vld [vmem:[%s16280_s1 + $0xb58] sm:$0xff]  ;;  %v6975_v26 = vld [vmem:[%s16280_s1 + $0xd70] sm:$0xff] }
 0x281   : > { %1588 = vmatprep.subr.mxu0 %v6870_v28  ;;  %1799 = vmatpush1.msra.mxu1 %v6939_v29  ;;  %v6905_v27 = vld [vmem:[%s16280_s1 + $0xb50] sm:$0xff]  ;;  %v6974_v28 = vld [vmem:[%s16280_s1 + $0xd68] sm:$0xff] }
 0x282   : > { %1589 = vmatpush1.msra.mxu0 %v6869_v30  ;;  %1800 = vmatprep.subr.mxu1 %v6938_v31  ;;  %v6904_v29 = vld [vmem:[%s16280_s1 + $0xb48] sm:$0xff]  ;;  %v6973_v30 = vld [vmem:[%s16280_s1 + $0xd60] sm:$0xff] }
 0x283   : > { %1590 = vmatprep.subr.mxu0 %v6868_v32  ;;  %1801 = vmatpush1.msra.mxu1 %v6937_v33  ;;  %v6903_v31 = vld [vmem:[%s16280_s1 + $0xb40] sm:$0xff]  ;;  %v6902_v32 = vld [vmem:[%s16280_s1 + $0xb38] sm:$0xff] }
 0x284   : > { %1591 = vmatpush1.msra.mxu0 %v6867_v34  ;;  %1802 = vmatprep.subr.mxu1 %v6936_v36  ;;  %v6972_v33 = vld [vmem:[%s16280_s1 + $0xd58] sm:$0xff]  ;;  %v6901_v34 = vld [vmem:[%s16280_s1 + $0xb30] sm:$0xff] }
 0x285   : > { %1592 = vmatprep.subr.mxu0 %v6866_v38  ;;  %1803 = vmatpush1.msra.mxu1 %v6935_v39  ;;  %v6971_v36 = vld [vmem:[%s16280_s1 + $0xd50] sm:$0xff]  ;;  %v6900_v38 = vld [vmem:[%s16280_s1 + $0xb28] sm:$0xff] }
 0x286   : > { %1593 = vmatpush1.msra.mxu0 %v6865_v40  ;;  %1804 = vmatprep.subr.mxu1 %v6934_v41  ;;  %v6970_v39 = vld [vmem:[%s16280_s1 + $0xd48] sm:$0xff]  ;;  %v6899_v40 = vld [vmem:[%s16280_s1 + $0xb20] sm:$0xff] }
 0x287   : > { %1594 = vmatprep.subr.mxu0 %v6864_v14  ;;  %1805 = vmatpush1.msra.mxu1 %v6933_v13  ;;  %v6969_v41 = vld [vmem:[%s16280_s1 + $0xd40] sm:$0xff]  ;;  %v6898_v14 = vld [vmem:[%s16280_s1 + $0xb18] sm:$0xff] }
 0x288   : > { %1595 = vmatpush1.msra.mxu0 %v6863_v42  ;;  %1806 = vmatprep.subr.mxu1 %v6932_v43  ;;  %v6968_v13 = vld [vmem:[%s16280_s1 + $0xd38] sm:$0xff]  ;;  %v6897_v42 = vld [vmem:[%s16280_s1 + $0xb10] sm:$0xff] }
 0x289   : > { %1596 = vmatprep.subr.mxu0 %v6926_v44  ;;  %1807 = vmatpush1.msra.mxu1 %v6931_v45  ;;  %v6967_v43 = vld [vmem:[%s16280_s1 + $0xd30] sm:$0xff]  ;;  %v6896_v44 = vld [vmem:[%s16280_s1 + $0xb08] sm:$0xff] }
 0x28a   : > { %1597 = vmatpush2.msra.mxu0 %v6925_v46  ;;  %1808 = vmatprep.subr.mxu1 %v6930_v47  ;;  %v6966_v45 = vld [vmem:[%s16280_s1 + $0xd28] sm:$0xff]  ;;  %v6895_v46 = vld [vmem:[%s16280_s1 + $0xb00] sm:$0xff] }
 0x28b   : > { %1598 = vmatprep.subr.mxu0 %v6924_v48  ;;  %1809 = vmatpush1.msra.mxu1 %v6929_v49  ;;  %v6965_v47 = vld [vmem:[%s16280_s1 + $0xd20] sm:$0xff]  ;;  %v6964_v48 = vld [vmem:[%s16280_s1 + $0xd18] sm:$0xff]  ;;  %v6963_v49 = vld [vmem:[%s16280_s1 + $0xd10] sm:$0xff] }
 0x28c   : > { %1599 = vmatpush2.msra.mxu0 %v6923_v50  ;;  %1810 = vmatprep.subr.mxu1 %v6992_v51  ;;  %v6962_v50 = vld [vmem:[%s16280_s1 + $0xd08] sm:$0xff]  ;;  %v6961_v51 = vld [vmem:[%s16280_s1 + $0xd00] sm:$0xff] }
 0x28d   : > { %1600 = vmatprep.subr.mxu0 %v6922_v52  ;;  %1811 = vmatpush2.msra.mxu1 %v6991_v53 }
 0x28e   : > { %1601 = vmatpush2.msra.mxu0 %v6921_v54  ;;  %1812 = vmatprep.subr.mxu1 %v6990_v55 }
 0x28f   : > { %1602 = vmatprep.subr.mxu0 %v6920_v56  ;;  %1813 = vmatpush2.msra.mxu1 %v6989_v57 }
 0x290   : > { %1603 = vmatpush2.msra.mxu0 %v6919_v58  ;;  %1814 = vmatprep.subr.mxu1 %v6988_v59 }
 0x291   : > { %1604 = vmatprep.subr.mxu0 %v6918_v60  ;;  %1815 = vmatpush2.msra.mxu1 %v6987_v61 }
 0x292   : > { %1605 = vmatpush2.msra.mxu0 %v6917_v62  ;;  %1816 = vmatprep.subr.mxu1 %v6986_v63  ;;  %v7025_v63 = vld [vmem:[%s16280_s1 + $0xef0] sm:$0xff] }
 0x293   : > { %1606 = vmatprep.subr.mxu0 %v6916_v2  ;;  %1817 = vmatpush2.msra.mxu1 %v6985_v3  ;;  %v7092_v2 = vld [vmem:[%s16280_s1 + $0x10f8] sm:$0xff]  ;;  %v7024_v3 = vld [vmem:[%s16280_s1 + $0xee8] sm:$0xff] }
 0x294   : > { %1607 = vmatpush2.msra.mxu0 %v6915_v5  ;;  %1818 = vmatprep.subr.mxu1 %v6984_v6  ;;  %v7059_v5 = vld [vmem:[%s9033_s14 + $0x40] sm:$0xff] }
 0x295   : > { %1608 = vmatprep.subr.mxu0 %v6914_v7  ;;  %1819 = vmatpush2.msra.mxu1 %v6983_v8  ;;  %v7023_v6 = vld [vmem:[%s16280_s1 + $0xee0] sm:$0xff]  ;;  %v7022_v7 = vld [vmem:[%s16280_s1 + $0xed8] sm:$0xff]  ;;  %v7091_v8 = vld [vmem:[%s16280_s1 + $0x10f0] sm:$0xff] }
 0x296   : > { %1609 = vmatpush2.msra.mxu0 %v6913_v9  ;;  %1820 = vmatprep.subr.mxu1 %v6982_v10  ;;  %v7090_v9 = vld [vmem:[%s16280_s1 + $0x10e8] sm:$0xff] }
 0x297   : > { %1610 = vmatprep.subr.mxu0 %v6912_v11  ;;  %1821 = vmatpush2.msra.mxu1 %v6981_v12  ;;  %v7020_v10 = vld [vmem:[%s16280_s1 + $0xec8] sm:$0xff]  ;;  %v7089_v11 = vld [vmem:[%s16280_s1 + $0x10e0] sm:$0xff] }
 0x298   : > { %1611 = vmatpush2.msra.mxu0 %v6911_v15  ;;  %1822 = vmatprep.subr.mxu1 %v6980_v16  ;;  %v7019_v12 = vld [vmem:[%s16280_s1 + $0xec0] sm:$0xff]  ;;  %v7088_v15 = vld [vmem:[%s16280_s1 + $0x10d8] sm:$0xff] }
 0x299   : > { %1612 = vmatprep.subr.mxu0 %v6910_v18  ;;  %1823 = vmatpush2.msra.mxu1 %v6979_v1  ;;  %v7018_v16 = vld [vmem:[%s16280_s1 + $0xeb8] sm:$0xff]  ;;  %v7087_v18 = vld [vmem:[%s16280_s1 + $0x10d0] sm:$0xff] }
 0x29a   : > { %1613 = vmatpush2.msra.mxu0 %v6909_v20  ;;  %1824 = vmatprep.subr.mxu1 %v6978_v0  ;;  %v7017_v1 = vld [vmem:[%s16280_s1 + $0xeb0] sm:$0xff]  ;;  %v7086_v20 = vld [vmem:[%s16280_s1 + $0x10c8] sm:$0xff] }
 0x29b   : > { %1614 = vmatprep.subr.mxu0 %v6908_v21  ;;  %1825 = vmatpush2.msra.mxu1 %v6977_v22  ;;  %v7016_v0 = vld [vmem:[%s16280_s1 + $0xea8] sm:$0xff]  ;;  %v7085_v21 = vld [vmem:[%s16280_s1 + $0x10c0] sm:$0xff] }
 0x29c   : > { %1615 = vmatpush2.msra.mxu0 %v6907_v23  ;;  %1826 = vmatprep.subr.mxu1 %v6976_v24  ;;  %v7015_v22 = vld [vmem:[%s16280_s1 + $0xea0] sm:$0xff]  ;;  %v7084_v23 = vld [vmem:[%s16280_s1 + $0x10b8] sm:$0xff] }
 0x29d   : > { %1616 = vmatprep.subr.mxu0 %v6906_v25  ;;  %1827 = vmatpush2.msra.mxu1 %v6975_v26  ;;  %v7014_v24 = vld [vmem:[%s16280_s1 + $0xe98] sm:$0xff]  ;;  %v7083_v25 = vld [vmem:[%s16280_s1 + $0x10b0] sm:$0xff] }
 0x29e   : > { %1617 = vmatpush2.msra.mxu0 %v6905_v27  ;;  %1828 = vmatprep.subr.mxu1 %v6974_v28  ;;  %v7013_v26 = vld [vmem:[%s16280_s1 + $0xe90] sm:$0xff]  ;;  %v7082_v27 = vld [vmem:[%s16280_s1 + $0x10a8] sm:$0xff] }
 0x29f   : > { %1618 = vmatprep.subr.mxu0 %v6904_v29  ;;  %1829 = vmatpush2.msra.mxu1 %v6973_v30  ;;  %v7012_v28 = vld [vmem:[%s16280_s1 + $0xe88] sm:$0xff]  ;;  %v7081_v29 = vld [vmem:[%s16280_s1 + $0x10a0] sm:$0xff] }
 0x2a0   : > { %1619 = vmatpush2.msra.mxu0 %v6903_v31  ;;  %1830 = vmatprep.subr.mxu1 %v6972_v33  ;;  %v7011_v30 = vld [vmem:[%s16280_s1 + $0xe80] sm:$0xff]  ;;  %v7080_v31 = vld [vmem:[%s16280_s1 + $0x1098] sm:$0xff]  ;;  %v7079_v33 = vld [vmem:[%s16280_s1 + $0x1090] sm:$0xff] }
 0x2a1   : > { %1620 = vmatprep.subr.mxu0 %v6902_v32  ;;  %1831 = vmatpush2.msra.mxu1 %v6971_v36  ;;  %v7010_v32 = vld [vmem:[%s16280_s1 + $0xe78] sm:$0xff]  ;;  %v7078_v36 = vld [vmem:[%s16280_s1 + $0x1088] sm:$0xff] }
 0x2a2   : > { %1621 = vmatpush2.msra.mxu0 %v6901_v34  ;;  %1832 = vmatprep.subr.mxu1 %v6970_v39  ;;  %v7009_v34 = vld [vmem:[%s16280_s1 + $0xe70] sm:$0xff]  ;;  %v7077_v39 = vld [vmem:[%s16280_s1 + $0x1080] sm:$0xff] }
 0x2a3   : > { %1622 = vmatprep.subr.mxu0 %v6900_v38  ;;  %1833 = vmatpush2.msra.mxu1 %v6969_v41  ;;  %v7008_v38 = vld [vmem:[%s16280_s1 + $0xe68] sm:$0xff]  ;;  %v7076_v41 = vld [vmem:[%s16280_s1 + $0x1078] sm:$0xff] }
 0x2a4   : > { %1623 = vmatpush2.msra.mxu0 %v6899_v40  ;;  %1834 = vmatprep.subr.mxu1 %v6968_v13  ;;  %v7007_v40 = vld [vmem:[%s16280_s1 + $0xe60] sm:$0xff]  ;;  %v7075_v13 = vld [vmem:[%s16280_s1 + $0x1070] sm:$0xff] }
 0x2a5   : > { %1624 = vmatprep.subr.mxu0 %v6898_v14  ;;  %1835 = vmatpush2.msra.mxu1 %v6967_v43  ;;  %v7006_v14 = vld [vmem:[%s16280_s1 + $0xe58] sm:$0xff]  ;;  %v7074_v43 = vld [vmem:[%s16280_s1 + $0x1068] sm:$0xff] }
 0x2a6   : > { %1625 = vmatpush2.msra.mxu0 %v6897_v42  ;;  %1836 = vmatprep.subr.mxu1 %v6966_v45  ;;  %v7005_v42 = vld [vmem:[%s16280_s1 + $0xe50] sm:$0xff]  ;;  %v7073_v45 = vld [vmem:[%s16280_s1 + $0x1060] sm:$0xff] }
 0x2a7   : > { %1626 = vmatprep.subr.mxu0 %v6896_v44  ;;  %1837 = vmatpush2.msra.mxu1 %v6965_v47  ;;  %v7004_v44 = vld [vmem:[%s16280_s1 + $0xe48] sm:$0xff]  ;;  %v7072_v47 = vld [vmem:[%s16280_s1 + $0x1058] sm:$0xff] }
 0x2a8   : > { %1627 = vmatpush2.msra.mxu0 %v6895_v46  ;;  %1838 = vmatprep.subr.mxu1 %v6964_v48  ;;  %v7003_v46 = vld [vmem:[%s16280_s1 + $0xe40] sm:$0xff]  ;;  %v7002_v48 = vld [vmem:[%s16280_s1 + $0xe38] sm:$0xff] }
 0x2a9   : > { %1886 = vmatprep.subr.mxu0 %v9798_v19  ;;  %1839 = vmatpush2.msra.mxu1 %v6963_v49  ;;  %v7071_v49 = vld [vmem:[%s16280_s1 + $0x1050] sm:$0xff] }
 0x2aa   : > { %1840 = vmatprep.subr.mxu1 %v6962_v50  ;;  %v7001_v50 = vld [vmem:[%s16280_s1 + $0xe30] sm:$0xff] }
 0x2ab   : > { %1841 = vmatpush2.msra.mxu1 %v6961_v51  ;;  %v7070_v51 = vld [vmem:[%s16280_s1 + $0x1048] sm:$0xff] }
 0x2ac   : > { %2100 = vmatprep.subr.mxu1 %v9798_v19  ;;  %v7026_v19 = vld [vmem:[%s16280_s1 + $0xef8] sm:$0xff] }
 0x324   : > { %v1202_v52 = vpop.f32.mrf.mxu0 }
 0x325   : > { %v1207_v53 = vadd.f32 %v1202_v52, %v10026_v35  ;;  %v6993_v35 = vld [vmem:[%s9033_s14 + $0x38] sm:$0xff]  ;;  %v7000_v52 = vld [vmem:[%s16280_s1 + $0xe28] sm:$0xff] }
 0x326   : > { %v1204_v54 = vpop.f32.mrf.mxu0 }
 0x327   : > { %v1208_v55 = vadd.f32 %v1204_v54, %v10028_v37  ;;  %v6999_v54 = vld [vmem:[%s16280_s1 + $0xe20] sm:$0xff] }
 0x328   : > { %v1416_v56 = vpop.f32.mrf.mxu1  ;;  %v1494_v57 = vpop.f32.mrf.mxu0 }
 0x329   : > { %v10426_v58 = vadd.f32 %v1416_v56, %v1207_v53  ;;  %v7069_v53 = vld [vmem:[%s16280_s1 + $0x1040] sm:$0xff]  ;;  %v6998_v56 = vld [vmem:[%s16280_s1 + $0xe18] sm:$0xff] }
 0x32a   : > { %v1418_v59 = vpop.f32.mrf.mxu1  ;;  %v1496_v60 = vpop.f32.mrf.mxu0 }
 0x32b   : > { %v10428_v61 = vadd.f32 %v1418_v59, %v1208_v55  ;;  %1628 = vmatprep.mubr.f32.mxu0 %v1496_v60  ;;  %v7068_v55 = vld [vmem:[%s16280_s1 + $0x1038] sm:$0xff]  ;;  %v6997_v59 = vld [vmem:[%s16280_s1 + $0xe10] sm:$0xff]  ;;  %v7066_v60 = vld [vmem:[%s16280_s1 + $0x1028] sm:$0xff] }
 0x32c   : > { %1629 = vmatmul.mubr.f32.vlgmr.msra.gmra.mxu0 %v1494_v57  ;;  %v1708_v62 = vpop.f32.mrf.mxu1  ;;  %v7067_v57 = vld [vmem:[%s16280_s1 + $0x1030] sm:$0xff] }
 0x32d   : > { %1887 = vmatpush1.msra.mxu0 %v9790_v17  ;;  %1920 = vmatprep.mubr.f32.mxu0 %v8955_v4 }
 0x32e   : > { %v1710_v37 = vpop.f32.mrf.mxu1  ;;  %1992 = vmatprep.subr.mxu0 %v7026_v19  ;;  %v6996_v19 = vld [vmem:[%s16280_s1 + $0xe08] sm:$0xff] }
 0x32f   : > { %1842 = vmatprep.mubr.f32.mxu1 %v1710_v37  ;;  %v7064_v37 = vld [vmem:[%s16280_s1 + $0x1018] sm:$0xff] }
 0x330   : > { %1843 = vmatmul.mubr.f32.vlgmr.msra.gmra.mxu1 %v1708_v62  ;;  %6994 = vmatmul.mubr.msk.f32.vlgmr.msra.gmra.mxu0 %vm359_vm0, %v6993_v35  ;;  %v7065_v62 = vld [vmem:[%s16280_s1 + $0x1020] sm:$0xff] }
 0x331   : > { %2101 = vmatpush1.msra.mxu1 %v9790_v17  ;;  %2134 = vmatprep.mubr.f32.mxu1 %v8955_v4  ;;  %v7021_v17 = vld [vmem:[%s16280_s1 + $0xed0] sm:$0xff]  ;;  %v6995_v35 = vld [vmem:[%s16280_s1 + $0xe00] sm:$0xff] }
 0x332   : > { %1993 = vmatpush1.msra.mxu0 %v7025_v63  ;;  %2206 = vmatprep.subr.mxu1 %v7092_v2  ;;  %v7058_v63 = vld [vmem:[%s16280_s1 + $0xff8] sm:$0xff]  ;;  %v7063_v2 = vld [vmem:[%s16280_s1 + $0x1010] sm:$0xff] }
 0x333   : > { %1994 = vmatprep.subr.mxu0 %v7024_v3  ;;  %v7057_v3 = vld [vmem:[%s16280_s1 + $0xff0] sm:$0xff] }
 0x334   : > { %7060 = vmatmul.mubr.msk.f32.vlgmr.msra.gmra.mxu1 %vm359_vm0, %v7059_v5  ;;  %1995 = vmatpush1.msra.mxu0 %v7023_v6  ;;  %v7062_v5 = vld [vmem:[%s16280_s1 + $0x1008] sm:$0xff] }
 0x335   : > { %1996 = vmatprep.subr.mxu0 %v7022_v7  ;;  %2207 = vmatpush1.msra.mxu1 %v7091_v8  ;;  %v7056_v6 = vld [vmem:[%s16280_s1 + $0xfe8] sm:$0xff]  ;;  %v7061_v7 = vld [vmem:[%s16280_s1 + $0x1000] sm:$0xff] }
 0x336   : > { %1997 = vmatpush1.msra.mxu0 %v7021_v17  ;;  %2208 = vmatprep.subr.mxu1 %v7090_v9  ;;  %v7055_v8 = vld [vmem:[%s16280_s1 + $0xfe0] sm:$0xff]  ;;  %v7124_v17 = vld [vmem:[%s16280_s1 + $0x11f8] sm:$0xff] }
 0x337   : > { %1998 = vmatprep.subr.mxu0 %v7020_v10  ;;  %2209 = vmatpush1.msra.mxu1 %v7089_v11  ;;  %v7054_v9 = vld [vmem:[%s16280_s1 + $0xfd8] sm:$0xff]  ;;  %v7123_v10 = vld [vmem:[%s16280_s1 + $0x11f0] sm:$0xff] }
 0x338   : > { %1999 = vmatpush1.msra.mxu0 %v7019_v12  ;;  %2210 = vmatprep.subr.mxu1 %v7088_v15  ;;  %v7053_v11 = vld [vmem:[%s16280_s1 + $0xfd0] sm:$0xff]  ;;  %v7122_v12 = vld [vmem:[%s16280_s1 + $0x11e8] sm:$0xff] }
 0x339   : > { %2000 = vmatprep.subr.mxu0 %v7018_v16  ;;  %2211 = vmatpush1.msra.mxu1 %v7087_v18  ;;  %v7052_v15 = vld [vmem:[%s16280_s1 + $0xfc8] sm:$0xff]  ;;  %v7121_v16 = vld [vmem:[%s16280_s1 + $0x11e0] sm:$0xff] }
 0x33a   : > { %2001 = vmatpush1.msra.mxu0 %v7017_v1  ;;  %2212 = vmatprep.subr.mxu1 %v7086_v20  ;;  %v7051_v18 = vld [vmem:[%s16280_s1 + $0xfc0] sm:$0xff]  ;;  %v7120_v1 = vld [vmem:[%s16280_s1 + $0x11d8] sm:$0xff] }
 0x33b   : > { %2002 = vmatprep.subr.mxu0 %v7016_v0  ;;  %2213 = vmatpush1.msra.mxu1 %v7085_v21  ;;  %v7050_v20 = vld [vmem:[%s16280_s1 + $0xfb8] sm:$0xff]  ;;  %v7119_v0 = vld [vmem:[%s16280_s1 + $0x11d0] sm:$0xff] }
 0x33c   : > { %2003 = vmatpush1.msra.mxu0 %v7015_v22  ;;  %2214 = vmatprep.subr.mxu1 %v7084_v23  ;;  %v7049_v21 = vld [vmem:[%s16280_s1 + $0xfb0] sm:$0xff]  ;;  %v7118_v22 = vld [vmem:[%s16280_s1 + $0x11c8] sm:$0xff] }
 0x33d   : > { %2004 = vmatprep.subr.mxu0 %v7014_v24  ;;  %2215 = vmatpush1.msra.mxu1 %v7083_v25  ;;  %v7048_v23 = vld [vmem:[%s16280_s1 + $0xfa8] sm:$0xff]  ;;  %v7117_v24 = vld [vmem:[%s16280_s1 + $0x11c0] sm:$0xff] }
 0x33e   : > { %2005 = vmatpush1.msra.mxu0 %v7013_v26  ;;  %2216 = vmatprep.subr.mxu1 %v7082_v27  ;;  %v7047_v25 = vld [vmem:[%s16280_s1 + $0xfa0] sm:$0xff]  ;;  %v7116_v26 = vld [vmem:[%s16280_s1 + $0x11b8] sm:$0xff] }
 0x33f   : > { %2006 = vmatprep.subr.mxu0 %v7012_v28  ;;  %2217 = vmatpush1.msra.mxu1 %v7081_v29  ;;  %v7046_v27 = vld [vmem:[%s16280_s1 + $0xf98] sm:$0xff]  ;;  %v7115_v28 = vld [vmem:[%s16280_s1 + $0x11b0] sm:$0xff] }
 0x340   : > { %2007 = vmatpush1.msra.mxu0 %v7011_v30  ;;  %2218 = vmatprep.subr.mxu1 %v7080_v31  ;;  %v7045_v29 = vld [vmem:[%s16280_s1 + $0xf90] sm:$0xff]  ;;  %v7114_v30 = vld [vmem:[%s16280_s1 + $0x11a8] sm:$0xff] }
 0x341   : > { %2008 = vmatprep.subr.mxu0 %v7010_v32  ;;  %2219 = vmatpush1.msra.mxu1 %v7079_v33  ;;  %v7044_v31 = vld [vmem:[%s16280_s1 + $0xf88] sm:$0xff]  ;;  %v7113_v32 = vld [vmem:[%s16280_s1 + $0x11a0] sm:$0xff] }
 0x342   : > { %2009 = vmatpush1.msra.mxu0 %v7009_v34  ;;  %2220 = vmatprep.subr.mxu1 %v7078_v36  ;;  %v7043_v33 = vld [vmem:[%s16280_s1 + $0xf80] sm:$0xff]  ;;  %v7112_v34 = vld [vmem:[%s16280_s1 + $0x1198] sm:$0xff] }
 0x343   : > { %2010 = vmatprep.subr.mxu0 %v7008_v38  ;;  %2221 = vmatpush1.msra.mxu1 %v7077_v39  ;;  %v7042_v36 = vld [vmem:[%s16280_s1 + $0xf78] sm:$0xff]  ;;  %v7111_v38 = vld [vmem:[%s16280_s1 + $0x1190] sm:$0xff] }
 0x344   : > { %2011 = vmatpush1.msra.mxu0 %v7007_v40  ;;  %2222 = vmatprep.subr.mxu1 %v7076_v41  ;;  %v7041_v39 = vld [vmem:[%s16280_s1 + $0xf70] sm:$0xff]  ;;  %v7110_v40 = vld [vmem:[%s16280_s1 + $0x1188] sm:$0xff] }
 0x345   : > { %2012 = vmatprep.subr.mxu0 %v7006_v14  ;;  %2223 = vmatpush1.msra.mxu1 %v7075_v13  ;;  %v7040_v41 = vld [vmem:[%s16280_s1 + $0xf68] sm:$0xff]  ;;  %v7109_v14 = vld [vmem:[%s16280_s1 + $0x1180] sm:$0xff] }
 0x346   : > { %2013 = vmatpush1.msra.mxu0 %v7005_v42  ;;  %2224 = vmatprep.subr.mxu1 %v7074_v43  ;;  %v7039_v13 = vld [vmem:[%s16280_s1 + $0xf60] sm:$0xff]  ;;  %v7108_v42 = vld [vmem:[%s16280_s1 + $0x1178] sm:$0xff] }
 0x347   : > { %2014 = vmatprep.subr.mxu0 %v7004_v44  ;;  %2225 = vmatpush1.msra.mxu1 %v7073_v45  ;;  %v7038_v43 = vld [vmem:[%s16280_s1 + $0xf58] sm:$0xff]  ;;  %v7107_v44 = vld [vmem:[%s16280_s1 + $0x1170] sm:$0xff] }
 0x348   : > { %2015 = vmatpush1.msra.mxu0 %v7003_v46  ;;  %2226 = vmatprep.subr.mxu1 %v7072_v47  ;;  %v7037_v45 = vld [vmem:[%s16280_s1 + $0xf50] sm:$0xff]  ;;  %v7106_v46 = vld [vmem:[%s16280_s1 + $0x1168] sm:$0xff] }
 0x349   : > { %2016 = vmatprep.subr.mxu0 %v7002_v48  ;;  %2227 = vmatpush1.msra.mxu1 %v7071_v49  ;;  %v7036_v47 = vld [vmem:[%s16280_s1 + $0xf48] sm:$0xff]  ;;  %v7105_v48 = vld [vmem:[%s16280_s1 + $0x1160] sm:$0xff] }
 0x34a   : > { %2017 = vmatpush1.msra.mxu0 %v7001_v50  ;;  %2228 = vmatprep.subr.mxu1 %v7070_v51  ;;  %v7035_v49 = vld [vmem:[%s16280_s1 + $0xf40] sm:$0xff]  ;;  %v7034_v50 = vld [vmem:[%s16280_s1 + $0xf38] sm:$0xff] }
 0x34b   : > { %2018 = vmatprep.subr.mxu0 %v7000_v52  ;;  %2229 = vmatpush1.msra.mxu1 %v7069_v53  ;;  %v7104_v51 = vld [vmem:[%s16280_s1 + $0x1158] sm:$0xff]  ;;  %v7033_v52 = vld [vmem:[%s16280_s1 + $0xf30] sm:$0xff] }
 0x34c   : > { %2019 = vmatpush1.msra.mxu0 %v6999_v54  ;;  %2230 = vmatprep.subr.mxu1 %v7068_v55  ;;  %v7103_v53 = vld [vmem:[%s16280_s1 + $0x1150] sm:$0xff]  ;;  %v7032_v54 = vld [vmem:[%s16280_s1 + $0xf28] sm:$0xff] }
 0x34d   : > { %2020 = vmatprep.subr.mxu0 %v6998_v56  ;;  %2231 = vmatpush1.msra.mxu1 %v7067_v57  ;;  %v7102_v55 = vld [vmem:[%s16280_s1 + $0x1148] sm:$0xff]  ;;  %v7031_v56 = vld [vmem:[%s16280_s1 + $0xf20] sm:$0xff] }
 0x34e   : > { %2021 = vmatpush1.msra.mxu0 %v6997_v59  ;;  %2232 = vmatprep.subr.mxu1 %v7066_v60  ;;  %v7101_v57 = vld [vmem:[%s16280_s1 + $0x1140] sm:$0xff]  ;;  %v7030_v59 = vld [vmem:[%s16280_s1 + $0xf18] sm:$0xff] }
 0x34f   : > { %2022 = vmatprep.subr.mxu0 %v6996_v19  ;;  %2233 = vmatpush1.msra.mxu1 %v7065_v62  ;;  %v7100_v60 = vld [vmem:[%s16280_s1 + $0x1138] sm:$0xff]  ;;  %v7029_v19 = vld [vmem:[%s16280_s1 + $0xf10] sm:$0xff] }
 0x350   : > { %2023 = vmatpush1.msra.mxu0 %v6995_v35  ;;  %2234 = vmatprep.subr.mxu1 %v7064_v37  ;;  %v7099_v62 = vld [vmem:[%s16280_s1 + $0x1130] sm:$0xff]  ;;  %v7028_v35 = vld [vmem:[%s16280_s1 + $0xf08] sm:$0xff] }
 0x351   : > { %2024 = vmatprep.subr.mxu0 %v7058_v63  ;;  %2235 = vmatpush1.msra.mxu1 %v7063_v2  ;;  %v7098_v37 = vld [vmem:[%s16280_s1 + $0x1128] sm:$0xff]  ;;  %v7027_v63 = vld [vmem:[%s16280_s1 + $0xf00] sm:$0xff] }
 0x352   : > { %2025 = vmatpush2.msra.mxu0 %v7057_v3  ;;  %2236 = vmatprep.subr.mxu1 %v7062_v5  ;;  %v7097_v2 = vld [vmem:[%s16280_s1 + $0x1120] sm:$0xff]  ;;  %v7096_v3 = vld [vmem:[%s16280_s1 + $0x1118] sm:$0xff]  ;;  %v7095_v5 = vld [vmem:[%s16280_s1 + $0x1110] sm:$0xff] }
 0x353   : > { %2026 = vmatprep.subr.mxu0 %v7056_v6  ;;  %2237 = vmatpush1.msra.mxu1 %v7061_v7  ;;  %v7094_v6 = vld [vmem:[%s16280_s1 + $0x1108] sm:$0xff]  ;;  %v7093_v7 = vld [vmem:[%s16280_s1 + $0x1100] sm:$0xff] }
 0x354   : > { %2027 = vmatpush2.msra.mxu0 %v7055_v8  ;;  %2238 = vmatprep.subr.mxu1 %v7124_v17  ;;  %v7217_v8 = vld [vmem:[%s16280_s1 + $0xf8] sm:$0xff]  ;;  %v8956_v17 = vmov 0  }
 0x355   : > { %2028 = vmatprep.subr.mxu0 %v7054_v9  ;;  %2239 = vmatpush2.msra.mxu1 %v7123_v10  ;;  %v2279_v9 = vld [vmem:[%s10832_s11] sm:$0xff] }
 0x356   : > { %2029 = vmatpush2.msra.mxu0 %v7053_v11  ;;  %2240 = vmatprep.subr.mxu1 %v7122_v12 }
 0x357   : > { %2030 = vmatprep.subr.mxu0 %v7052_v15  ;;  %2241 = vmatpush2.msra.mxu1 %v7121_v16 }
 0x358   : > { %2031 = vmatpush2.msra.mxu0 %v7051_v18  ;;  %2242 = vmatprep.subr.mxu1 %v7120_v1 }
 0x359   : > { %2032 = vmatprep.subr.mxu0 %v7050_v20  ;;  %2243 = vmatpush2.msra.mxu1 %v7119_v0 }
 0x35a   : > { %2033 = vmatpush2.msra.mxu0 %v7049_v21  ;;  %2244 = vmatprep.subr.mxu1 %v7118_v22 }
 0x35b   : > { %2034 = vmatprep.subr.mxu0 %v7048_v23  ;;  %2245 = vmatpush2.msra.mxu1 %v7117_v24  ;;  %v7220_v24 = vld [vmem:[%s16280_s1 + $0xe0] sm:$0xff] }
 0x35c   : > { %2035 = vmatpush2.msra.mxu0 %v7047_v25  ;;  %2246 = vmatprep.subr.mxu1 %v7116_v26  ;;  %v7221_v25 = vld [vmem:[%s16280_s1 + $0xd8] sm:$0xff]  ;;  %v7222_v26 = vld [vmem:[%s16280_s1 + $0xd0] sm:$0xff] }
 0x35d   : > { %2036 = vmatprep.subr.mxu0 %v7046_v27  ;;  %2247 = vmatpush2.msra.mxu1 %v7115_v28  ;;  %v7223_v27 = vld [vmem:[%s16280_s1 + $0xc8] sm:$0xff]  ;;  %v7224_v28 = vld [vmem:[%s16280_s1 + $0xc0] sm:$0xff] }
 0x35e   : > { %2037 = vmatpush2.msra.mxu0 %v7045_v29  ;;  %2248 = vmatprep.subr.mxu1 %v7114_v30  ;;  %v7225_v29 = vld [vmem:[%s16280_s1 + $0xb8] sm:$0xff]  ;;  %v7226_v30 = vld [vmem:[%s16280_s1 + $0xb0] sm:$0xff] }
 0x35f   : > { %2038 = vmatprep.subr.mxu0 %v7044_v31  ;;  %2249 = vmatpush2.msra.mxu1 %v7113_v32  ;;  %v7227_v31 = vld [vmem:[%s16280_s1 + $0xa8] sm:$0xff]  ;;  %v7228_v32 = vld [vmem:[%s16280_s1 + $0xa0] sm:$0xff] }
 0x360   : > { %2039 = vmatpush2.msra.mxu0 %v7043_v33  ;;  %2250 = vmatprep.subr.mxu1 %v7112_v34  ;;  %v7229_v33 = vld [vmem:[%s16280_s1 + $0x98] sm:$0xff]  ;;  %v7230_v34 = vld [vmem:[%s16280_s1 + $0x90] sm:$0xff] }
 0x361   : > { %2040 = vmatprep.subr.mxu0 %v7042_v36  ;;  %2251 = vmatpush2.msra.mxu1 %v7111_v38  ;;  %v7231_v36 = vld [vmem:[%s16280_s1 + $0x88] sm:$0xff]  ;;  %v7232_v38 = vld [vmem:[%s16280_s1 + $0x80] sm:$0xff] }
 0x362   : > { %2041 = vmatpush2.msra.mxu0 %v7041_v39  ;;  %2252 = vmatprep.subr.mxu1 %v7110_v40  ;;  %v7233_v39 = vld [vmem:[%s16280_s1 + $0x78] sm:$0xff]  ;;  %v7234_v40 = vld [vmem:[%s16280_s1 + $0x70] sm:$0xff] }
 0x363   : > { %2042 = vmatprep.subr.mxu0 %v7040_v41  ;;  %2253 = vmatpush2.msra.mxu1 %v7109_v14  ;;  %v7235_v41 = vld [vmem:[%s16280_s1 + $0x68] sm:$0xff]  ;;  %v7236_v14 = vld [vmem:[%s16280_s1 + $0x60] sm:$0xff] }
 0x364   : > { %2043 = vmatpush2.msra.mxu0 %v7039_v13  ;;  %2254 = vmatprep.subr.mxu1 %v7108_v42  ;;  %v7237_v13 = vld [vmem:[%s16280_s1 + $0x58] sm:$0xff]  ;;  %v7238_v42 = vld [vmem:[%s16280_s1 + $0x50] sm:$0xff] }
 0x365   : > { %2044 = vmatprep.subr.mxu0 %v7038_v43  ;;  %2255 = vmatpush2.msra.mxu1 %v7107_v44  ;;  %v7239_v43 = vld [vmem:[%s16280_s1 + $0x48] sm:$0xff]  ;;  %v7240_v44 = vld [vmem:[%s16280_s1 + $0x40] sm:$0xff] }
 0x366   : > { %2045 = vmatpush2.msra.mxu0 %v7037_v45  ;;  %2256 = vmatprep.subr.mxu1 %v7106_v46  ;;  %v7241_v45 = vld [vmem:[%s16280_s1 + $0x38] sm:$0xff]  ;;  %v7242_v46 = vld [vmem:[%s16280_s1 + $0x30] sm:$0xff] }
 0x367   : > { %2046 = vmatprep.subr.mxu0 %v7036_v47  ;;  %2257 = vmatpush2.msra.mxu1 %v7105_v48  ;;  %v7243_v47 = vld [vmem:[%s16280_s1 + $0x28] sm:$0xff]  ;;  %v7244_v48 = vld [vmem:[%s16280_s1 + $0x20] sm:$0xff] }
 0x368   : > { %2047 = vmatpush2.msra.mxu0 %v7035_v49  ;;  %2258 = vmatprep.subr.mxu1 %v7104_v51  ;;  %v7245_v49 = vld [vmem:[%s16280_s1 + $0x18] sm:$0xff]  ;;  %v7247_v51 = vld [vmem:[%s16280_s1 + $0x8] sm:$0xff] }
 0x369   : > { %2048 = vmatprep.subr.mxu0 %v7034_v50  ;;  %2259 = vmatpush2.msra.mxu1 %v7103_v53  ;;  %v7246_v50 = vld [vmem:[%s16280_s1 + $0x10] sm:$0xff]  ;;  %v7249_v53 = vld [vmem:[%s16280_s1 + $0x1f8] sm:$0xff] }
 0x36a   : > { %2049 = vmatpush2.msra.mxu0 %v7033_v52  ;;  %2260 = vmatprep.subr.mxu1 %v7102_v55  ;;  %v7248_v52 = vld [vmem:[%s16280_s1] sm:$0xff]  ;;  %v7251_v55 = vld [vmem:[%s16280_s1 + $0x1e8] sm:$0xff] }
 0x36b   : > { %2050 = vmatprep.subr.mxu0 %v7032_v54  ;;  %2261 = vmatpush2.msra.mxu1 %v7101_v57  ;;  %v7250_v54 = vld [vmem:[%s16280_s1 + $0x1f0] sm:$0xff]  ;;  %v7253_v57 = vld [vmem:[%s16280_s1 + $0x1d8] sm:$0xff] }
 0x36c   : > { %2051 = vmatpush2.msra.mxu0 %v7031_v56  ;;  %2262 = vmatprep.subr.mxu1 %v7100_v60  ;;  %v7252_v56 = vld [vmem:[%s16280_s1 + $0x1e0] sm:$0xff]  ;;  %v7255_v60 = vld [vmem:[%s16280_s1 + $0x1c8] sm:$0xff] }
 0x36d   : > { %2052 = vmatprep.subr.mxu0 %v7030_v59  ;;  %2263 = vmatpush2.msra.mxu1 %v7099_v62  ;;  %v7254_v59 = vld [vmem:[%s16280_s1 + $0x1d0] sm:$0xff]  ;;  %v7257_v62 = vld [vmem:[%s16280_s1 + $0x1b8] sm:$0xff] }
 0x36e   : > { %2053 = vmatpush2.msra.mxu0 %v7029_v19  ;;  %2264 = vmatprep.subr.mxu1 %v7098_v37  ;;  %v7256_v19 = vld [vmem:[%s16280_s1 + $0x1c0] sm:$0xff]  ;;  %v7259_v37 = vld [vmem:[%s16280_s1 + $0x1a8] sm:$0xff] }
 0x36f   : > { %2054 = vmatprep.subr.mxu0 %v7028_v35  ;;  %2265 = vmatpush2.msra.mxu1 %v7097_v2  ;;  %v7258_v35 = vld [vmem:[%s16280_s1 + $0x1b0] sm:$0xff]  ;;  %v7261_v2 = vld [vmem:[%s16280_s1 + $0x198] sm:$0xff] }
 0x370   : > { %2055 = vmatpush2.msra.mxu0 %v7027_v63  ;;  %2266 = vmatprep.subr.mxu1 %v7096_v3  ;;  %v7260_v63 = vld [vmem:[%s16280_s1 + $0x1a0] sm:$0xff]  ;;  %v7262_v3 = vld [vmem:[%s16280_s1 + $0x190] sm:$0xff] }
 0x371   : > { %2267 = vmatpush2.msra.mxu1 %v7095_v5  ;;  %7205 = vset.pattern.permute.xlu0 %v8956_v17  ;;  %v7263_v5 = vld [vmem:[%s16280_s1 + $0x188] sm:$0xff] }
 0x372   : > { %2268 = vmatprep.subr.mxu1 %v7094_v6  ;;  %7206 = vset.pattern.permute.xlu1 %v8956_v17  ;;  %v7264_v6 = vld [vmem:[%s16280_s1 + $0x180] sm:$0xff]  ;;  %v7267_v17 = vld [vmem:[%s16280_s1 + $0x168] sm:$0xff] }
 0x373   : > { %2269 = vmatpush2.msra.mxu1 %v7093_v7  ;;  %2282 = vperm.xlu0 %7205, %v2279_v9   ;;  %v7265_v7 = vld [vmem:[%s16280_s1 + $0x178] sm:$0xff]  ;;  %v7268_v9 = vld [vmem:[%s16280_s1 + $0x160] sm:$0xff] }
 0x374   : > { %2545 = vmatprep.subr.mxu1 %v7217_v8  ;;  %v7266_v8 = vld [vmem:[%s16280_s1 + $0x170] sm:$0xff] }
 0x3ec   : > { %v1630_v10 = vpop.f32.mrf.mxu0 }
 0x3ed   : > { %v1635_v11 = vadd.f32 %v1630_v10, %v10426_v58  ;;  %v7218_v58 = vld [vmem:[%s16280_s1 + $0xf0] sm:$0xff]  ;;  %v7269_v10 = vld [vmem:[%s16280_s1 + $0x158] sm:$0xff] }
 0x3ee   : > { %v1632_v12 = vpop.f32.mrf.mxu0 }
 0x3ef   : > { %v1636_v15 = vadd.f32 %v1632_v12, %v10428_v61  ;;  %v7219_v61 = vld [vmem:[%s16280_s1 + $0xe8] sm:$0xff] }
 0x3f0   : > { %v1844_v16 = vpop.f32.mrf.mxu1  ;;  %v1922_v18 = vpop.f32.mrf.mxu0  ;;  %v7271_v12 = vld [vmem:[%s16280_s1 + $0x148] sm:$0xff] }
 0x3f1   : > { %v10837_v1 = vadd.f32 %v1844_v16, %v1635_v11  ;;  %v7270_v11 = vld [vmem:[%s16280_s1 + $0x150] sm:$0xff]  ;;  %v7273_v16 = vld [vmem:[%s16280_s1 + $0x138] sm:$0xff] }
 0x3f2   : > { %v1846_v20 = vpop.f32.mrf.mxu1  ;;  %v1924_v0 = vpop.f32.mrf.mxu0 }
 0x3f3   : > { %v10839_v21 = vadd.f32 %v1846_v20, %v1636_v15  ;;  %2056 = vmatprep.mubr.f32.mxu0 %v1924_v0  ;;  %v7272_v15 = vld [vmem:[%s16280_s1 + $0x140] sm:$0xff]  ;;  %v7275_v20 = vld [vmem:[%s16280_s1 + $0x128] sm:$0xff] }
 0x3f4   : > { %2057 = vmatmul.mubr.f32.vlgmr.msra.gmra.mxu0 %v1922_v18  ;;  %v2136_v22 = vpop.f32.mrf.mxu1  ;;  %v7274_v18 = vld [vmem:[%s16280_s1 + $0x130] sm:$0xff]  ;;  %v7276_v0 = vld [vmem:[%s16280_s1 + $0x120] sm:$0xff] }
 0x3f5   : > { %2391 = vmatprep.mubr.f32.mxu0 %v8955_v4 }
 0x3f6   : > { %v2138_v23 = vpop.f32.mrf.mxu1 }
 0x3f7   : > { %2270 = vmatprep.mubr.f32.mxu1 %v2138_v23  ;;  %v7278_v23 = vld [vmem:[%s16280_s1 + $0x110] sm:$0xff] }
 0x3f8   : > { %2271 = vmatmul.mubr.f32.vlgmr.msra.gmra.mxu1 %v2136_v22  ;;  %v7277_v22 = vld [vmem:[%s16280_s1 + $0x118] sm:$0xff] }
 0x3f9   : > { %2546 = vmatpush1.msra.mxu1 %v7218_v58  ;;  %v7279_v58 = vld [vmem:[%s16280_s1 + $0x108] sm:$0xff] }
 0x3fa   : > { %2547 = vmatprep.subr.mxu1 %v7219_v61  ;;  %v7280_v61 = vld [vmem:[%s16280_s1 + $0x100] sm:$0xff] }
 0x3fb   : > { %2548 = vmatpush1.msra.mxu1 %v7220_v24  ;;  %v2300_v24 = vld [vmem:[%s11035_s15] sm:$0xff] }
 0x3fc   : > { %2549 = vmatprep.subr.mxu1 %v7221_v25  ;;  %2307 = vperm.xlu1 %7206, %v2300_v24   ;;  %v7305_v24 = vld [vmem:[%s16280_s1 + $0x238] sm:$0xff] }
 0x3fd   : > { %2550 = vmatpush1.msra.mxu1 %v7222_v26 }
 0x3fe   : > { %2551 = vmatprep.subr.mxu1 %v7223_v27 }
 0x3ff   : > { %2552 = vmatpush1.msra.mxu1 %v7224_v28 }
 0x400   : > { %2553 = vmatprep.subr.mxu1 %v7225_v29 }
 0x401   : > { %2554 = vmatpush1.msra.mxu1 %v7226_v30 }
 0x402   : > { %2555 = vmatprep.subr.mxu1 %v7227_v31  ;;  %v2283_v31 = vpop.permute.xlu0 %2282 }
 0x403   : > { %2556 = vmatpush1.msra.mxu1 %v7228_v32 }
 0x404   : > { %2557 = vmatprep.subr.mxu1 %v7229_v33 }
 0x405   : > { %2558 = vmatpush1.msra.mxu1 %v7230_v34 }
 0x406   : > { %2559 = vmatprep.subr.mxu1 %v7231_v36 }
 0x407   : > { %2560 = vmatpush1.msra.mxu1 %v7232_v38 }
 0x408   : > { %2561 = vmatprep.subr.mxu1 %v7233_v39  ;;  %v7144_v39 = vld [vmem:[%s11035_s15 + $0x8] sm:$0xff] }
 0x409   : > { %2562 = vmatpush1.msra.mxu1 %v7234_v40 }
 0x40a   : > { %2563 = vmatprep.subr.mxu1 %v7235_v41 }
 0x40b   : > { %2564 = vmatpush1.msra.mxu1 %v7236_v14 }
 0x40c   : > { %2565 = vmatprep.subr.mxu1 %v7237_v13 }
 0x40d   : > { %2566 = vmatpush1.msra.mxu1 %v7238_v42 }
 0x40e   : > { %2567 = vmatprep.subr.mxu1 %v7239_v43 }
 0x40f   : > { %2568 = vmatpush1.msra.mxu1 %v7240_v44  ;;  %v7143_v44 = vld [vmem:[%s10832_s11 + $0x8] sm:$0xff] }
 0x410   : > { %2569 = vmatprep.subr.mxu1 %v7241_v45 }
 0x411   : > { %2570 = vmatpush1.msra.mxu1 %v7242_v46 }
 0x412   : > { %2571 = vmatprep.subr.mxu1 %v7243_v47 }
 0x413   : > { %2572 = vmatpush1.msra.mxu1 %v7244_v48 }
 0x414   : > { %2573 = vmatprep.subr.mxu1 %v7245_v49 }
 0x415   : > { %2574 = vmatpush1.msra.mxu1 %v7246_v50 }
 0x416   : > { %2575 = vmatprep.subr.mxu1 %v7247_v51 }
 0x417   : > { %2576 = vmatpush1.msra.mxu1 %v7248_v52 }
 0x418   : > { %2577 = vmatprep.subr.mxu1 %v7249_v53 }
 0x419   : > { %2578 = vmatpush2.msra.mxu1 %v7250_v54 }
 0x41a   : > { %2579 = vmatprep.subr.mxu1 %v7251_v55 }
 0x41b   : > { %2580 = vmatpush2.msra.mxu1 %v7252_v56 }
 0x41c   : > { %2581 = vmatprep.subr.mxu1 %v7253_v57 }
 0x41d   : > { %2582 = vmatpush2.msra.mxu1 %v7254_v59 }
 0x41e   : > { %2583 = vmatprep.subr.mxu1 %v7255_v60  ;;  %v7125_v60 = vld [vmem:[%s9033_s14 + $0x48] sm:$0xff] }
 0x41f   : > { %2584 = vmatpush2.msra.mxu1 %v7256_v19  ;;  %v7127_v19 = vld [vmem:[%s9033_s14 + $0x50] sm:$0xff] }
 0x420   : > { %2585 = vmatprep.subr.mxu1 %v7257_v62  ;;  %v7281_v62 = vld [vmem:[%s16280_s1 + $0x2f8] sm:$0xff] }
 0x421   : > { %2586 = vmatpush2.msra.mxu1 %v7258_v35  ;;  %v7282_v35 = vld [vmem:[%s16280_s1 + $0x2f0] sm:$0xff] }
 0x422   : > { %2587 = vmatprep.subr.mxu1 %v7259_v37  ;;  %v7283_v37 = vld [vmem:[%s16280_s1 + $0x2e8] sm:$0xff] }
 0x423   : > { %2588 = vmatpush2.msra.mxu1 %v7260_v63  ;;  %v7284_v63 = vld [vmem:[%s16280_s1 + $0x2e0] sm:$0xff] }
 0x424   : > { %2589 = vmatprep.subr.mxu1 %v7261_v2  ;;  %v7285_v2 = vld [vmem:[%s16280_s1 + $0x2d8] sm:$0xff] }
 0x425   : > { %2590 = vmatpush2.msra.mxu1 %v7262_v3  ;;  %v7286_v3 = vld [vmem:[%s16280_s1 + $0x2d0] sm:$0xff] }
 0x426   : > { %2591 = vmatprep.subr.mxu1 %v7263_v5  ;;  %v7287_v5 = vld [vmem:[%s16280_s1 + $0x2c8] sm:$0xff] }
 0x427   : > { %2592 = vmatpush2.msra.mxu1 %v7264_v6  ;;  %v7288_v6 = vld [vmem:[%s16280_s1 + $0x2c0] sm:$0xff] }
 0x428   : > { %2593 = vmatprep.subr.mxu1 %v7265_v7  ;;  %v7289_v7 = vld [vmem:[%s16280_s1 + $0x2b8] sm:$0xff] }
 0x429   : > { %2594 = vmatpush2.msra.mxu1 %v7266_v8  ;;  %v7290_v8 = vld [vmem:[%s16280_s1 + $0x2b0] sm:$0xff] }
 0x42a   : > { %2595 = vmatprep.subr.mxu1 %v7267_v17  ;;  %v7291_v17 = vld [vmem:[%s16280_s1 + $0x2a8] sm:$0xff] }
 0x42b   : > { %2596 = vmatpush2.msra.mxu1 %v7268_v9  ;;  %v7292_v9 = vld [vmem:[%s16280_s1 + $0x2a0] sm:$0xff] }
 0x42c   : > { %2597 = vmatprep.subr.mxu1 %v7269_v10  ;;  %v7293_v10 = vld [vmem:[%s16280_s1 + $0x298] sm:$0xff] }
 0x42d   : > { %2598 = vmatpush2.msra.mxu1 %v7270_v11  ;;  %v7294_v11 = vld [vmem:[%s16280_s1 + $0x290] sm:$0xff] }
 0x42e   : > { %2599 = vmatprep.subr.mxu1 %v7271_v12  ;;  %v7295_v12 = vld [vmem:[%s16280_s1 + $0x288] sm:$0xff] }
 0x42f   : > { %2600 = vmatpush2.msra.mxu1 %v7272_v15  ;;  %v7296_v15 = vld [vmem:[%s16280_s1 + $0x280] sm:$0xff] }
 0x430   : > { %2601 = vmatprep.subr.mxu1 %v7273_v16  ;;  %v7297_v16 = vld [vmem:[%s16280_s1 + $0x278] sm:$0xff] }
 0x431   : > { %2602 = vmatpush2.msra.mxu1 %v7274_v18  ;;  %v7298_v18 = vld [vmem:[%s16280_s1 + $0x270] sm:$0xff] }
 0x432   : > { %2603 = vmatprep.subr.mxu1 %v7275_v20  ;;  %v7299_v20 = vld [vmem:[%s16280_s1 + $0x268] sm:$0xff] }
 0x433   : > { %2604 = vmatpush2.msra.mxu1 %v7276_v0  ;;  %v7300_v0 = vld [vmem:[%s16280_s1 + $0x260] sm:$0xff] }
 0x434   : > { %2605 = vmatprep.subr.mxu1 %v7277_v22  ;;  %v7301_v22 = vld [vmem:[%s16280_s1 + $0x258] sm:$0xff] }
 0x435   : > { %2606 = vmatpush2.msra.mxu1 %v7278_v23  ;;  %v7302_v23 = vld [vmem:[%s16280_s1 + $0x250] sm:$0xff] }
 0x436   : > { %2607 = vmatprep.subr.mxu1 %v7279_v58  ;;  %v7303_v58 = vld [vmem:[%s16280_s1 + $0x248] sm:$0xff] }
 0x437   : > { %2608 = vmatpush2.msra.mxu1 %v7280_v61  ;;  %v7304_v61 = vld [vmem:[%s16280_s1 + $0x240] sm:$0xff] }
 0x477   : > { %v2308_v45 = vpop.permute.xlu1 %2307 }
 0x4b4   : > { %v2058_v25 = vpop.f32.mrf.mxu0 }
 0x4b5   : > { %v2063_v27 = vadd.f32 %v2058_v25, %v10837_v1  ;;  %v7306_v25 = vld [vmem:[%s16280_s1 + $0x230] sm:$0xff] }
 0x4b6   : > { %v2060_v26 = vpop.f32.mrf.mxu0 }
 0x4b7   : > { %v2064_v29 = vadd.f32 %v2060_v26, %v10839_v21  ;;  %v2312_v21 = vld [vmem:[%s11045_s18] sm:$0xff]  ;;  %v7307_v26 = vld [vmem:[%s16280_s1 + $0x228] sm:$0xff] }
 0x4b8   : > { %v2272_v28 = vpop.f32.mrf.mxu1 }
 0x4b9   : > { %v2277_v30 = vadd.f32 %v2272_v28, %v2063_v27  ;;  %v7308_v27 = vld [vmem:[%s16280_s1 + $0x220] sm:$0xff]  ;;  %v7309_v28 = vld [vmem:[%s16280_s1 + $0x218] sm:$0xff] }
 0x4ba   : > { %v2274_v32 = vpop.f32.mrf.mxu1 }
 0x4bb   : > { %v2278_v33 = vadd.f32 %v2274_v32, %v2064_v29  ;;  %v2285_v34 = vadd.f32 %v2283_v31, %v2277_v30  ;;  %v7310_v29 = vld [vmem:[%s16280_s1 + $0x210] sm:$0xff]  ;;  %v7311_v30 = vld [vmem:[%s16280_s1 + $0x208] sm:$0xff]  ;;  %v7313_v32 = vld [vmem:[%s16280_s1 + $0x3f8] sm:$0xff] }
 0x4bd   : > { %v2286_v36 = vadd.f32 %v2283_v31, %v2278_v33  ;;  %v7312_v31 = vld [vmem:[%s16280_s1 + $0x200] sm:$0xff]  ;;  %v7314_v33 = vld [vmem:[%s16280_s1 + $0x3f0] sm:$0xff] }
 0x4bf   : > { %v2287_v38 = vadd.f32 %v2286_v36, %v2285_v34 }
 0x4c1   : > { %2288 = vadd.xlane.f32.xlu0 %v2287_v38  ;;  %v7317_v38 = vld [vmem:[%s16280_s1 + $0x3d8] sm:$0xff] }
 0x4d7   : > { %3688 = vperm.xlu0 %7205, %v7144_v39   ;;  %v7318_v39 = vld [vmem:[%s16280_s1 + $0x3d0] sm:$0xff] }
 0x54a   : > { %v2289_v40 = vpop.xlane.xlu0 %2288 }
 0x54b   : > { %v2291_v41 = vmul.f32 0.00390625, %v2289_v40  ;;  %v7319_v40 = vld [vmem:[%s16280_s1 + $0x3c8] sm:$0xff] }
 0x54d   : > { %v2292_v14 = vsub.f32 %v2285_v34, %v2291_v41  ;;  %v2293_v13 = vsub.f32 %v2286_v36, %v2291_v41  ;;  %v7315_v34 = vld [vmem:[%s16280_s1 + $0x3e8] sm:$0xff]  ;;  %v7316_v36 = vld [vmem:[%s16280_s1 + $0x3e0] sm:$0xff] }
 0x54e   : > { %v7320_v41 = vld [vmem:[%s16280_s1 + $0x3c0] sm:$0xff] }
 0x54f   : > { %v2294_v1 = vmul.f32 %v2292_v14, %v2292_v14  ;;  %v2295_v42 = vmul.f32 %v2293_v13, %v2293_v13 }
 0x551   : > { %v2296_v43 = vadd.f32 %v2295_v42, %v2294_v1  ;;  %v7323_v1 = vld [vmem:[%s16280_s1 + $0x3a8] sm:$0xff]  ;;  %v7324_v42 = vld [vmem:[%s16280_s1 + $0x3a0] sm:$0xff] }
 0x553   : > { %2297 = vadd.xlane.f32.xlu1 %v2296_v43  ;;  %v7325_v43 = vld [vmem:[%s16280_s1 + $0x398] sm:$0xff] }
 0x564   : > { %2315 = vperm.xlu1 %7206, %v2312_v21   ;;  %v7326_v21 = vld [vmem:[%s16280_s1 + $0x390] sm:$0xff] }
 0x568   : > { %3663 = vperm.xlu1 %7206, %v7143_v44   ;;  %v7327_v44 = vld [vmem:[%s16280_s1 + $0x388] sm:$0xff] }
 0x5dc   : > { %v2298_v46 = vpop.xlane.xlu1 %2297 }
 0x5dd   : > { %v2299_v47 = vmul.f32 0.00390625, %v2298_v46  ;;  %v7329_v46 = vld [vmem:[%s16280_s1 + $0x378] sm:$0xff] }
 0x5df   : > { %v2301_v48 = vadd.f32 1e-05, %v2299_v47  ;;  %v7330_v47 = vld [vmem:[%s16280_s1 + $0x370] sm:$0xff] }
 0x5e0   : > { %v2316_v54 = vpop.permute.xlu1 %2315 }
 0x5e1   : > { %7207 = vrsqrt.f32 %v2301_v48  ;;  %v7331_v48 = vld [vmem:[%s16280_s1 + $0x368] sm:$0xff] }
 0x5ee   : > { %v7208_v49 = vpop.eup %7207 }
 0x5ef   : > { %v2303_v50 = vmul.f32 %v7208_v49, %v2292_v14  ;;  %v2304_v51 = vmul.f32 %v7208_v49, %v2293_v13  ;;  %v7321_v14 = vld [vmem:[%s16280_s1 + $0x3b8] sm:$0xff]  ;;  %v7322_v13 = vld [vmem:[%s16280_s1 + $0x3b0] sm:$0xff]  ;;  %v7332_v49 = vld [vmem:[%s16280_s1 + $0x360] sm:$0xff] }
 0x5f1   : > { %v2310_v52 = vmul.f32 %v2308_v45, %v2303_v50  ;;  %v2311_v53 = vmul.f32 %v2308_v45, %v2304_v51  ;;  %v7328_v45 = vld [vmem:[%s16280_s1 + $0x380] sm:$0xff]  ;;  %v7333_v50 = vld [vmem:[%s16280_s1 + $0x358] sm:$0xff]  ;;  %v7334_v51 = vld [vmem:[%s16280_s1 + $0x350] sm:$0xff] }
 0x5f3   : > { %v2318_v55 = vadd.f32 %v2316_v54, %v2310_v52  ;;  %v2319_v56 = vadd.f32 %v2316_v54, %v2311_v53  ;;  %v7335_v52 = vld [vmem:[%s16280_s1 + $0x348] sm:$0xff]  ;;  %v7336_v53 = vld [vmem:[%s16280_s1 + $0x340] sm:$0xff]  ;;  %v7337_v54 = vld [vmem:[%s16280_s1 + $0x338] sm:$0xff] }
 0x5f5   : > { %v11049_v57 = vmax.f32 %v2318_v55, 0.0  ;;  %v11051_v59 = vmax.f32 %v2319_v56, 0.0  ;;  %v7338_v55 = vld [vmem:[%s16280_s1 + $0x330] sm:$0xff]  ;;  %v7339_v56 = vld [vmem:[%s16280_s1 + $0x328] sm:$0xff] }
 0x5f7   : > { %2357 = vmatprep.subr.mxu0 %v11051_v59  ;;  %2800 = vmatprep.subr.mxu1 %v11051_v59 }
 0x5f8   : > { %2358 = vmatpush1.msra.mxu0 %v11049_v57 }
 0x5f9   : > { %7126 = vmatmul.mubr.msk.f32.vlgmr.msra.gmra.mxu0 %vm359_vm0, %v7125_v60  ;;  %2433 = vmatprep.subr.mxu0 %v11051_v59  ;;  %v7340_v60 = vld [vmem:[%s16280_s1 + $0x320] sm:$0xff] }
 0x5fa   : > { %2434 = vmatpush1.msra.mxu0 %v11049_v57  ;;  %2467 = vmatprep.mubr.f32.mxu0 %v8955_v4 }
 0x5fb   : > { %2474 = vmatprep.subr.mxu0 %v7281_v62  ;;  %v7342_v62 = vld [vmem:[%s16280_s1 + $0x310] sm:$0xff] }
 0x5fd   : > { %7128 = vmatmul.mubr.msk.f32.vlgmr.msra.gmra.mxu0 %vm359_vm0, %v7127_v19  ;;  %v7341_v19 = vld [vmem:[%s16280_s1 + $0x318] sm:$0xff] }
 0x5fe   : > { %2475 = vmatpush1.msra.mxu0 %v7282_v35  ;;  %v7343_v35 = vld [vmem:[%s16280_s1 + $0x308] sm:$0xff] }
 0x5ff   : > { %2476 = vmatprep.subr.mxu0 %v7283_v37  ;;  %v7344_v37 = vld [vmem:[%s16280_s1 + $0x300] sm:$0xff] }
 0x600   : > { %2477 = vmatpush1.msra.mxu0 %v7284_v63 }
 0x601   : > { %2478 = vmatprep.subr.mxu0 %v7285_v2 }
 0x602   : > { %2479 = vmatpush1.msra.mxu0 %v7286_v3 }
 0x603   : > { %2480 = vmatprep.subr.mxu0 %v7287_v5  ;;  %v7131_v5 = vld [vmem:[%s9033_s14 + $0x60] sm:$0xff] }
 0x604   : > { %2481 = vmatpush1.msra.mxu0 %v7288_v6 }
 0x605   : > { %2482 = vmatprep.subr.mxu0 %v7289_v7  ;;  %v7345_v7 = vld [vmem:[%s16280_s1 + $0x6f8] sm:$0xff] }
 0x606   : > { %2483 = vmatpush1.msra.mxu0 %v7290_v8  ;;  %v7346_v8 = vld [vmem:[%s16280_s1 + $0x6f0] sm:$0xff] }
 0x607   : > { %2484 = vmatprep.subr.mxu0 %v7291_v17  ;;  %v7129_v17 = vld [vmem:[%s9033_s14 + $0x58] sm:$0xff] }
 0x608   : > { %2485 = vmatpush1.msra.mxu0 %v7292_v9  ;;  %v7347_v9 = vld [vmem:[%s16280_s1 + $0x6e8] sm:$0xff] }
 0x609   : > { %2486 = vmatprep.subr.mxu0 %v7293_v10  ;;  %v7348_v10 = vld [vmem:[%s16280_s1 + $0x6e0] sm:$0xff] }
 0x60a   : > { %2487 = vmatpush1.msra.mxu0 %v7294_v11  ;;  %v7349_v11 = vld [vmem:[%s16280_s1 + $0x4f8] sm:$0xff] }
 0x60b   : > { %2488 = vmatprep.subr.mxu0 %v7295_v12  ;;  %v7350_v12 = vld [vmem:[%s16280_s1 + $0x6d8] sm:$0xff] }
 0x60c   : > { %2489 = vmatpush1.msra.mxu0 %v7296_v15  ;;  %v7351_v15 = vld [vmem:[%s16280_s1 + $0x4f0] sm:$0xff] }
 0x60d   : > { %2490 = vmatprep.subr.mxu0 %v7297_v16  ;;  %v7352_v16 = vld [vmem:[%s16280_s1 + $0x6d0] sm:$0xff] }
 0x60e   : > { %2491 = vmatpush1.msra.mxu0 %v7298_v18  ;;  %v7353_v18 = vld [vmem:[%s16280_s1 + $0x4e8] sm:$0xff] }
 0x60f   : > { %2492 = vmatprep.subr.mxu0 %v7299_v20  ;;  %v7354_v20 = vld [vmem:[%s16280_s1 + $0x6c8] sm:$0xff] }
 0x610   : > { %2493 = vmatpush1.msra.mxu0 %v7300_v0  ;;  %v7355_v0 = vld [vmem:[%s16280_s1 + $0x4e0] sm:$0xff] }
 0x611   : > { %2494 = vmatprep.subr.mxu0 %v7301_v22  ;;  %v7356_v22 = vld [vmem:[%s16280_s1 + $0x6c0] sm:$0xff] }
 0x612   : > { %2495 = vmatpush1.msra.mxu0 %v7302_v23  ;;  %v7357_v23 = vld [vmem:[%s16280_s1 + $0x4d8] sm:$0xff] }
 0x613   : > { %2496 = vmatprep.subr.mxu0 %v7303_v58  ;;  %v7358_v58 = vld [vmem:[%s16280_s1 + $0x6b8] sm:$0xff] }
 0x614   : > { %2497 = vmatpush1.msra.mxu0 %v7304_v61  ;;  %v7359_v61 = vld [vmem:[%s16280_s1 + $0x4d0] sm:$0xff] }
 0x615   : > { %2498 = vmatprep.subr.mxu0 %v7305_v24  ;;  %v7360_v24 = vld [vmem:[%s16280_s1 + $0x6b0] sm:$0xff] }
 0x616   : > { %2499 = vmatpush1.msra.mxu0 %v7306_v25  ;;  %v7361_v25 = vld [vmem:[%s16280_s1 + $0x4c8] sm:$0xff] }
 0x617   : > { %2500 = vmatprep.subr.mxu0 %v7307_v26  ;;  %v7362_v26 = vld [vmem:[%s16280_s1 + $0x6a8] sm:$0xff] }
 0x618   : > { %2501 = vmatpush1.msra.mxu0 %v7308_v27  ;;  %v7363_v27 = vld [vmem:[%s16280_s1 + $0x4c0] sm:$0xff] }
 0x619   : > { %2502 = vmatprep.subr.mxu0 %v7309_v28  ;;  %v7364_v28 = vld [vmem:[%s16280_s1 + $0x6a0] sm:$0xff] }
 0x61a   : > { %2503 = vmatpush1.msra.mxu0 %v7310_v29  ;;  %v7365_v29 = vld [vmem:[%s16280_s1 + $0x4b8] sm:$0xff] }
 0x61b   : > { %2504 = vmatprep.subr.mxu0 %v7311_v30  ;;  %v7366_v30 = vld [vmem:[%s16280_s1 + $0x698] sm:$0xff] }
 0x61c   : > { %2505 = vmatpush1.msra.mxu0 %v7312_v31  ;;  %v7367_v31 = vld [vmem:[%s16280_s1 + $0x4b0] sm:$0xff] }
 0x61d   : > { %2506 = vmatprep.subr.mxu0 %v7313_v32  ;;  %v7368_v32 = vld [vmem:[%s16280_s1 + $0x690] sm:$0xff] }
 0x61e   : > { %2507 = vmatpush2.msra.mxu0 %v7314_v33  ;;  %v7369_v33 = vld [vmem:[%s16280_s1 + $0x4a8] sm:$0xff] }
 0x61f   : > { %2508 = vmatprep.subr.mxu0 %v7315_v34  ;;  %v7370_v34 = vld [vmem:[%s16280_s1 + $0x688] sm:$0xff] }
 0x620   : > { %2509 = vmatpush2.msra.mxu0 %v7316_v36  ;;  %v7371_v36 = vld [vmem:[%s16280_s1 + $0x4a0] sm:$0xff] }
 0x621   : > { %2510 = vmatprep.subr.mxu0 %v7317_v38  ;;  %v7372_v38 = vld [vmem:[%s16280_s1 + $0x680] sm:$0xff] }
 0x622   : > { %2511 = vmatpush2.msra.mxu0 %v7318_v39  ;;  %v7373_v39 = vld [vmem:[%s16280_s1 + $0x498] sm:$0xff] }
 0x623   : > { %2512 = vmatprep.subr.mxu0 %v7319_v40  ;;  %v7374_v40 = vld [vmem:[%s16280_s1 + $0x678] sm:$0xff] }
 0x624   : > { %2513 = vmatpush2.msra.mxu0 %v7320_v41  ;;  %v7375_v41 = vld [vmem:[%s16280_s1 + $0x490] sm:$0xff] }
 0x625   : > { %2514 = vmatprep.subr.mxu0 %v7321_v14  ;;  %v7376_v14 = vld [vmem:[%s16280_s1 + $0x670] sm:$0xff] }
 0x626   : > { %2515 = vmatpush2.msra.mxu0 %v7322_v13  ;;  %v7377_v13 = vld [vmem:[%s16280_s1 + $0x488] sm:$0xff] }
 0x627   : > { %2516 = vmatprep.subr.mxu0 %v7323_v1  ;;  %v7378_v1 = vld [vmem:[%s16280_s1 + $0x668] sm:$0xff] }
 0x628   : > { %2517 = vmatpush2.msra.mxu0 %v7324_v42  ;;  %v7379_v42 = vld [vmem:[%s16280_s1 + $0x480] sm:$0xff] }
 0x629   : > { %2518 = vmatprep.subr.mxu0 %v7325_v43  ;;  %v7380_v43 = vld [vmem:[%s16280_s1 + $0x660] sm:$0xff] }
 0x62a   : > { %2519 = vmatpush2.msra.mxu0 %v7326_v21  ;;  %v7381_v21 = vld [vmem:[%s16280_s1 + $0x478] sm:$0xff] }
 0x62b   : > { %2520 = vmatprep.subr.mxu0 %v7327_v44  ;;  %v7382_v44 = vld [vmem:[%s16280_s1 + $0x658] sm:$0xff] }
 0x62c   : > { %2521 = vmatpush2.msra.mxu0 %v7328_v45  ;;  %v7383_v45 = vld [vmem:[%s16280_s1 + $0x470] sm:$0xff] }
 0x62d   : > { %2522 = vmatprep.subr.mxu0 %v7329_v46  ;;  %v7384_v46 = vld [vmem:[%s16280_s1 + $0x650] sm:$0xff] }
 0x62e   : > { %2523 = vmatpush2.msra.mxu0 %v7330_v47  ;;  %v7385_v47 = vld [vmem:[%s16280_s1 + $0x468] sm:$0xff] }
 0x62f   : > { %2524 = vmatprep.subr.mxu0 %v7331_v48  ;;  %v7386_v48 = vld [vmem:[%s16280_s1 + $0x648] sm:$0xff] }
 0x630   : > { %2525 = vmatpush2.msra.mxu0 %v7332_v49  ;;  %v7387_v49 = vld [vmem:[%s16280_s1 + $0x460] sm:$0xff] }
 0x631   : > { %2526 = vmatprep.subr.mxu0 %v7333_v50  ;;  %v7388_v50 = vld [vmem:[%s16280_s1 + $0x640] sm:$0xff] }
 0x632   : > { %2527 = vmatpush2.msra.mxu0 %v7334_v51  ;;  %v7389_v51 = vld [vmem:[%s16280_s1 + $0x458] sm:$0xff] }
 0x633   : > { %2528 = vmatprep.subr.mxu0 %v7335_v52  ;;  %v7390_v52 = vld [vmem:[%s16280_s1 + $0x638] sm:$0xff] }
 0x634   : > { %2529 = vmatpush2.msra.mxu0 %v7336_v53  ;;  %v7391_v53 = vld [vmem:[%s16280_s1 + $0x450] sm:$0xff] }
 0x635   : > { %2530 = vmatprep.subr.mxu0 %v7337_v54  ;;  %v7392_v54 = vld [vmem:[%s16280_s1 + $0x630] sm:$0xff] }
 0x636   : > { %2531 = vmatpush2.msra.mxu0 %v7338_v55  ;;  %v7393_v55 = vld [vmem:[%s16280_s1 + $0x448] sm:$0xff] }
 0x637   : > { %2532 = vmatprep.subr.mxu0 %v7339_v56  ;;  %v7394_v56 = vld [vmem:[%s16280_s1 + $0x628] sm:$0xff] }
 0x638   : > { %2533 = vmatpush2.msra.mxu0 %v7340_v60  ;;  %v7395_v60 = vld [vmem:[%s16280_s1 + $0x440] sm:$0xff] }
 0x639   : > { %2534 = vmatprep.subr.mxu0 %v7341_v19  ;;  %v7396_v19 = vld [vmem:[%s16280_s1 + $0x620] sm:$0xff] }
 0x63a   : > { %2535 = vmatpush2.msra.mxu0 %v7342_v62  ;;  %v7397_v62 = vld [vmem:[%s16280_s1 + $0x438] sm:$0xff] }
 0x63b   : > { %2536 = vmatprep.subr.mxu0 %v7343_v35  ;;  %v7398_v35 = vld [vmem:[%s16280_s1 + $0x618] sm:$0xff] }
 0x63c   : > { %2537 = vmatpush2.msra.mxu0 %v7344_v37  ;;  %v7399_v37 = vld [vmem:[%s16280_s1 + $0x430] sm:$0xff] }
 0x63d   : > { %2651 = vmatprep.subr.mxu0 %v11051_v59 }
 0x6b9   : > { %v2393_v63 = vpop.f32.mrf.mxu0 }
 0x6bb   : > { %v2395_v2 = vpop.f32.mrf.mxu0 }
 0x6bc   : > { %2609 = vmatprep.mubr.f32.mxu1 %v2395_v2  ;;  %v7401_v2 = vld [vmem:[%s16280_s1 + $0x428] sm:$0xff] }
 0x6bd   : > { %v2469_v3 = vpop.f32.mrf.mxu0  ;;  %2610 = vmatmul.mubr.f32.vlgmr.msra.gmra.mxu1 %v2393_v63  ;;  %v7400_v63 = vld [vmem:[%s16280_s1 + $0x610] sm:$0xff] }
 0x6be   : > { %2801 = vmatpush1.msra.mxu1 %v11049_v57  ;;  %2834 = vmatprep.mubr.f32.mxu1 %v8955_v4 }
 0x6bf   : > { %v2471_v6 = vpop.f32.mrf.mxu0  ;;  %2841 = vmatprep.subr.mxu1 %v7345_v7  ;;  %v7405_v7 = vld [vmem:[%s16280_s1 + $0x418] sm:$0xff] }
 0x6c0   : > { %2538 = vmatprep.mubr.f32.mxu0 %v2471_v6  ;;  %v7404_v6 = vld [vmem:[%s16280_s1 + $0x600] sm:$0xff] }
 0x6c1   : > { %2539 = vmatmul.mubr.f32.vlgmr.msra.gmra.mxu0 %v2469_v3  ;;  %7132 = vmatmul.mubr.msk.f32.vlgmr.msra.gmra.mxu1 %vm359_vm0, %v7131_v5  ;;  %v7402_v3 = vld [vmem:[%s16280_s1 + $0x608] sm:$0xff]  ;;  %v7403_v5 = vld [vmem:[%s16280_s1 + $0x420] sm:$0xff] }
 0x6c2   : > { %2652 = vmatpush1.msra.mxu0 %v11049_v57  ;;  %2842 = vmatpush1.msra.mxu1 %v7346_v8  ;;  %v7406_v8 = vld [vmem:[%s16280_s1 + $0x7f8] sm:$0xff] }
 0x6c3   : > { %2843 = vmatprep.subr.mxu1 %v7347_v9  ;;  %2685 = vmatprep.mubr.f32.mxu0 %v8955_v4  ;;  %v7408_v9 = vld [vmem:[%s16280_s1 + $0x7f0] sm:$0xff] }
 0x6c4   : > { %2844 = vmatpush1.msra.mxu1 %v7348_v10  ;;  %2692 = vmatprep.subr.mxu0 %v7349_v11  ;;  %v7409_v10 = vld [vmem:[%s16280_s1 + $0x408] sm:$0xff] }
 0x6c5   : > { %2845 = vmatprep.subr.mxu1 %v7350_v12  ;;  %7130 = vmatmul.mubr.msk.f32.vlgmr.msra.gmra.mxu0 %vm359_vm0, %v7129_v17  ;;  %v7407_v17 = vld [vmem:[%s16280_s1 + $0x410] sm:$0xff]  ;;  %v7410_v11 = vld [vmem:[%s16280_s1 + $0x7e8] sm:$0xff]  ;;  %v7411_v12 = vld [vmem:[%s16280_s1 + $0x400] sm:$0xff] }
 0x6c6   : > { %2693 = vmatpush1.msra.mxu0 %v7351_v15  ;;  %2846 = vmatpush1.msra.mxu1 %v7352_v16  ;;  %v7412_v15 = vld [vmem:[%s16280_s1 + $0x7e0] sm:$0xff]  ;;  %v7413_v16 = vld [vmem:[%s16280_s1 + $0x5f8] sm:$0xff] }
 0x6c7   : > { %2694 = vmatprep.subr.mxu0 %v7353_v18  ;;  %2847 = vmatprep.subr.mxu1 %v7354_v20  ;;  %v7414_v18 = vld [vmem:[%s16280_s1 + $0x7d8] sm:$0xff]  ;;  %v7415_v20 = vld [vmem:[%s16280_s1 + $0x5f0] sm:$0xff] }
 0x6c8   : > { %2695 = vmatpush1.msra.mxu0 %v7355_v0  ;;  %2848 = vmatpush1.msra.mxu1 %v7356_v22  ;;  %v7416_v0 = vld [vmem:[%s16280_s1 + $0x7d0] sm:$0xff]  ;;  %v7417_v22 = vld [vmem:[%s16280_s1 + $0x5e8] sm:$0xff] }
 0x6c9   : > { %2696 = vmatprep.subr.mxu0 %v7357_v23  ;;  %2849 = vmatprep.subr.mxu1 %v7358_v58  ;;  %v7418_v23 = vld [vmem:[%s16280_s1 + $0x7c8] sm:$0xff]  ;;  %v7419_v58 = vld [vmem:[%s16280_s1 + $0x5e0] sm:$0xff] }
 0x6ca   : > { %2697 = vmatpush1.msra.mxu0 %v7359_v61  ;;  %2850 = vmatpush1.msra.mxu1 %v7360_v24  ;;  %v7420_v61 = vld [vmem:[%s16280_s1 + $0x7c0] sm:$0xff]  ;;  %v7421_v24 = vld [vmem:[%s16280_s1 + $0x5d8] sm:$0xff] }
 0x6cb   : > { %2698 = vmatprep.subr.mxu0 %v7361_v25  ;;  %2851 = vmatprep.subr.mxu1 %v7362_v26  ;;  %v7422_v25 = vld [vmem:[%s16280_s1 + $0x7b8] sm:$0xff]  ;;  %v7423_v26 = vld [vmem:[%s16280_s1 + $0x5d0] sm:$0xff] }
 0x6cc   : > { %2699 = vmatpush1.msra.mxu0 %v7363_v27  ;;  %2852 = vmatpush1.msra.mxu1 %v7364_v28  ;;  %v7424_v27 = vld [vmem:[%s16280_s1 + $0x7b0] sm:$0xff]  ;;  %v7425_v28 = vld [vmem:[%s16280_s1 + $0x5c8] sm:$0xff] }
 0x6cd   : > { %2700 = vmatprep.subr.mxu0 %v7365_v29  ;;  %2853 = vmatprep.subr.mxu1 %v7366_v30  ;;  %v7426_v29 = vld [vmem:[%s16280_s1 + $0x7a8] sm:$0xff]  ;;  %v7427_v30 = vld [vmem:[%s16280_s1 + $0x5c0] sm:$0xff] }
 0x6ce   : > { %2701 = vmatpush1.msra.mxu0 %v7367_v31  ;;  %2854 = vmatpush1.msra.mxu1 %v7368_v32  ;;  %v7428_v31 = vld [vmem:[%s16280_s1 + $0x7a0] sm:$0xff]  ;;  %v7429_v32 = vld [vmem:[%s16280_s1 + $0x5b8] sm:$0xff] }
 0x6cf   : > { %2702 = vmatprep.subr.mxu0 %v7369_v33  ;;  %2855 = vmatprep.subr.mxu1 %v7370_v34  ;;  %v7430_v33 = vld [vmem:[%s16280_s1 + $0x798] sm:$0xff]  ;;  %v7431_v34 = vld [vmem:[%s16280_s1 + $0x5b0] sm:$0xff] }
 0x6d0   : > { %2703 = vmatpush1.msra.mxu0 %v7371_v36  ;;  %2856 = vmatpush1.msra.mxu1 %v7372_v38  ;;  %v7432_v36 = vld [vmem:[%s16280_s1 + $0x790] sm:$0xff]  ;;  %v7433_v38 = vld [vmem:[%s16280_s1 + $0x5a8] sm:$0xff] }
 0x6d1   : > { %2704 = vmatprep.subr.mxu0 %v7373_v39  ;;  %2857 = vmatprep.subr.mxu1 %v7374_v40  ;;  %v7434_v39 = vld [vmem:[%s16280_s1 + $0x788] sm:$0xff]  ;;  %v7435_v40 = vld [vmem:[%s16280_s1 + $0x5a0] sm:$0xff] }
 0x6d2   : > { %2705 = vmatpush1.msra.mxu0 %v7375_v41  ;;  %2858 = vmatpush1.msra.mxu1 %v7376_v14  ;;  %v7436_v41 = vld [vmem:[%s16280_s1 + $0x780] sm:$0xff]  ;;  %v7437_v14 = vld [vmem:[%s16280_s1 + $0x598] sm:$0xff] }
 0x6d3   : > { %2706 = vmatprep.subr.mxu0 %v7377_v13  ;;  %2859 = vmatprep.subr.mxu1 %v7378_v1  ;;  %v7438_v13 = vld [vmem:[%s16280_s1 + $0x778] sm:$0xff]  ;;  %v7439_v1 = vld [vmem:[%s16280_s1 + $0x590] sm:$0xff] }
 0x6d4   : > { %2707 = vmatpush1.msra.mxu0 %v7379_v42  ;;  %2860 = vmatpush1.msra.mxu1 %v7380_v43  ;;  %v7440_v42 = vld [vmem:[%s16280_s1 + $0x770] sm:$0xff]  ;;  %v7441_v43 = vld [vmem:[%s16280_s1 + $0x588] sm:$0xff] }
 0x6d5   : > { %2708 = vmatprep.subr.mxu0 %v7381_v21  ;;  %2861 = vmatprep.subr.mxu1 %v7382_v44  ;;  %v7442_v21 = vld [vmem:[%s16280_s1 + $0x768] sm:$0xff]  ;;  %v7443_v44 = vld [vmem:[%s16280_s1 + $0x580] sm:$0xff] }
 0x6d6   : > { %2709 = vmatpush1.msra.mxu0 %v7383_v45  ;;  %2862 = vmatpush1.msra.mxu1 %v7384_v46  ;;  %v7444_v45 = vld [vmem:[%s16280_s1 + $0x760] sm:$0xff]  ;;  %v7445_v46 = vld [vmem:[%s16280_s1 + $0x578] sm:$0xff] }
 0x6d7   : > { %2710 = vmatprep.subr.mxu0 %v7385_v47  ;;  %2863 = vmatprep.subr.mxu1 %v7386_v48  ;;  %v7446_v47 = vld [vmem:[%s16280_s1 + $0x758] sm:$0xff]  ;;  %v7447_v48 = vld [vmem:[%s16280_s1 + $0x570] sm:$0xff] }
 0x6d8   : > { %2711 = vmatpush1.msra.mxu0 %v7387_v49  ;;  %2864 = vmatpush1.msra.mxu1 %v7388_v50  ;;  %v7448_v49 = vld [vmem:[%s16280_s1 + $0x750] sm:$0xff]  ;;  %v7449_v50 = vld [vmem:[%s16280_s1 + $0x568] sm:$0xff] }
 0x6d9   : > { %2712 = vmatprep.subr.mxu0 %v7389_v51  ;;  %2865 = vmatprep.subr.mxu1 %v7390_v52  ;;  %v7450_v51 = vld [vmem:[%s16280_s1 + $0x748] sm:$0xff]  ;;  %v7451_v52 = vld [vmem:[%s16280_s1 + $0x560] sm:$0xff] }
 0x6da   : > { %2713 = vmatpush1.msra.mxu0 %v7391_v53  ;;  %2866 = vmatpush1.msra.mxu1 %v7392_v54  ;;  %v7452_v53 = vld [vmem:[%s16280_s1 + $0x740] sm:$0xff]  ;;  %v7453_v54 = vld [vmem:[%s16280_s1 + $0x558] sm:$0xff] }
 0x6db   : > { %2714 = vmatprep.subr.mxu0 %v7393_v55  ;;  %2867 = vmatprep.subr.mxu1 %v7394_v56  ;;  %v7454_v55 = vld [vmem:[%s16280_s1 + $0x738] sm:$0xff]  ;;  %v7455_v56 = vld [vmem:[%s16280_s1 + $0x550] sm:$0xff] }
 0x6dc   : > { %2715 = vmatpush1.msra.mxu0 %v7395_v60  ;;  %2868 = vmatpush1.msra.mxu1 %v7396_v19  ;;  %v7456_v60 = vld [vmem:[%s16280_s1 + $0x730] sm:$0xff]  ;;  %v7457_v19 = vld [vmem:[%s16280_s1 + $0x548] sm:$0xff] }
 0x6dd   : > { %2716 = vmatprep.subr.mxu0 %v7397_v62  ;;  %2869 = vmatprep.subr.mxu1 %v7398_v35  ;;  %v7458_v62 = vld [vmem:[%s16280_s1 + $0x728] sm:$0xff]  ;;  %v7459_v35 = vld [vmem:[%s16280_s1 + $0x540] sm:$0xff] }
 0x6de   : > { %2717 = vmatpush1.msra.mxu0 %v7399_v37  ;;  %2870 = vmatpush1.msra.mxu1 %v7400_v63  ;;  %v7460_v37 = vld [vmem:[%s16280_s1 + $0x720] sm:$0xff]  ;;  %v7461_v63 = vld [vmem:[%s16280_s1 + $0x538] sm:$0xff] }
 0x6df   : > { %2718 = vmatprep.subr.mxu0 %v7401_v2  ;;  %2871 = vmatprep.subr.mxu1 %v7402_v3  ;;  %v7462_v2 = vld [vmem:[%s16280_s1 + $0x718] sm:$0xff]  ;;  %v7463_v3 = vld [vmem:[%s16280_s1 + $0x530] sm:$0xff] }
 0x6e0   : > { %2719 = vmatpush1.msra.mxu0 %v7403_v5  ;;  %2872 = vmatpush1.msra.mxu1 %v7404_v6  ;;  %v7464_v5 = vld [vmem:[%s16280_s1 + $0x710] sm:$0xff]  ;;  %v7465_v6 = vld [vmem:[%s16280_s1 + $0x528] sm:$0xff] }
 0x6e1   : > { %2720 = vmatprep.subr.mxu0 %v7405_v7  ;;  %2873 = vmatprep.subr.mxu1 %v7406_v8  ;;  %v7466_v7 = vld [vmem:[%s16280_s1 + $0x708] sm:$0xff]  ;;  %v7467_v8 = vld [vmem:[%s16280_s1 + $0x520] sm:$0xff] }
 0x6e2   : > { %2721 = vmatpush1.msra.mxu0 %v7407_v17  ;;  %2874 = vmatpush2.msra.mxu1 %v7408_v9  ;;  %v7468_v17 = vld [vmem:[%s16280_s1 + $0x700] sm:$0xff]  ;;  %v7469_v9 = vld [vmem:[%s16280_s1 + $0x518] sm:$0xff] }
 0x6e3   : > { %2722 = vmatprep.subr.mxu0 %v7409_v10  ;;  %2875 = vmatprep.subr.mxu1 %v7410_v11  ;;  %v7470_v10 = vld [vmem:[%s16280_s1 + $0x510] sm:$0xff]  ;;  %v7471_v11 = vld [vmem:[%s16280_s1 + $0x508] sm:$0xff] }
 0x6e4   : > { %2723 = vmatpush1.msra.mxu0 %v7411_v12  ;;  %2876 = vmatpush2.msra.mxu1 %v7412_v15  ;;  %v7472_v12 = vld [vmem:[%s16280_s1 + $0x500] sm:$0xff] }
 0x6e5   : > { %2724 = vmatprep.subr.mxu0 %v7413_v16  ;;  %2877 = vmatprep.subr.mxu1 %v7414_v18 }
 0x6e6   : > { %2725 = vmatpush2.msra.mxu0 %v7415_v20  ;;  %2878 = vmatpush2.msra.mxu1 %v7416_v0 }
 0x6e7   : > { %2726 = vmatprep.subr.mxu0 %v7417_v22  ;;  %2879 = vmatprep.subr.mxu1 %v7418_v23 }
 0x6e8   : > { %2727 = vmatpush2.msra.mxu0 %v7419_v58  ;;  %2880 = vmatpush2.msra.mxu1 %v7420_v61 }
 0x6e9   : > { %2728 = vmatprep.subr.mxu0 %v7421_v24  ;;  %2881 = vmatprep.subr.mxu1 %v7422_v25  ;;  %v7135_v24 = vld [vmem:[%s9033_s14 + $0x70] sm:$0xff] }
 0x6ea   : > { %2729 = vmatpush2.msra.mxu0 %v7423_v26  ;;  %2882 = vmatpush2.msra.mxu1 %v7424_v27  ;;  %v7473_v26 = vld [vmem:[%s16280_s1 + $0xaf8] sm:$0xff]  ;;  %v7474_v27 = vld [vmem:[%s16280_s1 + $0xaf0] sm:$0xff] }
 0x6eb   : > { %2730 = vmatprep.subr.mxu0 %v7425_v28  ;;  %2883 = vmatprep.subr.mxu1 %v7426_v29  ;;  %v7133_v28 = vld [vmem:[%s9033_s14 + $0x68] sm:$0xff] }
 0x6ec   : > { %2731 = vmatpush2.msra.mxu0 %v7427_v30  ;;  %2884 = vmatpush2.msra.mxu1 %v7428_v31  ;;  %v7475_v29 = vld [vmem:[%s16280_s1 + $0xae8] sm:$0xff]  ;;  %v7476_v30 = vld [vmem:[%s16280_s1 + $0xae0] sm:$0xff]  ;;  %v7477_v31 = vld [vmem:[%s16280_s1 + $0x8f8] sm:$0xff] }
 0x6ed   : > { %2732 = vmatprep.subr.mxu0 %v7429_v32  ;;  %2885 = vmatprep.subr.mxu1 %v7430_v33  ;;  %v7478_v32 = vld [vmem:[%s16280_s1 + $0xad8] sm:$0xff]  ;;  %v7479_v33 = vld [vmem:[%s16280_s1 + $0x8f0] sm:$0xff] }
 0x6ee   : > { %2733 = vmatpush2.msra.mxu0 %v7431_v34  ;;  %2886 = vmatpush2.msra.mxu1 %v7432_v36  ;;  %v7480_v34 = vld [vmem:[%s16280_s1 + $0xad0] sm:$0xff]  ;;  %v7481_v36 = vld [vmem:[%s16280_s1 + $0x8e8] sm:$0xff] }
 0x6ef   : > { %2734 = vmatprep.subr.mxu0 %v7433_v38  ;;  %2887 = vmatprep.subr.mxu1 %v7434_v39  ;;  %v7482_v38 = vld [vmem:[%s16280_s1 + $0xac8] sm:$0xff]  ;;  %v7483_v39 = vld [vmem:[%s16280_s1 + $0x8e0] sm:$0xff] }
 0x6f0   : > { %2735 = vmatpush2.msra.mxu0 %v7435_v40  ;;  %2888 = vmatpush2.msra.mxu1 %v7436_v41  ;;  %v7484_v40 = vld [vmem:[%s16280_s1 + $0xac0] sm:$0xff]  ;;  %v7485_v41 = vld [vmem:[%s16280_s1 + $0x8d8] sm:$0xff] }
 0x6f1   : > { %2736 = vmatprep.subr.mxu0 %v7437_v14  ;;  %2889 = vmatprep.subr.mxu1 %v7438_v13  ;;  %v7486_v14 = vld [vmem:[%s16280_s1 + $0xab8] sm:$0xff]  ;;  %v7487_v13 = vld [vmem:[%s16280_s1 + $0x8d0] sm:$0xff] }
 0x6f2   : > { %2737 = vmatpush2.msra.mxu0 %v7439_v1  ;;  %2890 = vmatpush2.msra.mxu1 %v7440_v42  ;;  %v7488_v1 = vld [vmem:[%s16280_s1 + $0xab0] sm:$0xff]  ;;  %v7489_v42 = vld [vmem:[%s16280_s1 + $0x8c8] sm:$0xff] }
 0x6f3   : > { %2738 = vmatprep.subr.mxu0 %v7441_v43  ;;  %2891 = vmatprep.subr.mxu1 %v7442_v21  ;;  %v7490_v43 = vld [vmem:[%s16280_s1 + $0xaa8] sm:$0xff]  ;;  %v7491_v21 = vld [vmem:[%s16280_s1 + $0x8c0] sm:$0xff] }
 0x6f4   : > { %2739 = vmatpush2.msra.mxu0 %v7443_v44  ;;  %2892 = vmatpush2.msra.mxu1 %v7444_v45  ;;  %v7492_v44 = vld [vmem:[%s16280_s1 + $0xaa0] sm:$0xff]  ;;  %v7493_v45 = vld [vmem:[%s16280_s1 + $0x8b8] sm:$0xff] }
 0x6f5   : > { %2740 = vmatprep.subr.mxu0 %v7445_v46  ;;  %2893 = vmatprep.subr.mxu1 %v7446_v47  ;;  %v7494_v46 = vld [vmem:[%s16280_s1 + $0xa98] sm:$0xff]  ;;  %v7495_v47 = vld [vmem:[%s16280_s1 + $0x8b0] sm:$0xff] }
 0x6f6   : > { %2741 = vmatpush2.msra.mxu0 %v7447_v48  ;;  %2894 = vmatpush2.msra.mxu1 %v7448_v49  ;;  %v7496_v48 = vld [vmem:[%s16280_s1 + $0xa90] sm:$0xff]  ;;  %v7497_v49 = vld [vmem:[%s16280_s1 + $0x8a8] sm:$0xff] }
 0x6f7   : > { %2742 = vmatprep.subr.mxu0 %v7449_v50  ;;  %2895 = vmatprep.subr.mxu1 %v7450_v51  ;;  %v7498_v50 = vld [vmem:[%s16280_s1 + $0xa88] sm:$0xff]  ;;  %v7499_v51 = vld [vmem:[%s16280_s1 + $0x8a0] sm:$0xff] }
 0x6f8   : > { %2743 = vmatpush2.msra.mxu0 %v7451_v52  ;;  %2896 = vmatpush2.msra.mxu1 %v7452_v53  ;;  %v7500_v52 = vld [vmem:[%s16280_s1 + $0xa80] sm:$0xff]  ;;  %v7501_v53 = vld [vmem:[%s16280_s1 + $0x898] sm:$0xff] }
 0x6f9   : > { %2744 = vmatprep.subr.mxu0 %v7453_v54  ;;  %2897 = vmatprep.subr.mxu1 %v7454_v55  ;;  %v7502_v54 = vld [vmem:[%s16280_s1 + $0xa78] sm:$0xff]  ;;  %v7503_v55 = vld [vmem:[%s16280_s1 + $0x890] sm:$0xff] }
 0x6fa   : > { %2745 = vmatpush2.msra.mxu0 %v7455_v56  ;;  %2898 = vmatpush2.msra.mxu1 %v7456_v60  ;;  %v7504_v56 = vld [vmem:[%s16280_s1 + $0xa70] sm:$0xff]  ;;  %v7505_v60 = vld [vmem:[%s16280_s1 + $0x888] sm:$0xff] }
 0x6fb   : > { %2746 = vmatprep.subr.mxu0 %v7457_v19  ;;  %2899 = vmatprep.subr.mxu1 %v7458_v62  ;;  %v7506_v19 = vld [vmem:[%s16280_s1 + $0xa68] sm:$0xff]  ;;  %v7507_v62 = vld [vmem:[%s16280_s1 + $0x880] sm:$0xff] }
 0x6fc   : > { %2747 = vmatpush2.msra.mxu0 %v7459_v35  ;;  %2900 = vmatpush2.msra.mxu1 %v7460_v37  ;;  %v7508_v35 = vld [vmem:[%s16280_s1 + $0xa60] sm:$0xff]  ;;  %v7509_v37 = vld [vmem:[%s16280_s1 + $0x878] sm:$0xff] }
 0x6fd   : > { %2748 = vmatprep.subr.mxu0 %v7461_v63  ;;  %2901 = vmatprep.subr.mxu1 %v7462_v2  ;;  %v7510_v63 = vld [vmem:[%s16280_s1 + $0xa58] sm:$0xff]  ;;  %v7511_v2 = vld [vmem:[%s16280_s1 + $0x870] sm:$0xff] }
 0x6fe   : > { %2749 = vmatpush2.msra.mxu0 %v7463_v3  ;;  %2902 = vmatpush2.msra.mxu1 %v7464_v5  ;;  %v7512_v3 = vld [vmem:[%s16280_s1 + $0xa50] sm:$0xff]  ;;  %v7513_v5 = vld [vmem:[%s16280_s1 + $0x868] sm:$0xff] }
 0x6ff   : > { %2750 = vmatprep.subr.mxu0 %v7465_v6  ;;  %2903 = vmatprep.subr.mxu1 %v7466_v7  ;;  %v7514_v6 = vld [vmem:[%s16280_s1 + $0xa48] sm:$0xff]  ;;  %v7515_v7 = vld [vmem:[%s16280_s1 + $0x860] sm:$0xff] }
 0x700   : > { %2751 = vmatpush2.msra.mxu0 %v7467_v8  ;;  %2904 = vmatpush2.msra.mxu1 %v7468_v17  ;;  %v7516_v8 = vld [vmem:[%s16280_s1 + $0xa40] sm:$0xff]  ;;  %v7517_v17 = vld [vmem:[%s16280_s1 + $0x858] sm:$0xff] }
 0x701   : > { %2752 = vmatprep.subr.mxu0 %v7469_v9  ;;  %3098 = vmatprep.subr.mxu1 %v11051_v59  ;;  %v7518_v9 = vld [vmem:[%s16280_s1 + $0xa38] sm:$0xff] }
 0x702   : > { %2753 = vmatpush2.msra.mxu0 %v7470_v10  ;;  %v7519_v10 = vld [vmem:[%s16280_s1 + $0x850] sm:$0xff] }
 0x703   : > { %2754 = vmatprep.subr.mxu0 %v7471_v11  ;;  %v7520_v11 = vld [vmem:[%s16280_s1 + $0xa30] sm:$0xff] }
 0x704   : > { %2755 = vmatpush2.msra.mxu0 %v7472_v12  ;;  %v7521_v12 = vld [vmem:[%s16280_s1 + $0x848] sm:$0xff] }
 0x705   : > { %2949 = vmatprep.subr.mxu0 %v11051_v59 }
 0x77d   : > { %v2611_v15 = vpop.f32.mrf.mxu1 }
 0x77f   : > { %v2613_v16 = vpop.f32.mrf.mxu1 }
 0x781   : > { %v2540_v18 = vpop.f32.mrf.mxu0  ;;  %v2836_v20 = vpop.f32.mrf.mxu1 }
 0x782   : > { %v11650_v0 = vadd.f32 %v2611_v15, %v2540_v18  ;;  %v7522_v15 = vld [vmem:[%s16280_s1 + $0xa28] sm:$0xff]  ;;  %v7524_v18 = vld [vmem:[%s16280_s1 + $0xa20] sm:$0xff] }
 0x783   : > { %v2542_v22 = vpop.f32.mrf.mxu0  ;;  %v2838_v23 = vpop.f32.mrf.mxu1 }
 0x784   : > { %v11652_v58 = vadd.f32 %v2613_v16, %v2542_v22  ;;  %2905 = vmatprep.mubr.f32.mxu1 %v2838_v23  ;;  %v7523_v16 = vld [vmem:[%s16280_s1 + $0x840] sm:$0xff]  ;;  %v7526_v22 = vld [vmem:[%s16280_s1 + $0xa18] sm:$0xff]  ;;  %v7527_v23 = vld [vmem:[%s16280_s1 + $0x830] sm:$0xff] }
 0x785   : > { %v2687_v61 = vpop.f32.mrf.mxu0  ;;  %2906 = vmatmul.mubr.f32.vlgmr.msra.gmra.mxu1 %v2836_v20  ;;  %v7525_v20 = vld [vmem:[%s16280_s1 + $0x838] sm:$0xff] }
 0x786   : > { %3099 = vmatpush1.msra.mxu1 %v11049_v57  ;;  %3132 = vmatprep.mubr.f32.mxu1 %v8955_v4 }
 0x787   : > { %v2689_v25 = vpop.f32.mrf.mxu0  ;;  %3139 = vmatprep.subr.mxu1 %v7473_v26  ;;  %v7531_v26 = vld [vmem:[%s16280_s1 + $0x820] sm:$0xff] }
 0x788   : > { %2756 = vmatprep.mubr.f32.mxu0 %v2689_v25  ;;  %v7530_v25 = vld [vmem:[%s16280_s1 + $0xa08] sm:$0xff] }
 0x789   : > { %2757 = vmatmul.mubr.f32.vlgmr.msra.gmra.mxu0 %v2687_v61  ;;  %7136 = vmatmul.mubr.msk.f32.vlgmr.msra.gmra.mxu1 %vm359_vm0, %v7135_v24  ;;  %v7528_v61 = vld [vmem:[%s16280_s1 + $0xa10] sm:$0xff]  ;;  %v7529_v24 = vld [vmem:[%s16280_s1 + $0x828] sm:$0xff] }
 0x78a   : > { %2950 = vmatpush1.msra.mxu0 %v11049_v57  ;;  %3140 = vmatpush1.msra.mxu1 %v7474_v27  ;;  %v7532_v27 = vld [vmem:[%s16280_s1 + $0xa00] sm:$0xff] }
 0x78b   : > { %3141 = vmatprep.subr.mxu1 %v7475_v29  ;;  %2983 = vmatprep.mubr.f32.mxu0 %v8955_v4  ;;  %v7534_v29 = vld [vmem:[%s16280_s1 + $0xbf8] sm:$0xff] }
 0x78c   : > { %3142 = vmatpush1.msra.mxu1 %v7476_v30  ;;  %2990 = vmatprep.subr.mxu0 %v7477_v31  ;;  %v7535_v30 = vld [vmem:[%s16280_s1 + $0x810] sm:$0xff] }
 0x78d   : > { %3143 = vmatprep.subr.mxu1 %v7478_v32  ;;  %7134 = vmatmul.mubr.msk.f32.vlgmr.msra.gmra.mxu0 %vm359_vm0, %v7133_v28  ;;  %v7533_v28 = vld [vmem:[%s16280_s1 + $0x818] sm:$0xff]  ;;  %v7536_v31 = vld [vmem:[%s16280_s1 + $0xbf0] sm:$0xff]  ;;  %v7537_v32 = vld [vmem:[%s16280_s1 + $0x808] sm:$0xff] }
 0x78e   : > { %2991 = vmatpush1.msra.mxu0 %v7479_v33  ;;  %3144 = vmatpush1.msra.mxu1 %v7480_v34  ;;  %v7538_v33 = vld [vmem:[%s16280_s1 + $0xbe8] sm:$0xff]  ;;  %v7539_v34 = vld [vmem:[%s16280_s1 + $0x800] sm:$0xff] }
 0x78f   : > { %2992 = vmatprep.subr.mxu0 %v7481_v36  ;;  %3145 = vmatprep.subr.mxu1 %v7482_v38  ;;  %v7540_v36 = vld [vmem:[%s16280_s1 + $0xbe0] sm:$0xff]  ;;  %v7541_v38 = vld [vmem:[%s16280_s1 + $0x9f8] sm:$0xff] }
 0x790   : > { %2993 = vmatpush1.msra.mxu0 %v7483_v39  ;;  %3146 = vmatpush1.msra.mxu1 %v7484_v40  ;;  %v7542_v39 = vld [vmem:[%s16280_s1 + $0xbd8] sm:$0xff]  ;;  %v7543_v40 = vld [vmem:[%s16280_s1 + $0x9f0] sm:$0xff] }
 0x791   : > { %2994 = vmatprep.subr.mxu0 %v7485_v41  ;;  %3147 = vmatprep.subr.mxu1 %v7486_v14  ;;  %v7544_v41 = vld [vmem:[%s16280_s1 + $0xbd0] sm:$0xff]  ;;  %v7545_v14 = vld [vmem:[%s16280_s1 + $0x9e8] sm:$0xff] }
 0x792   : > { %2995 = vmatpush1.msra.mxu0 %v7487_v13  ;;  %3148 = vmatpush1.msra.mxu1 %v7488_v1  ;;  %v7546_v13 = vld [vmem:[%s16280_s1 + $0xbc8] sm:$0xff]  ;;  %v7547_v1 = vld [vmem:[%s16280_s1 + $0x9e0] sm:$0xff] }
 0x793   : > { %2996 = vmatprep.subr.mxu0 %v7489_v42  ;;  %3149 = vmatprep.subr.mxu1 %v7490_v43  ;;  %v7548_v42 = vld [vmem:[%s16280_s1 + $0xbc0] sm:$0xff]  ;;  %v7549_v43 = vld [vmem:[%s16280_s1 + $0x9d8] sm:$0xff] }
 0x794   : > { %2997 = vmatpush1.msra.mxu0 %v7491_v21  ;;  %3150 = vmatpush1.msra.mxu1 %v7492_v44  ;;  %v7550_v21 = vld [vmem:[%s16280_s1 + $0xbb8] sm:$0xff]  ;;  %v7551_v44 = vld [vmem:[%s16280_s1 + $0x9d0] sm:$0xff] }
 0x795   : > { %2998 = vmatprep.subr.mxu0 %v7493_v45  ;;  %3151 = vmatprep.subr.mxu1 %v7494_v46  ;;  %v7552_v45 = vld [vmem:[%s16280_s1 + $0xbb0] sm:$0xff]  ;;  %v7553_v46 = vld [vmem:[%s16280_s1 + $0x9c8] sm:$0xff] }
 0x796   : > { %2999 = vmatpush1.msra.mxu0 %v7495_v47  ;;  %3152 = vmatpush1.msra.mxu1 %v7496_v48  ;;  %v7554_v47 = vld [vmem:[%s16280_s1 + $0xba8] sm:$0xff]  ;;  %v7555_v48 = vld [vmem:[%s16280_s1 + $0x9c0] sm:$0xff] }
 0x797   : > { %3000 = vmatprep.subr.mxu0 %v7497_v49  ;;  %3153 = vmatprep.subr.mxu1 %v7498_v50  ;;  %v7556_v49 = vld [vmem:[%s16280_s1 + $0xba0] sm:$0xff]  ;;  %v7557_v50 = vld [vmem:[%s16280_s1 + $0x9b8] sm:$0xff] }
 0x798   : > { %3001 = vmatpush1.msra.mxu0 %v7499_v51  ;;  %3154 = vmatpush1.msra.mxu1 %v7500_v52  ;;  %v7558_v51 = vld [vmem:[%s16280_s1 + $0xb98] sm:$0xff]  ;;  %v7559_v52 = vld [vmem:[%s16280_s1 + $0x9b0] sm:$0xff] }
 0x799   : > { %3002 = vmatprep.subr.mxu0 %v7501_v53  ;;  %3155 = vmatprep.subr.mxu1 %v7502_v54  ;;  %v7560_v53 = vld [vmem:[%s16280_s1 + $0xb90] sm:$0xff]  ;;  %v7561_v54 = vld [vmem:[%s16280_s1 + $0x9a8] sm:$0xff] }
 0x79a   : > { %3003 = vmatpush1.msra.mxu0 %v7503_v55  ;;  %3156 = vmatpush1.msra.mxu1 %v7504_v56  ;;  %v7562_v55 = vld [vmem:[%s16280_s1 + $0xb88] sm:$0xff]  ;;  %v7563_v56 = vld [vmem:[%s16280_s1 + $0x9a0] sm:$0xff] }
 0x79b   : > { %3004 = vmatprep.subr.mxu0 %v7505_v60  ;;  %3157 = vmatprep.subr.mxu1 %v7506_v19  ;;  %v7564_v60 = vld [vmem:[%s16280_s1 + $0xb80] sm:$0xff]  ;;  %v7565_v19 = vld [vmem:[%s16280_s1 + $0x998] sm:$0xff] }
 0x79c   : > { %3005 = vmatpush1.msra.mxu0 %v7507_v62  ;;  %3158 = vmatpush1.msra.mxu1 %v7508_v35  ;;  %v7566_v62 = vld [vmem:[%s16280_s1 + $0xb78] sm:$0xff]  ;;  %v7567_v35 = vld [vmem:[%s16280_s1 + $0x990] sm:$0xff] }
 0x79d   : > { %3006 = vmatprep.subr.mxu0 %v7509_v37  ;;  %3159 = vmatprep.subr.mxu1 %v7510_v63  ;;  %v7568_v37 = vld [vmem:[%s16280_s1 + $0xb70] sm:$0xff]  ;;  %v7569_v63 = vld [vmem:[%s16280_s1 + $0x988] sm:$0xff] }
 0x79e   : > { %3007 = vmatpush1.msra.mxu0 %v7511_v2  ;;  %3160 = vmatpush1.msra.mxu1 %v7512_v3  ;;  %v7570_v2 = vld [vmem:[%s16280_s1 + $0xb68] sm:$0xff]  ;;  %v7571_v3 = vld [vmem:[%s16280_s1 + $0x980] sm:$0xff] }
 0x79f   : > { %3008 = vmatprep.subr.mxu0 %v7513_v5  ;;  %3161 = vmatprep.subr.mxu1 %v7514_v6  ;;  %v7572_v5 = vld [vmem:[%s16280_s1 + $0xb60] sm:$0xff]  ;;  %v7573_v6 = vld [vmem:[%s16280_s1 + $0x978] sm:$0xff] }
 0x7a0   : > { %3009 = vmatpush1.msra.mxu0 %v7515_v7  ;;  %3162 = vmatpush1.msra.mxu1 %v7516_v8  ;;  %v7574_v7 = vld [vmem:[%s16280_s1 + $0xb58] sm:$0xff]  ;;  %v7575_v8 = vld [vmem:[%s16280_s1 + $0x970] sm:$0xff] }
 0x7a1   : > { %3010 = vmatprep.subr.mxu0 %v7517_v17  ;;  %3163 = vmatprep.subr.mxu1 %v7518_v9  ;;  %v7576_v17 = vld [vmem:[%s16280_s1 + $0xb50] sm:$0xff]  ;;  %v7577_v9 = vld [vmem:[%s16280_s1 + $0x968] sm:$0xff] }
 0x7a2   : > { %3011 = vmatpush1.msra.mxu0 %v7519_v10  ;;  %3164 = vmatpush1.msra.mxu1 %v7520_v11  ;;  %v7578_v10 = vld [vmem:[%s16280_s1 + $0xb48] sm:$0xff]  ;;  %v7579_v11 = vld [vmem:[%s16280_s1 + $0x960] sm:$0xff] }
 0x7a3   : > { %3012 = vmatprep.subr.mxu0 %v7521_v12  ;;  %3165 = vmatprep.subr.mxu1 %v7522_v15  ;;  %v7580_v12 = vld [vmem:[%s16280_s1 + $0xb40] sm:$0xff]  ;;  %v7581_v15 = vld [vmem:[%s16280_s1 + $0x958] sm:$0xff] }
 0x7a4   : > { %3013 = vmatpush1.msra.mxu0 %v7523_v16  ;;  %3166 = vmatpush1.msra.mxu1 %v7524_v18  ;;  %v7582_v16 = vld [vmem:[%s16280_s1 + $0xb38] sm:$0xff]  ;;  %v7583_v18 = vld [vmem:[%s16280_s1 + $0x950] sm:$0xff] }
 0x7a5   : > { %3014 = vmatprep.subr.mxu0 %v7525_v20  ;;  %3167 = vmatprep.subr.mxu1 %v7526_v22  ;;  %v7584_v20 = vld [vmem:[%s16280_s1 + $0xb30] sm:$0xff]  ;;  %v7585_v22 = vld [vmem:[%s16280_s1 + $0x948] sm:$0xff] }
 0x7a6   : > { %3015 = vmatpush1.msra.mxu0 %v7527_v23  ;;  %3168 = vmatpush1.msra.mxu1 %v7528_v61  ;;  %v7586_v23 = vld [vmem:[%s16280_s1 + $0xb28] sm:$0xff]  ;;  %v7587_v61 = vld [vmem:[%s16280_s1 + $0x940] sm:$0xff] }
 0x7a7   : > { %3016 = vmatprep.subr.mxu0 %v7529_v24  ;;  %3169 = vmatprep.subr.mxu1 %v7530_v25  ;;  %v7588_v24 = vld [vmem:[%s16280_s1 + $0xb20] sm:$0xff]  ;;  %v7589_v25 = vld [vmem:[%s16280_s1 + $0x938] sm:$0xff] }
 0x7a8   : > { %3017 = vmatpush1.msra.mxu0 %v7531_v26  ;;  %3170 = vmatpush1.msra.mxu1 %v7532_v27  ;;  %v7590_v26 = vld [vmem:[%s16280_s1 + $0xb18] sm:$0xff]  ;;  %v7591_v27 = vld [vmem:[%s16280_s1 + $0x930] sm:$0xff] }
 0x7a9   : > { %3018 = vmatprep.subr.mxu0 %v7533_v28  ;;  %3171 = vmatprep.subr.mxu1 %v7534_v29  ;;  %v7592_v28 = vld [vmem:[%s16280_s1 + $0xb10] sm:$0xff]  ;;  %v7593_v29 = vld [vmem:[%s16280_s1 + $0x928] sm:$0xff] }
 0x7aa   : > { %3019 = vmatpush1.msra.mxu0 %v7535_v30  ;;  %3172 = vmatpush2.msra.mxu1 %v7536_v31  ;;  %v7594_v30 = vld [vmem:[%s16280_s1 + $0xb08] sm:$0xff]  ;;  %v7595_v31 = vld [vmem:[%s16280_s1 + $0x920] sm:$0xff] }
 0x7ab   : > { %3020 = vmatprep.subr.mxu0 %v7537_v32  ;;  %3173 = vmatprep.subr.mxu1 %v7538_v33  ;;  %v7596_v32 = vld [vmem:[%s16280_s1 + $0xb00] sm:$0xff]  ;;  %v7597_v33 = vld [vmem:[%s16280_s1 + $0x918] sm:$0xff] }
 0x7ac   : > { %3021 = vmatpush1.msra.mxu0 %v7539_v34  ;;  %3174 = vmatpush2.msra.mxu1 %v7540_v36  ;;  %v7598_v34 = vld [vmem:[%s16280_s1 + $0x910] sm:$0xff]  ;;  %v7599_v36 = vld [vmem:[%s16280_s1 + $0x908] sm:$0xff] }
 0x7ad   : > { %3022 = vmatprep.subr.mxu0 %v7541_v38  ;;  %3175 = vmatprep.subr.mxu1 %v7542_v39  ;;  %v7600_v38 = vld [vmem:[%s16280_s1 + $0x900] sm:$0xff] }
 0x7ae   : > { %3023 = vmatpush2.msra.mxu0 %v7543_v40  ;;  %3176 = vmatpush2.msra.mxu1 %v7544_v41 }
 0x7af   : > { %3024 = vmatprep.subr.mxu0 %v7545_v14  ;;  %3177 = vmatprep.subr.mxu1 %v7546_v13 }
 0x7b0   : > { %3025 = vmatpush2.msra.mxu0 %v7547_v1  ;;  %3178 = vmatpush2.msra.mxu1 %v7548_v42 }
 0x7b1   : > { %3026 = vmatprep.subr.mxu0 %v7549_v43  ;;  %3179 = vmatprep.subr.mxu1 %v7550_v21 }
 0x7b2   : > { %3027 = vmatpush2.msra.mxu0 %v7551_v44  ;;  %3180 = vmatpush2.msra.mxu1 %v7552_v45  ;;  %v7139_v45 = vld [vmem:[%s9033_s14 + $0x80] sm:$0xff] }
 0x7b3   : > { %3028 = vmatprep.subr.mxu0 %v7553_v46  ;;  %3181 = vmatprep.subr.mxu1 %v7554_v47 }
 0x7b4   : > { %3029 = vmatpush2.msra.mxu0 %v7555_v48  ;;  %3182 = vmatpush2.msra.mxu1 %v7556_v49  ;;  %v7602_v48 = vld [vmem:[%s16280_s1 + $0xcf8] sm:$0xff]  ;;  %v7603_v49 = vld [vmem:[%s16280_s1 + $0xef0] sm:$0xff] }
 0x7b5   : > { %3030 = vmatprep.subr.mxu0 %v7557_v50  ;;  %3183 = vmatprep.subr.mxu1 %v7558_v51  ;;  %v7604_v50 = vld [vmem:[%s16280_s1 + $0xee8] sm:$0xff]  ;;  %v7605_v51 = vld [vmem:[%s16280_s1 + $0xee0] sm:$0xff] }
 0x7b6   : > { %3031 = vmatpush2.msra.mxu0 %v7559_v52  ;;  %3184 = vmatpush2.msra.mxu1 %v7560_v53  ;;  %v7606_v52 = vld [vmem:[%s16280_s1 + $0xcf0] sm:$0xff]  ;;  %v7607_v53 = vld [vmem:[%s16280_s1 + $0xed8] sm:$0xff] }
 0x7b7   : > { %3032 = vmatprep.subr.mxu0 %v7561_v54  ;;  %3185 = vmatprep.subr.mxu1 %v7562_v55  ;;  %v7608_v54 = vld [vmem:[%s16280_s1 + $0xce8] sm:$0xff]  ;;  %v7609_v55 = vld [vmem:[%s16280_s1 + $0xed0] sm:$0xff] }
 0x7b8   : > { %3033 = vmatpush2.msra.mxu0 %v7563_v56  ;;  %3186 = vmatpush2.msra.mxu1 %v7564_v60  ;;  %v7610_v56 = vld [vmem:[%s16280_s1 + $0xce0] sm:$0xff]  ;;  %v7611_v60 = vld [vmem:[%s16280_s1 + $0xec8] sm:$0xff] }
 0x7b9   : > { %3034 = vmatprep.subr.mxu0 %v7565_v19  ;;  %3187 = vmatprep.subr.mxu1 %v7566_v62  ;;  %v7612_v19 = vld [vmem:[%s16280_s1 + $0xcd8] sm:$0xff]  ;;  %v7613_v62 = vld [vmem:[%s16280_s1 + $0xec0] sm:$0xff] }
 0x7ba   : > { %3035 = vmatpush2.msra.mxu0 %v7567_v35  ;;  %3188 = vmatpush2.msra.mxu1 %v7568_v37  ;;  %v7614_v35 = vld [vmem:[%s16280_s1 + $0xcd0] sm:$0xff]  ;;  %v7615_v37 = vld [vmem:[%s16280_s1 + $0xeb8] sm:$0xff] }
 0x7bb   : > { %3036 = vmatprep.subr.mxu0 %v7569_v63  ;;  %3189 = vmatprep.subr.mxu1 %v7570_v2  ;;  %v7616_v63 = vld [vmem:[%s16280_s1 + $0xcc8] sm:$0xff]  ;;  %v7617_v2 = vld [vmem:[%s16280_s1 + $0xeb0] sm:$0xff] }
 0x7bc   : > { %3037 = vmatpush2.msra.mxu0 %v7571_v3  ;;  %3190 = vmatpush2.msra.mxu1 %v7572_v5  ;;  %v7618_v3 = vld [vmem:[%s16280_s1 + $0xcc0] sm:$0xff]  ;;  %v7619_v5 = vld [vmem:[%s16280_s1 + $0xea8] sm:$0xff] }
 0x7bd   : > { %3038 = vmatprep.subr.mxu0 %v7573_v6  ;;  %3191 = vmatprep.subr.mxu1 %v7574_v7  ;;  %v7620_v6 = vld [vmem:[%s16280_s1 + $0xcb8] sm:$0xff]  ;;  %v7621_v7 = vld [vmem:[%s16280_s1 + $0xea0] sm:$0xff] }
 0x7be   : > { %3039 = vmatpush2.msra.mxu0 %v7575_v8  ;;  %3192 = vmatpush2.msra.mxu1 %v7576_v17  ;;  %v7622_v8 = vld [vmem:[%s16280_s1 + $0xcb0] sm:$0xff]  ;;  %v7623_v17 = vld [vmem:[%s16280_s1 + $0xe98] sm:$0xff] }
 0x7bf   : > { %3040 = vmatprep.subr.mxu0 %v7577_v9  ;;  %3193 = vmatprep.subr.mxu1 %v7578_v10  ;;  %v7624_v9 = vld [vmem:[%s16280_s1 + $0xca8] sm:$0xff]  ;;  %v7625_v10 = vld [vmem:[%s16280_s1 + $0xe90] sm:$0xff] }
 0x7c0   : > { %3041 = vmatpush2.msra.mxu0 %v7579_v11  ;;  %3194 = vmatpush2.msra.mxu1 %v7580_v12  ;;  %v7626_v11 = vld [vmem:[%s16280_s1 + $0xca0] sm:$0xff]  ;;  %v7627_v12 = vld [vmem:[%s16280_s1 + $0xe88] sm:$0xff] }
 0x7c1   : > { %3042 = vmatprep.subr.mxu0 %v7581_v15  ;;  %3195 = vmatprep.subr.mxu1 %v7582_v16  ;;  %v7628_v15 = vld [vmem:[%s16280_s1 + $0xc98] sm:$0xff]  ;;  %v7629_v16 = vld [vmem:[%s16280_s1 + $0xe80] sm:$0xff] }
 0x7c2   : > { %3043 = vmatpush2.msra.mxu0 %v7583_v18  ;;  %3196 = vmatpush2.msra.mxu1 %v7584_v20  ;;  %v7630_v18 = vld [vmem:[%s16280_s1 + $0xc90] sm:$0xff]  ;;  %v7631_v20 = vld [vmem:[%s16280_s1 + $0xe78] sm:$0xff] }
 0x7c3   : > { %3044 = vmatprep.subr.mxu0 %v7585_v22  ;;  %3197 = vmatprep.subr.mxu1 %v7586_v23  ;;  %v7632_v22 = vld [vmem:[%s16280_s1 + $0xc88] sm:$0xff]  ;;  %v7633_v23 = vld [vmem:[%s16280_s1 + $0xe70] sm:$0xff] }
 0x7c4   : > { %3045 = vmatpush2.msra.mxu0 %v7587_v61  ;;  %3198 = vmatpush2.msra.mxu1 %v7588_v24  ;;  %v7634_v61 = vld [vmem:[%s16280_s1 + $0xc80] sm:$0xff]  ;;  %v7635_v24 = vld [vmem:[%s16280_s1 + $0xe68] sm:$0xff] }
 0x7c5   : > { %3046 = vmatprep.subr.mxu0 %v7589_v25  ;;  %3199 = vmatprep.subr.mxu1 %v7590_v26  ;;  %v7636_v25 = vld [vmem:[%s16280_s1 + $0xc78] sm:$0xff]  ;;  %v7637_v26 = vld [vmem:[%s16280_s1 + $0xe60] sm:$0xff] }
 0x7c6   : > { %3047 = vmatpush2.msra.mxu0 %v7591_v27  ;;  %3200 = vmatpush2.msra.mxu1 %v7592_v28  ;;  %v7638_v27 = vld [vmem:[%s16280_s1 + $0xc70] sm:$0xff]  ;;  %v7639_v28 = vld [vmem:[%s16280_s1 + $0xe58] sm:$0xff] }
 0x7c7   : > { %3048 = vmatprep.subr.mxu0 %v7593_v29  ;;  %3201 = vmatprep.subr.mxu1 %v7594_v30  ;;  %v7640_v29 = vld [vmem:[%s16280_s1 + $0xc68] sm:$0xff]  ;;  %v7641_v30 = vld [vmem:[%s16280_s1 + $0xe50] sm:$0xff] }
 0x7c8   : > { %3049 = vmatpush2.msra.mxu0 %v7595_v31  ;;  %3202 = vmatpush2.msra.mxu1 %v7596_v32  ;;  %v7642_v31 = vld [vmem:[%s16280_s1 + $0xc60] sm:$0xff]  ;;  %v7643_v32 = vld [vmem:[%s16280_s1 + $0xe48] sm:$0xff] }
 0x7c9   : > { %3050 = vmatprep.subr.mxu0 %v7597_v33  ;;  %3396 = vmatprep.subr.mxu1 %v11051_v59  ;;  %v7644_v33 = vld [vmem:[%s16280_s1 + $0xc58] sm:$0xff] }
 0x7ca   : > { %3051 = vmatpush2.msra.mxu0 %v7598_v34  ;;  %v7645_v34 = vld [vmem:[%s16280_s1 + $0xe40] sm:$0xff] }
 0x7cb   : > { %3052 = vmatprep.subr.mxu0 %v7599_v36  ;;  %v7646_v36 = vld [vmem:[%s16280_s1 + $0xc50] sm:$0xff] }
 0x7cc   : > { %3053 = vmatpush2.msra.mxu0 %v7600_v38  ;;  %v7647_v38 = vld [vmem:[%s16280_s1 + $0xe38] sm:$0xff] }
 0x7cd   : > { %3247 = vmatprep.subr.mxu0 %v11051_v59 }
 0x845   : > { %v2907_v39 = vpop.f32.mrf.mxu1 }
 0x847   : > { %v2909_v40 = vpop.f32.mrf.mxu1 }
 0x849   : > { %v2758_v41 = vpop.f32.mrf.mxu0  ;;  %v3134_v14 = vpop.f32.mrf.mxu1 }
 0x84a   : > { %v2763_v13 = vadd.f32 %v2758_v41, %v11650_v0  ;;  %v7601_v0 = vld [vmem:[%s16280_s1 + $0xef8] sm:$0xff]  ;;  %v7650_v41 = vld [vmem:[%s16280_s1 + $0xc40] sm:$0xff] }
 0x84b   : > { %v2760_v1 = vpop.f32.mrf.mxu0  ;;  %v3136_v42 = vpop.f32.mrf.mxu1 }
 0x84c   : > { %v2764_v43 = vadd.f32 %v2760_v1, %v11652_v58  ;;  %3203 = vmatprep.mubr.f32.mxu1 %v3136_v42  ;;  %v12050_v21 = vadd.f32 %v2907_v39, %v2763_v13  ;;  %v7137_v58 = vld [vmem:[%s9033_s14 + $0x78] sm:$0xff]  ;;  %v7648_v39 = vld [vmem:[%s16280_s1 + $0xc48] sm:$0xff]  ;;  %v7653_v1 = vld [vmem:[%s16280_s1 + $0xe20] sm:$0xff] }
 0x84d   : > { %v2985_v44 = vpop.f32.mrf.mxu0  ;;  %3204 = vmatmul.mubr.f32.vlgmr.msra.gmra.mxu1 %v3134_v14  ;;  %v7651_v14 = vld [vmem:[%s16280_s1 + $0xe28] sm:$0xff]  ;;  %v7652_v13 = vld [vmem:[%s16280_s1 + $0xc38] sm:$0xff]  ;;  %v7654_v42 = vld [vmem:[%s16280_s1 + $0xc30] sm:$0xff] }
 0x84e   : > { %3397 = vmatpush1.msra.mxu1 %v11049_v57  ;;  %3430 = vmatprep.mubr.f32.mxu1 %v8955_v4  ;;  %v12055_v46 = vadd.f32 %v2909_v40, %v2764_v43  ;;  %v7649_v40 = vld [vmem:[%s16280_s1 + $0xe30] sm:$0xff]  ;;  %v7655_v43 = vld [vmem:[%s16280_s1 + $0xe18] sm:$0xff] }
 0x84f   : > { %v2987_v47 = vpop.f32.mrf.mxu0  ;;  %3437 = vmatprep.subr.mxu1 %v7601_v0  ;;  %v7659_v0 = vld [vmem:[%s16280_s1 + $0xe08] sm:$0xff] }
 0x850   : > { %3054 = vmatprep.mubr.f32.mxu0 %v2987_v47  ;;  %v7658_v47 = vld [vmem:[%s16280_s1 + $0xc20] sm:$0xff] }
 0x851   : > { %3055 = vmatmul.mubr.f32.vlgmr.msra.gmra.mxu0 %v2985_v44  ;;  %7140 = vmatmul.mubr.msk.f32.vlgmr.msra.gmra.mxu1 %vm359_vm0, %v7139_v45  ;;  %v7656_v44 = vld [vmem:[%s16280_s1 + $0xc28] sm:$0xff]  ;;  %v7657_v45 = vld [vmem:[%s16280_s1 + $0xe10] sm:$0xff] }
 0x852   : > { %3248 = vmatpush1.msra.mxu0 %v11049_v57  ;;  %3281 = vmatprep.mubr.f32.mxu0 %v8955_v4 }
 0x853   : > { %3288 = vmatprep.subr.mxu0 %v7602_v48  ;;  %3438 = vmatpush1.msra.mxu1 %v7603_v49  ;;  %v7661_v48 = vld [vmem:[%s16280_s1 + $0xe00] sm:$0xff]  ;;  %v7662_v49 = vld [vmem:[%s16280_s1 + $0xc10] sm:$0xff] }
 0x854   : > { %3439 = vmatprep.subr.mxu1 %v7604_v50  ;;  %v7663_v50 = vld [vmem:[%s16280_s1 + $0xff8] sm:$0xff] }
 0x855   : > { %7138 = vmatmul.mubr.msk.f32.vlgmr.msra.gmra.mxu0 %vm359_vm0, %v7137_v58  ;;  %3440 = vmatpush1.msra.mxu1 %v7605_v51  ;;  %v7660_v58 = vld [vmem:[%s16280_s1 + $0xc18] sm:$0xff]  ;;  %v7664_v51 = vld [vmem:[%s16280_s1 + $0xc08] sm:$0xff] }
 0x856   : > { %3289 = vmatpush1.msra.mxu0 %v7606_v52  ;;  %3441 = vmatprep.subr.mxu1 %v7607_v53  ;;  %v7665_v52 = vld [vmem:[%s16280_s1 + $0xff0] sm:$0xff]  ;;  %v7666_v53 = vld [vmem:[%s16280_s1 + $0xc00] sm:$0xff] }
 0x857   : > { %3290 = vmatprep.subr.mxu0 %v7608_v54  ;;  %3442 = vmatpush1.msra.mxu1 %v7609_v55  ;;  %v7667_v54 = vld [vmem:[%s16280_s1 + $0xfe8] sm:$0xff]  ;;  %v7668_v55 = vld [vmem:[%s16280_s1 + $0xdf8] sm:$0xff] }
 0x858   : > { %3291 = vmatpush1.msra.mxu0 %v7610_v56  ;;  %3443 = vmatprep.subr.mxu1 %v7611_v60  ;;  %v7669_v56 = vld [vmem:[%s16280_s1 + $0xfe0] sm:$0xff]  ;;  %v7670_v60 = vld [vmem:[%s16280_s1 + $0xdf0] sm:$0xff] }
 0x859   : > { %3292 = vmatprep.subr.mxu0 %v7612_v19  ;;  %3444 = vmatpush1.msra.mxu1 %v7613_v62  ;;  %v7671_v19 = vld [vmem:[%s16280_s1 + $0xfd8] sm:$0xff]  ;;  %v7672_v62 = vld [vmem:[%s16280_s1 + $0xde8] sm:$0xff] }
 0x85a   : > { %3293 = vmatpush1.msra.mxu0 %v7614_v35  ;;  %3445 = vmatprep.subr.mxu1 %v7615_v37  ;;  %v7673_v35 = vld [vmem:[%s16280_s1 + $0xfd0] sm:$0xff]  ;;  %v7674_v37 = vld [vmem:[%s16280_s1 + $0xde0] sm:$0xff] }
 0x85b   : > { %3294 = vmatprep.subr.mxu0 %v7616_v63  ;;  %3446 = vmatpush1.msra.mxu1 %v7617_v2  ;;  %v7675_v63 = vld [vmem:[%s16280_s1 + $0xfc8] sm:$0xff]  ;;  %v7676_v2 = vld [vmem:[%s16280_s1 + $0xdd8] sm:$0xff] }
 0x85c   : > { %3295 = vmatpush1.msra.mxu0 %v7618_v3  ;;  %3447 = vmatprep.subr.mxu1 %v7619_v5  ;;  %v7677_v3 = vld [vmem:[%s16280_s1 + $0xfc0] sm:$0xff]  ;;  %v7678_v5 = vld [vmem:[%s16280_s1 + $0xdd0] sm:$0xff] }
 0x85d   : > { %3296 = vmatprep.subr.mxu0 %v7620_v6  ;;  %3448 = vmatpush1.msra.mxu1 %v7621_v7  ;;  %v7679_v6 = vld [vmem:[%s16280_s1 + $0xfb8] sm:$0xff]  ;;  %v7680_v7 = vld [vmem:[%s16280_s1 + $0xdc8] sm:$0xff] }
 0x85e   : > { %3297 = vmatpush1.msra.mxu0 %v7622_v8  ;;  %3449 = vmatprep.subr.mxu1 %v7623_v17  ;;  %v7681_v8 = vld [vmem:[%s16280_s1 + $0xfb0] sm:$0xff]  ;;  %v7682_v17 = vld [vmem:[%s16280_s1 + $0xdc0] sm:$0xff] }
 0x85f   : > { %3298 = vmatprep.subr.mxu0 %v7624_v9  ;;  %3450 = vmatpush1.msra.mxu1 %v7625_v10  ;;  %v7683_v9 = vld [vmem:[%s16280_s1 + $0xfa8] sm:$0xff]  ;;  %v7684_v10 = vld [vmem:[%s16280_s1 + $0xdb8] sm:$0xff] }
 0x860   : > { %3299 = vmatpush1.msra.mxu0 %v7626_v11  ;;  %3451 = vmatprep.subr.mxu1 %v7627_v12  ;;  %v7685_v11 = vld [vmem:[%s16280_s1 + $0xfa0] sm:$0xff]  ;;  %v7686_v12 = vld [vmem:[%s16280_s1 + $0xdb0] sm:$0xff] }
 0x861   : > { %3300 = vmatprep.subr.mxu0 %v7628_v15  ;;  %3452 = vmatpush1.msra.mxu1 %v7629_v16  ;;  %v7687_v15 = vld [vmem:[%s16280_s1 + $0xf98] sm:$0xff]  ;;  %v7688_v16 = vld [vmem:[%s16280_s1 + $0xda8] sm:$0xff] }
 0x862   : > { %3301 = vmatpush1.msra.mxu0 %v7630_v18  ;;  %3453 = vmatprep.subr.mxu1 %v7631_v20  ;;  %v7689_v18 = vld [vmem:[%s16280_s1 + $0xf90] sm:$0xff]  ;;  %v7690_v20 = vld [vmem:[%s16280_s1 + $0xda0] sm:$0xff] }
 0x863   : > { %3302 = vmatprep.subr.mxu0 %v7632_v22  ;;  %3454 = vmatpush1.msra.mxu1 %v7633_v23  ;;  %v7691_v22 = vld [vmem:[%s16280_s1 + $0xf88] sm:$0xff]  ;;  %v7692_v23 = vld [vmem:[%s16280_s1 + $0xd98] sm:$0xff] }
 0x864   : > { %3303 = vmatpush1.msra.mxu0 %v7634_v61  ;;  %3455 = vmatprep.subr.mxu1 %v7635_v24  ;;  %v7693_v61 = vld [vmem:[%s16280_s1 + $0xf80] sm:$0xff]  ;;  %v7694_v24 = vld [vmem:[%s16280_s1 + $0xd90] sm:$0xff] }
 0x865   : > { %3304 = vmatprep.subr.mxu0 %v7636_v25  ;;  %3456 = vmatpush1.msra.mxu1 %v7637_v26  ;;  %v7695_v25 = vld [vmem:[%s16280_s1 + $0xf78] sm:$0xff]  ;;  %v7696_v26 = vld [vmem:[%s16280_s1 + $0xd88] sm:$0xff] }
 0x866   : > { %3305 = vmatpush1.msra.mxu0 %v7638_v27  ;;  %3457 = vmatprep.subr.mxu1 %v7639_v28  ;;  %v7697_v27 = vld [vmem:[%s16280_s1 + $0xf70] sm:$0xff]  ;;  %v7698_v28 = vld [vmem:[%s16280_s1 + $0xd80] sm:$0xff] }
 0x867   : > { %3306 = vmatprep.subr.mxu0 %v7640_v29  ;;  %3458 = vmatpush1.msra.mxu1 %v7641_v30  ;;  %v7699_v29 = vld [vmem:[%s16280_s1 + $0xf68] sm:$0xff]  ;;  %v7700_v30 = vld [vmem:[%s16280_s1 + $0xd78] sm:$0xff] }
 0x868   : > { %3307 = vmatpush1.msra.mxu0 %v7642_v31  ;;  %3459 = vmatprep.subr.mxu1 %v7643_v32  ;;  %v7701_v31 = vld [vmem:[%s16280_s1 + $0xf60] sm:$0xff]  ;;  %v7702_v32 = vld [vmem:[%s16280_s1 + $0xd70] sm:$0xff] }
 0x869   : > { %3308 = vmatprep.subr.mxu0 %v7644_v33  ;;  %3460 = vmatpush1.msra.mxu1 %v7645_v34  ;;  %v7703_v33 = vld [vmem:[%s16280_s1 + $0xf58] sm:$0xff]  ;;  %v7704_v34 = vld [vmem:[%s16280_s1 + $0xd68] sm:$0xff] }
 0x86a   : > { %3309 = vmatpush1.msra.mxu0 %v7646_v36  ;;  %3461 = vmatprep.subr.mxu1 %v7647_v38  ;;  %v7705_v36 = vld [vmem:[%s16280_s1 + $0xf50] sm:$0xff]  ;;  %v7706_v38 = vld [vmem:[%s16280_s1 + $0xd60] sm:$0xff] }
 0x86b   : > { %3310 = vmatprep.subr.mxu0 %v7648_v39  ;;  %3462 = vmatpush1.msra.mxu1 %v7649_v40  ;;  %v7707_v39 = vld [vmem:[%s16280_s1 + $0xf48] sm:$0xff]  ;;  %v7708_v40 = vld [vmem:[%s16280_s1 + $0xd58] sm:$0xff] }
 0x86c   : > { %3311 = vmatpush1.msra.mxu0 %v7650_v41  ;;  %3463 = vmatprep.subr.mxu1 %v7651_v14  ;;  %v7709_v41 = vld [vmem:[%s16280_s1 + $0xf40] sm:$0xff]  ;;  %v7710_v14 = vld [vmem:[%s16280_s1 + $0xd50] sm:$0xff] }
 0x86d   : > { %3312 = vmatprep.subr.mxu0 %v7652_v13  ;;  %3464 = vmatpush1.msra.mxu1 %v7653_v1  ;;  %v7711_v13 = vld [vmem:[%s16280_s1 + $0xf38] sm:$0xff]  ;;  %v7712_v1 = vld [vmem:[%s16280_s1 + $0xd48] sm:$0xff] }
 0x86e   : > { %3313 = vmatpush1.msra.mxu0 %v7654_v42  ;;  %3465 = vmatprep.subr.mxu1 %v7655_v43  ;;  %v7713_v42 = vld [vmem:[%s16280_s1 + $0xf30] sm:$0xff]  ;;  %v7714_v43 = vld [vmem:[%s16280_s1 + $0xd40] sm:$0xff] }
 0x86f   : > { %3314 = vmatprep.subr.mxu0 %v7656_v44  ;;  %3466 = vmatpush1.msra.mxu1 %v7657_v45  ;;  %v7715_v44 = vld [vmem:[%s16280_s1 + $0xf28] sm:$0xff]  ;;  %v7716_v45 = vld [vmem:[%s16280_s1 + $0xd38] sm:$0xff] }
 0x870   : > { %3315 = vmatpush1.msra.mxu0 %v7658_v47  ;;  %3467 = vmatprep.subr.mxu1 %v7659_v0  ;;  %v7717_v47 = vld [vmem:[%s16280_s1 + $0xf20] sm:$0xff]  ;;  %v7718_v0 = vld [vmem:[%s16280_s1 + $0xd30] sm:$0xff] }
 0x871   : > { %3316 = vmatprep.subr.mxu0 %v7660_v58  ;;  %3468 = vmatpush1.msra.mxu1 %v7661_v48  ;;  %v7719_v58 = vld [vmem:[%s16280_s1 + $0xf18] sm:$0xff]  ;;  %v7720_v48 = vld [vmem:[%s16280_s1 + $0xd28] sm:$0xff] }
 0x872   : > { %3317 = vmatpush1.msra.mxu0 %v7662_v49  ;;  %3469 = vmatprep.subr.mxu1 %v7663_v50  ;;  %v7721_v49 = vld [vmem:[%s16280_s1 + $0xf10] sm:$0xff]  ;;  %v7722_v50 = vld [vmem:[%s16280_s1 + $0xd20] sm:$0xff] }
 0x873   : > { %3318 = vmatprep.subr.mxu0 %v7664_v51  ;;  %3470 = vmatpush2.msra.mxu1 %v7665_v52  ;;  %v7723_v51 = vld [vmem:[%s16280_s1 + $0xf08] sm:$0xff]  ;;  %v7724_v52 = vld [vmem:[%s16280_s1 + $0xd18] sm:$0xff] }
 0x874   : > { %3319 = vmatpush1.msra.mxu0 %v7666_v53  ;;  %3471 = vmatprep.subr.mxu1 %v7667_v54  ;;  %v7725_v53 = vld [vmem:[%s16280_s1 + $0xf00] sm:$0xff]  ;;  %v7726_v54 = vld [vmem:[%s16280_s1 + $0xd10] sm:$0xff] }
 0x875   : > { %3320 = vmatprep.subr.mxu0 %v7668_v55  ;;  %3472 = vmatpush2.msra.mxu1 %v7669_v56  ;;  %v7727_v55 = vld [vmem:[%s16280_s1 + $0xd08] sm:$0xff]  ;;  %v7728_v56 = vld [vmem:[%s16280_s1 + $0xd00] sm:$0xff] }
 0x876   : > { %3321 = vmatpush2.msra.mxu0 %v7670_v60  ;;  %3473 = vmatprep.subr.mxu1 %v7671_v19 }
 0x877   : > { %3322 = vmatprep.subr.mxu0 %v7672_v62  ;;  %3474 = vmatpush2.msra.mxu1 %v7673_v35 }
 0x878   : > { %3323 = vmatpush2.msra.mxu0 %v7674_v37  ;;  %3475 = vmatprep.subr.mxu1 %v7675_v63 }
 0x879   : > { %3324 = vmatprep.subr.mxu0 %v7676_v2  ;;  %3476 = vmatpush2.msra.mxu1 %v7677_v3 }
 0x87a   : > { %3325 = vmatpush2.msra.mxu0 %v7678_v5  ;;  %3477 = vmatprep.subr.mxu1 %v7679_v6 }
 0x87b   : > { %3326 = vmatprep.subr.mxu0 %v7680_v7  ;;  %3478 = vmatpush2.msra.mxu1 %v7681_v8  ;;  %v7730_v8 = vld [vmem:[%s16280_s1 + $0x10f0] sm:$0xff] }
 0x87c   : > { %3327 = vmatpush2.msra.mxu0 %v7682_v17  ;;  %3479 = vmatprep.subr.mxu1 %v7683_v9  ;;  %v7731_v17 = vld [vmem:[%s16280_s1 + $0x10e8] sm:$0xff]  ;;  %v7733_v9 = vld [vmem:[%s16280_s1 + $0x10d8] sm:$0xff] }
 0x87d   : > { %3328 = vmatprep.subr.mxu0 %v7684_v10  ;;  %3480 = vmatpush2.msra.mxu1 %v7685_v11  ;;  %v7734_v10 = vld [vmem:[%s16280_s1 + $0x10d0] sm:$0xff]  ;;  %v7735_v11 = vld [vmem:[%s16280_s1 + $0x10c8] sm:$0xff] }
 0x87e   : > { %3329 = vmatpush2.msra.mxu0 %v7686_v12  ;;  %3481 = vmatprep.subr.mxu1 %v7687_v15  ;;  %v7736_v12 = vld [vmem:[%s16280_s1 + $0x10c0] sm:$0xff]  ;;  %v7737_v15 = vld [vmem:[%s16280_s1 + $0x10b8] sm:$0xff] }
 0x87f   : > { %3330 = vmatprep.subr.mxu0 %v7688_v16  ;;  %3482 = vmatpush2.msra.mxu1 %v7689_v18  ;;  %v7738_v16 = vld [vmem:[%s16280_s1 + $0x10b0] sm:$0xff]  ;;  %v7739_v18 = vld [vmem:[%s16280_s1 + $0x10a8] sm:$0xff] }
 0x880   : > { %3331 = vmatpush2.msra.mxu0 %v7690_v20  ;;  %3483 = vmatprep.subr.mxu1 %v7691_v22  ;;  %v7740_v20 = vld [vmem:[%s16280_s1 + $0x10a0] sm:$0xff]  ;;  %v7741_v22 = vld [vmem:[%s16280_s1 + $0x1098] sm:$0xff] }
 0x881   : > { %3332 = vmatprep.subr.mxu0 %v7692_v23  ;;  %3484 = vmatpush2.msra.mxu1 %v7693_v61  ;;  %v7742_v23 = vld [vmem:[%s16280_s1 + $0x1090] sm:$0xff]  ;;  %v7743_v61 = vld [vmem:[%s16280_s1 + $0x1088] sm:$0xff] }
 0x882   : > { %3333 = vmatpush2.msra.mxu0 %v7694_v24  ;;  %3485 = vmatprep.subr.mxu1 %v7695_v25  ;;  %v7744_v24 = vld [vmem:[%s16280_s1 + $0x1080] sm:$0xff]  ;;  %v7745_v25 = vld [vmem:[%s16280_s1 + $0x1078] sm:$0xff] }
 0x883   : > { %3334 = vmatprep.subr.mxu0 %v7696_v26  ;;  %3486 = vmatpush2.msra.mxu1 %v7697_v27  ;;  %v7746_v26 = vld [vmem:[%s16280_s1 + $0x1070] sm:$0xff]  ;;  %v7747_v27 = vld [vmem:[%s16280_s1 + $0x1068] sm:$0xff] }
 0x884   : > { %3335 = vmatpush2.msra.mxu0 %v7698_v28  ;;  %3487 = vmatprep.subr.mxu1 %v7699_v29  ;;  %v7748_v28 = vld [vmem:[%s16280_s1 + $0x1060] sm:$0xff]  ;;  %v7749_v29 = vld [vmem:[%s16280_s1 + $0x1058] sm:$0xff] }
 0x885   : > { %3336 = vmatprep.subr.mxu0 %v7700_v30  ;;  %3488 = vmatpush2.msra.mxu1 %v7701_v31  ;;  %v7750_v30 = vld [vmem:[%s16280_s1 + $0x1050] sm:$0xff]  ;;  %v7751_v31 = vld [vmem:[%s16280_s1 + $0x1048] sm:$0xff] }
 0x886   : > { %3337 = vmatpush2.msra.mxu0 %v7702_v32  ;;  %3489 = vmatprep.subr.mxu1 %v7703_v33  ;;  %v7752_v32 = vld [vmem:[%s16280_s1 + $0x1040] sm:$0xff]  ;;  %v7753_v33 = vld [vmem:[%s16280_s1 + $0x1038] sm:$0xff] }
 0x887   : > { %3338 = vmatprep.subr.mxu0 %v7704_v34  ;;  %3490 = vmatpush2.msra.mxu1 %v7705_v36  ;;  %v7754_v34 = vld [vmem:[%s16280_s1 + $0x1030] sm:$0xff]  ;;  %v7755_v36 = vld [vmem:[%s16280_s1 + $0x1028] sm:$0xff] }
 0x888   : > { %3339 = vmatpush2.msra.mxu0 %v7706_v38  ;;  %3491 = vmatprep.subr.mxu1 %v7707_v39  ;;  %v7756_v38 = vld [vmem:[%s16280_s1 + $0x1020] sm:$0xff]  ;;  %v7757_v39 = vld [vmem:[%s16280_s1 + $0x1018] sm:$0xff] }
 0x889   : > { %3340 = vmatprep.subr.mxu0 %v7708_v40  ;;  %3492 = vmatpush2.msra.mxu1 %v7709_v41  ;;  %v7758_v40 = vld [vmem:[%s16280_s1 + $0x1010] sm:$0xff]  ;;  %v7759_v41 = vld [vmem:[%s16280_s1 + $0x1008] sm:$0xff] }
 0x88a   : > { %3341 = vmatpush2.msra.mxu0 %v7710_v14  ;;  %3493 = vmatprep.subr.mxu1 %v7711_v13  ;;  %v7760_v14 = vld [vmem:[%s16280_s1 + $0x1000] sm:$0xff]  ;;  %v7761_v13 = vld [vmem:[%s16280_s1 + $0x11f8] sm:$0xff] }
 0x88b   : > { %3342 = vmatprep.subr.mxu0 %v7712_v1  ;;  %3494 = vmatpush2.msra.mxu1 %v7713_v42  ;;  %v7762_v1 = vld [vmem:[%s16280_s1 + $0x11f0] sm:$0xff]  ;;  %v7763_v42 = vld [vmem:[%s16280_s1 + $0x11e8] sm:$0xff] }
 0x88c   : > { %3343 = vmatpush2.msra.mxu0 %v7714_v43  ;;  %3495 = vmatprep.subr.mxu1 %v7715_v44  ;;  %v7764_v43 = vld [vmem:[%s16280_s1 + $0x11e0] sm:$0xff]  ;;  %v7765_v44 = vld [vmem:[%s16280_s1 + $0x11d8] sm:$0xff] }
 0x88d   : > { %3344 = vmatprep.subr.mxu0 %v7716_v45  ;;  %3496 = vmatpush2.msra.mxu1 %v7717_v47  ;;  %v7766_v45 = vld [vmem:[%s16280_s1 + $0x11d0] sm:$0xff]  ;;  %v7767_v47 = vld [vmem:[%s16280_s1 + $0x11c8] sm:$0xff] }
 0x88e   : > { %3345 = vmatpush2.msra.mxu0 %v7718_v0  ;;  %3497 = vmatprep.subr.mxu1 %v7719_v58  ;;  %v7768_v0 = vld [vmem:[%s16280_s1 + $0x11c0] sm:$0xff]  ;;  %v7769_v58 = vld [vmem:[%s16280_s1 + $0x11b8] sm:$0xff] }
 0x88f   : > { %3346 = vmatprep.subr.mxu0 %v7720_v48  ;;  %3498 = vmatpush2.msra.mxu1 %v7721_v49  ;;  %v7770_v48 = vld [vmem:[%s16280_s1 + $0x11b0] sm:$0xff]  ;;  %v7771_v49 = vld [vmem:[%s16280_s1 + $0x11a8] sm:$0xff] }
 0x890   : > { %3347 = vmatpush2.msra.mxu0 %v7722_v50  ;;  %3499 = vmatprep.subr.mxu1 %v7723_v51  ;;  %v7772_v50 = vld [vmem:[%s16280_s1 + $0x11a0] sm:$0xff]  ;;  %v7773_v51 = vld [vmem:[%s16280_s1 + $0x1198] sm:$0xff] }
 0x891   : > { %3348 = vmatprep.subr.mxu0 %v7724_v52  ;;  %3500 = vmatpush2.msra.mxu1 %v7725_v53  ;;  %v7774_v52 = vld [vmem:[%s16280_s1 + $0x1190] sm:$0xff]  ;;  %v7775_v53 = vld [vmem:[%s16280_s1 + $0x1188] sm:$0xff] }
 0x892   : > { %3349 = vmatpush2.msra.mxu0 %v7726_v54  ;;  %v7776_v54 = vld [vmem:[%s16280_s1 + $0x1180] sm:$0xff] }
 0x893   : > { %3350 = vmatprep.subr.mxu0 %v7727_v55  ;;  %v7777_v55 = vld [vmem:[%s16280_s1 + $0x1178] sm:$0xff] }
 0x894   : > { %3351 = vmatpush2.msra.mxu0 %v7728_v56  ;;  %v7778_v56 = vld [vmem:[%s16280_s1 + $0x1170] sm:$0xff] }
 0x895   : > { %3545 = vmatprep.subr.mxu0 %v11051_v59 }
 0x90d   : > { %v3205_v60 = vpop.f32.mrf.mxu1 }
 0x90f   : > { %v3207_v19 = vpop.f32.mrf.mxu1 }
 0x911   : > { %v3056_v62 = vpop.f32.mrf.mxu0  ;;  %v3432_v35 = vpop.f32.mrf.mxu1 }
 0x912   : > { %v3061_v37 = vadd.f32 %v3056_v62, %v12050_v21  ;;  %v7141_v21 = vld [vmem:[%s9033_s14 + $0x88] sm:$0xff]  ;;  %v7781_v62 = vld [vmem:[%s16280_s1 + $0x1158] sm:$0xff] }
 0x913   : > { %v3058_v63 = vpop.f32.mrf.mxu0  ;;  %v3434_v2 = vpop.f32.mrf.mxu1 }
 0x914   : > { %v3062_v3 = vadd.f32 %v3058_v63, %v12055_v46  ;;  %v12449_v5 = vadd.f32 %v3205_v60, %v3061_v37  ;;  %3501 = vmatprep.mubr.f32.mxu1 %v3434_v2  ;;  %v7729_v46 = vld [vmem:[%s16280_s1 + $0x10f8] sm:$0xff]  ;;  %v7779_v60 = vld [vmem:[%s16280_s1 + $0x1168] sm:$0xff]  ;;  %v7784_v63 = vld [vmem:[%s16280_s1 + $0x1140] sm:$0xff] }
 0x915   : > { %v3283_v6 = vpop.f32.mrf.mxu0  ;;  %3502 = vmatmul.mubr.f32.vlgmr.msra.gmra.mxu1 %v3432_v35  ;;  %v7782_v35 = vld [vmem:[%s16280_s1 + $0x1150] sm:$0xff]  ;;  %v7783_v37 = vld [vmem:[%s16280_s1 + $0x1148] sm:$0xff]  ;;  %v7785_v2 = vld [vmem:[%s16280_s1 + $0x1138] sm:$0xff] }
 0x916   : > { %v12451_v7 = vadd.f32 %v3207_v19, %v3062_v3  ;;  %3773 = vmatprep.mubr.f32.mxu1 %v8955_v4  ;;  %v7780_v19 = vld [vmem:[%s16280_s1 + $0x1160] sm:$0xff]  ;;  %v7786_v3 = vld [vmem:[%s16280_s1 + $0x1130] sm:$0xff] }
 0x917   : > { %v3285_v59 = vpop.f32.mrf.mxu0 }
 0x918   : > { %3352 = vmatprep.mubr.f32.mxu0 %v3285_v59  ;;  %v7788_v59 = vld [vmem:[%s16280_s1 + $0x1120] sm:$0xff] }
 0x919   : > { %3353 = vmatmul.mubr.f32.vlgmr.msra.gmra.mxu0 %v3283_v6  ;;  %v7787_v6 = vld [vmem:[%s16280_s1 + $0x1128] sm:$0xff] }
 0x91a   : > { %3546 = vmatpush1.msra.mxu0 %v11049_v57  ;;  %3579 = vmatprep.mubr.f32.mxu0 %v8955_v4  ;;  %v7732_v57 = vld [vmem:[%s16280_s1 + $0x10e0] sm:$0xff] }
 0x91b   : > { %3586 = vmatprep.subr.mxu0 %v7729_v46  ;;  %v7790_v46 = vld [vmem:[%s16280_s1 + $0x1110] sm:$0xff] }
 0x91d   : > { %7142 = vmatmul.mubr.msk.f32.vlgmr.msra.gmra.mxu0 %vm359_vm0, %v7141_v21  ;;  %v7789_v21 = vld [vmem:[%s16280_s1 + $0x1118] sm:$0xff] }
 0x91e   : > { %3587 = vmatpush1.msra.mxu0 %v7730_v8  ;;  %v7791_v8 = vld [vmem:[%s16280_s1 + $0x1108] sm:$0xff] }
 0x91f   : > { %3588 = vmatprep.subr.mxu0 %v7731_v17  ;;  %v7792_v17 = vld [vmem:[%s16280_s1 + $0x1100] sm:$0xff] }
 0x920   : > { %3589 = vmatpush1.msra.mxu0 %v7732_v57  ;;  %v7793_v57 = vld [vmem:[%s16280_s1 + $0xf8] sm:$0xff] }
 0x921   : > { %3590 = vmatprep.subr.mxu0 %v7733_v9 }
 0x922   : > { %3591 = vmatpush1.msra.mxu0 %v7734_v10 }
 0x923   : > { %3592 = vmatprep.subr.mxu0 %v7735_v11 }
 0x924   : > { %3593 = vmatpush1.msra.mxu0 %v7736_v12 }
 0x925   : > { %3594 = vmatprep.subr.mxu0 %v7737_v15 }
 0x926   : > { %3595 = vmatpush1.msra.mxu0 %v7738_v16 }
 0x927   : > { %3596 = vmatprep.subr.mxu0 %v7739_v18  ;;  %v7794_v18 = vld [vmem:[%s16280_s1 + $0xf0] sm:$0xff] }
 0x928   : > { %3597 = vmatpush1.msra.mxu0 %v7740_v20  ;;  %v7795_v20 = vld [vmem:[%s16280_s1 + $0xe8] sm:$0xff] }
 0x929   : > { %3598 = vmatprep.subr.mxu0 %v7741_v22  ;;  %v7798_v22 = vld [vmem:[%s16280_s1 + $0xd0] sm:$0xff] }
 0x92a   : > { %3599 = vmatpush1.msra.mxu0 %v7742_v23  ;;  %v7799_v23 = vld [vmem:[%s16280_s1 + $0xc8] sm:$0xff] }
 0x92b   : > { %3600 = vmatprep.subr.mxu0 %v7743_v61  ;;  %v7800_v61 = vld [vmem:[%s16280_s1 + $0xc0] sm:$0xff] }
 0x92c   : > { %3601 = vmatpush1.msra.mxu0 %v7744_v24  ;;  %v7801_v24 = vld [vmem:[%s16280_s1 + $0xb8] sm:$0xff] }
 0x92d   : > { %3602 = vmatprep.subr.mxu0 %v7745_v25  ;;  %v7802_v25 = vld [vmem:[%s16280_s1 + $0xb0] sm:$0xff] }
 0x92e   : > { %3603 = vmatpush1.msra.mxu0 %v7746_v26  ;;  %v7803_v26 = vld [vmem:[%s16280_s1 + $0xa8] sm:$0xff] }
 0x92f   : > { %3604 = vmatprep.subr.mxu0 %v7747_v27  ;;  %v7804_v27 = vld [vmem:[%s16280_s1 + $0xa0] sm:$0xff] }
 0x930   : > { %3605 = vmatpush1.msra.mxu0 %v7748_v28  ;;  %v7805_v28 = vld [vmem:[%s16280_s1 + $0x98] sm:$0xff] }
 0x931   : > { %3606 = vmatprep.subr.mxu0 %v7749_v29  ;;  %v7806_v29 = vld [vmem:[%s16280_s1 + $0x90] sm:$0xff] }
 0x932   : > { %3607 = vmatpush1.msra.mxu0 %v7750_v30  ;;  %v7807_v30 = vld [vmem:[%s16280_s1 + $0x88] sm:$0xff] }
 0x933   : > { %3608 = vmatprep.subr.mxu0 %v7751_v31  ;;  %v7808_v31 = vld [vmem:[%s16280_s1 + $0x80] sm:$0xff] }
 0x934   : > { %3609 = vmatpush1.msra.mxu0 %v7752_v32  ;;  %v7809_v32 = vld [vmem:[%s16280_s1 + $0x78] sm:$0xff] }
 0x935   : > { %3610 = vmatprep.subr.mxu0 %v7753_v33  ;;  %v7810_v33 = vld [vmem:[%s16280_s1 + $0x70] sm:$0xff] }
 0x936   : > { %3611 = vmatpush1.msra.mxu0 %v7754_v34  ;;  %v7811_v34 = vld [vmem:[%s16280_s1 + $0x68] sm:$0xff] }
 0x937   : > { %3612 = vmatprep.subr.mxu0 %v7755_v36  ;;  %v7812_v36 = vld [vmem:[%s16280_s1 + $0x60] sm:$0xff] }
 0x938   : > { %3613 = vmatpush1.msra.mxu0 %v7756_v38  ;;  %v7813_v38 = vld [vmem:[%s16280_s1 + $0x58] sm:$0xff] }
 0x939   : > { %3614 = vmatprep.subr.mxu0 %v7757_v39  ;;  %v7814_v39 = vld [vmem:[%s16280_s1 + $0x50] sm:$0xff] }
 0x93a   : > { %3615 = vmatpush1.msra.mxu0 %v7758_v40  ;;  %v7815_v40 = vld [vmem:[%s16280_s1 + $0x48] sm:$0xff] }
 0x93b   : > { %3616 = vmatprep.subr.mxu0 %v7759_v41  ;;  %v7816_v41 = vld [vmem:[%s16280_s1 + $0x40] sm:$0xff] }
 0x93c   : > { %3617 = vmatpush1.msra.mxu0 %v7760_v14  ;;  %v7817_v14 = vld [vmem:[%s16280_s1 + $0x38] sm:$0xff] }
 0x93d   : > { %3618 = vmatprep.subr.mxu0 %v7761_v13  ;;  %v7818_v13 = vld [vmem:[%s16280_s1 + $0x30] sm:$0xff] }
 0x93e   : > { %3619 = vmatpush2.msra.mxu0 %v7762_v1  ;;  %v7819_v1 = vld [vmem:[%s16280_s1 + $0x28] sm:$0xff] }
 0x93f   : > { %3620 = vmatprep.subr.mxu0 %v7763_v42  ;;  %v7820_v42 = vld [vmem:[%s16280_s1 + $0x20] sm:$0xff] }
 0x940   : > { %3621 = vmatpush2.msra.mxu0 %v7764_v43  ;;  %v7821_v43 = vld [vmem:[%s16280_s1 + $0x18] sm:$0xff] }
 0x941   : > { %3622 = vmatprep.subr.mxu0 %v7765_v44  ;;  %v7822_v44 = vld [vmem:[%s16280_s1 + $0x10] sm:$0xff] }
 0x942   : > { %3623 = vmatpush2.msra.mxu0 %v7766_v45  ;;  %v7823_v45 = vld [vmem:[%s16280_s1 + $0x8] sm:$0xff] }
 0x943   : > { %3624 = vmatprep.subr.mxu0 %v7767_v47  ;;  %v7824_v47 = vld [vmem:[%s16280_s1] sm:$0xff] }
 0x944   : > { %3625 = vmatpush2.msra.mxu0 %v7768_v0  ;;  %v7825_v0 = vld [vmem:[%s16280_s1 + $0x1f8] sm:$0xff] }
 0x945   : > { %3626 = vmatprep.subr.mxu0 %v7769_v58  ;;  %v7826_v58 = vld [vmem:[%s16280_s1 + $0x1f0] sm:$0xff] }
 0x946   : > { %3627 = vmatpush2.msra.mxu0 %v7770_v48  ;;  %v7827_v48 = vld [vmem:[%s16280_s1 + $0x1e8] sm:$0xff] }
 0x947   : > { %3628 = vmatprep.subr.mxu0 %v7771_v49  ;;  %v7828_v49 = vld [vmem:[%s16280_s1 + $0x1e0] sm:$0xff] }
 0x948   : > { %3629 = vmatpush2.msra.mxu0 %v7772_v50  ;;  %v7829_v50 = vld [vmem:[%s16280_s1 + $0x1d8] sm:$0xff] }
 0x949   : > { %3630 = vmatprep.subr.mxu0 %v7773_v51  ;;  %v7830_v51 = vld [vmem:[%s16280_s1 + $0x1d0] sm:$0xff] }
 0x94a   : > { %3631 = vmatpush2.msra.mxu0 %v7774_v52  ;;  %v7831_v52 = vld [vmem:[%s16280_s1 + $0x1c8] sm:$0xff] }
 0x94b   : > { %3632 = vmatprep.subr.mxu0 %v7775_v53  ;;  %v7832_v53 = vld [vmem:[%s16280_s1 + $0x1c0] sm:$0xff] }
 0x94c   : > { %3633 = vmatpush2.msra.mxu0 %v7776_v54  ;;  %v7833_v54 = vld [vmem:[%s16280_s1 + $0x1b8] sm:$0xff] }
 0x94d   : > { %3634 = vmatprep.subr.mxu0 %v7777_v55  ;;  %v7834_v55 = vld [vmem:[%s16280_s1 + $0x1b0] sm:$0xff] }
 0x94e   : > { %3635 = vmatpush2.msra.mxu0 %v7778_v56  ;;  %v7835_v56 = vld [vmem:[%s16280_s1 + $0x1a8] sm:$0xff] }
 0x94f   : > { %3636 = vmatprep.subr.mxu0 %v7779_v60  ;;  %v7836_v60 = vld [vmem:[%s16280_s1 + $0x1a0] sm:$0xff] }
 0x950   : > { %3637 = vmatpush2.msra.mxu0 %v7780_v19  ;;  %v7837_v19 = vld [vmem:[%s16280_s1 + $0x198] sm:$0xff] }
 0x951   : > { %3638 = vmatprep.subr.mxu0 %v7781_v62  ;;  %v7838_v62 = vld [vmem:[%s16280_s1 + $0x190] sm:$0xff] }
 0x952   : > { %3639 = vmatpush2.msra.mxu0 %v7782_v35  ;;  %v7839_v35 = vld [vmem:[%s16280_s1 + $0x188] sm:$0xff] }
 0x953   : > { %3640 = vmatprep.subr.mxu0 %v7783_v37  ;;  %v7840_v37 = vld [vmem:[%s16280_s1 + $0x180] sm:$0xff] }
 0x954   : > { %3641 = vmatpush2.msra.mxu0 %v7784_v63  ;;  %v7841_v63 = vld [vmem:[%s16280_s1 + $0x178] sm:$0xff] }
 0x955   : > { %3642 = vmatprep.subr.mxu0 %v7785_v2  ;;  %v7842_v2 = vld [vmem:[%s16280_s1 + $0x170] sm:$0xff] }
 0x956   : > { %3643 = vmatpush2.msra.mxu0 %v7786_v3  ;;  %v7843_v3 = vld [vmem:[%s16280_s1 + $0x168] sm:$0xff] }
 0x957   : > { %3644 = vmatprep.subr.mxu0 %v7787_v6  ;;  %v7844_v6 = vld [vmem:[%s16280_s1 + $0x160] sm:$0xff] }
 0x958   : > { %3645 = vmatpush2.msra.mxu0 %v7788_v59  ;;  %v7845_v59 = vld [vmem:[%s16280_s1 + $0x158] sm:$0xff] }
 0x959   : > { %3646 = vmatprep.subr.mxu0 %v7789_v21  ;;  %v7846_v21 = vld [vmem:[%s16280_s1 + $0x150] sm:$0xff] }
 0x95a   : > { %3647 = vmatpush2.msra.mxu0 %v7790_v46  ;;  %v7847_v46 = vld [vmem:[%s16280_s1 + $0x148] sm:$0xff] }
 0x95b   : > { %3648 = vmatprep.subr.mxu0 %v7791_v8  ;;  %v7848_v8 = vld [vmem:[%s16280_s1 + $0x140] sm:$0xff] }
 0x95c   : > { %3649 = vmatpush2.msra.mxu0 %v7792_v17  ;;  %v7849_v17 = vld [vmem:[%s16280_s1 + $0x138] sm:$0xff] }
 0x95d   : > { %3927 = vmatprep.subr.mxu0 %v7793_v57  ;;  %v7850_v57 = vld [vmem:[%s16280_s1 + $0x130] sm:$0xff] }
 0x9d9   : > { %v3354_v9 = vpop.f32.mrf.mxu0 }
 0x9da   : > { %v12654_v10 = vadd.f32 %v3354_v9, %v12449_v5  ;;  %v7796_v5 = vld [vmem:[%s16280_s1 + $0xe0] sm:$0xff]  ;;  %v7851_v9 = vld [vmem:[%s16280_s1 + $0x128] sm:$0xff] }
 0x9db   : > { %v3356_v11 = vpop.f32.mrf.mxu0 }
 0x9dc   : > { %v12657_v12 = vadd.f32 %v3356_v11, %v12451_v7  ;;  %v7797_v7 = vld [vmem:[%s16280_s1 + $0xd8] sm:$0xff]  ;;  %v7852_v11 = vld [vmem:[%s16280_s1 + $0x120] sm:$0xff] }
 0x9dd   : > { %v3581_v15 = vpop.f32.mrf.mxu0 }
 0x9df   : > { %v3583_v16 = vpop.f32.mrf.mxu0 }
 0x9e0   : > { %3650 = vmatprep.mubr.f32.mxu0 %v3583_v16  ;;  %v7854_v16 = vld [vmem:[%s16280_s1 + $0x110] sm:$0xff] }
 0x9e1   : > { %3651 = vmatmul.mubr.f32.vlgmr.msra.gmra.mxu0 %v3581_v15  ;;  %v7853_v15 = vld [vmem:[%s16280_s1 + $0x118] sm:$0xff] }
 0x9e2   : > { %3928 = vmatpush1.msra.mxu0 %v7794_v18  ;;  %v7855_v18 = vld [vmem:[%s16280_s1 + $0x108] sm:$0xff] }
 0x9e3   : > { %3929 = vmatprep.subr.mxu0 %v7795_v20  ;;  %v7856_v20 = vld [vmem:[%s16280_s1 + $0x100] sm:$0xff] }
 0x9e4   : > { %3930 = vmatpush1.msra.mxu0 %v7796_v5  ;;  %v3503_v5 = vpop.f32.mrf.mxu1 }
 0x9e5   : > { %3931 = vmatprep.subr.mxu0 %v7797_v7 }
 0x9e6   : > { %3932 = vmatpush1.msra.mxu0 %v7798_v22  ;;  %v3505_v7 = vpop.f32.mrf.mxu1  ;;  %v3508_v22 = vadd.f32 %v3503_v5, %v12654_v10  ;;  %v7883_v5 = vld [vmem:[%s16280_s1 + $0x238] sm:$0xff] }
 0x9e7   : > { %3933 = vmatprep.subr.mxu0 %v7799_v23 }
 0x9e8   : > { %3934 = vmatpush1.msra.mxu0 %v7800_v61  ;;  %v3509_v61 = vadd.f32 %v3505_v7, %v12657_v12  ;;  %v7164_v12 = vld [vmem:[%s10832_s11 + $0x10] sm:$0xff] }
 0x9e9   : > { %3935 = vmatprep.subr.mxu0 %v7801_v24  ;;  %v7884_v7 = vld [vmem:[%s16280_s1 + $0x230] sm:$0xff] }
 0x9ea   : > { %3936 = vmatpush1.msra.mxu0 %v7802_v25 }
 0x9eb   : > { %3937 = vmatprep.subr.mxu0 %v7803_v26 }
 0x9ec   : > { %3938 = vmatpush1.msra.mxu0 %v7804_v27  ;;  %v3664_v27 = vpop.permute.xlu1 %3663 }
 0x9ed   : > { %3939 = vmatprep.subr.mxu0 %v7805_v28 }
 0x9ee   : > { %3940 = vmatpush1.msra.mxu0 %v7806_v29 }
 0x9ef   : > { %3941 = vmatprep.subr.mxu0 %v7807_v30 }
 0x9f0   : > { %3942 = vmatpush1.msra.mxu0 %v7808_v31 }
 0x9f1   : > { %3943 = vmatprep.subr.mxu0 %v7809_v32 }
 0x9f2   : > { %3944 = vmatpush1.msra.mxu0 %v7810_v33 }
 0x9f3   : > { %3945 = vmatprep.subr.mxu0 %v7811_v34 }
 0x9f4   : > { %3946 = vmatpush1.msra.mxu0 %v7812_v36 }
 0x9f5   : > { %3947 = vmatprep.subr.mxu0 %v7813_v38 }
 0x9f6   : > { %3948 = vmatpush1.msra.mxu0 %v7814_v39  ;;  %v7145_v39 = vld [vmem:[%s11045_s18 + $0x8] sm:$0xff] }
 0x9f7   : > { %3949 = vmatprep.subr.mxu0 %v7815_v40  ;;  %v3689_v40 = vpop.permute.xlu0 %3688 }
 0x9f8   : > { %3950 = vmatpush1.msra.mxu0 %v7816_v41 }
 0x9f9   : > { %3951 = vmatprep.subr.mxu0 %v7817_v14 }
 0x9fa   : > { %3952 = vmatpush1.msra.mxu0 %v7818_v13 }
 0x9fb   : > { %3953 = vmatprep.subr.mxu0 %v7819_v1 }
 0x9fc   : > { %3954 = vmatpush1.msra.mxu0 %v7820_v42 }
 0x9fd   : > { %3955 = vmatprep.subr.mxu0 %v7821_v43 }
 0x9fe   : > { %3956 = vmatpush1.msra.mxu0 %v7822_v44 }
 0x9ff   : > { %3957 = vmatprep.subr.mxu0 %v7823_v45 }
 0xa00   : > { %3958 = vmatpush1.msra.mxu0 %v7824_v47 }
 0xa01   : > { %3959 = vmatprep.subr.mxu0 %v7825_v0 }
 0xa02   : > { %3960 = vmatpush2.msra.mxu0 %v7826_v58 }
 0xa03   : > { %3961 = vmatprep.subr.mxu0 %v7827_v48  ;;  %v7857_v48 = vld [vmem:[%s16279_s0] sm:$0xff] }
 0xa04   : > { %3962 = vmatpush2.msra.mxu0 %v7828_v49 }
 0xa05   : > { %3963 = vmatprep.subr.mxu0 %v7829_v50  ;;  %v7858_v50 = vld [vmem:[%s16279_s0 + $0x8] sm:$0xff] }
 0xa06   : > { %3964 = vmatpush2.msra.mxu0 %v7830_v51 }
 0xa07   : > { %3965 = vmatprep.subr.mxu0 %v7831_v52  ;;  %v7146_v52 = vld [vmem:[%s9033_s14 + $0x90] sm:$0xff] }
 0xa08   : > { %3966 = vmatpush2.msra.mxu0 %v7832_v53  ;;  %v7148_v53 = vld [vmem:[%s9033_s14 + $0x98] sm:$0xff] }
 0xa09   : > { %3967 = vmatprep.subr.mxu0 %v7833_v54  ;;  %v7859_v54 = vld [vmem:[%s16280_s1 + $0x2f8] sm:$0xff] }
 0xa0a   : > { %3968 = vmatpush2.msra.mxu0 %v7834_v55  ;;  %v7860_v55 = vld [vmem:[%s16280_s1 + $0x2f0] sm:$0xff] }
 0xa0b   : > { %3969 = vmatprep.subr.mxu0 %v7835_v56  ;;  %v7861_v56 = vld [vmem:[%s16280_s1 + $0x2e8] sm:$0xff] }
 0xa0c   : > { %3970 = vmatpush2.msra.mxu0 %v7836_v60  ;;  %v7862_v60 = vld [vmem:[%s16280_s1 + $0x2e0] sm:$0xff] }
 0xa0d   : > { %3971 = vmatprep.subr.mxu0 %v7837_v19  ;;  %v7863_v19 = vld [vmem:[%s16280_s1 + $0x2d8] sm:$0xff] }
 0xa0e   : > { %3972 = vmatpush2.msra.mxu0 %v7838_v62  ;;  %v7864_v62 = vld [vmem:[%s16280_s1 + $0x2d0] sm:$0xff] }
 0xa0f   : > { %3973 = vmatprep.subr.mxu0 %v7839_v35  ;;  %v7865_v35 = vld [vmem:[%s16280_s1 + $0x2c8] sm:$0xff] }
 0xa10   : > { %3974 = vmatpush2.msra.mxu0 %v7840_v37  ;;  %v7866_v37 = vld [vmem:[%s16280_s1 + $0x2c0] sm:$0xff] }
 0xa11   : > { %3975 = vmatprep.subr.mxu0 %v7841_v63  ;;  %v7867_v63 = vld [vmem:[%s16280_s1 + $0x2b8] sm:$0xff] }
 0xa12   : > { %3976 = vmatpush2.msra.mxu0 %v7842_v2  ;;  %v7868_v2 = vld [vmem:[%s16280_s1 + $0x2b0] sm:$0xff] }
 0xa13   : > { %3977 = vmatprep.subr.mxu0 %v7843_v3  ;;  %v7869_v3 = vld [vmem:[%s16280_s1 + $0x2a8] sm:$0xff] }
 0xa14   : > { %3978 = vmatpush2.msra.mxu0 %v7844_v6  ;;  %v7870_v6 = vld [vmem:[%s16280_s1 + $0x2a0] sm:$0xff] }
 0xa15   : > { %3979 = vmatprep.subr.mxu0 %v7845_v59  ;;  %v7871_v59 = vld [vmem:[%s16280_s1 + $0x298] sm:$0xff] }
 0xa16   : > { %3980 = vmatpush2.msra.mxu0 %v7846_v21  ;;  %v7872_v21 = vld [vmem:[%s16280_s1 + $0x290] sm:$0xff] }
 0xa17   : > { %3981 = vmatprep.subr.mxu0 %v7847_v46  ;;  %v7873_v46 = vld [vmem:[%s16280_s1 + $0x288] sm:$0xff] }
 0xa18   : > { %3982 = vmatpush2.msra.mxu0 %v7848_v8  ;;  %v7874_v8 = vld [vmem:[%s16280_s1 + $0x280] sm:$0xff] }
 0xa19   : > { %3983 = vmatprep.subr.mxu0 %v7849_v17  ;;  %v7875_v17 = vld [vmem:[%s16280_s1 + $0x278] sm:$0xff] }
 0xa1a   : > { %3984 = vmatpush2.msra.mxu0 %v7850_v57  ;;  %v7876_v57 = vld [vmem:[%s16280_s1 + $0x270] sm:$0xff] }
 0xa1b   : > { %3985 = vmatprep.subr.mxu0 %v7851_v9  ;;  %v7877_v9 = vld [vmem:[%s16280_s1 + $0x268] sm:$0xff] }
 0xa1c   : > { %3986 = vmatpush2.msra.mxu0 %v7852_v11  ;;  %v7878_v11 = vld [vmem:[%s16280_s1 + $0x260] sm:$0xff] }
 0xa1d   : > { %3987 = vmatprep.subr.mxu0 %v7853_v15  ;;  %v7879_v15 = vld [vmem:[%s16280_s1 + $0x258] sm:$0xff] }
 0xa1e   : > { %3988 = vmatpush2.msra.mxu0 %v7854_v16  ;;  %v7880_v16 = vld [vmem:[%s16280_s1 + $0x250] sm:$0xff] }
 0xa1f   : > { %3989 = vmatprep.subr.mxu0 %v7855_v18  ;;  %v7881_v18 = vld [vmem:[%s16280_s1 + $0x248] sm:$0xff] }
 0xa20   : > { %3990 = vmatpush2.msra.mxu0 %v7856_v20  ;;  %v7882_v20 = vld [vmem:[%s16280_s1 + $0x240] sm:$0xff] }
 0xaa1   : > { %v3652_v23 = vpop.f32.mrf.mxu0 }
 0xaa2   : > { %v3657_v24 = vadd.f32 %v3652_v23, %v3508_v22  ;;  %v7885_v22 = vld [vmem:[%s16280_s1 + $0x228] sm:$0xff]  ;;  %v7886_v23 = vld [vmem:[%s16280_s1 + $0x220] sm:$0xff] }
 0xaa3   : > { %v3654_v25 = vpop.f32.mrf.mxu0 }
 0xaa4   : > { %v3658_v26 = vadd.f32 %v3654_v25, %v3509_v61  ;;  %v3666_v28 = vadd.f32 %v3664_v27, %v3657_v24  ;;  %v7887_v61 = vld [vmem:[%s16280_s1 + $0x218] sm:$0xff]  ;;  %v7888_v24 = vld [vmem:[%s16280_s1 + $0x210] sm:$0xff]  ;;  %v7889_v25 = vld [vmem:[%s16280_s1 + $0x208] sm:$0xff] }
 0xaa6   : > { %v3667_v29 = vadd.f32 %v3664_v27, %v3658_v26  ;;  %v7890_v26 = vld [vmem:[%s16280_s1 + $0x200] sm:$0xff]  ;;  %v7891_v27 = vld [vmem:[%s16280_s1 + $0x3f8] sm:$0xff] }
 0xaa8   : > { %v3668_v30 = vadd.f32 %v3667_v29, %v3666_v28 }
 0xaaa   : > { %3669 = vadd.xlane.f32.xlu1 %v3668_v30  ;;  %v7894_v30 = vld [vmem:[%s16280_s1 + $0x3e0] sm:$0xff] }
 0xb33   : > { %v3670_v31 = vpop.xlane.xlu1 %3669 }
 0xb34   : > { %v3671_v32 = vmul.f32 0.00390625, %v3670_v31  ;;  %v7895_v31 = vld [vmem:[%s16280_s1 + $0x3d8] sm:$0xff] }
 0xb36   : > { %v3672_v33 = vsub.f32 %v3666_v28, %v3671_v32  ;;  %v3673_v34 = vsub.f32 %v3667_v29, %v3671_v32  ;;  %v7892_v28 = vld [vmem:[%s16280_s1 + $0x3f0] sm:$0xff]  ;;  %v7893_v29 = vld [vmem:[%s16280_s1 + $0x3e8] sm:$0xff] }
 0xb37   : > { %v7896_v32 = vld [vmem:[%s16280_s1 + $0x3d0] sm:$0xff] }
 0xb38   : > { %v3674_v36 = vmul.f32 %v3672_v33, %v3672_v33  ;;  %v3675_v38 = vmul.f32 %v3673_v34, %v3673_v34 }
 0xb3a   : > { %v3676_v10 = vadd.f32 %v3675_v38, %v3674_v36  ;;  %v7899_v36 = vld [vmem:[%s16280_s1 + $0x3b8] sm:$0xff]  ;;  %v7900_v38 = vld [vmem:[%s16280_s1 + $0x3b0] sm:$0xff] }
 0xb3c   : > { %3677 = vadd.xlane.f32.xlu0 %v3676_v10  ;;  %v7901_v10 = vld [vmem:[%s16280_s1 + $0x3a8] sm:$0xff] }
 0xb52   : > { %3697 = vperm.xlu0 %7205, %v7145_v39   ;;  %v7902_v39 = vld [vmem:[%s16280_s1 + $0x3a0] sm:$0xff] }
 0xb56   : > { %5045 = vperm.xlu0 %7205, %v7164_v12   ;;  %v7903_v12 = vld [vmem:[%s16280_s1 + $0x398] sm:$0xff] }
 0xbc5   : > { %v3678_v41 = vpop.xlane.xlu0 %3677 }
 0xbc6   : > { %v3679_v14 = vmul.f32 0.00390625, %v3678_v41  ;;  %v7905_v41 = vld [vmem:[%s16280_s1 + $0x388] sm:$0xff] }
 0xbc8   : > { %v3682_v13 = vadd.f32 1e-05, %v3679_v14  ;;  %v7906_v14 = vld [vmem:[%s16280_s1 + $0x380] sm:$0xff] }
 0xbca   : > { %7209 = vrsqrt.f32 %v3682_v13  ;;  %v7907_v13 = vld [vmem:[%s16280_s1 + $0x378] sm:$0xff] }
 0xbcd   : > { %v3698_v47 = vpop.permute.xlu0 %3697 }
 0xbd7   : > { %v7210_v1 = vpop.eup %7209 }
 0xbd8   : > { %v3684_v42 = vmul.f32 %v7210_v1, %v3672_v33  ;;  %v3685_v43 = vmul.f32 %v7210_v1, %v3673_v34  ;;  %v7897_v33 = vld [vmem:[%s16280_s1 + $0x3c8] sm:$0xff]  ;;  %v7898_v34 = vld [vmem:[%s16280_s1 + $0x3c0] sm:$0xff]  ;;  %v7908_v1 = vld [vmem:[%s16280_s1 + $0x370] sm:$0xff] }
 0xbda   : > { %v3691_v44 = vmul.f32 %v3689_v40, %v3684_v42  ;;  %v3692_v45 = vmul.f32 %v3689_v40, %v3685_v43  ;;  %v7904_v40 = vld [vmem:[%s16280_s1 + $0x390] sm:$0xff]  ;;  %v7909_v42 = vld [vmem:[%s16280_s1 + $0x368] sm:$0xff]  ;;  %v7910_v43 = vld [vmem:[%s16280_s1 + $0x360] sm:$0xff] }
 0xbdc   : > { %v3700_v0 = vadd.f32 %v3698_v47, %v3691_v44  ;;  %v3701_v58 = vadd.f32 %v3698_v47, %v3692_v45  ;;  %v7911_v44 = vld [vmem:[%s16280_s1 + $0x358] sm:$0xff]  ;;  %v7912_v45 = vld [vmem:[%s16280_s1 + $0x350] sm:$0xff]  ;;  %v7913_v47 = vld [vmem:[%s16280_s1 + $0x348] sm:$0xff] }
 0xbde   : > { %v12855_v49 = vadd.f32 %v7857_v48, %v3700_v0  ;;  %v12860_v51 = vadd.f32 %v7858_v50, %v3701_v58  ;;  %v7914_v0 = vld [vmem:[%s16280_s1 + $0x340] sm:$0xff]  ;;  %v7915_v58 = vld [vmem:[%s16280_s1 + $0x338] sm:$0xff]  ;;  %v7916_v48 = vld [vmem:[%s16280_s1 + $0x330] sm:$0xff] }
 0xbdf   : > { %v7917_v50 = vld [vmem:[%s16280_s1 + $0x328] sm:$0xff] }
 0xbe0   : > { %3739 = vmatprep.subr.mxu1 %v12860_v51  ;;  %4182 = vmatprep.subr.mxu0 %v12860_v51 }
 0xbe1   : > { %3740 = vmatpush1.msra.mxu1 %v12855_v49 }
 0xbe2   : > { %7147 = vmatmul.mubr.msk.f32.vlgmr.msra.gmra.mxu1 %vm359_vm0, %v7146_v52  ;;  %3815 = vmatprep.subr.mxu1 %v12860_v51  ;;  %v7918_v52 = vld [vmem:[%s16280_s1 + $0x320] sm:$0xff] }
 0xbe3   : > { %3816 = vmatpush1.msra.mxu1 %v12855_v49  ;;  %3849 = vmatprep.mubr.f32.mxu1 %v8955_v4 }
 0xbe4   : > { %3856 = vmatprep.subr.mxu1 %v7859_v54  ;;  %v7920_v54 = vld [vmem:[%s16280_s1 + $0x310] sm:$0xff] }
 0xbe6   : > { %7149 = vmatmul.mubr.msk.f32.vlgmr.msra.gmra.mxu1 %vm359_vm0, %v7148_v53  ;;  %v7919_v53 = vld [vmem:[%s16280_s1 + $0x318] sm:$0xff] }
 0xbe7   : > { %3857 = vmatpush1.msra.mxu1 %v7860_v55  ;;  %v7921_v55 = vld [vmem:[%s16280_s1 + $0x308] sm:$0xff] }
 0xbe8   : > { %3858 = vmatprep.subr.mxu1 %v7861_v56  ;;  %v7922_v56 = vld [vmem:[%s16280_s1 + $0x300] sm:$0xff] }
 0xbe9   : > { %3859 = vmatpush1.msra.mxu1 %v7862_v60 }
 0xbea   : > { %3860 = vmatprep.subr.mxu1 %v7863_v19 }
 0xbeb   : > { %3861 = vmatpush1.msra.mxu1 %v7864_v62 }
 0xbec   : > { %3862 = vmatprep.subr.mxu1 %v7865_v35  ;;  %v7152_v35 = vld [vmem:[%s9033_s14 + $0xa8] sm:$0xff] }
 0xbed   : > { %3863 = vmatpush1.msra.mxu1 %v7866_v37 }
 0xbee   : > { %3864 = vmatprep.subr.mxu1 %v7867_v63  ;;  %v7923_v63 = vld [vmem:[%s16280_s1 + $0x6f8] sm:$0xff] }
 0xbef   : > { %3865 = vmatpush1.msra.mxu1 %v7868_v2  ;;  %v7924_v2 = vld [vmem:[%s16280_s1 + $0x6f0] sm:$0xff] }
 0xbf0   : > { %3866 = vmatprep.subr.mxu1 %v7869_v3  ;;  %v7150_v3 = vld [vmem:[%s9033_s14 + $0xa0] sm:$0xff] }
 0xbf1   : > { %3867 = vmatpush1.msra.mxu1 %v7870_v6  ;;  %v7925_v6 = vld [vmem:[%s16280_s1 + $0x6e8] sm:$0xff] }
 0xbf2   : > { %3868 = vmatprep.subr.mxu1 %v7871_v59  ;;  %v7926_v59 = vld [vmem:[%s16280_s1 + $0x6e0] sm:$0xff] }
 0xbf3   : > { %3869 = vmatpush1.msra.mxu1 %v7872_v21  ;;  %v7927_v21 = vld [vmem:[%s16280_s1 + $0x4f8] sm:$0xff] }
 0xbf4   : > { %3870 = vmatprep.subr.mxu1 %v7873_v46  ;;  %v7928_v46 = vld [vmem:[%s16280_s1 + $0x6d8] sm:$0xff] }
 0xbf5   : > { %3871 = vmatpush1.msra.mxu1 %v7874_v8  ;;  %v7929_v8 = vld [vmem:[%s16280_s1 + $0x4f0] sm:$0xff] }
 0xbf6   : > { %3872 = vmatprep.subr.mxu1 %v7875_v17  ;;  %v7930_v17 = vld [vmem:[%s16280_s1 + $0x6d0] sm:$0xff] }
 0xbf7   : > { %3873 = vmatpush1.msra.mxu1 %v7876_v57  ;;  %v7931_v57 = vld [vmem:[%s16280_s1 + $0x4e8] sm:$0xff] }
 0xbf8   : > { %3874 = vmatprep.subr.mxu1 %v7877_v9  ;;  %v7932_v9 = vld [vmem:[%s16280_s1 + $0x6c8] sm:$0xff] }
 0xbf9   : > { %3875 = vmatpush1.msra.mxu1 %v7878_v11  ;;  %v7933_v11 = vld [vmem:[%s16280_s1 + $0x4e0] sm:$0xff] }
 0xbfa   : > { %3876 = vmatprep.subr.mxu1 %v7879_v15  ;;  %v7934_v15 = vld [vmem:[%s16280_s1 + $0x6c0] sm:$0xff] }
 0xbfb   : > { %3877 = vmatpush1.msra.mxu1 %v7880_v16  ;;  %v7935_v16 = vld [vmem:[%s16280_s1 + $0x4d8] sm:$0xff] }
 0xbfc   : > { %3878 = vmatprep.subr.mxu1 %v7881_v18  ;;  %v7936_v18 = vld [vmem:[%s16280_s1 + $0x6b8] sm:$0xff] }
 0xbfd   : > { %3879 = vmatpush1.msra.mxu1 %v7882_v20  ;;  %v7937_v20 = vld [vmem:[%s16280_s1 + $0x4d0] sm:$0xff] }
 0xbfe   : > { %3880 = vmatprep.subr.mxu1 %v7883_v5  ;;  %v7938_v5 = vld [vmem:[%s16280_s1 + $0x6b0] sm:$0xff] }
 0xbff   : > { %3881 = vmatpush1.msra.mxu1 %v7884_v7  ;;  %v7939_v7 = vld [vmem:[%s16280_s1 + $0x4c8] sm:$0xff] }
 0xc00   : > { %3882 = vmatprep.subr.mxu1 %v7885_v22  ;;  %v7940_v22 = vld [vmem:[%s16280_s1 + $0x6a8] sm:$0xff] }
 0xc01   : > { %3883 = vmatpush1.msra.mxu1 %v7886_v23  ;;  %v7941_v23 = vld [vmem:[%s16280_s1 + $0x4c0] sm:$0xff] }
 0xc02   : > { %3884 = vmatprep.subr.mxu1 %v7887_v61  ;;  %v7942_v61 = vld [vmem:[%s16280_s1 + $0x6a0] sm:$0xff] }
 0xc03   : > { %3885 = vmatpush1.msra.mxu1 %v7888_v24  ;;  %v7943_v24 = vld [vmem:[%s16280_s1 + $0x4b8] sm:$0xff] }
 0xc04   : > { %3886 = vmatprep.subr.mxu1 %v7889_v25  ;;  %v7944_v25 = vld [vmem:[%s16280_s1 + $0x698] sm:$0xff] }
 0xc05   : > { %3887 = vmatpush1.msra.mxu1 %v7890_v26  ;;  %v7945_v26 = vld [vmem:[%s16280_s1 + $0x4b0] sm:$0xff] }
 0xc06   : > { %3888 = vmatprep.subr.mxu1 %v7891_v27  ;;  %v7946_v27 = vld [vmem:[%s16280_s1 + $0x690] sm:$0xff] }
 0xc07   : > { %3889 = vmatpush2.msra.mxu1 %v7892_v28  ;;  %v7947_v28 = vld [vmem:[%s16280_s1 + $0x4a8] sm:$0xff] }
 0xc08   : > { %3890 = vmatprep.subr.mxu1 %v7893_v29  ;;  %v7948_v29 = vld [vmem:[%s16280_s1 + $0x688] sm:$0xff] }
 0xc09   : > { %3891 = vmatpush2.msra.mxu1 %v7894_v30  ;;  %v7949_v30 = vld [vmem:[%s16280_s1 + $0x4a0] sm:$0xff] }
 0xc0a   : > { %3892 = vmatprep.subr.mxu1 %v7895_v31  ;;  %v7950_v31 = vld [vmem:[%s16280_s1 + $0x680] sm:$0xff] }
 0xc0b   : > { %3893 = vmatpush2.msra.mxu1 %v7896_v32  ;;  %v7951_v32 = vld [vmem:[%s16280_s1 + $0x498] sm:$0xff] }
 0xc0c   : > { %3894 = vmatprep.subr.mxu1 %v7897_v33  ;;  %v7952_v33 = vld [vmem:[%s16280_s1 + $0x678] sm:$0xff] }
 0xc0d   : > { %3895 = vmatpush2.msra.mxu1 %v7898_v34  ;;  %v7953_v34 = vld [vmem:[%s16280_s1 + $0x490] sm:$0xff] }
 0xc0e   : > { %3896 = vmatprep.subr.mxu1 %v7899_v36  ;;  %v7954_v36 = vld [vmem:[%s16280_s1 + $0x670] sm:$0xff] }
 0xc0f   : > { %3897 = vmatpush2.msra.mxu1 %v7900_v38  ;;  %v7955_v38 = vld [vmem:[%s16280_s1 + $0x488] sm:$0xff] }
 0xc10   : > { %3898 = vmatprep.subr.mxu1 %v7901_v10  ;;  %v7956_v10 = vld [vmem:[%s16280_s1 + $0x668] sm:$0xff] }
 0xc11   : > { %3899 = vmatpush2.msra.mxu1 %v7902_v39  ;;  %v7957_v39 = vld [vmem:[%s16280_s1 + $0x480] sm:$0xff] }
 0xc12   : > { %3900 = vmatprep.subr.mxu1 %v7903_v12  ;;  %v7958_v12 = vld [vmem:[%s16280_s1 + $0x660] sm:$0xff] }
 0xc13   : > { %3901 = vmatpush2.msra.mxu1 %v7904_v40  ;;  %v7959_v40 = vld [vmem:[%s16280_s1 + $0x478] sm:$0xff] }
 0xc14   : > { %3902 = vmatprep.subr.mxu1 %v7905_v41  ;;  %v7960_v41 = vld [vmem:[%s16280_s1 + $0x658] sm:$0xff] }
 0xc15   : > { %3903 = vmatpush2.msra.mxu1 %v7906_v14  ;;  %v7961_v14 = vld [vmem:[%s16280_s1 + $0x470] sm:$0xff] }
 0xc16   : > { %3904 = vmatprep.subr.mxu1 %v7907_v13  ;;  %v7962_v13 = vld [vmem:[%s16280_s1 + $0x650] sm:$0xff] }
 0xc17   : > { %3905 = vmatpush2.msra.mxu1 %v7908_v1  ;;  %v7963_v1 = vld [vmem:[%s16280_s1 + $0x468] sm:$0xff] }
 0xc18   : > { %3906 = vmatprep.subr.mxu1 %v7909_v42  ;;  %v7964_v42 = vld [vmem:[%s16280_s1 + $0x648] sm:$0xff] }
 0xc19   : > { %3907 = vmatpush2.msra.mxu1 %v7910_v43  ;;  %v7965_v43 = vld [vmem:[%s16280_s1 + $0x460] sm:$0xff] }
 0xc1a   : > { %3908 = vmatprep.subr.mxu1 %v7911_v44  ;;  %v7966_v44 = vld [vmem:[%s16280_s1 + $0x640] sm:$0xff] }
 0xc1b   : > { %3909 = vmatpush2.msra.mxu1 %v7912_v45  ;;  %v7967_v45 = vld [vmem:[%s16280_s1 + $0x458] sm:$0xff] }
 0xc1c   : > { %3910 = vmatprep.subr.mxu1 %v7913_v47  ;;  %v7968_v47 = vld [vmem:[%s16280_s1 + $0x638] sm:$0xff] }
 0xc1d   : > { %3911 = vmatpush2.msra.mxu1 %v7914_v0  ;;  %v7969_v0 = vld [vmem:[%s16280_s1 + $0x450] sm:$0xff] }
 0xc1e   : > { %3912 = vmatprep.subr.mxu1 %v7915_v58  ;;  %v7970_v58 = vld [vmem:[%s16280_s1 + $0x630] sm:$0xff] }
 0xc1f   : > { %3913 = vmatpush2.msra.mxu1 %v7916_v48  ;;  %v7971_v48 = vld [vmem:[%s16280_s1 + $0x448] sm:$0xff] }
 0xc20   : > { %3914 = vmatprep.subr.mxu1 %v7917_v50  ;;  %v7972_v50 = vld [vmem:[%s16280_s1 + $0x628] sm:$0xff] }
 0xc21   : > { %3915 = vmatpush2.msra.mxu1 %v7918_v52  ;;  %v7973_v52 = vld [vmem:[%s16280_s1 + $0x440] sm:$0xff] }
 0xc22   : > { %3916 = vmatprep.subr.mxu1 %v7919_v53  ;;  %v7974_v53 = vld [vmem:[%s16280_s1 + $0x620] sm:$0xff] }
 0xc23   : > { %3917 = vmatpush2.msra.mxu1 %v7920_v54  ;;  %v7975_v54 = vld [vmem:[%s16280_s1 + $0x438] sm:$0xff] }
 0xc24   : > { %3918 = vmatprep.subr.mxu1 %v7921_v55  ;;  %v7976_v55 = vld [vmem:[%s16280_s1 + $0x618] sm:$0xff] }
 0xc25   : > { %3919 = vmatpush2.msra.mxu1 %v7922_v56  ;;  %v7977_v56 = vld [vmem:[%s16280_s1 + $0x430] sm:$0xff] }
 0xc26   : > { %4033 = vmatprep.subr.mxu1 %v12860_v51 }
 0xca2   : > { %v3775_v60 = vpop.f32.mrf.mxu1 }
 0xca4   : > { %v3777_v19 = vpop.f32.mrf.mxu1 }
 0xca5   : > { %3991 = vmatprep.mubr.f32.mxu0 %v3777_v19  ;;  %v7979_v19 = vld [vmem:[%s16280_s1 + $0x428] sm:$0xff] }
 0xca6   : > { %v3851_v62 = vpop.f32.mrf.mxu1  ;;  %3992 = vmatmul.mubr.f32.vlgmr.msra.gmra.mxu0 %v3775_v60  ;;  %v7978_v60 = vld [vmem:[%s16280_s1 + $0x610] sm:$0xff] }
 0xca7   : > { %4183 = vmatpush1.msra.mxu0 %v12855_v49  ;;  %4216 = vmatprep.mubr.f32.mxu0 %v8955_v4 }
 0xca8   : > { %v3853_v37 = vpop.f32.mrf.mxu1  ;;  %4223 = vmatprep.subr.mxu0 %v7923_v63  ;;  %v7983_v63 = vld [vmem:[%s16280_s1 + $0x418] sm:$0xff] }
 0xca9   : > { %3920 = vmatprep.mubr.f32.mxu1 %v3853_v37  ;;  %v7982_v37 = vld [vmem:[%s16280_s1 + $0x600] sm:$0xff] }
 0xcaa   : > { %3921 = vmatmul.mubr.f32.vlgmr.msra.gmra.mxu1 %v3851_v62  ;;  %7153 = vmatmul.mubr.msk.f32.vlgmr.msra.gmra.mxu0 %vm359_vm0, %v7152_v35  ;;  %v7980_v62 = vld [vmem:[%s16280_s1 + $0x608] sm:$0xff]  ;;  %v7981_v35 = vld [vmem:[%s16280_s1 + $0x420] sm:$0xff] }
 0xcab   : > { %4034 = vmatpush1.msra.mxu1 %v12855_v49  ;;  %4224 = vmatpush1.msra.mxu0 %v7924_v2  ;;  %v7984_v2 = vld [vmem:[%s16280_s1 + $0x7f8] sm:$0xff] }
 0xcac   : > { %4225 = vmatprep.subr.mxu0 %v7925_v6  ;;  %4067 = vmatprep.mubr.f32.mxu1 %v8955_v4  ;;  %v7986_v6 = vld [vmem:[%s16280_s1 + $0x7f0] sm:$0xff] }
 0xcad   : > { %4226 = vmatpush1.msra.mxu0 %v7926_v59  ;;  %4074 = vmatprep.subr.mxu1 %v7927_v21  ;;  %v7987_v59 = vld [vmem:[%s16280_s1 + $0x408] sm:$0xff] }
 0xcae   : > { %4227 = vmatprep.subr.mxu0 %v7928_v46  ;;  %7151 = vmatmul.mubr.msk.f32.vlgmr.msra.gmra.mxu1 %vm359_vm0, %v7150_v3  ;;  %v7985_v3 = vld [vmem:[%s16280_s1 + $0x410] sm:$0xff]  ;;  %v7988_v21 = vld [vmem:[%s16280_s1 + $0x7e8] sm:$0xff]  ;;  %v7989_v46 = vld [vmem:[%s16280_s1 + $0x400] sm:$0xff] }
 0xcaf   : > { %4075 = vmatpush1.msra.mxu1 %v7929_v8  ;;  %4228 = vmatpush1.msra.mxu0 %v7930_v17  ;;  %v7990_v8 = vld [vmem:[%s16280_s1 + $0x7e0] sm:$0xff]  ;;  %v7991_v17 = vld [vmem:[%s16280_s1 + $0x5f8] sm:$0xff] }
 0xcb0   : > { %4076 = vmatprep.subr.mxu1 %v7931_v57  ;;  %4229 = vmatprep.subr.mxu0 %v7932_v9  ;;  %v7992_v57 = vld [vmem:[%s16280_s1 + $0x7d8] sm:$0xff]  ;;  %v7993_v9 = vld [vmem:[%s16280_s1 + $0x5f0] sm:$0xff] }
 0xcb1   : > { %4077 = vmatpush1.msra.mxu1 %v7933_v11  ;;  %4230 = vmatpush1.msra.mxu0 %v7934_v15  ;;  %v7994_v11 = vld [vmem:[%s16280_s1 + $0x7d0] sm:$0xff]  ;;  %v7995_v15 = vld [vmem:[%s16280_s1 + $0x5e8] sm:$0xff] }
 0xcb2   : > { %4078 = vmatprep.subr.mxu1 %v7935_v16  ;;  %4231 = vmatprep.subr.mxu0 %v7936_v18  ;;  %v7996_v16 = vld [vmem:[%s16280_s1 + $0x7c8] sm:$0xff]  ;;  %v7997_v18 = vld [vmem:[%s16280_s1 + $0x5e0] sm:$0xff] }
 0xcb3   : > { %4079 = vmatpush1.msra.mxu1 %v7937_v20  ;;  %4232 = vmatpush1.msra.mxu0 %v7938_v5  ;;  %v7998_v20 = vld [vmem:[%s16280_s1 + $0x7c0] sm:$0xff]  ;;  %v7999_v5 = vld [vmem:[%s16280_s1 + $0x5d8] sm:$0xff] }
 0xcb4   : > { %4080 = vmatprep.subr.mxu1 %v7939_v7  ;;  %4233 = vmatprep.subr.mxu0 %v7940_v22  ;;  %v8000_v7 = vld [vmem:[%s16280_s1 + $0x7b8] sm:$0xff]  ;;  %v8001_v22 = vld [vmem:[%s16280_s1 + $0x5d0] sm:$0xff] }
 0xcb5   : > { %4081 = vmatpush1.msra.mxu1 %v7941_v23  ;;  %4234 = vmatpush1.msra.mxu0 %v7942_v61  ;;  %v8002_v23 = vld [vmem:[%s16280_s1 + $0x7b0] sm:$0xff]  ;;  %v8003_v61 = vld [vmem:[%s16280_s1 + $0x5c8] sm:$0xff] }
 0xcb6   : > { %4082 = vmatprep.subr.mxu1 %v7943_v24  ;;  %4235 = vmatprep.subr.mxu0 %v7944_v25  ;;  %v8004_v24 = vld [vmem:[%s16280_s1 + $0x7a8] sm:$0xff]  ;;  %v8005_v25 = vld [vmem:[%s16280_s1 + $0x5c0] sm:$0xff] }
 0xcb7   : > { %4083 = vmatpush1.msra.mxu1 %v7945_v26  ;;  %4236 = vmatpush1.msra.mxu0 %v7946_v27  ;;  %v8006_v26 = vld [vmem:[%s16280_s1 + $0x7a0] sm:$0xff]  ;;  %v8007_v27 = vld [vmem:[%s16280_s1 + $0x5b8] sm:$0xff] }
 0xcb8   : > { %4084 = vmatprep.subr.mxu1 %v7947_v28  ;;  %4237 = vmatprep.subr.mxu0 %v7948_v29  ;;  %v8008_v28 = vld [vmem:[%s16280_s1 + $0x798] sm:$0xff]  ;;  %v8009_v29 = vld [vmem:[%s16280_s1 + $0x5b0] sm:$0xff] }
 0xcb9   : > { %4085 = vmatpush1.msra.mxu1 %v7949_v30  ;;  %4238 = vmatpush1.msra.mxu0 %v7950_v31  ;;  %v8010_v30 = vld [vmem:[%s16280_s1 + $0x790] sm:$0xff]  ;;  %v8011_v31 = vld [vmem:[%s16280_s1 + $0x5a8] sm:$0xff] }
 0xcba   : > { %4086 = vmatprep.subr.mxu1 %v7951_v32  ;;  %4239 = vmatprep.subr.mxu0 %v7952_v33  ;;  %v8012_v32 = vld [vmem:[%s16280_s1 + $0x788] sm:$0xff]  ;;  %v8013_v33 = vld [vmem:[%s16280_s1 + $0x5a0] sm:$0xff] }
 0xcbb   : > { %4087 = vmatpush1.msra.mxu1 %v7953_v34  ;;  %4240 = vmatpush1.msra.mxu0 %v7954_v36  ;;  %v8014_v34 = vld [vmem:[%s16280_s1 + $0x780] sm:$0xff]  ;;  %v8015_v36 = vld [vmem:[%s16280_s1 + $0x598] sm:$0xff] }
 0xcbc   : > { %4088 = vmatprep.subr.mxu1 %v7955_v38  ;;  %4241 = vmatprep.subr.mxu0 %v7956_v10  ;;  %v8016_v38 = vld [vmem:[%s16280_s1 + $0x778] sm:$0xff]  ;;  %v8017_v10 = vld [vmem:[%s16280_s1 + $0x590] sm:$0xff] }
 0xcbd   : > { %4089 = vmatpush1.msra.mxu1 %v7957_v39  ;;  %4242 = vmatpush1.msra.mxu0 %v7958_v12  ;;  %v8018_v39 = vld [vmem:[%s16280_s1 + $0x770] sm:$0xff]  ;;  %v8019_v12 = vld [vmem:[%s16280_s1 + $0x588] sm:$0xff] }
 0xcbe   : > { %4090 = vmatprep.subr.mxu1 %v7959_v40  ;;  %4243 = vmatprep.subr.mxu0 %v7960_v41  ;;  %v8020_v40 = vld [vmem:[%s16280_s1 + $0x768] sm:$0xff]  ;;  %v8021_v41 = vld [vmem:[%s16280_s1 + $0x580] sm:$0xff] }
 0xcbf   : > { %4091 = vmatpush1.msra.mxu1 %v7961_v14  ;;  %4244 = vmatpush1.msra.mxu0 %v7962_v13  ;;  %v8022_v14 = vld [vmem:[%s16280_s1 + $0x760] sm:$0xff]  ;;  %v8023_v13 = vld [vmem:[%s16280_s1 + $0x578] sm:$0xff] }
 0xcc0   : > { %4092 = vmatprep.subr.mxu1 %v7963_v1  ;;  %4245 = vmatprep.subr.mxu0 %v7964_v42  ;;  %v8024_v1 = vld [vmem:[%s16280_s1 + $0x758] sm:$0xff]  ;;  %v8025_v42 = vld [vmem:[%s16280_s1 + $0x570] sm:$0xff] }
 0xcc1   : > { %4093 = vmatpush1.msra.mxu1 %v7965_v43  ;;  %4246 = vmatpush1.msra.mxu0 %v7966_v44  ;;  %v8026_v43 = vld [vmem:[%s16280_s1 + $0x750] sm:$0xff]  ;;  %v8027_v44 = vld [vmem:[%s16280_s1 + $0x568] sm:$0xff] }
 0xcc2   : > { %4094 = vmatprep.subr.mxu1 %v7967_v45  ;;  %4247 = vmatprep.subr.mxu0 %v7968_v47  ;;  %v8028_v45 = vld [vmem:[%s16280_s1 + $0x748] sm:$0xff]  ;;  %v8029_v47 = vld [vmem:[%s16280_s1 + $0x560] sm:$0xff] }
 0xcc3   : > { %4095 = vmatpush1.msra.mxu1 %v7969_v0  ;;  %4248 = vmatpush1.msra.mxu0 %v7970_v58  ;;  %v8030_v0 = vld [vmem:[%s16280_s1 + $0x740] sm:$0xff]  ;;  %v8031_v58 = vld [vmem:[%s16280_s1 + $0x558] sm:$0xff] }
 0xcc4   : > { %4096 = vmatprep.subr.mxu1 %v7971_v48  ;;  %4249 = vmatprep.subr.mxu0 %v7972_v50  ;;  %v8032_v48 = vld [vmem:[%s16280_s1 + $0x738] sm:$0xff]  ;;  %v8033_v50 = vld [vmem:[%s16280_s1 + $0x550] sm:$0xff] }
 0xcc5   : > { %4097 = vmatpush1.msra.mxu1 %v7973_v52  ;;  %4250 = vmatpush1.msra.mxu0 %v7974_v53  ;;  %v8034_v52 = vld [vmem:[%s16280_s1 + $0x730] sm:$0xff]  ;;  %v8035_v53 = vld [vmem:[%s16280_s1 + $0x548] sm:$0xff] }
 0xcc6   : > { %4098 = vmatprep.subr.mxu1 %v7975_v54  ;;  %4251 = vmatprep.subr.mxu0 %v7976_v55  ;;  %v8036_v54 = vld [vmem:[%s16280_s1 + $0x728] sm:$0xff]  ;;  %v8037_v55 = vld [vmem:[%s16280_s1 + $0x540] sm:$0xff] }
 0xcc7   : > { %4099 = vmatpush1.msra.mxu1 %v7977_v56  ;;  %4252 = vmatpush1.msra.mxu0 %v7978_v60  ;;  %v8038_v56 = vld [vmem:[%s16280_s1 + $0x720] sm:$0xff]  ;;  %v8039_v60 = vld [vmem:[%s16280_s1 + $0x538] sm:$0xff] }
 0xcc8   : > { %4100 = vmatprep.subr.mxu1 %v7979_v19  ;;  %4253 = vmatprep.subr.mxu0 %v7980_v62  ;;  %v8040_v19 = vld [vmem:[%s16280_s1 + $0x718] sm:$0xff]  ;;  %v8041_v62 = vld [vmem:[%s16280_s1 + $0x530] sm:$0xff] }
 0xcc9   : > { %4101 = vmatpush1.msra.mxu1 %v7981_v35  ;;  %4254 = vmatpush1.msra.mxu0 %v7982_v37  ;;  %v8042_v35 = vld [vmem:[%s16280_s1 + $0x710] sm:$0xff]  ;;  %v8043_v37 = vld [vmem:[%s16280_s1 + $0x528] sm:$0xff] }
 0xcca   : > { %4102 = vmatprep.subr.mxu1 %v7983_v63  ;;  %4255 = vmatprep.subr.mxu0 %v7984_v2  ;;  %v8044_v63 = vld [vmem:[%s16280_s1 + $0x708] sm:$0xff]  ;;  %v8045_v2 = vld [vmem:[%s16280_s1 + $0x520] sm:$0xff] }
 0xccb   : > { %4103 = vmatpush1.msra.mxu1 %v7985_v3  ;;  %4256 = vmatpush2.msra.mxu0 %v7986_v6  ;;  %v8046_v3 = vld [vmem:[%s16280_s1 + $0x700] sm:$0xff]  ;;  %v8047_v6 = vld [vmem:[%s16280_s1 + $0x518] sm:$0xff] }
 0xccc   : > { %4104 = vmatprep.subr.mxu1 %v7987_v59  ;;  %4257 = vmatprep.subr.mxu0 %v7988_v21  ;;  %v8048_v59 = vld [vmem:[%s16280_s1 + $0x510] sm:$0xff]  ;;  %v8049_v21 = vld [vmem:[%s16280_s1 + $0x508] sm:$0xff] }
 0xccd   : > { %4105 = vmatpush1.msra.mxu1 %v7989_v46  ;;  %4258 = vmatpush2.msra.mxu0 %v7990_v8  ;;  %v8050_v46 = vld [vmem:[%s16280_s1 + $0x500] sm:$0xff] }
 0xcce   : > { %4106 = vmatprep.subr.mxu1 %v7991_v17  ;;  %4259 = vmatprep.subr.mxu0 %v7992_v57 }
 0xccf   : > { %4107 = vmatpush2.msra.mxu1 %v7993_v9  ;;  %4260 = vmatpush2.msra.mxu0 %v7994_v11 }
 0xcd0   : > { %4108 = vmatprep.subr.mxu1 %v7995_v15  ;;  %4261 = vmatprep.subr.mxu0 %v7996_v16 }
 0xcd1   : > { %4109 = vmatpush2.msra.mxu1 %v7997_v18  ;;  %4262 = vmatpush2.msra.mxu0 %v7998_v20 }
 0xcd2   : > { %4110 = vmatprep.subr.mxu1 %v7999_v5  ;;  %4263 = vmatprep.subr.mxu0 %v8000_v7  ;;  %v7156_v5 = vld [vmem:[%s9033_s14 + $0xb8] sm:$0xff] }
 0xcd3   : > { %4111 = vmatpush2.msra.mxu1 %v8001_v22  ;;  %4264 = vmatpush2.msra.mxu0 %v8002_v23  ;;  %v8051_v22 = vld [vmem:[%s16280_s1 + $0xaf8] sm:$0xff]  ;;  %v8052_v23 = vld [vmem:[%s16280_s1 + $0xaf0] sm:$0xff] }
 0xcd4   : > { %4112 = vmatprep.subr.mxu1 %v8003_v61  ;;  %4265 = vmatprep.subr.mxu0 %v8004_v24  ;;  %v7154_v61 = vld [vmem:[%s9033_s14 + $0xb0] sm:$0xff]  ;;  %v8053_v24 = vld [vmem:[%s16280_s1 + $0xae8] sm:$0xff] }
 0xcd5   : > { %4113 = vmatpush2.msra.mxu1 %v8005_v25  ;;  %4266 = vmatpush2.msra.mxu0 %v8006_v26  ;;  %v8054_v25 = vld [vmem:[%s16280_s1 + $0xae0] sm:$0xff]  ;;  %v8055_v26 = vld [vmem:[%s16280_s1 + $0x8f8] sm:$0xff] }
 0xcd6   : > { %4114 = vmatprep.subr.mxu1 %v8007_v27  ;;  %4267 = vmatprep.subr.mxu0 %v8008_v28  ;;  %v8056_v27 = vld [vmem:[%s16280_s1 + $0xad8] sm:$0xff]  ;;  %v8057_v28 = vld [vmem:[%s16280_s1 + $0x8f0] sm:$0xff] }
 0xcd7   : > { %4115 = vmatpush2.msra.mxu1 %v8009_v29  ;;  %4268 = vmatpush2.msra.mxu0 %v8010_v30  ;;  %v8058_v29 = vld [vmem:[%s16280_s1 + $0xad0] sm:$0xff]  ;;  %v8059_v30 = vld [vmem:[%s16280_s1 + $0x8e8] sm:$0xff] }
 0xcd8   : > { %4116 = vmatprep.subr.mxu1 %v8011_v31  ;;  %4269 = vmatprep.subr.mxu0 %v8012_v32  ;;  %v8060_v31 = vld [vmem:[%s16280_s1 + $0xac8] sm:$0xff]  ;;  %v8061_v32 = vld [vmem:[%s16280_s1 + $0x8e0] sm:$0xff] }
 0xcd9   : > { %4117 = vmatpush2.msra.mxu1 %v8013_v33  ;;  %4270 = vmatpush2.msra.mxu0 %v8014_v34  ;;  %v8062_v33 = vld [vmem:[%s16280_s1 + $0xac0] sm:$0xff]  ;;  %v8063_v34 = vld [vmem:[%s16280_s1 + $0x8d8] sm:$0xff] }
 0xcda   : > { %4118 = vmatprep.subr.mxu1 %v8015_v36  ;;  %4271 = vmatprep.subr.mxu0 %v8016_v38  ;;  %v8064_v36 = vld [vmem:[%s16280_s1 + $0xab8] sm:$0xff]  ;;  %v8065_v38 = vld [vmem:[%s16280_s1 + $0x8d0] sm:$0xff] }
 0xcdb   : > { %4119 = vmatpush2.msra.mxu1 %v8017_v10  ;;  %4272 = vmatpush2.msra.mxu0 %v8018_v39  ;;  %v8066_v10 = vld [vmem:[%s16280_s1 + $0xab0] sm:$0xff]  ;;  %v8067_v39 = vld [vmem:[%s16280_s1 + $0x8c8] sm:$0xff] }
 0xcdc   : > { %4120 = vmatprep.subr.mxu1 %v8019_v12  ;;  %4273 = vmatprep.subr.mxu0 %v8020_v40  ;;  %v8068_v12 = vld [vmem:[%s16280_s1 + $0xaa8] sm:$0xff]  ;;  %v8069_v40 = vld [vmem:[%s16280_s1 + $0x8c0] sm:$0xff] }
 0xcdd   : > { %4121 = vmatpush2.msra.mxu1 %v8021_v41  ;;  %4274 = vmatpush2.msra.mxu0 %v8022_v14  ;;  %v8070_v41 = vld [vmem:[%s16280_s1 + $0xaa0] sm:$0xff]  ;;  %v8071_v14 = vld [vmem:[%s16280_s1 + $0x8b8] sm:$0xff] }
 0xcde   : > { %4122 = vmatprep.subr.mxu1 %v8023_v13  ;;  %4275 = vmatprep.subr.mxu0 %v8024_v1  ;;  %v8072_v13 = vld [vmem:[%s16280_s1 + $0xa98] sm:$0xff]  ;;  %v8073_v1 = vld [vmem:[%s16280_s1 + $0x8b0] sm:$0xff] }
 0xcdf   : > { %4123 = vmatpush2.msra.mxu1 %v8025_v42  ;;  %4276 = vmatpush2.msra.mxu0 %v8026_v43  ;;  %v8074_v42 = vld [vmem:[%s16280_s1 + $0xa90] sm:$0xff]  ;;  %v8075_v43 = vld [vmem:[%s16280_s1 + $0x8a8] sm:$0xff] }
 0xce0   : > { %4124 = vmatprep.subr.mxu1 %v8027_v44  ;;  %4277 = vmatprep.subr.mxu0 %v8028_v45  ;;  %v8076_v44 = vld [vmem:[%s16280_s1 + $0xa88] sm:$0xff]  ;;  %v8077_v45 = vld [vmem:[%s16280_s1 + $0x8a0] sm:$0xff] }
 0xce1   : > { %4125 = vmatpush2.msra.mxu1 %v8029_v47  ;;  %4278 = vmatpush2.msra.mxu0 %v8030_v0  ;;  %v8078_v47 = vld [vmem:[%s16280_s1 + $0xa80] sm:$0xff]  ;;  %v8079_v0 = vld [vmem:[%s16280_s1 + $0x898] sm:$0xff] }
 0xce2   : > { %4126 = vmatprep.subr.mxu1 %v8031_v58  ;;  %4279 = vmatprep.subr.mxu0 %v8032_v48  ;;  %v8080_v58 = vld [vmem:[%s16280_s1 + $0xa78] sm:$0xff]  ;;  %v8081_v48 = vld [vmem:[%s16280_s1 + $0x890] sm:$0xff] }
 0xce3   : > { %4127 = vmatpush2.msra.mxu1 %v8033_v50  ;;  %4280 = vmatpush2.msra.mxu0 %v8034_v52  ;;  %v8082_v50 = vld [vmem:[%s16280_s1 + $0xa70] sm:$0xff]  ;;  %v8083_v52 = vld [vmem:[%s16280_s1 + $0x888] sm:$0xff] }
 0xce4   : > { %4128 = vmatprep.subr.mxu1 %v8035_v53  ;;  %4281 = vmatprep.subr.mxu0 %v8036_v54  ;;  %v8084_v53 = vld [vmem:[%s16280_s1 + $0xa68] sm:$0xff]  ;;  %v8085_v54 = vld [vmem:[%s16280_s1 + $0x880] sm:$0xff] }
 0xce5   : > { %4129 = vmatpush2.msra.mxu1 %v8037_v55  ;;  %4282 = vmatpush2.msra.mxu0 %v8038_v56  ;;  %v8086_v55 = vld [vmem:[%s16280_s1 + $0xa60] sm:$0xff]  ;;  %v8087_v56 = vld [vmem:[%s16280_s1 + $0x878] sm:$0xff] }
 0xce6   : > { %4130 = vmatprep.subr.mxu1 %v8039_v60  ;;  %4283 = vmatprep.subr.mxu0 %v8040_v19  ;;  %v8088_v60 = vld [vmem:[%s16280_s1 + $0xa58] sm:$0xff]  ;;  %v8089_v19 = vld [vmem:[%s16280_s1 + $0x870] sm:$0xff] }
 0xce7   : > { %4131 = vmatpush2.msra.mxu1 %v8041_v62  ;;  %4284 = vmatpush2.msra.mxu0 %v8042_v35  ;;  %v8090_v62 = vld [vmem:[%s16280_s1 + $0xa50] sm:$0xff]  ;;  %v8091_v35 = vld [vmem:[%s16280_s1 + $0x868] sm:$0xff] }
 0xce8   : > { %4132 = vmatprep.subr.mxu1 %v8043_v37  ;;  %4285 = vmatprep.subr.mxu0 %v8044_v63  ;;  %v8092_v37 = vld [vmem:[%s16280_s1 + $0xa48] sm:$0xff]  ;;  %v8093_v63 = vld [vmem:[%s16280_s1 + $0x860] sm:$0xff] }
 0xce9   : > { %4133 = vmatpush2.msra.mxu1 %v8045_v2  ;;  %4286 = vmatpush2.msra.mxu0 %v8046_v3  ;;  %v8094_v2 = vld [vmem:[%s16280_s1 + $0xa40] sm:$0xff]  ;;  %v8095_v3 = vld [vmem:[%s16280_s1 + $0x858] sm:$0xff] }
 0xcea   : > { %4134 = vmatprep.subr.mxu1 %v8047_v6  ;;  %4480 = vmatprep.subr.mxu0 %v12860_v51  ;;  %v8096_v6 = vld [vmem:[%s16280_s1 + $0xa38] sm:$0xff] }
 0xceb   : > { %4135 = vmatpush2.msra.mxu1 %v8048_v59  ;;  %v8097_v59 = vld [vmem:[%s16280_s1 + $0x850] sm:$0xff] }
 0xcec   : > { %4136 = vmatprep.subr.mxu1 %v8049_v21  ;;  %v8098_v21 = vld [vmem:[%s16280_s1 + $0xa30] sm:$0xff] }
 0xced   : > { %4137 = vmatpush2.msra.mxu1 %v8050_v46  ;;  %v8099_v46 = vld [vmem:[%s16280_s1 + $0x848] sm:$0xff] }
 0xcee   : > { %4331 = vmatprep.subr.mxu1 %v12860_v51 }
 0xd66   : > { %v3993_v8 = vpop.f32.mrf.mxu0 }
 0xd68   : > { %v3995_v17 = vpop.f32.mrf.mxu0 }
 0xd6a   : > { %v3922_v57 = vpop.f32.mrf.mxu1  ;;  %v4218_v9 = vpop.f32.mrf.mxu0 }
 0xd6b   : > { %v13459_v11 = vadd.f32 %v3993_v8, %v3922_v57  ;;  %v8100_v8 = vld [vmem:[%s16280_s1 + $0xa28] sm:$0xff]  ;;  %v8102_v57 = vld [vmem:[%s16280_s1 + $0xa20] sm:$0xff] }
 0xd6c   : > { %v3924_v15 = vpop.f32.mrf.mxu1  ;;  %v4220_v16 = vpop.f32.mrf.mxu0 }
 0xd6d   : > { %v13461_v18 = vadd.f32 %v3995_v17, %v3924_v15  ;;  %4287 = vmatprep.mubr.f32.mxu0 %v4220_v16  ;;  %v8101_v17 = vld [vmem:[%s16280_s1 + $0x840] sm:$0xff]  ;;  %v8104_v15 = vld [vmem:[%s16280_s1 + $0xa18] sm:$0xff]  ;;  %v8105_v16 = vld [vmem:[%s16280_s1 + $0x830] sm:$0xff] }
 0xd6e   : > { %v4069_v20 = vpop.f32.mrf.mxu1  ;;  %4288 = vmatmul.mubr.f32.vlgmr.msra.gmra.mxu0 %v4218_v9  ;;  %v8103_v9 = vld [vmem:[%s16280_s1 + $0x838] sm:$0xff] }
 0xd6f   : > { %4481 = vmatpush1.msra.mxu0 %v12855_v49  ;;  %4514 = vmatprep.mubr.f32.mxu0 %v8955_v4 }
 0xd70   : > { %v4071_v7 = vpop.f32.mrf.mxu1  ;;  %4521 = vmatprep.subr.mxu0 %v8051_v22  ;;  %v8109_v22 = vld [vmem:[%s16280_s1 + $0x820] sm:$0xff] }
 0xd71   : > { %4138 = vmatprep.mubr.f32.mxu1 %v4071_v7  ;;  %v8108_v7 = vld [vmem:[%s16280_s1 + $0xa08] sm:$0xff] }
 0xd72   : > { %4139 = vmatmul.mubr.f32.vlgmr.msra.gmra.mxu1 %v4069_v20  ;;  %7157 = vmatmul.mubr.msk.f32.vlgmr.msra.gmra.mxu0 %vm359_vm0, %v7156_v5  ;;  %v8106_v20 = vld [vmem:[%s16280_s1 + $0xa10] sm:$0xff]  ;;  %v8107_v5 = vld [vmem:[%s16280_s1 + $0x828] sm:$0xff] }
 0xd73   : > { %4332 = vmatpush1.msra.mxu1 %v12855_v49  ;;  %4522 = vmatpush1.msra.mxu0 %v8052_v23  ;;  %v8110_v23 = vld [vmem:[%s16280_s1 + $0xa00] sm:$0xff] }
 0xd74   : > { %4523 = vmatprep.subr.mxu0 %v8053_v24  ;;  %4365 = vmatprep.mubr.f32.mxu1 %v8955_v4  ;;  %v8112_v24 = vld [vmem:[%s16280_s1 + $0xbf8] sm:$0xff] }
 0xd75   : > { %4524 = vmatpush1.msra.mxu0 %v8054_v25  ;;  %4372 = vmatprep.subr.mxu1 %v8055_v26  ;;  %v8113_v25 = vld [vmem:[%s16280_s1 + $0x810] sm:$0xff] }
 0xd76   : > { %4525 = vmatprep.subr.mxu0 %v8056_v27  ;;  %7155 = vmatmul.mubr.msk.f32.vlgmr.msra.gmra.mxu1 %vm359_vm0, %v7154_v61  ;;  %v8111_v61 = vld [vmem:[%s16280_s1 + $0x818] sm:$0xff]  ;;  %v8114_v26 = vld [vmem:[%s16280_s1 + $0xbf0] sm:$0xff]  ;;  %v8115_v27 = vld [vmem:[%s16280_s1 + $0x808] sm:$0xff] }
 0xd77   : > { %4373 = vmatpush1.msra.mxu1 %v8057_v28  ;;  %4526 = vmatpush1.msra.mxu0 %v8058_v29  ;;  %v8116_v28 = vld [vmem:[%s16280_s1 + $0xbe8] sm:$0xff]  ;;  %v8117_v29 = vld [vmem:[%s16280_s1 + $0x800] sm:$0xff] }
 0xd78   : > { %4374 = vmatprep.subr.mxu1 %v8059_v30  ;;  %4527 = vmatprep.subr.mxu0 %v8060_v31  ;;  %v8118_v30 = vld [vmem:[%s16280_s1 + $0xbe0] sm:$0xff]  ;;  %v8119_v31 = vld [vmem:[%s16280_s1 + $0x9f8] sm:$0xff] }
 0xd79   : > { %4375 = vmatpush1.msra.mxu1 %v8061_v32  ;;  %4528 = vmatpush1.msra.mxu0 %v8062_v33  ;;  %v8120_v32 = vld [vmem:[%s16280_s1 + $0xbd8] sm:$0xff]  ;;  %v8121_v33 = vld [vmem:[%s16280_s1 + $0x9f0] sm:$0xff] }
 0xd7a   : > { %4376 = vmatprep.subr.mxu1 %v8063_v34  ;;  %4529 = vmatprep.subr.mxu0 %v8064_v36  ;;  %v8122_v34 = vld [vmem:[%s16280_s1 + $0xbd0] sm:$0xff]  ;;  %v8123_v36 = vld [vmem:[%s16280_s1 + $0x9e8] sm:$0xff] }
 0xd7b   : > { %4377 = vmatpush1.msra.mxu1 %v8065_v38  ;;  %4530 = vmatpush1.msra.mxu0 %v8066_v10  ;;  %v8124_v38 = vld [vmem:[%s16280_s1 + $0xbc8] sm:$0xff]  ;;  %v8125_v10 = vld [vmem:[%s16280_s1 + $0x9e0] sm:$0xff] }
 0xd7c   : > { %4378 = vmatprep.subr.mxu1 %v8067_v39  ;;  %4531 = vmatprep.subr.mxu0 %v8068_v12  ;;  %v8126_v39 = vld [vmem:[%s16280_s1 + $0xbc0] sm:$0xff]  ;;  %v8127_v12 = vld [vmem:[%s16280_s1 + $0x9d8] sm:$0xff] }
 0xd7d   : > { %4379 = vmatpush1.msra.mxu1 %v8069_v40  ;;  %4532 = vmatpush1.msra.mxu0 %v8070_v41  ;;  %v8128_v40 = vld [vmem:[%s16280_s1 + $0xbb8] sm:$0xff]  ;;  %v8129_v41 = vld [vmem:[%s16280_s1 + $0x9d0] sm:$0xff] }
 0xd7e   : > { %4380 = vmatprep.subr.mxu1 %v8071_v14  ;;  %4533 = vmatprep.subr.mxu0 %v8072_v13  ;;  %v8130_v14 = vld [vmem:[%s16280_s1 + $0xbb0] sm:$0xff]  ;;  %v8131_v13 = vld [vmem:[%s16280_s1 + $0x9c8] sm:$0xff] }
 0xd7f   : > { %4381 = vmatpush1.msra.mxu1 %v8073_v1  ;;  %4534 = vmatpush1.msra.mxu0 %v8074_v42  ;;  %v8132_v1 = vld [vmem:[%s16280_s1 + $0xba8] sm:$0xff]  ;;  %v8133_v42 = vld [vmem:[%s16280_s1 + $0x9c0] sm:$0xff] }
 0xd80   : > { %4382 = vmatprep.subr.mxu1 %v8075_v43  ;;  %4535 = vmatprep.subr.mxu0 %v8076_v44  ;;  %v8134_v43 = vld [vmem:[%s16280_s1 + $0xba0] sm:$0xff]  ;;  %v8135_v44 = vld [vmem:[%s16280_s1 + $0x9b8] sm:$0xff] }
 0xd81   : > { %4383 = vmatpush1.msra.mxu1 %v8077_v45  ;;  %4536 = vmatpush1.msra.mxu0 %v8078_v47  ;;  %v8136_v45 = vld [vmem:[%s16280_s1 + $0xb98] sm:$0xff]  ;;  %v8137_v47 = vld [vmem:[%s16280_s1 + $0x9b0] sm:$0xff] }
 0xd82   : > { %4384 = vmatprep.subr.mxu1 %v8079_v0  ;;  %4537 = vmatprep.subr.mxu0 %v8080_v58  ;;  %v8138_v0 = vld [vmem:[%s16280_s1 + $0xb90] sm:$0xff]  ;;  %v8139_v58 = vld [vmem:[%s16280_s1 + $0x9a8] sm:$0xff] }
 0xd83   : > { %4385 = vmatpush1.msra.mxu1 %v8081_v48  ;;  %4538 = vmatpush1.msra.mxu0 %v8082_v50  ;;  %v8140_v48 = vld [vmem:[%s16280_s1 + $0xb88] sm:$0xff]  ;;  %v8141_v50 = vld [vmem:[%s16280_s1 + $0x9a0] sm:$0xff] }
 0xd84   : > { %4386 = vmatprep.subr.mxu1 %v8083_v52  ;;  %4539 = vmatprep.subr.mxu0 %v8084_v53  ;;  %v8142_v52 = vld [vmem:[%s16280_s1 + $0xb80] sm:$0xff]  ;;  %v8143_v53 = vld [vmem:[%s16280_s1 + $0x998] sm:$0xff] }
 0xd85   : > { %4387 = vmatpush1.msra.mxu1 %v8085_v54  ;;  %4540 = vmatpush1.msra.mxu0 %v8086_v55  ;;  %v8144_v54 = vld [vmem:[%s16280_s1 + $0xb78] sm:$0xff]  ;;  %v8145_v55 = vld [vmem:[%s16280_s1 + $0x990] sm:$0xff] }
 0xd86   : > { %4388 = vmatprep.subr.mxu1 %v8087_v56  ;;  %4541 = vmatprep.subr.mxu0 %v8088_v60  ;;  %v8146_v56 = vld [vmem:[%s16280_s1 + $0xb70] sm:$0xff]  ;;  %v8147_v60 = vld [vmem:[%s16280_s1 + $0x988] sm:$0xff] }
 0xd87   : > { %4389 = vmatpush1.msra.mxu1 %v8089_v19  ;;  %4542 = vmatpush1.msra.mxu0 %v8090_v62  ;;  %v8148_v19 = vld [vmem:[%s16280_s1 + $0xb68] sm:$0xff]  ;;  %v8149_v62 = vld [vmem:[%s16280_s1 + $0x980] sm:$0xff] }
 0xd88   : > { %4390 = vmatprep.subr.mxu1 %v8091_v35  ;;  %4543 = vmatprep.subr.mxu0 %v8092_v37  ;;  %v8150_v35 = vld [vmem:[%s16280_s1 + $0xb60] sm:$0xff]  ;;  %v8151_v37 = vld [vmem:[%s16280_s1 + $0x978] sm:$0xff] }
 0xd89   : > { %4391 = vmatpush1.msra.mxu1 %v8093_v63  ;;  %4544 = vmatpush1.msra.mxu0 %v8094_v2  ;;  %v8152_v63 = vld [vmem:[%s16280_s1 + $0xb58] sm:$0xff]  ;;  %v8153_v2 = vld [vmem:[%s16280_s1 + $0x970] sm:$0xff] }
 0xd8a   : > { %4392 = vmatprep.subr.mxu1 %v8095_v3  ;;  %4545 = vmatprep.subr.mxu0 %v8096_v6  ;;  %v8154_v3 = vld [vmem:[%s16280_s1 + $0xb50] sm:$0xff]  ;;  %v8155_v6 = vld [vmem:[%s16280_s1 + $0x968] sm:$0xff] }
 0xd8b   : > { %4393 = vmatpush1.msra.mxu1 %v8097_v59  ;;  %4546 = vmatpush1.msra.mxu0 %v8098_v21  ;;  %v8156_v59 = vld [vmem:[%s16280_s1 + $0xb48] sm:$0xff]  ;;  %v8157_v21 = vld [vmem:[%s16280_s1 + $0x960] sm:$0xff] }
 0xd8c   : > { %4394 = vmatprep.subr.mxu1 %v8099_v46  ;;  %4547 = vmatprep.subr.mxu0 %v8100_v8  ;;  %v8158_v46 = vld [vmem:[%s16280_s1 + $0xb40] sm:$0xff]  ;;  %v8159_v8 = vld [vmem:[%s16280_s1 + $0x958] sm:$0xff] }
 0xd8d   : > { %4395 = vmatpush1.msra.mxu1 %v8101_v17  ;;  %4548 = vmatpush1.msra.mxu0 %v8102_v57  ;;  %v8160_v17 = vld [vmem:[%s16280_s1 + $0xb38] sm:$0xff]  ;;  %v8161_v57 = vld [vmem:[%s16280_s1 + $0x950] sm:$0xff] }
 0xd8e   : > { %4396 = vmatprep.subr.mxu1 %v8103_v9  ;;  %4549 = vmatprep.subr.mxu0 %v8104_v15  ;;  %v8162_v9 = vld [vmem:[%s16280_s1 + $0xb30] sm:$0xff]  ;;  %v8163_v15 = vld [vmem:[%s16280_s1 + $0x948] sm:$0xff] }
 0xd8f   : > { %4397 = vmatpush1.msra.mxu1 %v8105_v16  ;;  %4550 = vmatpush1.msra.mxu0 %v8106_v20  ;;  %v8164_v16 = vld [vmem:[%s16280_s1 + $0xb28] sm:$0xff]  ;;  %v8165_v20 = vld [vmem:[%s16280_s1 + $0x940] sm:$0xff] }
 0xd90   : > { %4398 = vmatprep.subr.mxu1 %v8107_v5  ;;  %4551 = vmatprep.subr.mxu0 %v8108_v7  ;;  %v8166_v5 = vld [vmem:[%s16280_s1 + $0xb20] sm:$0xff]  ;;  %v8167_v7 = vld [vmem:[%s16280_s1 + $0x938] sm:$0xff] }
 0xd91   : > { %4399 = vmatpush1.msra.mxu1 %v8109_v22  ;;  %4552 = vmatpush1.msra.mxu0 %v8110_v23  ;;  %v8168_v22 = vld [vmem:[%s16280_s1 + $0xb18] sm:$0xff]  ;;  %v8169_v23 = vld [vmem:[%s16280_s1 + $0x930] sm:$0xff] }
 0xd92   : > { %4400 = vmatprep.subr.mxu1 %v8111_v61  ;;  %4553 = vmatprep.subr.mxu0 %v8112_v24  ;;  %v8170_v61 = vld [vmem:[%s16280_s1 + $0xb10] sm:$0xff]  ;;  %v8171_v24 = vld [vmem:[%s16280_s1 + $0x928] sm:$0xff] }
 0xd93   : > { %4401 = vmatpush1.msra.mxu1 %v8113_v25  ;;  %4554 = vmatpush2.msra.mxu0 %v8114_v26  ;;  %v8172_v25 = vld [vmem:[%s16280_s1 + $0xb08] sm:$0xff]  ;;  %v8173_v26 = vld [vmem:[%s16280_s1 + $0x920] sm:$0xff] }
 0xd94   : > { %4402 = vmatprep.subr.mxu1 %v8115_v27  ;;  %4555 = vmatprep.subr.mxu0 %v8116_v28  ;;  %v8174_v27 = vld [vmem:[%s16280_s1 + $0xb00] sm:$0xff]  ;;  %v8175_v28 = vld [vmem:[%s16280_s1 + $0x918] sm:$0xff] }
 0xd95   : > { %4403 = vmatpush1.msra.mxu1 %v8117_v29  ;;  %4556 = vmatpush2.msra.mxu0 %v8118_v30  ;;  %v8176_v29 = vld [vmem:[%s16280_s1 + $0x910] sm:$0xff]  ;;  %v8177_v30 = vld [vmem:[%s16280_s1 + $0x908] sm:$0xff] }
 0xd96   : > { %4404 = vmatprep.subr.mxu1 %v8119_v31  ;;  %4557 = vmatprep.subr.mxu0 %v8120_v32  ;;  %v8178_v31 = vld [vmem:[%s16280_s1 + $0x900] sm:$0xff] }
 0xd97   : > { %4405 = vmatpush2.msra.mxu1 %v8121_v33  ;;  %4558 = vmatpush2.msra.mxu0 %v8122_v34 }
 0xd98   : > { %4406 = vmatprep.subr.mxu1 %v8123_v36  ;;  %4559 = vmatprep.subr.mxu0 %v8124_v38 }
 0xd99   : > { %4407 = vmatpush2.msra.mxu1 %v8125_v10  ;;  %4560 = vmatpush2.msra.mxu0 %v8126_v39 }
 0xd9a   : > { %4408 = vmatprep.subr.mxu1 %v8127_v12  ;;  %4561 = vmatprep.subr.mxu0 %v8128_v40 }
 0xd9b   : > { %4409 = vmatpush2.msra.mxu1 %v8129_v41  ;;  %4562 = vmatpush2.msra.mxu0 %v8130_v14  ;;  %v7160_v14 = vld [vmem:[%s9033_s14 + $0xc8] sm:$0xff] }
 0xd9c   : > { %4410 = vmatprep.subr.mxu1 %v8131_v13  ;;  %4563 = vmatprep.subr.mxu0 %v8132_v1 }
 0xd9d   : > { %4411 = vmatpush2.msra.mxu1 %v8133_v42  ;;  %4564 = vmatpush2.msra.mxu0 %v8134_v43  ;;  %v8180_v42 = vld [vmem:[%s16280_s1 + $0xcf8] sm:$0xff]  ;;  %v8181_v43 = vld [vmem:[%s16280_s1 + $0xef0] sm:$0xff] }
 0xd9e   : > { %4412 = vmatprep.subr.mxu1 %v8135_v44  ;;  %4565 = vmatprep.subr.mxu0 %v8136_v45  ;;  %v8182_v44 = vld [vmem:[%s16280_s1 + $0xee8] sm:$0xff]  ;;  %v8183_v45 = vld [vmem:[%s16280_s1 + $0xee0] sm:$0xff] }
 0xd9f   : > { %4413 = vmatpush2.msra.mxu1 %v8137_v47  ;;  %4566 = vmatpush2.msra.mxu0 %v8138_v0  ;;  %v8184_v47 = vld [vmem:[%s16280_s1 + $0xcf0] sm:$0xff]  ;;  %v8185_v0 = vld [vmem:[%s16280_s1 + $0xed8] sm:$0xff] }
 0xda0   : > { %4414 = vmatprep.subr.mxu1 %v8139_v58  ;;  %4567 = vmatprep.subr.mxu0 %v8140_v48  ;;  %v8186_v58 = vld [vmem:[%s16280_s1 + $0xce8] sm:$0xff]  ;;  %v8187_v48 = vld [vmem:[%s16280_s1 + $0xed0] sm:$0xff] }
 0xda1   : > { %4415 = vmatpush2.msra.mxu1 %v8141_v50  ;;  %4568 = vmatpush2.msra.mxu0 %v8142_v52  ;;  %v8188_v50 = vld [vmem:[%s16280_s1 + $0xce0] sm:$0xff]  ;;  %v8189_v52 = vld [vmem:[%s16280_s1 + $0xec8] sm:$0xff] }
 0xda2   : > { %4416 = vmatprep.subr.mxu1 %v8143_v53  ;;  %4569 = vmatprep.subr.mxu0 %v8144_v54  ;;  %v8190_v53 = vld [vmem:[%s16280_s1 + $0xcd8] sm:$0xff]  ;;  %v8191_v54 = vld [vmem:[%s16280_s1 + $0xec0] sm:$0xff] }
 0xda3   : > { %4417 = vmatpush2.msra.mxu1 %v8145_v55  ;;  %4570 = vmatpush2.msra.mxu0 %v8146_v56  ;;  %v8192_v55 = vld [vmem:[%s16280_s1 + $0xcd0] sm:$0xff]  ;;  %v8193_v56 = vld [vmem:[%s16280_s1 + $0xeb8] sm:$0xff] }
 0xda4   : > { %4418 = vmatprep.subr.mxu1 %v8147_v60  ;;  %4571 = vmatprep.subr.mxu0 %v8148_v19  ;;  %v8194_v60 = vld [vmem:[%s16280_s1 + $0xcc8] sm:$0xff]  ;;  %v8195_v19 = vld [vmem:[%s16280_s1 + $0xeb0] sm:$0xff] }
 0xda5   : > { %4419 = vmatpush2.msra.mxu1 %v8149_v62  ;;  %4572 = vmatpush2.msra.mxu0 %v8150_v35  ;;  %v8196_v62 = vld [vmem:[%s16280_s1 + $0xcc0] sm:$0xff]  ;;  %v8197_v35 = vld [vmem:[%s16280_s1 + $0xea8] sm:$0xff] }
 0xda6   : > { %4420 = vmatprep.subr.mxu1 %v8151_v37  ;;  %4573 = vmatprep.subr.mxu0 %v8152_v63  ;;  %v8198_v37 = vld [vmem:[%s16280_s1 + $0xcb8] sm:$0xff]  ;;  %v8199_v63 = vld [vmem:[%s16280_s1 + $0xea0] sm:$0xff] }
 0xda7   : > { %4421 = vmatpush2.msra.mxu1 %v8153_v2  ;;  %4574 = vmatpush2.msra.mxu0 %v8154_v3  ;;  %v8200_v2 = vld [vmem:[%s16280_s1 + $0xcb0] sm:$0xff]  ;;  %v8201_v3 = vld [vmem:[%s16280_s1 + $0xe98] sm:$0xff] }
 0xda8   : > { %4422 = vmatprep.subr.mxu1 %v8155_v6  ;;  %4575 = vmatprep.subr.mxu0 %v8156_v59  ;;  %v8202_v6 = vld [vmem:[%s16280_s1 + $0xca8] sm:$0xff]  ;;  %v8203_v59 = vld [vmem:[%s16280_s1 + $0xe90] sm:$0xff] }
 0xda9   : > { %4423 = vmatpush2.msra.mxu1 %v8157_v21  ;;  %4576 = vmatpush2.msra.mxu0 %v8158_v46  ;;  %v8204_v21 = vld [vmem:[%s16280_s1 + $0xca0] sm:$0xff]  ;;  %v8205_v46 = vld [vmem:[%s16280_s1 + $0xe88] sm:$0xff] }
 0xdaa   : > { %4424 = vmatprep.subr.mxu1 %v8159_v8  ;;  %4577 = vmatprep.subr.mxu0 %v8160_v17  ;;  %v8206_v8 = vld [vmem:[%s16280_s1 + $0xc98] sm:$0xff]  ;;  %v8207_v17 = vld [vmem:[%s16280_s1 + $0xe80] sm:$0xff] }
 0xdab   : > { %4425 = vmatpush2.msra.mxu1 %v8161_v57  ;;  %4578 = vmatpush2.msra.mxu0 %v8162_v9  ;;  %v8208_v57 = vld [vmem:[%s16280_s1 + $0xc90] sm:$0xff]  ;;  %v8209_v9 = vld [vmem:[%s16280_s1 + $0xe78] sm:$0xff] }
 0xdac   : > { %4426 = vmatprep.subr.mxu1 %v8163_v15  ;;  %4579 = vmatprep.subr.mxu0 %v8164_v16  ;;  %v8210_v15 = vld [vmem:[%s16280_s1 + $0xc88] sm:$0xff]  ;;  %v8211_v16 = vld [vmem:[%s16280_s1 + $0xe70] sm:$0xff] }
 0xdad   : > { %4427 = vmatpush2.msra.mxu1 %v8165_v20  ;;  %4580 = vmatpush2.msra.mxu0 %v8166_v5  ;;  %v8212_v20 = vld [vmem:[%s16280_s1 + $0xc80] sm:$0xff]  ;;  %v8213_v5 = vld [vmem:[%s16280_s1 + $0xe68] sm:$0xff] }
 0xdae   : > { %4428 = vmatprep.subr.mxu1 %v8167_v7  ;;  %4581 = vmatprep.subr.mxu0 %v8168_v22  ;;  %v8214_v7 = vld [vmem:[%s16280_s1 + $0xc78] sm:$0xff]  ;;  %v8215_v22 = vld [vmem:[%s16280_s1 + $0xe60] sm:$0xff] }
 0xdaf   : > { %4429 = vmatpush2.msra.mxu1 %v8169_v23  ;;  %4582 = vmatpush2.msra.mxu0 %v8170_v61  ;;  %v8216_v23 = vld [vmem:[%s16280_s1 + $0xc70] sm:$0xff]  ;;  %v8217_v61 = vld [vmem:[%s16280_s1 + $0xe58] sm:$0xff] }
 0xdb0   : > { %4430 = vmatprep.subr.mxu1 %v8171_v24  ;;  %4583 = vmatprep.subr.mxu0 %v8172_v25  ;;  %v8218_v24 = vld [vmem:[%s16280_s1 + $0xc68] sm:$0xff]  ;;  %v8219_v25 = vld [vmem:[%s16280_s1 + $0xe50] sm:$0xff] }
 0xdb1   : > { %4431 = vmatpush2.msra.mxu1 %v8173_v26  ;;  %4584 = vmatpush2.msra.mxu0 %v8174_v27  ;;  %v8220_v26 = vld [vmem:[%s16280_s1 + $0xc60] sm:$0xff]  ;;  %v8221_v27 = vld [vmem:[%s16280_s1 + $0xe48] sm:$0xff] }
 0xdb2   : > { %4432 = vmatprep.subr.mxu1 %v8175_v28  ;;  %4778 = vmatprep.subr.mxu0 %v12860_v51  ;;  %v8222_v28 = vld [vmem:[%s16280_s1 + $0xc58] sm:$0xff] }
 0xdb3   : > { %4433 = vmatpush2.msra.mxu1 %v8176_v29  ;;  %v8223_v29 = vld [vmem:[%s16280_s1 + $0xe40] sm:$0xff] }
 0xdb4   : > { %4434 = vmatprep.subr.mxu1 %v8177_v30  ;;  %v8224_v30 = vld [vmem:[%s16280_s1 + $0xc50] sm:$0xff] }
 0xdb5   : > { %4435 = vmatpush2.msra.mxu1 %v8178_v31  ;;  %v8225_v31 = vld [vmem:[%s16280_s1 + $0xe38] sm:$0xff] }
 0xdb6   : > { %4629 = vmatprep.subr.mxu1 %v12860_v51 }
 0xe2e   : > { %v4289_v32 = vpop.f32.mrf.mxu0 }
 0xe30   : > { %v4291_v33 = vpop.f32.mrf.mxu0 }
 0xe32   : > { %v4140_v34 = vpop.f32.mrf.mxu1  ;;  %v4516_v36 = vpop.f32.mrf.mxu0 }
 0xe33   : > { %v4145_v38 = vadd.f32 %v4140_v34, %v13459_v11  ;;  %v8179_v11 = vld [vmem:[%s16280_s1 + $0xef8] sm:$0xff]  ;;  %v8228_v34 = vld [vmem:[%s16280_s1 + $0xc40] sm:$0xff] }
 0xe34   : > { %v4142_v10 = vpop.f32.mrf.mxu1  ;;  %v4518_v39 = vpop.f32.mrf.mxu0 }
 0xe35   : > { %v4146_v12 = vadd.f32 %v4142_v10, %v13461_v18  ;;  %4585 = vmatprep.mubr.f32.mxu0 %v4518_v39  ;;  %v13859_v40 = vadd.f32 %v4289_v32, %v4145_v38  ;;  %v7158_v18 = vld [vmem:[%s9033_s14 + $0xc0] sm:$0xff]  ;;  %v8226_v32 = vld [vmem:[%s16280_s1 + $0xc48] sm:$0xff]  ;;  %v8230_v38 = vld [vmem:[%s16280_s1 + $0xc38] sm:$0xff] }
 0xe36   : > { %v4367_v41 = vpop.f32.mrf.mxu1  ;;  %4586 = vmatmul.mubr.f32.vlgmr.msra.gmra.mxu0 %v4516_v36  ;;  %v8229_v36 = vld [vmem:[%s16280_s1 + $0xe28] sm:$0xff]  ;;  %v8231_v10 = vld [vmem:[%s16280_s1 + $0xe20] sm:$0xff]  ;;  %v8232_v39 = vld [vmem:[%s16280_s1 + $0xc30] sm:$0xff] }
 0xe37   : > { %4779 = vmatpush1.msra.mxu0 %v12855_v49  ;;  %4812 = vmatprep.mubr.f32.mxu0 %v8955_v4  ;;  %v13864_v13 = vadd.f32 %v4291_v33, %v4146_v12  ;;  %v8227_v33 = vld [vmem:[%s16280_s1 + $0xe30] sm:$0xff]  ;;  %v8233_v12 = vld [vmem:[%s16280_s1 + $0xe18] sm:$0xff] }
 0xe38   : > { %v4369_v1 = vpop.f32.mrf.mxu1  ;;  %4819 = vmatprep.subr.mxu0 %v8179_v11  ;;  %v8237_v11 = vld [vmem:[%s16280_s1 + $0xe08] sm:$0xff] }
 0xe39   : > { %4436 = vmatprep.mubr.f32.mxu1 %v4369_v1  ;;  %v8236_v1 = vld [vmem:[%s16280_s1 + $0xc20] sm:$0xff] }
 0xe3a   : > { %4437 = vmatmul.mubr.f32.vlgmr.msra.gmra.mxu1 %v4367_v41  ;;  %7161 = vmatmul.mubr.msk.f32.vlgmr.msra.gmra.mxu0 %vm359_vm0, %v7160_v14  ;;  %v8234_v41 = vld [vmem:[%s16280_s1 + $0xc28] sm:$0xff]  ;;  %v8235_v14 = vld [vmem:[%s16280_s1 + $0xe10] sm:$0xff] }
 0xe3b   : > { %4630 = vmatpush1.msra.mxu1 %v12855_v49  ;;  %4663 = vmatprep.mubr.f32.mxu1 %v8955_v4 }
 0xe3c   : > { %4670 = vmatprep.subr.mxu1 %v8180_v42  ;;  %4820 = vmatpush1.msra.mxu0 %v8181_v43  ;;  %v8239_v42 = vld [vmem:[%s16280_s1 + $0xe00] sm:$0xff]  ;;  %v8240_v43 = vld [vmem:[%s16280_s1 + $0xc10] sm:$0xff] }
 0xe3d   : > { %4821 = vmatprep.subr.mxu0 %v8182_v44  ;;  %v8241_v44 = vld [vmem:[%s16280_s1 + $0xff8] sm:$0xff] }
 0xe3e   : > { %7159 = vmatmul.mubr.msk.f32.vlgmr.msra.gmra.mxu1 %vm359_vm0, %v7158_v18  ;;  %4822 = vmatpush1.msra.mxu0 %v8183_v45  ;;  %v8238_v18 = vld [vmem:[%s16280_s1 + $0xc18] sm:$0xff]  ;;  %v8242_v45 = vld [vmem:[%s16280_s1 + $0xc08] sm:$0xff] }
 0xe3f   : > { %4671 = vmatpush1.msra.mxu1 %v8184_v47  ;;  %4823 = vmatprep.subr.mxu0 %v8185_v0  ;;  %v8243_v47 = vld [vmem:[%s16280_s1 + $0xff0] sm:$0xff]  ;;  %v8244_v0 = vld [vmem:[%s16280_s1 + $0xc00] sm:$0xff] }
 0xe40   : > { %4672 = vmatprep.subr.mxu1 %v8186_v58  ;;  %4824 = vmatpush1.msra.mxu0 %v8187_v48  ;;  %v8245_v58 = vld [vmem:[%s16280_s1 + $0xfe8] sm:$0xff]  ;;  %v8246_v48 = vld [vmem:[%s16280_s1 + $0xdf8] sm:$0xff] }
 0xe41   : > { %4673 = vmatpush1.msra.mxu1 %v8188_v50  ;;  %4825 = vmatprep.subr.mxu0 %v8189_v52  ;;  %v8247_v50 = vld [vmem:[%s16280_s1 + $0xfe0] sm:$0xff]  ;;  %v8248_v52 = vld [vmem:[%s16280_s1 + $0xdf0] sm:$0xff] }
 0xe42   : > { %4674 = vmatprep.subr.mxu1 %v8190_v53  ;;  %4826 = vmatpush1.msra.mxu0 %v8191_v54  ;;  %v8249_v53 = vld [vmem:[%s16280_s1 + $0xfd8] sm:$0xff]  ;;  %v8250_v54 = vld [vmem:[%s16280_s1 + $0xde8] sm:$0xff] }
 0xe43   : > { %4675 = vmatpush1.msra.mxu1 %v8192_v55  ;;  %4827 = vmatprep.subr.mxu0 %v8193_v56  ;;  %v8251_v55 = vld [vmem:[%s16280_s1 + $0xfd0] sm:$0xff]  ;;  %v8252_v56 = vld [vmem:[%s16280_s1 + $0xde0] sm:$0xff] }
 0xe44   : > { %4676 = vmatprep.subr.mxu1 %v8194_v60  ;;  %4828 = vmatpush1.msra.mxu0 %v8195_v19  ;;  %v8253_v60 = vld [vmem:[%s16280_s1 + $0xfc8] sm:$0xff]  ;;  %v8254_v19 = vld [vmem:[%s16280_s1 + $0xdd8] sm:$0xff] }
 0xe45   : > { %4677 = vmatpush1.msra.mxu1 %v8196_v62  ;;  %4829 = vmatprep.subr.mxu0 %v8197_v35  ;;  %v8255_v62 = vld [vmem:[%s16280_s1 + $0xfc0] sm:$0xff]  ;;  %v8256_v35 = vld [vmem:[%s16280_s1 + $0xdd0] sm:$0xff] }
 0xe46   : > { %4678 = vmatprep.subr.mxu1 %v8198_v37  ;;  %4830 = vmatpush1.msra.mxu0 %v8199_v63  ;;  %v8257_v37 = vld [vmem:[%s16280_s1 + $0xfb8] sm:$0xff]  ;;  %v8258_v63 = vld [vmem:[%s16280_s1 + $0xdc8] sm:$0xff] }
 0xe47   : > { %4679 = vmatpush1.msra.mxu1 %v8200_v2  ;;  %4831 = vmatprep.subr.mxu0 %v8201_v3  ;;  %v8259_v2 = vld [vmem:[%s16280_s1 + $0xfb0] sm:$0xff]  ;;  %v8260_v3 = vld [vmem:[%s16280_s1 + $0xdc0] sm:$0xff] }
 0xe48   : > { %4680 = vmatprep.subr.mxu1 %v8202_v6  ;;  %4832 = vmatpush1.msra.mxu0 %v8203_v59  ;;  %v8261_v6 = vld [vmem:[%s16280_s1 + $0xfa8] sm:$0xff]  ;;  %v8262_v59 = vld [vmem:[%s16280_s1 + $0xdb8] sm:$0xff] }
 0xe49   : > { %4681 = vmatpush1.msra.mxu1 %v8204_v21  ;;  %4833 = vmatprep.subr.mxu0 %v8205_v46  ;;  %v8263_v21 = vld [vmem:[%s16280_s1 + $0xfa0] sm:$0xff]  ;;  %v8264_v46 = vld [vmem:[%s16280_s1 + $0xdb0] sm:$0xff] }
 0xe4a   : > { %4682 = vmatprep.subr.mxu1 %v8206_v8  ;;  %4834 = vmatpush1.msra.mxu0 %v8207_v17  ;;  %v8265_v8 = vld [vmem:[%s16280_s1 + $0xf98] sm:$0xff]  ;;  %v8266_v17 = vld [vmem:[%s16280_s1 + $0xda8] sm:$0xff] }
 0xe4b   : > { %4683 = vmatpush1.msra.mxu1 %v8208_v57  ;;  %4835 = vmatprep.subr.mxu0 %v8209_v9  ;;  %v8267_v57 = vld [vmem:[%s16280_s1 + $0xf90] sm:$0xff]  ;;  %v8268_v9 = vld [vmem:[%s16280_s1 + $0xda0] sm:$0xff] }
 0xe4c   : > { %4684 = vmatprep.subr.mxu1 %v8210_v15  ;;  %4836 = vmatpush1.msra.mxu0 %v8211_v16  ;;  %v8269_v15 = vld [vmem:[%s16280_s1 + $0xf88] sm:$0xff]  ;;  %v8270_v16 = vld [vmem:[%s16280_s1 + $0xd98] sm:$0xff] }
 0xe4d   : > { %4685 = vmatpush1.msra.mxu1 %v8212_v20  ;;  %4837 = vmatprep.subr.mxu0 %v8213_v5  ;;  %v8271_v20 = vld [vmem:[%s16280_s1 + $0xf80] sm:$0xff]  ;;  %v8272_v5 = vld [vmem:[%s16280_s1 + $0xd90] sm:$0xff] }
 0xe4e   : > { %4686 = vmatprep.subr.mxu1 %v8214_v7  ;;  %4838 = vmatpush1.msra.mxu0 %v8215_v22  ;;  %v8273_v7 = vld [vmem:[%s16280_s1 + $0xf78] sm:$0xff]  ;;  %v8274_v22 = vld [vmem:[%s16280_s1 + $0xd88] sm:$0xff] }
 0xe4f   : > { %4687 = vmatpush1.msra.mxu1 %v8216_v23  ;;  %4839 = vmatprep.subr.mxu0 %v8217_v61  ;;  %v8275_v23 = vld [vmem:[%s16280_s1 + $0xf70] sm:$0xff]  ;;  %v8276_v61 = vld [vmem:[%s16280_s1 + $0xd80] sm:$0xff] }
 0xe50   : > { %4688 = vmatprep.subr.mxu1 %v8218_v24  ;;  %4840 = vmatpush1.msra.mxu0 %v8219_v25  ;;  %v8277_v24 = vld [vmem:[%s16280_s1 + $0xf68] sm:$0xff]  ;;  %v8278_v25 = vld [vmem:[%s16280_s1 + $0xd78] sm:$0xff] }
 0xe51   : > { %4689 = vmatpush1.msra.mxu1 %v8220_v26  ;;  %4841 = vmatprep.subr.mxu0 %v8221_v27  ;;  %v8279_v26 = vld [vmem:[%s16280_s1 + $0xf60] sm:$0xff]  ;;  %v8280_v27 = vld [vmem:[%s16280_s1 + $0xd70] sm:$0xff] }
 0xe52   : > { %4690 = vmatprep.subr.mxu1 %v8222_v28  ;;  %4842 = vmatpush1.msra.mxu0 %v8223_v29  ;;  %v8281_v28 = vld [vmem:[%s16280_s1 + $0xf58] sm:$0xff]  ;;  %v8282_v29 = vld [vmem:[%s16280_s1 + $0xd68] sm:$0xff] }
 0xe53   : > { %4691 = vmatpush1.msra.mxu1 %v8224_v30  ;;  %4843 = vmatprep.subr.mxu0 %v8225_v31  ;;  %v8283_v30 = vld [vmem:[%s16280_s1 + $0xf50] sm:$0xff]  ;;  %v8284_v31 = vld [vmem:[%s16280_s1 + $0xd60] sm:$0xff] }
 0xe54   : > { %4692 = vmatprep.subr.mxu1 %v8226_v32  ;;  %4844 = vmatpush1.msra.mxu0 %v8227_v33  ;;  %v8285_v32 = vld [vmem:[%s16280_s1 + $0xf48] sm:$0xff]  ;;  %v8286_v33 = vld [vmem:[%s16280_s1 + $0xd58] sm:$0xff] }
 0xe55   : > { %4693 = vmatpush1.msra.mxu1 %v8228_v34  ;;  %4845 = vmatprep.subr.mxu0 %v8229_v36  ;;  %v8287_v34 = vld [vmem:[%s16280_s1 + $0xf40] sm:$0xff]  ;;  %v8288_v36 = vld [vmem:[%s16280_s1 + $0xd50] sm:$0xff] }
 0xe56   : > { %4694 = vmatprep.subr.mxu1 %v8230_v38  ;;  %4846 = vmatpush1.msra.mxu0 %v8231_v10  ;;  %v8289_v38 = vld [vmem:[%s16280_s1 + $0xf38] sm:$0xff]  ;;  %v8290_v10 = vld [vmem:[%s16280_s1 + $0xd48] sm:$0xff] }
 0xe57   : > { %4695 = vmatpush1.msra.mxu1 %v8232_v39  ;;  %4847 = vmatprep.subr.mxu0 %v8233_v12  ;;  %v8291_v39 = vld [vmem:[%s16280_s1 + $0xf30] sm:$0xff]  ;;  %v8292_v12 = vld [vmem:[%s16280_s1 + $0xd40] sm:$0xff] }
 0xe58   : > { %4696 = vmatprep.subr.mxu1 %v8234_v41  ;;  %4848 = vmatpush1.msra.mxu0 %v8235_v14  ;;  %v8293_v41 = vld [vmem:[%s16280_s1 + $0xf28] sm:$0xff]  ;;  %v8294_v14 = vld [vmem:[%s16280_s1 + $0xd38] sm:$0xff] }
 0xe59   : > { %4697 = vmatpush1.msra.mxu1 %v8236_v1  ;;  %4849 = vmatprep.subr.mxu0 %v8237_v11  ;;  %v8295_v1 = vld [vmem:[%s16280_s1 + $0xf20] sm:$0xff]  ;;  %v8296_v11 = vld [vmem:[%s16280_s1 + $0xd30] sm:$0xff] }
 0xe5a   : > { %4698 = vmatprep.subr.mxu1 %v8238_v18  ;;  %4850 = vmatpush1.msra.mxu0 %v8239_v42  ;;  %v8297_v18 = vld [vmem:[%s16280_s1 + $0xf18] sm:$0xff]  ;;  %v8298_v42 = vld [vmem:[%s16280_s1 + $0xd28] sm:$0xff] }
 0xe5b   : > { %4699 = vmatpush1.msra.mxu1 %v8240_v43  ;;  %4851 = vmatprep.subr.mxu0 %v8241_v44  ;;  %v8299_v43 = vld [vmem:[%s16280_s1 + $0xf10] sm:$0xff]  ;;  %v8300_v44 = vld [vmem:[%s16280_s1 + $0xd20] sm:$0xff] }
 0xe5c   : > { %4700 = vmatprep.subr.mxu1 %v8242_v45  ;;  %4852 = vmatpush2.msra.mxu0 %v8243_v47  ;;  %v8301_v45 = vld [vmem:[%s16280_s1 + $0xf08] sm:$0xff]  ;;  %v8302_v47 = vld [vmem:[%s16280_s1 + $0xd18] sm:$0xff] }
 0xe5d   : > { %4701 = vmatpush1.msra.mxu1 %v8244_v0  ;;  %4853 = vmatprep.subr.mxu0 %v8245_v58  ;;  %v8303_v0 = vld [vmem:[%s16280_s1 + $0xf00] sm:$0xff]  ;;  %v8304_v58 = vld [vmem:[%s16280_s1 + $0xd10] sm:$0xff] }
 0xe5e   : > { %4702 = vmatprep.subr.mxu1 %v8246_v48  ;;  %4854 = vmatpush2.msra.mxu0 %v8247_v50  ;;  %v8305_v48 = vld [vmem:[%s16280_s1 + $0xd08] sm:$0xff]  ;;  %v8306_v50 = vld [vmem:[%s16280_s1 + $0xd00] sm:$0xff] }
 0xe5f   : > { %4703 = vmatpush2.msra.mxu1 %v8248_v52  ;;  %4855 = vmatprep.subr.mxu0 %v8249_v53 }
 0xe60   : > { %4704 = vmatprep.subr.mxu1 %v8250_v54  ;;  %4856 = vmatpush2.msra.mxu0 %v8251_v55 }
 0xe61   : > { %4705 = vmatpush2.msra.mxu1 %v8252_v56  ;;  %4857 = vmatprep.subr.mxu0 %v8253_v60 }
 0xe62   : > { %4706 = vmatprep.subr.mxu1 %v8254_v19  ;;  %4858 = vmatpush2.msra.mxu0 %v8255_v62 }
 0xe63   : > { %4707 = vmatpush2.msra.mxu1 %v8256_v35  ;;  %4859 = vmatprep.subr.mxu0 %v8257_v37 }
 0xe64   : > { %4708 = vmatprep.subr.mxu1 %v8258_v63  ;;  %4860 = vmatpush2.msra.mxu0 %v8259_v2 }
 0xe65   : > { %4709 = vmatpush2.msra.mxu1 %v8260_v3  ;;  %4861 = vmatprep.subr.mxu0 %v8261_v6  ;;  %v8308_v3 = vld [vmem:[%s16280_s1 + $0x10f0] sm:$0xff]  ;;  %v8309_v6 = vld [vmem:[%s16280_s1 + $0x10e8] sm:$0xff] }
 0xe66   : > { %4710 = vmatprep.subr.mxu1 %v8262_v59  ;;  %4862 = vmatpush2.msra.mxu0 %v8263_v21  ;;  %v8310_v59 = vld [vmem:[%s16280_s1 + $0x10e0] sm:$0xff]  ;;  %v8311_v21 = vld [vmem:[%s16280_s1 + $0x10d8] sm:$0xff] }
 0xe67   : > { %4711 = vmatpush2.msra.mxu1 %v8264_v46  ;;  %4863 = vmatprep.subr.mxu0 %v8265_v8  ;;  %v8312_v46 = vld [vmem:[%s16280_s1 + $0x10d0] sm:$0xff]  ;;  %v8313_v8 = vld [vmem:[%s16280_s1 + $0x10c8] sm:$0xff] }
 0xe68   : > { %4712 = vmatprep.subr.mxu1 %v8266_v17  ;;  %4864 = vmatpush2.msra.mxu0 %v8267_v57  ;;  %v8314_v17 = vld [vmem:[%s16280_s1 + $0x10c0] sm:$0xff]  ;;  %v8315_v57 = vld [vmem:[%s16280_s1 + $0x10b8] sm:$0xff] }
 0xe69   : > { %4713 = vmatpush2.msra.mxu1 %v8268_v9  ;;  %4865 = vmatprep.subr.mxu0 %v8269_v15  ;;  %v8316_v9 = vld [vmem:[%s16280_s1 + $0x10b0] sm:$0xff]  ;;  %v8317_v15 = vld [vmem:[%s16280_s1 + $0x10a8] sm:$0xff] }
 0xe6a   : > { %4714 = vmatprep.subr.mxu1 %v8270_v16  ;;  %4866 = vmatpush2.msra.mxu0 %v8271_v20  ;;  %v8318_v16 = vld [vmem:[%s16280_s1 + $0x10a0] sm:$0xff]  ;;  %v8319_v20 = vld [vmem:[%s16280_s1 + $0x1098] sm:$0xff] }
 0xe6b   : > { %4715 = vmatpush2.msra.mxu1 %v8272_v5  ;;  %4867 = vmatprep.subr.mxu0 %v8273_v7  ;;  %v8320_v5 = vld [vmem:[%s16280_s1 + $0x1090] sm:$0xff]  ;;  %v8321_v7 = vld [vmem:[%s16280_s1 + $0x1088] sm:$0xff] }
 0xe6c   : > { %4716 = vmatprep.subr.mxu1 %v8274_v22  ;;  %4868 = vmatpush2.msra.mxu0 %v8275_v23  ;;  %v8322_v22 = vld [vmem:[%s16280_s1 + $0x1080] sm:$0xff]  ;;  %v8323_v23 = vld [vmem:[%s16280_s1 + $0x1078] sm:$0xff] }
 0xe6d   : > { %4717 = vmatpush2.msra.mxu1 %v8276_v61  ;;  %4869 = vmatprep.subr.mxu0 %v8277_v24  ;;  %v8324_v61 = vld [vmem:[%s16280_s1 + $0x1070] sm:$0xff]  ;;  %v8325_v24 = vld [vmem:[%s16280_s1 + $0x1068] sm:$0xff] }
 0xe6e   : > { %4718 = vmatprep.subr.mxu1 %v8278_v25  ;;  %4870 = vmatpush2.msra.mxu0 %v8279_v26  ;;  %v8326_v25 = vld [vmem:[%s16280_s1 + $0x1060] sm:$0xff]  ;;  %v8327_v26 = vld [vmem:[%s16280_s1 + $0x1058] sm:$0xff] }
 0xe6f   : > { %4719 = vmatpush2.msra.mxu1 %v8280_v27  ;;  %4871 = vmatprep.subr.mxu0 %v8281_v28  ;;  %v8328_v27 = vld [vmem:[%s16280_s1 + $0x1050] sm:$0xff]  ;;  %v8329_v28 = vld [vmem:[%s16280_s1 + $0x1048] sm:$0xff] }
 0xe70   : > { %4720 = vmatprep.subr.mxu1 %v8282_v29  ;;  %4872 = vmatpush2.msra.mxu0 %v8283_v30  ;;  %v8330_v29 = vld [vmem:[%s16280_s1 + $0x1040] sm:$0xff]  ;;  %v8331_v30 = vld [vmem:[%s16280_s1 + $0x1038] sm:$0xff] }
 0xe71   : > { %4721 = vmatpush2.msra.mxu1 %v8284_v31  ;;  %4873 = vmatprep.subr.mxu0 %v8285_v32  ;;  %v8332_v31 = vld [vmem:[%s16280_s1 + $0x1030] sm:$0xff]  ;;  %v8333_v32 = vld [vmem:[%s16280_s1 + $0x1028] sm:$0xff] }
 0xe72   : > { %4722 = vmatprep.subr.mxu1 %v8286_v33  ;;  %4874 = vmatpush2.msra.mxu0 %v8287_v34  ;;  %v8334_v33 = vld [vmem:[%s16280_s1 + $0x1020] sm:$0xff]  ;;  %v8335_v34 = vld [vmem:[%s16280_s1 + $0x1018] sm:$0xff] }
 0xe73   : > { %4723 = vmatpush2.msra.mxu1 %v8288_v36  ;;  %4875 = vmatprep.subr.mxu0 %v8289_v38  ;;  %v8336_v36 = vld [vmem:[%s16280_s1 + $0x1010] sm:$0xff]  ;;  %v8337_v38 = vld [vmem:[%s16280_s1 + $0x1008] sm:$0xff] }
 0xe74   : > { %4724 = vmatprep.subr.mxu1 %v8290_v10  ;;  %4876 = vmatpush2.msra.mxu0 %v8291_v39  ;;  %v8338_v10 = vld [vmem:[%s16280_s1 + $0x1000] sm:$0xff]  ;;  %v8339_v39 = vld [vmem:[%s16280_s1 + $0x11f8] sm:$0xff] }
 0xe75   : > { %4725 = vmatpush2.msra.mxu1 %v8292_v12  ;;  %4877 = vmatprep.subr.mxu0 %v8293_v41  ;;  %v8340_v12 = vld [vmem:[%s16280_s1 + $0x11f0] sm:$0xff]  ;;  %v8341_v41 = vld [vmem:[%s16280_s1 + $0x11e8] sm:$0xff] }
 0xe76   : > { %4726 = vmatprep.subr.mxu1 %v8294_v14  ;;  %4878 = vmatpush2.msra.mxu0 %v8295_v1  ;;  %v8342_v14 = vld [vmem:[%s16280_s1 + $0x11e0] sm:$0xff]  ;;  %v8343_v1 = vld [vmem:[%s16280_s1 + $0x11d8] sm:$0xff] }
 0xe77   : > { %4727 = vmatpush2.msra.mxu1 %v8296_v11  ;;  %4879 = vmatprep.subr.mxu0 %v8297_v18  ;;  %v8344_v11 = vld [vmem:[%s16280_s1 + $0x11d0] sm:$0xff]  ;;  %v8345_v18 = vld [vmem:[%s16280_s1 + $0x11c8] sm:$0xff] }
 0xe78   : > { %4728 = vmatprep.subr.mxu1 %v8298_v42  ;;  %4880 = vmatpush2.msra.mxu0 %v8299_v43  ;;  %v8346_v42 = vld [vmem:[%s16280_s1 + $0x11c0] sm:$0xff]  ;;  %v8347_v43 = vld [vmem:[%s16280_s1 + $0x11b8] sm:$0xff] }
 0xe79   : > { %4729 = vmatpush2.msra.mxu1 %v8300_v44  ;;  %4881 = vmatprep.subr.mxu0 %v8301_v45  ;;  %v8348_v44 = vld [vmem:[%s16280_s1 + $0x11b0] sm:$0xff]  ;;  %v8349_v45 = vld [vmem:[%s16280_s1 + $0x11a8] sm:$0xff] }
 0xe7a   : > { %4730 = vmatprep.subr.mxu1 %v8302_v47  ;;  %4882 = vmatpush2.msra.mxu0 %v8303_v0  ;;  %v8350_v47 = vld [vmem:[%s16280_s1 + $0x11a0] sm:$0xff]  ;;  %v8351_v0 = vld [vmem:[%s16280_s1 + $0x1198] sm:$0xff] }
 0xe7b   : > { %4731 = vmatpush2.msra.mxu1 %v8304_v58  ;;  %v8352_v58 = vld [vmem:[%s16280_s1 + $0x1190] sm:$0xff] }
 0xe7c   : > { %4732 = vmatprep.subr.mxu1 %v8305_v48  ;;  %v8353_v48 = vld [vmem:[%s16280_s1 + $0x1188] sm:$0xff] }
 0xe7d   : > { %4733 = vmatpush2.msra.mxu1 %v8306_v50  ;;  %v8354_v50 = vld [vmem:[%s16280_s1 + $0x1180] sm:$0xff] }
 0xe7e   : > { %4927 = vmatprep.subr.mxu1 %v12860_v51 }
 0xef6   : > { %v4587_v52 = vpop.f32.mrf.mxu0 }
 0xef8   : > { %v4589_v53 = vpop.f32.mrf.mxu0 }
 0xefa   : > { %v4438_v54 = vpop.f32.mrf.mxu1  ;;  %v4814_v55 = vpop.f32.mrf.mxu0 }
 0xefb   : > { %v4443_v56 = vadd.f32 %v4438_v54, %v13859_v40  ;;  %v7162_v40 = vld [vmem:[%s9033_s14 + $0xd0] sm:$0xff]  ;;  %v8357_v54 = vld [vmem:[%s16280_s1 + $0x1168] sm:$0xff] }
 0xefc   : > { %v4440_v60 = vpop.f32.mrf.mxu1  ;;  %v4816_v19 = vpop.f32.mrf.mxu0 }
 0xefd   : > { %v4444_v62 = vadd.f32 %v4440_v60, %v13864_v13  ;;  %v14258_v35 = vadd.f32 %v4587_v52, %v4443_v56  ;;  %4883 = vmatprep.mubr.f32.mxu0 %v4816_v19  ;;  %v8307_v13 = vld [vmem:[%s16280_s1 + $0x10f8] sm:$0xff]  ;;  %v8360_v60 = vld [vmem:[%s16280_s1 + $0x1150] sm:$0xff]  ;;  %v8361_v19 = vld [vmem:[%s16280_s1 + $0x1148] sm:$0xff] }
 0xefe   : > { %v4665_v37 = vpop.f32.mrf.mxu1  ;;  %4884 = vmatmul.mubr.f32.vlgmr.msra.gmra.mxu0 %v4814_v55  ;;  %v8355_v52 = vld [vmem:[%s16280_s1 + $0x1178] sm:$0xff]  ;;  %v8358_v55 = vld [vmem:[%s16280_s1 + $0x1160] sm:$0xff] }
 0xeff   : > { %v14260_v63 = vadd.f32 %v4589_v53, %v4444_v62  ;;  %5155 = vmatprep.mubr.f32.mxu0 %v8955_v4  ;;  %v8356_v53 = vld [vmem:[%s16280_s1 + $0x1170] sm:$0xff]  ;;  %v8359_v56 = vld [vmem:[%s16280_s1 + $0x1158] sm:$0xff]  ;;  %v8362_v62 = vld [vmem:[%s16280_s1 + $0x1140] sm:$0xff] }
 0xf00   : > { %v4667_v2 = vpop.f32.mrf.mxu1 }
 0xf01   : > { %4734 = vmatprep.mubr.f32.mxu1 %v4667_v2  ;;  %v8364_v2 = vld [vmem:[%s16280_s1 + $0x1130] sm:$0xff] }
 0xf02   : > { %4735 = vmatmul.mubr.f32.vlgmr.msra.gmra.mxu1 %v4665_v37  ;;  %v8363_v37 = vld [vmem:[%s16280_s1 + $0x1138] sm:$0xff] }
 0xf03   : > { %4928 = vmatpush1.msra.mxu1 %v12855_v49  ;;  %4961 = vmatprep.mubr.f32.mxu1 %v8955_v4 }
 0xf04   : > { %4968 = vmatprep.subr.mxu1 %v8307_v13  ;;  %v8366_v13 = vld [vmem:[%s16280_s1 + $0x1120] sm:$0xff] }
 0xf06   : > { %7163 = vmatmul.mubr.msk.f32.vlgmr.msra.gmra.mxu1 %vm359_vm0, %v7162_v40  ;;  %v8365_v40 = vld [vmem:[%s16280_s1 + $0x1128] sm:$0xff] }
 0xf07   : > { %4969 = vmatpush1.msra.mxu1 %v8308_v3  ;;  %v8367_v3 = vld [vmem:[%s16280_s1 + $0x1118] sm:$0xff] }
 0xf08   : > { %4970 = vmatprep.subr.mxu1 %v8309_v6  ;;  %v8368_v6 = vld [vmem:[%s16280_s1 + $0x1110] sm:$0xff] }
 0xf09   : > { %4971 = vmatpush1.msra.mxu1 %v8310_v59  ;;  %v8369_v59 = vld [vmem:[%s16280_s1 + $0x1108] sm:$0xff] }
 0xf0a   : > { %4972 = vmatprep.subr.mxu1 %v8311_v21  ;;  %v8370_v21 = vld [vmem:[%s16280_s1 + $0x1100] sm:$0xff] }
 0xf0b   : > { %4973 = vmatpush1.msra.mxu1 %v8312_v46  ;;  %v8371_v46 = vld [vmem:[%s16280_s1 + $0xf8] sm:$0xff] }
 0xf0c   : > { %4974 = vmatprep.subr.mxu1 %v8313_v8 }
 0xf0d   : > { %4975 = vmatpush1.msra.mxu1 %v8314_v17 }
 0xf0e   : > { %4976 = vmatprep.subr.mxu1 %v8315_v57 }
 0xf0f   : > { %4977 = vmatpush1.msra.mxu1 %v8316_v9 }
 0xf10   : > { %4978 = vmatprep.subr.mxu1 %v8317_v15 }
 0xf11   : > { %4979 = vmatpush1.msra.mxu1 %v8318_v16 }
 0xf12   : > { %4980 = vmatprep.subr.mxu1 %v8319_v20  ;;  %v8372_v20 = vld [vmem:[%s16280_s1 + $0xf0] sm:$0xff] }
 0xf13   : > { %4981 = vmatpush1.msra.mxu1 %v8320_v5  ;;  %v8373_v5 = vld [vmem:[%s16280_s1 + $0xe8] sm:$0xff] }
 0xf14   : > { %4982 = vmatprep.subr.mxu1 %v8321_v7  ;;  %v8376_v7 = vld [vmem:[%s16280_s1 + $0xd0] sm:$0xff] }
 0xf15   : > { %4983 = vmatpush1.msra.mxu1 %v8322_v22  ;;  %v8377_v22 = vld [vmem:[%s16280_s1 + $0xc8] sm:$0xff] }
 0xf16   : > { %4984 = vmatprep.subr.mxu1 %v8323_v23  ;;  %v8378_v23 = vld [vmem:[%s16280_s1 + $0xc0] sm:$0xff] }
 0xf17   : > { %4985 = vmatpush1.msra.mxu1 %v8324_v61  ;;  %v8379_v61 = vld [vmem:[%s16280_s1 + $0xb8] sm:$0xff] }
 0xf18   : > { %4986 = vmatprep.subr.mxu1 %v8325_v24  ;;  %v8380_v24 = vld [vmem:[%s16280_s1 + $0xb0] sm:$0xff] }
 0xf19   : > { %4987 = vmatpush1.msra.mxu1 %v8326_v25  ;;  %v8381_v25 = vld [vmem:[%s16280_s1 + $0xa8] sm:$0xff] }
 0xf1a   : > { %4988 = vmatprep.subr.mxu1 %v8327_v26  ;;  %v8382_v26 = vld [vmem:[%s16280_s1 + $0xa0] sm:$0xff] }
 0xf1b   : > { %4989 = vmatpush1.msra.mxu1 %v8328_v27  ;;  %v8383_v27 = vld [vmem:[%s16280_s1 + $0x98] sm:$0xff] }
 0xf1c   : > { %4990 = vmatprep.subr.mxu1 %v8329_v28  ;;  %v8384_v28 = vld [vmem:[%s16280_s1 + $0x90] sm:$0xff] }
 0xf1d   : > { %4991 = vmatpush1.msra.mxu1 %v8330_v29  ;;  %v8385_v29 = vld [vmem:[%s16280_s1 + $0x88] sm:$0xff] }
 0xf1e   : > { %4992 = vmatprep.subr.mxu1 %v8331_v30  ;;  %v8386_v30 = vld [vmem:[%s16280_s1 + $0x80] sm:$0xff] }
 0xf1f   : > { %4993 = vmatpush1.msra.mxu1 %v8332_v31  ;;  %v8387_v31 = vld [vmem:[%s16280_s1 + $0x78] sm:$0xff] }
 0xf20   : > { %4994 = vmatprep.subr.mxu1 %v8333_v32  ;;  %v8388_v32 = vld [vmem:[%s16280_s1 + $0x70] sm:$0xff] }
 0xf21   : > { %4995 = vmatpush1.msra.mxu1 %v8334_v33  ;;  %v8389_v33 = vld [vmem:[%s16280_s1 + $0x68] sm:$0xff] }
 0xf22   : > { %4996 = vmatprep.subr.mxu1 %v8335_v34  ;;  %v8390_v34 = vld [vmem:[%s16280_s1 + $0x60] sm:$0xff] }
 0xf23   : > { %4997 = vmatpush1.msra.mxu1 %v8336_v36  ;;  %v8391_v36 = vld [vmem:[%s16280_s1 + $0x58] sm:$0xff] }
 0xf24   : > { %4998 = vmatprep.subr.mxu1 %v8337_v38  ;;  %v8392_v38 = vld [vmem:[%s16280_s1 + $0x50] sm:$0xff] }
 0xf25   : > { %4999 = vmatpush1.msra.mxu1 %v8338_v10  ;;  %v8393_v10 = vld [vmem:[%s16280_s1 + $0x48] sm:$0xff] }
 0xf26   : > { %5000 = vmatprep.subr.mxu1 %v8339_v39  ;;  %v8394_v39 = vld [vmem:[%s16280_s1 + $0x40] sm:$0xff] }
 0xf27   : > { %5001 = vmatpush2.msra.mxu1 %v8340_v12  ;;  %v8395_v12 = vld [vmem:[%s16280_s1 + $0x38] sm:$0xff] }
 0xf28   : > { %5002 = vmatprep.subr.mxu1 %v8341_v41  ;;  %v8396_v41 = vld [vmem:[%s16280_s1 + $0x30] sm:$0xff] }
 0xf29   : > { %5003 = vmatpush2.msra.mxu1 %v8342_v14  ;;  %v8397_v14 = vld [vmem:[%s16280_s1 + $0x28] sm:$0xff] }
 0xf2a   : > { %5004 = vmatprep.subr.mxu1 %v8343_v1  ;;  %v8398_v1 = vld [vmem:[%s16280_s1 + $0x20] sm:$0xff] }
 0xf2b   : > { %5005 = vmatpush2.msra.mxu1 %v8344_v11  ;;  %v8399_v11 = vld [vmem:[%s16280_s1 + $0x18] sm:$0xff] }
 0xf2c   : > { %5006 = vmatprep.subr.mxu1 %v8345_v18  ;;  %v8400_v18 = vld [vmem:[%s16280_s1 + $0x10] sm:$0xff] }
 0xf2d   : > { %5007 = vmatpush2.msra.mxu1 %v8346_v42  ;;  %v8401_v42 = vld [vmem:[%s16280_s1 + $0x8] sm:$0xff] }
 0xf2e   : > { %5008 = vmatprep.subr.mxu1 %v8347_v43  ;;  %v8402_v43 = vld [vmem:[%s16280_s1] sm:$0xff] }
 0xf2f   : > { %5009 = vmatpush2.msra.mxu1 %v8348_v44  ;;  %v8403_v44 = vld [vmem:[%s16280_s1 + $0x1f8] sm:$0xff] }
 0xf30   : > { %5010 = vmatprep.subr.mxu1 %v8349_v45  ;;  %v8404_v45 = vld [vmem:[%s16280_s1 + $0x1f0] sm:$0xff] }
 0xf31   : > { %5011 = vmatpush2.msra.mxu1 %v8350_v47  ;;  %v8405_v47 = vld [vmem:[%s16280_s1 + $0x1e8] sm:$0xff] }
 0xf32   : > { %5012 = vmatprep.subr.mxu1 %v8351_v0  ;;  %v8406_v0 = vld [vmem:[%s16280_s1 + $0x1e0] sm:$0xff] }
 0xf33   : > { %5013 = vmatpush2.msra.mxu1 %v8352_v58  ;;  %v8407_v58 = vld [vmem:[%s16280_s1 + $0x1d8] sm:$0xff] }
 0xf34   : > { %5014 = vmatprep.subr.mxu1 %v8353_v48  ;;  %v8408_v48 = vld [vmem:[%s16280_s1 + $0x1d0] sm:$0xff] }
 0xf35   : > { %5015 = vmatpush2.msra.mxu1 %v8354_v50  ;;  %v8409_v50 = vld [vmem:[%s16280_s1 + $0x1c8] sm:$0xff] }
 0xf36   : > { %5016 = vmatprep.subr.mxu1 %v8355_v52  ;;  %v8410_v52 = vld [vmem:[%s16280_s1 + $0x1c0] sm:$0xff] }
 0xf37   : > { %5017 = vmatpush2.msra.mxu1 %v8356_v53  ;;  %v8411_v53 = vld [vmem:[%s16280_s1 + $0x1b8] sm:$0xff] }
 0xf38   : > { %5018 = vmatprep.subr.mxu1 %v8357_v54  ;;  %v8412_v54 = vld [vmem:[%s16280_s1 + $0x1b0] sm:$0xff] }
 0xf39   : > { %5019 = vmatpush2.msra.mxu1 %v8358_v55  ;;  %v8413_v55 = vld [vmem:[%s16280_s1 + $0x1a8] sm:$0xff] }
 0xf3a   : > { %5020 = vmatprep.subr.mxu1 %v8359_v56  ;;  %v8414_v56 = vld [vmem:[%s16280_s1 + $0x1a0] sm:$0xff] }
 0xf3b   : > { %5021 = vmatpush2.msra.mxu1 %v8360_v60  ;;  %v8415_v60 = vld [vmem:[%s16280_s1 + $0x198] sm:$0xff] }
 0xf3c   : > { %5022 = vmatprep.subr.mxu1 %v8361_v19  ;;  %v8416_v19 = vld [vmem:[%s16280_s1 + $0x190] sm:$0xff] }
 0xf3d   : > { %5023 = vmatpush2.msra.mxu1 %v8362_v62  ;;  %v8417_v62 = vld [vmem:[%s16280_s1 + $0x188] sm:$0xff] }
 0xf3e   : > { %5024 = vmatprep.subr.mxu1 %v8363_v37  ;;  %v8418_v37 = vld [vmem:[%s16280_s1 + $0x180] sm:$0xff] }
 0xf3f   : > { %5025 = vmatpush2.msra.mxu1 %v8364_v2  ;;  %v8419_v2 = vld [vmem:[%s16280_s1 + $0x178] sm:$0xff] }
 0xf40   : > { %5026 = vmatprep.subr.mxu1 %v8365_v40  ;;  %v8420_v40 = vld [vmem:[%s16280_s1 + $0x170] sm:$0xff] }
 0xf41   : > { %5027 = vmatpush2.msra.mxu1 %v8366_v13  ;;  %v8421_v13 = vld [vmem:[%s16280_s1 + $0x168] sm:$0xff] }
 0xf42   : > { %5028 = vmatprep.subr.mxu1 %v8367_v3  ;;  %v8422_v3 = vld [vmem:[%s16280_s1 + $0x160] sm:$0xff] }
 0xf43   : > { %5029 = vmatpush2.msra.mxu1 %v8368_v6  ;;  %v8423_v6 = vld [vmem:[%s16280_s1 + $0x158] sm:$0xff] }
 0xf44   : > { %5030 = vmatprep.subr.mxu1 %v8369_v59  ;;  %v8424_v59 = vld [vmem:[%s16280_s1 + $0x150] sm:$0xff] }
 0xf45   : > { %5031 = vmatpush2.msra.mxu1 %v8370_v21  ;;  %v8425_v21 = vld [vmem:[%s16280_s1 + $0x148] sm:$0xff] }
 0xf46   : > { %5309 = vmatprep.subr.mxu1 %v8371_v46  ;;  %v8426_v46 = vld [vmem:[%s16280_s1 + $0x140] sm:$0xff] }
 0xfc2   : > { %v4736_v8 = vpop.f32.mrf.mxu1 }
 0xfc3   : > { %v14463_v17 = vadd.f32 %v4736_v8, %v14258_v35  ;;  %v8374_v35 = vld [vmem:[%s16280_s1 + $0xe0] sm:$0xff]  ;;  %v8427_v8 = vld [vmem:[%s16280_s1 + $0x138] sm:$0xff] }
 0xfc4   : > { %v4738_v57 = vpop.f32.mrf.mxu1 }
 0xfc5   : > { %v14466_v9 = vadd.f32 %v4738_v57, %v14260_v63  ;;  %v8375_v63 = vld [vmem:[%s16280_s1 + $0xd8] sm:$0xff]  ;;  %v8428_v57 = vld [vmem:[%s16280_s1 + $0x130] sm:$0xff] }
 0xfc6   : > { %v4963_v15 = vpop.f32.mrf.mxu1 }
 0xfc8   : > { %v4965_v16 = vpop.f32.mrf.mxu1 }
 0xfc9   : > { %5032 = vmatprep.mubr.f32.mxu1 %v4965_v16  ;;  %v8430_v16 = vld [vmem:[%s16280_s1 + $0x120] sm:$0xff] }
 0xfca   : > { %5033 = vmatmul.mubr.f32.vlgmr.msra.gmra.mxu1 %v4963_v15  ;;  %v8429_v15 = vld [vmem:[%s16280_s1 + $0x128] sm:$0xff] }
 0xfcb   : > { %5310 = vmatpush1.msra.mxu1 %v8372_v20  ;;  %v8431_v20 = vld [vmem:[%s16280_s1 + $0x118] sm:$0xff] }
 0xfcc   : > { %5311 = vmatprep.subr.mxu1 %v8373_v5  ;;  %v8432_v5 = vld [vmem:[%s16280_s1 + $0x110] sm:$0xff] }
 0xfcd   : > { %5312 = vmatpush1.msra.mxu1 %v8374_v35  ;;  %v8433_v35 = vld [vmem:[%s16280_s1 + $0x108] sm:$0xff] }
 0xfce   : > { %5313 = vmatprep.subr.mxu1 %v8375_v63  ;;  %v8434_v63 = vld [vmem:[%s16280_s1 + $0x100] sm:$0xff] }
 0xfcf   : > { %5314 = vmatpush1.msra.mxu1 %v8376_v7  ;;  %v4885_v7 = vpop.f32.mrf.mxu0 }
 0xfd0   : > { %5315 = vmatprep.subr.mxu1 %v8377_v22 }
 0xfd1   : > { %5316 = vmatpush1.msra.mxu1 %v8378_v23  ;;  %v4887_v22 = vpop.f32.mrf.mxu0  ;;  %v4890_v23 = vadd.f32 %v4885_v7, %v14463_v17  ;;  %v8457_v7 = vld [vmem:[%s16280_s1 + $0x248] sm:$0xff] }
 0xfd2   : > { %5317 = vmatprep.subr.mxu1 %v8379_v61 }
 0xfd3   : > { %5318 = vmatpush1.msra.mxu1 %v8380_v24  ;;  %v4891_v24 = vadd.f32 %v4887_v22, %v14466_v9  ;;  %v8458_v22 = vld [vmem:[%s16280_s1 + $0x240] sm:$0xff] }
 0xfd4   : > { %5319 = vmatprep.subr.mxu1 %v8381_v25 }
 0xfd5   : > { %5320 = vmatpush1.msra.mxu1 %v8382_v26 }
 0xfd6   : > { %5321 = vmatprep.subr.mxu1 %v8383_v27 }
 0xfd7   : > { %5322 = vmatpush1.msra.mxu1 %v8384_v28  ;;  %v5046_v28 = vpop.permute.xlu0 %5045 }
 0xfd8   : > { %5323 = vmatprep.subr.mxu1 %v8385_v29 }
 0xfd9   : > { %5324 = vmatpush1.msra.mxu1 %v8386_v30 }
 0xfda   : > { %5325 = vmatprep.subr.mxu1 %v8387_v31 }
 0xfdb   : > { %5326 = vmatpush1.msra.mxu1 %v8388_v32  ;;  %v7165_v32 = vld [vmem:[%s11035_s15 + $0x10] sm:$0xff] }
 0xfdc   : > { %5327 = vmatprep.subr.mxu1 %v8389_v33  ;;  %v7166_v33 = vld [vmem:[%s11045_s18 + $0x10] sm:$0xff] }
 0xfdd   : > { %5328 = vmatpush1.msra.mxu1 %v8390_v34  ;;  %v7185_v34 = vld [vmem:[%s10832_s11 + $0x18] sm:$0xff] }
 0xfde   : > { %5329 = vmatprep.subr.mxu1 %v8391_v36 }
 0xfdf   : > { %5330 = vmatpush1.msra.mxu1 %v8392_v38 }
 0xfe0   : > { %5331 = vmatprep.subr.mxu1 %v8393_v10 }
 0xfe1   : > { %5332 = vmatpush1.msra.mxu1 %v8394_v39 }
 0xfe2   : > { %5333 = vmatprep.subr.mxu1 %v8395_v12 }
 0xfe3   : > { %5334 = vmatpush1.msra.mxu1 %v8396_v41  ;;  %v7186_v41 = vld [vmem:[%s11035_s15 + $0x18] sm:$0xff] }
 0xfe4   : > { %5335 = vmatprep.subr.mxu1 %v8397_v14 }
 0xfe5   : > { %5336 = vmatpush1.msra.mxu1 %v8398_v1 }
 0xfe6   : > { %5337 = vmatprep.subr.mxu1 %v8399_v11 }
 0xfe7   : > { %5338 = vmatpush1.msra.mxu1 %v8400_v18 }
 0xfe8   : > { %5339 = vmatprep.subr.mxu1 %v8401_v42 }
 0xfe9   : > { %5340 = vmatpush1.msra.mxu1 %v8402_v43 }
 0xfea   : > { %5341 = vmatprep.subr.mxu1 %v8403_v44 }
 0xfeb   : > { %5342 = vmatpush2.msra.mxu1 %v8404_v45 }
 0xfec   : > { %5343 = vmatprep.subr.mxu1 %v8405_v47 }
 0xfed   : > { %5344 = vmatpush2.msra.mxu1 %v8406_v0 }
 0xfee   : > { %5345 = vmatprep.subr.mxu1 %v8407_v58 }
 0xfef   : > { %5346 = vmatpush2.msra.mxu1 %v8408_v48 }
 0xff0   : > { %5347 = vmatprep.subr.mxu1 %v8409_v50 }
 0xff1   : > { %5348 = vmatpush2.msra.mxu1 %v8410_v52 }
 0xff2   : > { %5349 = vmatprep.subr.mxu1 %v8411_v53  ;;  %v7167_v53 = vld [vmem:[%s9033_s14 + $0xd8] sm:$0xff] }
 0xff3   : > { %5350 = vmatpush2.msra.mxu1 %v8412_v54  ;;  %v7169_v54 = vld [vmem:[%s9033_s14 + $0xe0] sm:$0xff] }
 0xff4   : > { %5351 = vmatprep.subr.mxu1 %v8413_v55  ;;  %v8435_v55 = vld [vmem:[%s16280_s1 + $0x2f8] sm:$0xff] }
 0xff5   : > { %5352 = vmatpush2.msra.mxu1 %v8414_v56  ;;  %v8436_v56 = vld [vmem:[%s16280_s1 + $0x2f0] sm:$0xff] }
 0xff6   : > { %5353 = vmatprep.subr.mxu1 %v8415_v60  ;;  %v8437_v60 = vld [vmem:[%s16280_s1 + $0x2e8] sm:$0xff] }
 0xff7   : > { %5354 = vmatpush2.msra.mxu1 %v8416_v19  ;;  %v8438_v19 = vld [vmem:[%s16280_s1 + $0x2e0] sm:$0xff] }
 0xff8   : > { %5355 = vmatprep.subr.mxu1 %v8417_v62  ;;  %v8439_v62 = vld [vmem:[%s16280_s1 + $0x2d8] sm:$0xff] }
 0xff9   : > { %5356 = vmatpush2.msra.mxu1 %v8418_v37  ;;  %v8440_v37 = vld [vmem:[%s16280_s1 + $0x2d0] sm:$0xff] }
 0xffa   : > { %5357 = vmatprep.subr.mxu1 %v8419_v2  ;;  %v8441_v2 = vld [vmem:[%s16280_s1 + $0x2c8] sm:$0xff] }
 0xffb   : > { %5358 = vmatpush2.msra.mxu1 %v8420_v40  ;;  %v8442_v40 = vld [vmem:[%s16280_s1 + $0x2c0] sm:$0xff] }
 0xffc   : > { %5359 = vmatprep.subr.mxu1 %v8421_v13  ;;  %v8443_v13 = vld [vmem:[%s16280_s1 + $0x2b8] sm:$0xff] }
 0xffd   : > { %5360 = vmatpush2.msra.mxu1 %v8422_v3  ;;  %v8444_v3 = vld [vmem:[%s16280_s1 + $0x2b0] sm:$0xff] }
 0xffe   : > { %5361 = vmatprep.subr.mxu1 %v8423_v6  ;;  %v8445_v6 = vld [vmem:[%s16280_s1 + $0x2a8] sm:$0xff] }
 0xfff   : > { %5362 = vmatpush2.msra.mxu1 %v8424_v59  ;;  %v8446_v59 = vld [vmem:[%s16280_s1 + $0x2a0] sm:$0xff] }
0x1000   : > { %5363 = vmatprep.subr.mxu1 %v8425_v21  ;;  %v8447_v21 = vld [vmem:[%s16280_s1 + $0x298] sm:$0xff] }
0x1001   : > { %5364 = vmatpush2.msra.mxu1 %v8426_v46  ;;  %v8448_v46 = vld [vmem:[%s16280_s1 + $0x290] sm:$0xff] }
0x1002   : > { %5365 = vmatprep.subr.mxu1 %v8427_v8  ;;  %v8449_v8 = vld [vmem:[%s16280_s1 + $0x288] sm:$0xff] }
0x1003   : > { %5366 = vmatpush2.msra.mxu1 %v8428_v57  ;;  %v8450_v57 = vld [vmem:[%s16280_s1 + $0x280] sm:$0xff] }
0x1004   : > { %5367 = vmatprep.subr.mxu1 %v8429_v15  ;;  %v8451_v15 = vld [vmem:[%s16280_s1 + $0x278] sm:$0xff] }
0x1005   : > { %5368 = vmatpush2.msra.mxu1 %v8430_v16  ;;  %v8452_v16 = vld [vmem:[%s16280_s1 + $0x270] sm:$0xff] }
0x1006   : > { %5369 = vmatprep.subr.mxu1 %v8431_v20  ;;  %v8453_v20 = vld [vmem:[%s16280_s1 + $0x268] sm:$0xff] }
0x1007   : > { %5370 = vmatpush2.msra.mxu1 %v8432_v5  ;;  %v8454_v5 = vld [vmem:[%s16280_s1 + $0x260] sm:$0xff] }
0x1008   : > { %5371 = vmatprep.subr.mxu1 %v8433_v35  ;;  %v8455_v35 = vld [vmem:[%s16280_s1 + $0x258] sm:$0xff] }
0x1009   : > { %5372 = vmatpush2.msra.mxu1 %v8434_v63  ;;  %v8456_v63 = vld [vmem:[%s16280_s1 + $0x250] sm:$0xff] }
0x108a   : > { %v5034_v61 = vpop.f32.mrf.mxu1 }
0x108b   : > { %v5039_v25 = vadd.f32 %v5034_v61, %v4890_v23  ;;  %v8459_v23 = vld [vmem:[%s16280_s1 + $0x238] sm:$0xff]  ;;  %v8460_v61 = vld [vmem:[%s16280_s1 + $0x230] sm:$0xff] }
0x108c   : > { %v5036_v26 = vpop.f32.mrf.mxu1 }
0x108d   : > { %v5040_v27 = vadd.f32 %v5036_v26, %v4891_v24  ;;  %v5048_v29 = vadd.f32 %v5046_v28, %v5039_v25  ;;  %v8461_v24 = vld [vmem:[%s16280_s1 + $0x228] sm:$0xff]  ;;  %v8462_v25 = vld [vmem:[%s16280_s1 + $0x220] sm:$0xff]  ;;  %v8463_v26 = vld [vmem:[%s16280_s1 + $0x218] sm:$0xff] }
0x108f   : > { %v5049_v30 = vadd.f32 %v5046_v28, %v5040_v27  ;;  %v8464_v27 = vld [vmem:[%s16280_s1 + $0x210] sm:$0xff]  ;;  %v8465_v28 = vld [vmem:[%s16280_s1 + $0x208] sm:$0xff] }
0x1091   : > { %v5050_v31 = vadd.f32 %v5049_v30, %v5048_v29 }
0x1093   : > { %5051 = vadd.xlane.f32.xlu1 %v5050_v31  ;;  %v8468_v31 = vld [vmem:[%s16280_s1 + $0x3f0] sm:$0xff] }
0x10a4   : > { %5070 = vperm.xlu1 %7206, %v7165_v32   ;;  %v8469_v32 = vld [vmem:[%s16280_s1 + $0x3e8] sm:$0xff] }
0x10a8   : > { %5079 = vperm.xlu1 %7206, %v7166_v33   ;;  %v8470_v33 = vld [vmem:[%s16280_s1 + $0x3e0] sm:$0xff] }
0x10ac   : > { %6427 = vperm.xlu1 %7206, %v7185_v34   ;;  %v8471_v34 = vld [vmem:[%s16280_s1 + $0x3d8] sm:$0xff] }
0x111c   : > { %v5052_v36 = vpop.xlane.xlu1 %5051 }
0x111d   : > { %v5053_v17 = vmul.f32 0.00390625, %v5052_v36  ;;  %v8472_v36 = vld [vmem:[%s16280_s1 + $0x3d0] sm:$0xff] }
0x111f   : > { %v5054_v38 = vsub.f32 %v5048_v29, %v5053_v17  ;;  %v5055_v10 = vsub.f32 %v5049_v30, %v5053_v17  ;;  %v8466_v29 = vld [vmem:[%s16280_s1 + $0x200] sm:$0xff]  ;;  %v8467_v30 = vld [vmem:[%s16280_s1 + $0x3f8] sm:$0xff]  ;;  %v8473_v17 = vld [vmem:[%s16280_s1 + $0x3c8] sm:$0xff] }
0x1120   : > { %v5071_v18 = vpop.permute.xlu1 %5070 }
0x1121   : > { %v5056_v9 = vmul.f32 %v5054_v38, %v5054_v38  ;;  %v5057_v39 = vmul.f32 %v5055_v10, %v5055_v10 }
0x1123   : > { %v5058_v12 = vadd.f32 %v5057_v39, %v5056_v9  ;;  %v8476_v9 = vld [vmem:[%s16280_s1 + $0x3b0] sm:$0xff]  ;;  %v8477_v39 = vld [vmem:[%s16280_s1 + $0x3a8] sm:$0xff] }
0x1124   : > { %v5080_v0 = vpop.permute.xlu1 %5079 }
0x1125   : > { %5059 = vadd.xlane.f32.xlu0 %v5058_v12  ;;  %v8478_v12 = vld [vmem:[%s16280_s1 + $0x3a0] sm:$0xff] }
0x113b   : > { %6452 = vperm.xlu0 %7205, %v7186_v41   ;;  %v8479_v41 = vld [vmem:[%s16280_s1 + $0x398] sm:$0xff] }
0x11ae   : > { %v5060_v14 = vpop.xlane.xlu0 %5059 }
0x11af   : > { %v5061_v1 = vmul.f32 0.00390625, %v5060_v14  ;;  %v8480_v14 = vld [vmem:[%s16280_s1 + $0x390] sm:$0xff] }
0x11b1   : > { %v5064_v11 = vadd.f32 1e-05, %v5061_v1  ;;  %v8481_v1 = vld [vmem:[%s16280_s1 + $0x388] sm:$0xff] }
0x11b3   : > { %7211 = vrsqrt.f32 %v5064_v11  ;;  %v8482_v11 = vld [vmem:[%s16280_s1 + $0x380] sm:$0xff] }
0x11c0   : > { %v7212_v42 = vpop.eup %7211 }
0x11c1   : > { %v5066_v43 = vmul.f32 %v7212_v42, %v5054_v38  ;;  %v5067_v44 = vmul.f32 %v7212_v42, %v5055_v10  ;;  %v8474_v38 = vld [vmem:[%s16280_s1 + $0x3c0] sm:$0xff]  ;;  %v8475_v10 = vld [vmem:[%s16280_s1 + $0x3b8] sm:$0xff]  ;;  %v8484_v42 = vld [vmem:[%s16280_s1 + $0x370] sm:$0xff] }
0x11c3   : > { %v5073_v45 = vmul.f32 %v5071_v18, %v5066_v43  ;;  %v5074_v47 = vmul.f32 %v5071_v18, %v5067_v44  ;;  %v8483_v18 = vld [vmem:[%s16280_s1 + $0x378] sm:$0xff]  ;;  %v8485_v43 = vld [vmem:[%s16280_s1 + $0x368] sm:$0xff]  ;;  %v8486_v44 = vld [vmem:[%s16280_s1 + $0x360] sm:$0xff] }
0x11c5   : > { %v5082_v58 = vadd.f32 %v5080_v0, %v5073_v45  ;;  %v5083_v48 = vadd.f32 %v5080_v0, %v5074_v47  ;;  %v8487_v45 = vld [vmem:[%s16280_s1 + $0x358] sm:$0xff]  ;;  %v8488_v47 = vld [vmem:[%s16280_s1 + $0x350] sm:$0xff]  ;;  %v8489_v0 = vld [vmem:[%s16280_s1 + $0x348] sm:$0xff] }
0x11c7   : > { %v14663_v50 = vmax.f32 %v5082_v58, 0.0  ;;  %v14665_v52 = vmax.f32 %v5083_v48, 0.0  ;;  %v8490_v58 = vld [vmem:[%s16280_s1 + $0x340] sm:$0xff]  ;;  %v8491_v48 = vld [vmem:[%s16280_s1 + $0x338] sm:$0xff] }
0x11c9   : > { %5121 = vmatprep.subr.mxu0 %v14665_v52  ;;  %5564 = vmatprep.subr.mxu1 %v14665_v52 }
0x11ca   : > { %5122 = vmatpush1.msra.mxu0 %v14663_v50 }
0x11cb   : > { %7168 = vmatmul.mubr.msk.f32.vlgmr.msra.gmra.mxu0 %vm359_vm0, %v7167_v53  ;;  %5197 = vmatprep.subr.mxu0 %v14665_v52  ;;  %v8492_v53 = vld [vmem:[%s16280_s1 + $0x330] sm:$0xff] }
0x11cc   : > { %5198 = vmatpush1.msra.mxu0 %v14663_v50  ;;  %5231 = vmatprep.mubr.f32.mxu0 %v8955_v4 }
0x11cd   : > { %5238 = vmatprep.subr.mxu0 %v8435_v55  ;;  %v8494_v55 = vld [vmem:[%s16280_s1 + $0x320] sm:$0xff] }
0x11cf   : > { %7170 = vmatmul.mubr.msk.f32.vlgmr.msra.gmra.mxu0 %vm359_vm0, %v7169_v54  ;;  %v8493_v54 = vld [vmem:[%s16280_s1 + $0x328] sm:$0xff] }
0x11d0   : > { %5239 = vmatpush1.msra.mxu0 %v8436_v56  ;;  %v8495_v56 = vld [vmem:[%s16280_s1 + $0x318] sm:$0xff] }
0x11d1   : > { %5240 = vmatprep.subr.mxu0 %v8437_v60  ;;  %v8496_v60 = vld [vmem:[%s16280_s1 + $0x310] sm:$0xff] }
0x11d2   : > { %5241 = vmatpush1.msra.mxu0 %v8438_v19  ;;  %v8497_v19 = vld [vmem:[%s16280_s1 + $0x308] sm:$0xff] }
0x11d3   : > { %5242 = vmatprep.subr.mxu0 %v8439_v62  ;;  %v8498_v62 = vld [vmem:[%s16280_s1 + $0x300] sm:$0xff] }
0x11d4   : > { %5243 = vmatpush1.msra.mxu0 %v8440_v37 }
0x11d5   : > { %5244 = vmatprep.subr.mxu0 %v8441_v2 }
0x11d6   : > { %5245 = vmatpush1.msra.mxu0 %v8442_v40 }
0x11d7   : > { %5246 = vmatprep.subr.mxu0 %v8443_v13  ;;  %v7173_v13 = vld [vmem:[%s9033_s14 + $0xf0] sm:$0xff] }
0x11d8   : > { %5247 = vmatpush1.msra.mxu0 %v8444_v3 }
0x11d9   : > { %5248 = vmatprep.subr.mxu0 %v8445_v6  ;;  %v8499_v6 = vld [vmem:[%s16280_s1 + $0x6f8] sm:$0xff] }
0x11da   : > { %5249 = vmatpush1.msra.mxu0 %v8446_v59  ;;  %v8500_v59 = vld [vmem:[%s16280_s1 + $0x6f0] sm:$0xff] }
0x11db   : > { %5250 = vmatprep.subr.mxu0 %v8447_v21  ;;  %v7171_v21 = vld [vmem:[%s9033_s14 + $0xe8] sm:$0xff] }
0x11dc   : > { %5251 = vmatpush1.msra.mxu0 %v8448_v46  ;;  %v8501_v46 = vld [vmem:[%s16280_s1 + $0x6e8] sm:$0xff] }
0x11dd   : > { %5252 = vmatprep.subr.mxu0 %v8449_v8  ;;  %v8502_v8 = vld [vmem:[%s16280_s1 + $0x6e0] sm:$0xff] }
0x11de   : > { %5253 = vmatpush1.msra.mxu0 %v8450_v57  ;;  %v8503_v57 = vld [vmem:[%s16280_s1 + $0x4f8] sm:$0xff] }
0x11df   : > { %5254 = vmatprep.subr.mxu0 %v8451_v15  ;;  %v8504_v15 = vld [vmem:[%s16280_s1 + $0x6d8] sm:$0xff] }
0x11e0   : > { %5255 = vmatpush1.msra.mxu0 %v8452_v16  ;;  %v8505_v16 = vld [vmem:[%s16280_s1 + $0x4f0] sm:$0xff] }
0x11e1   : > { %5256 = vmatprep.subr.mxu0 %v8453_v20  ;;  %v8506_v20 = vld [vmem:[%s16280_s1 + $0x6d0] sm:$0xff] }
0x11e2   : > { %5257 = vmatpush1.msra.mxu0 %v8454_v5  ;;  %v8507_v5 = vld [vmem:[%s16280_s1 + $0x4e8] sm:$0xff] }
0x11e3   : > { %5258 = vmatprep.subr.mxu0 %v8455_v35  ;;  %v8508_v35 = vld [vmem:[%s16280_s1 + $0x6c8] sm:$0xff] }
0x11e4   : > { %5259 = vmatpush1.msra.mxu0 %v8456_v63  ;;  %v8509_v63 = vld [vmem:[%s16280_s1 + $0x4e0] sm:$0xff] }
0x11e5   : > { %5260 = vmatprep.subr.mxu0 %v8457_v7  ;;  %v8510_v7 = vld [vmem:[%s16280_s1 + $0x6c0] sm:$0xff] }
0x11e6   : > { %5261 = vmatpush1.msra.mxu0 %v8458_v22  ;;  %v8511_v22 = vld [vmem:[%s16280_s1 + $0x4d8] sm:$0xff] }
0x11e7   : > { %5262 = vmatprep.subr.mxu0 %v8459_v23  ;;  %v8512_v23 = vld [vmem:[%s16280_s1 + $0x6b8] sm:$0xff] }
0x11e8   : > { %5263 = vmatpush1.msra.mxu0 %v8460_v61  ;;  %v8513_v61 = vld [vmem:[%s16280_s1 + $0x4d0] sm:$0xff] }
0x11e9   : > { %5264 = vmatprep.subr.mxu0 %v8461_v24  ;;  %v8514_v24 = vld [vmem:[%s16280_s1 + $0x6b0] sm:$0xff] }
0x11ea   : > { %5265 = vmatpush1.msra.mxu0 %v8462_v25  ;;  %v8515_v25 = vld [vmem:[%s16280_s1 + $0x4c8] sm:$0xff] }
0x11eb   : > { %5266 = vmatprep.subr.mxu0 %v8463_v26  ;;  %v8516_v26 = vld [vmem:[%s16280_s1 + $0x6a8] sm:$0xff] }
0x11ec   : > { %5267 = vmatpush1.msra.mxu0 %v8464_v27  ;;  %v8517_v27 = vld [vmem:[%s16280_s1 + $0x4c0] sm:$0xff] }
0x11ed   : > { %5268 = vmatprep.subr.mxu0 %v8465_v28  ;;  %v8518_v28 = vld [vmem:[%s16280_s1 + $0x6a0] sm:$0xff] }
0x11ee   : > { %5269 = vmatpush1.msra.mxu0 %v8466_v29  ;;  %v8519_v29 = vld [vmem:[%s16280_s1 + $0x4b8] sm:$0xff] }
0x11ef   : > { %5270 = vmatprep.subr.mxu0 %v8467_v30  ;;  %v8520_v30 = vld [vmem:[%s16280_s1 + $0x698] sm:$0xff] }
0x11f0   : > { %5271 = vmatpush2.msra.mxu0 %v8468_v31  ;;  %v8521_v31 = vld [vmem:[%s16280_s1 + $0x4b0] sm:$0xff] }
0x11f1   : > { %5272 = vmatprep.subr.mxu0 %v8469_v32  ;;  %v8522_v32 = vld [vmem:[%s16280_s1 + $0x690] sm:$0xff] }
0x11f2   : > { %5273 = vmatpush2.msra.mxu0 %v8470_v33  ;;  %v8523_v33 = vld [vmem:[%s16280_s1 + $0x4a8] sm:$0xff] }
0x11f3   : > { %5274 = vmatprep.subr.mxu0 %v8471_v34  ;;  %v8524_v34 = vld [vmem:[%s16280_s1 + $0x688] sm:$0xff] }
0x11f4   : > { %5275 = vmatpush2.msra.mxu0 %v8472_v36  ;;  %v8525_v36 = vld [vmem:[%s16280_s1 + $0x4a0] sm:$0xff] }
0x11f5   : > { %5276 = vmatprep.subr.mxu0 %v8473_v17  ;;  %v8526_v17 = vld [vmem:[%s16280_s1 + $0x680] sm:$0xff] }
0x11f6   : > { %5277 = vmatpush2.msra.mxu0 %v8474_v38  ;;  %v8527_v38 = vld [vmem:[%s16280_s1 + $0x498] sm:$0xff] }
0x11f7   : > { %5278 = vmatprep.subr.mxu0 %v8475_v10  ;;  %v8528_v10 = vld [vmem:[%s16280_s1 + $0x678] sm:$0xff] }
0x11f8   : > { %5279 = vmatpush2.msra.mxu0 %v8476_v9  ;;  %v8529_v9 = vld [vmem:[%s16280_s1 + $0x490] sm:$0xff] }
0x11f9   : > { %5280 = vmatprep.subr.mxu0 %v8477_v39  ;;  %v8530_v39 = vld [vmem:[%s16280_s1 + $0x670] sm:$0xff] }
0x11fa   : > { %5281 = vmatpush2.msra.mxu0 %v8478_v12  ;;  %v8531_v12 = vld [vmem:[%s16280_s1 + $0x488] sm:$0xff] }
0x11fb   : > { %5282 = vmatprep.subr.mxu0 %v8479_v41  ;;  %v8532_v41 = vld [vmem:[%s16280_s1 + $0x668] sm:$0xff] }
0x11fc   : > { %5283 = vmatpush2.msra.mxu0 %v8480_v14  ;;  %v8533_v14 = vld [vmem:[%s16280_s1 + $0x480] sm:$0xff] }
0x11fd   : > { %5284 = vmatprep.subr.mxu0 %v8481_v1  ;;  %v8534_v1 = vld [vmem:[%s16280_s1 + $0x660] sm:$0xff] }
0x11fe   : > { %5285 = vmatpush2.msra.mxu0 %v8482_v11  ;;  %v8535_v11 = vld [vmem:[%s16280_s1 + $0x478] sm:$0xff] }
0x11ff   : > { %5286 = vmatprep.subr.mxu0 %v8483_v18  ;;  %v8536_v18 = vld [vmem:[%s16280_s1 + $0x658] sm:$0xff] }
0x1200   : > { %5287 = vmatpush2.msra.mxu0 %v8484_v42  ;;  %v8537_v42 = vld [vmem:[%s16280_s1 + $0x470] sm:$0xff] }
0x1201   : > { %5288 = vmatprep.subr.mxu0 %v8485_v43  ;;  %v8538_v43 = vld [vmem:[%s16280_s1 + $0x650] sm:$0xff] }
0x1202   : > { %5289 = vmatpush2.msra.mxu0 %v8486_v44  ;;  %v8539_v44 = vld [vmem:[%s16280_s1 + $0x468] sm:$0xff] }
0x1203   : > { %5290 = vmatprep.subr.mxu0 %v8487_v45  ;;  %v8540_v45 = vld [vmem:[%s16280_s1 + $0x648] sm:$0xff] }
0x1204   : > { %5291 = vmatpush2.msra.mxu0 %v8488_v47  ;;  %v8541_v47 = vld [vmem:[%s16280_s1 + $0x460] sm:$0xff] }
0x1205   : > { %5292 = vmatprep.subr.mxu0 %v8489_v0  ;;  %v8542_v0 = vld [vmem:[%s16280_s1 + $0x640] sm:$0xff] }
0x1206   : > { %5293 = vmatpush2.msra.mxu0 %v8490_v58  ;;  %v8543_v58 = vld [vmem:[%s16280_s1 + $0x458] sm:$0xff] }
0x1207   : > { %5294 = vmatprep.subr.mxu0 %v8491_v48  ;;  %v8544_v48 = vld [vmem:[%s16280_s1 + $0x638] sm:$0xff] }
0x1208   : > { %5295 = vmatpush2.msra.mxu0 %v8492_v53  ;;  %v8545_v53 = vld [vmem:[%s16280_s1 + $0x450] sm:$0xff] }
0x1209   : > { %5296 = vmatprep.subr.mxu0 %v8493_v54  ;;  %v8546_v54 = vld [vmem:[%s16280_s1 + $0x630] sm:$0xff] }
0x120a   : > { %5297 = vmatpush2.msra.mxu0 %v8494_v55  ;;  %v8547_v55 = vld [vmem:[%s16280_s1 + $0x448] sm:$0xff] }
0x120b   : > { %5298 = vmatprep.subr.mxu0 %v8495_v56  ;;  %v8548_v56 = vld [vmem:[%s16280_s1 + $0x628] sm:$0xff] }
0x120c   : > { %5299 = vmatpush2.msra.mxu0 %v8496_v60  ;;  %v8549_v60 = vld [vmem:[%s16280_s1 + $0x440] sm:$0xff] }
0x120d   : > { %5300 = vmatprep.subr.mxu0 %v8497_v19  ;;  %v8550_v19 = vld [vmem:[%s16280_s1 + $0x620] sm:$0xff] }
0x120e   : > { %5301 = vmatpush2.msra.mxu0 %v8498_v62  ;;  %v8551_v62 = vld [vmem:[%s16280_s1 + $0x438] sm:$0xff] }
0x120f   : > { %5415 = vmatprep.subr.mxu0 %v14665_v52 }
0x128b   : > { %v5157_v37 = vpop.f32.mrf.mxu0 }
0x128d   : > { %v5159_v2 = vpop.f32.mrf.mxu0 }
0x128e   : > { %5373 = vmatprep.mubr.f32.mxu1 %v5159_v2  ;;  %v8553_v2 = vld [vmem:[%s16280_s1 + $0x430] sm:$0xff] }
0x128f   : > { %v5233_v40 = vpop.f32.mrf.mxu0  ;;  %5374 = vmatmul.mubr.f32.vlgmr.msra.gmra.mxu1 %v5157_v37  ;;  %v8552_v37 = vld [vmem:[%s16280_s1 + $0x618] sm:$0xff] }
0x1290   : > { %5565 = vmatpush1.msra.mxu1 %v14663_v50  ;;  %5598 = vmatprep.mubr.f32.mxu1 %v8955_v4 }
0x1291   : > { %v5235_v3 = vpop.f32.mrf.mxu0  ;;  %5605 = vmatprep.subr.mxu1 %v8499_v6  ;;  %v8557_v6 = vld [vmem:[%s16280_s1 + $0x420] sm:$0xff] }
0x1292   : > { %5302 = vmatprep.mubr.f32.mxu0 %v5235_v3  ;;  %v8556_v3 = vld [vmem:[%s16280_s1 + $0x608] sm:$0xff] }
0x1293   : > { %5303 = vmatmul.mubr.f32.vlgmr.msra.gmra.mxu0 %v5233_v40  ;;  %7174 = vmatmul.mubr.msk.f32.vlgmr.msra.gmra.mxu1 %vm359_vm0, %v7173_v13  ;;  %v8554_v40 = vld [vmem:[%s16280_s1 + $0x610] sm:$0xff]  ;;  %v8555_v13 = vld [vmem:[%s16280_s1 + $0x428] sm:$0xff] }
0x1294   : > { %5416 = vmatpush1.msra.mxu0 %v14663_v50  ;;  %5606 = vmatpush1.msra.mxu1 %v8500_v59  ;;  %v8558_v59 = vld [vmem:[%s16280_s1 + $0x600] sm:$0xff] }
0x1295   : > { %5607 = vmatprep.subr.mxu1 %v8501_v46  ;;  %5449 = vmatprep.mubr.f32.mxu0 %v8955_v4  ;;  %v8560_v46 = vld [vmem:[%s16280_s1 + $0x7f8] sm:$0xff] }
0x1296   : > { %5608 = vmatpush1.msra.mxu1 %v8502_v8  ;;  %5456 = vmatprep.subr.mxu0 %v8503_v57  ;;  %v8561_v8 = vld [vmem:[%s16280_s1 + $0x410] sm:$0xff] }
0x1297   : > { %5609 = vmatprep.subr.mxu1 %v8504_v15  ;;  %7172 = vmatmul.mubr.msk.f32.vlgmr.msra.gmra.mxu0 %vm359_vm0, %v7171_v21  ;;  %v8559_v21 = vld [vmem:[%s16280_s1 + $0x418] sm:$0xff]  ;;  %v8562_v57 = vld [vmem:[%s16280_s1 + $0x7f0] sm:$0xff]  ;;  %v8563_v15 = vld [vmem:[%s16280_s1 + $0x408] sm:$0xff] }
0x1298   : > { %5457 = vmatpush1.msra.mxu0 %v8505_v16  ;;  %5610 = vmatpush1.msra.mxu1 %v8506_v20  ;;  %v8564_v16 = vld [vmem:[%s16280_s1 + $0x7e8] sm:$0xff]  ;;  %v8565_v20 = vld [vmem:[%s16280_s1 + $0x400] sm:$0xff] }
0x1299   : > { %5458 = vmatprep.subr.mxu0 %v8507_v5  ;;  %5611 = vmatprep.subr.mxu1 %v8508_v35  ;;  %v8566_v5 = vld [vmem:[%s16280_s1 + $0x7e0] sm:$0xff]  ;;  %v8567_v35 = vld [vmem:[%s16280_s1 + $0x5f8] sm:$0xff] }
0x129a   : > { %5459 = vmatpush1.msra.mxu0 %v8509_v63  ;;  %5612 = vmatpush1.msra.mxu1 %v8510_v7  ;;  %v8568_v63 = vld [vmem:[%s16280_s1 + $0x7d8] sm:$0xff]  ;;  %v8569_v7 = vld [vmem:[%s16280_s1 + $0x5f0] sm:$0xff] }
0x129b   : > { %5460 = vmatprep.subr.mxu0 %v8511_v22  ;;  %5613 = vmatprep.subr.mxu1 %v8512_v23  ;;  %v8570_v22 = vld [vmem:[%s16280_s1 + $0x7d0] sm:$0xff]  ;;  %v8571_v23 = vld [vmem:[%s16280_s1 + $0x5e8] sm:$0xff] }
0x129c   : > { %5461 = vmatpush1.msra.mxu0 %v8513_v61  ;;  %5614 = vmatpush1.msra.mxu1 %v8514_v24  ;;  %v8572_v61 = vld [vmem:[%s16280_s1 + $0x7c8] sm:$0xff]  ;;  %v8573_v24 = vld [vmem:[%s16280_s1 + $0x5e0] sm:$0xff] }
0x129d   : > { %5462 = vmatprep.subr.mxu0 %v8515_v25  ;;  %5615 = vmatprep.subr.mxu1 %v8516_v26  ;;  %v8574_v25 = vld [vmem:[%s16280_s1 + $0x7c0] sm:$0xff]  ;;  %v8575_v26 = vld [vmem:[%s16280_s1 + $0x5d8] sm:$0xff] }
0x129e   : > { %5463 = vmatpush1.msra.mxu0 %v8517_v27  ;;  %5616 = vmatpush1.msra.mxu1 %v8518_v28  ;;  %v8576_v27 = vld [vmem:[%s16280_s1 + $0x7b8] sm:$0xff]  ;;  %v8577_v28 = vld [vmem:[%s16280_s1 + $0x5d0] sm:$0xff] }
0x129f   : > { %5464 = vmatprep.subr.mxu0 %v8519_v29  ;;  %5617 = vmatprep.subr.mxu1 %v8520_v30  ;;  %v8578_v29 = vld [vmem:[%s16280_s1 + $0x7b0] sm:$0xff]  ;;  %v8579_v30 = vld [vmem:[%s16280_s1 + $0x5c8] sm:$0xff] }
0x12a0   : > { %5465 = vmatpush1.msra.mxu0 %v8521_v31  ;;  %5618 = vmatpush1.msra.mxu1 %v8522_v32  ;;  %v8580_v31 = vld [vmem:[%s16280_s1 + $0x7a8] sm:$0xff]  ;;  %v8581_v32 = vld [vmem:[%s16280_s1 + $0x5c0] sm:$0xff] }
0x12a1   : > { %5466 = vmatprep.subr.mxu0 %v8523_v33  ;;  %5619 = vmatprep.subr.mxu1 %v8524_v34  ;;  %v8582_v33 = vld [vmem:[%s16280_s1 + $0x7a0] sm:$0xff]  ;;  %v8583_v34 = vld [vmem:[%s16280_s1 + $0x5b8] sm:$0xff] }
0x12a2   : > { %5467 = vmatpush1.msra.mxu0 %v8525_v36  ;;  %5620 = vmatpush1.msra.mxu1 %v8526_v17  ;;  %v8584_v36 = vld [vmem:[%s16280_s1 + $0x798] sm:$0xff]  ;;  %v8585_v17 = vld [vmem:[%s16280_s1 + $0x5b0] sm:$0xff] }
0x12a3   : > { %5468 = vmatprep.subr.mxu0 %v8527_v38  ;;  %5621 = vmatprep.subr.mxu1 %v8528_v10  ;;  %v8586_v38 = vld [vmem:[%s16280_s1 + $0x790] sm:$0xff]  ;;  %v8587_v10 = vld [vmem:[%s16280_s1 + $0x5a8] sm:$0xff] }
0x12a4   : > { %5469 = vmatpush1.msra.mxu0 %v8529_v9  ;;  %5622 = vmatpush1.msra.mxu1 %v8530_v39  ;;  %v8588_v9 = vld [vmem:[%s16280_s1 + $0x788] sm:$0xff]  ;;  %v8589_v39 = vld [vmem:[%s16280_s1 + $0x5a0] sm:$0xff] }
0x12a5   : > { %5470 = vmatprep.subr.mxu0 %v8531_v12  ;;  %5623 = vmatprep.subr.mxu1 %v8532_v41  ;;  %v8590_v12 = vld [vmem:[%s16280_s1 + $0x780] sm:$0xff]  ;;  %v8591_v41 = vld [vmem:[%s16280_s1 + $0x598] sm:$0xff] }
0x12a6   : > { %5471 = vmatpush1.msra.mxu0 %v8533_v14  ;;  %5624 = vmatpush1.msra.mxu1 %v8534_v1  ;;  %v8592_v14 = vld [vmem:[%s16280_s1 + $0x778] sm:$0xff]  ;;  %v8593_v1 = vld [vmem:[%s16280_s1 + $0x590] sm:$0xff] }
0x12a7   : > { %5472 = vmatprep.subr.mxu0 %v8535_v11  ;;  %5625 = vmatprep.subr.mxu1 %v8536_v18  ;;  %v8594_v11 = vld [vmem:[%s16280_s1 + $0x770] sm:$0xff]  ;;  %v8595_v18 = vld [vmem:[%s16280_s1 + $0x588] sm:$0xff] }
0x12a8   : > { %5473 = vmatpush1.msra.mxu0 %v8537_v42  ;;  %5626 = vmatpush1.msra.mxu1 %v8538_v43  ;;  %v8596_v42 = vld [vmem:[%s16280_s1 + $0x768] sm:$0xff]  ;;  %v8597_v43 = vld [vmem:[%s16280_s1 + $0x580] sm:$0xff] }
0x12a9   : > { %5474 = vmatprep.subr.mxu0 %v8539_v44  ;;  %5627 = vmatprep.subr.mxu1 %v8540_v45  ;;  %v8598_v44 = vld [vmem:[%s16280_s1 + $0x760] sm:$0xff]  ;;  %v8599_v45 = vld [vmem:[%s16280_s1 + $0x578] sm:$0xff] }
0x12aa   : > { %5475 = vmatpush1.msra.mxu0 %v8541_v47  ;;  %5628 = vmatpush1.msra.mxu1 %v8542_v0  ;;  %v8600_v47 = vld [vmem:[%s16280_s1 + $0x758] sm:$0xff]  ;;  %v8601_v0 = vld [vmem:[%s16280_s1 + $0x570] sm:$0xff] }
0x12ab   : > { %5476 = vmatprep.subr.mxu0 %v8543_v58  ;;  %5629 = vmatprep.subr.mxu1 %v8544_v48  ;;  %v8602_v58 = vld [vmem:[%s16280_s1 + $0x750] sm:$0xff]  ;;  %v8603_v48 = vld [vmem:[%s16280_s1 + $0x568] sm:$0xff] }
0x12ac   : > { %5477 = vmatpush1.msra.mxu0 %v8545_v53  ;;  %5630 = vmatpush1.msra.mxu1 %v8546_v54  ;;  %v8604_v53 = vld [vmem:[%s16280_s1 + $0x748] sm:$0xff]  ;;  %v8605_v54 = vld [vmem:[%s16280_s1 + $0x560] sm:$0xff] }
0x12ad   : > { %5478 = vmatprep.subr.mxu0 %v8547_v55  ;;  %5631 = vmatprep.subr.mxu1 %v8548_v56  ;;  %v8606_v55 = vld [vmem:[%s16280_s1 + $0x740] sm:$0xff]  ;;  %v8607_v56 = vld [vmem:[%s16280_s1 + $0x558] sm:$0xff] }
0x12ae   : > { %5479 = vmatpush1.msra.mxu0 %v8549_v60  ;;  %5632 = vmatpush1.msra.mxu1 %v8550_v19  ;;  %v8608_v60 = vld [vmem:[%s16280_s1 + $0x738] sm:$0xff]  ;;  %v8609_v19 = vld [vmem:[%s16280_s1 + $0x550] sm:$0xff] }
0x12af   : > { %5480 = vmatprep.subr.mxu0 %v8551_v62  ;;  %5633 = vmatprep.subr.mxu1 %v8552_v37  ;;  %v8610_v62 = vld [vmem:[%s16280_s1 + $0x730] sm:$0xff]  ;;  %v8611_v37 = vld [vmem:[%s16280_s1 + $0x548] sm:$0xff] }
0x12b0   : > { %5481 = vmatpush1.msra.mxu0 %v8553_v2  ;;  %5634 = vmatpush1.msra.mxu1 %v8554_v40  ;;  %v8612_v2 = vld [vmem:[%s16280_s1 + $0x728] sm:$0xff]  ;;  %v8613_v40 = vld [vmem:[%s16280_s1 + $0x540] sm:$0xff] }
0x12b1   : > { %5482 = vmatprep.subr.mxu0 %v8555_v13  ;;  %5635 = vmatprep.subr.mxu1 %v8556_v3  ;;  %v8614_v13 = vld [vmem:[%s16280_s1 + $0x720] sm:$0xff]  ;;  %v8615_v3 = vld [vmem:[%s16280_s1 + $0x538] sm:$0xff] }
0x12b2   : > { %5483 = vmatpush1.msra.mxu0 %v8557_v6  ;;  %5636 = vmatpush1.msra.mxu1 %v8558_v59  ;;  %v8616_v6 = vld [vmem:[%s16280_s1 + $0x718] sm:$0xff]  ;;  %v8617_v59 = vld [vmem:[%s16280_s1 + $0x530] sm:$0xff] }
0x12b3   : > { %5484 = vmatprep.subr.mxu0 %v8559_v21  ;;  %5637 = vmatprep.subr.mxu1 %v8560_v46  ;;  %v8618_v21 = vld [vmem:[%s16280_s1 + $0x710] sm:$0xff]  ;;  %v8619_v46 = vld [vmem:[%s16280_s1 + $0x528] sm:$0xff] }
0x12b4   : > { %5485 = vmatpush1.msra.mxu0 %v8561_v8  ;;  %5638 = vmatpush2.msra.mxu1 %v8562_v57  ;;  %v8620_v8 = vld [vmem:[%s16280_s1 + $0x708] sm:$0xff]  ;;  %v8621_v57 = vld [vmem:[%s16280_s1 + $0x520] sm:$0xff] }
0x12b5   : > { %5486 = vmatprep.subr.mxu0 %v8563_v15  ;;  %5639 = vmatprep.subr.mxu1 %v8564_v16  ;;  %v8622_v15 = vld [vmem:[%s16280_s1 + $0x700] sm:$0xff]  ;;  %v8623_v16 = vld [vmem:[%s16280_s1 + $0x518] sm:$0xff] }
0x12b6   : > { %5487 = vmatpush1.msra.mxu0 %v8565_v20  ;;  %5640 = vmatpush2.msra.mxu1 %v8566_v5  ;;  %v8624_v20 = vld [vmem:[%s16280_s1 + $0x510] sm:$0xff]  ;;  %v8625_v5 = vld [vmem:[%s16280_s1 + $0x508] sm:$0xff] }
0x12b7   : > { %5488 = vmatprep.subr.mxu0 %v8567_v35  ;;  %5641 = vmatprep.subr.mxu1 %v8568_v63  ;;  %v8626_v35 = vld [vmem:[%s16280_s1 + $0x500] sm:$0xff] }
0x12b8   : > { %5489 = vmatpush2.msra.mxu0 %v8569_v7  ;;  %5642 = vmatpush2.msra.mxu1 %v8570_v22 }
0x12b9   : > { %5490 = vmatprep.subr.mxu0 %v8571_v23  ;;  %5643 = vmatprep.subr.mxu1 %v8572_v61 }
0x12ba   : > { %5491 = vmatpush2.msra.mxu0 %v8573_v24  ;;  %5644 = vmatpush2.msra.mxu1 %v8574_v25 }
0x12bb   : > { %5492 = vmatprep.subr.mxu0 %v8575_v26  ;;  %5645 = vmatprep.subr.mxu1 %v8576_v27 }
0x12bc   : > { %5493 = vmatpush2.msra.mxu0 %v8577_v28  ;;  %5646 = vmatpush2.msra.mxu1 %v8578_v29  ;;  %v7177_v28 = vld [vmem:[%s9033_s14 + $0x100] sm:$0xff] }
0x12bd   : > { %5494 = vmatprep.subr.mxu0 %v8579_v30  ;;  %5647 = vmatprep.subr.mxu1 %v8580_v31  ;;  %v8627_v30 = vld [vmem:[%s16280_s1 + $0xaf8] sm:$0xff]  ;;  %v8628_v31 = vld [vmem:[%s16280_s1 + $0xaf0] sm:$0xff] }
0x12be   : > { %5495 = vmatpush2.msra.mxu0 %v8581_v32  ;;  %5648 = vmatpush2.msra.mxu1 %v8582_v33  ;;  %v7175_v32 = vld [vmem:[%s9033_s14 + $0xf8] sm:$0xff]  ;;  %v8629_v33 = vld [vmem:[%s16280_s1 + $0xae8] sm:$0xff] }
0x12bf   : > { %5496 = vmatprep.subr.mxu0 %v8583_v34  ;;  %5649 = vmatprep.subr.mxu1 %v8584_v36  ;;  %v8630_v34 = vld [vmem:[%s16280_s1 + $0xae0] sm:$0xff]  ;;  %v8631_v36 = vld [vmem:[%s16280_s1 + $0x8f8] sm:$0xff] }
0x12c0   : > { %5497 = vmatpush2.msra.mxu0 %v8585_v17  ;;  %5650 = vmatpush2.msra.mxu1 %v8586_v38  ;;  %v8632_v17 = vld [vmem:[%s16280_s1 + $0xad8] sm:$0xff]  ;;  %v8633_v38 = vld [vmem:[%s16280_s1 + $0x8f0] sm:$0xff] }
0x12c1   : > { %5498 = vmatprep.subr.mxu0 %v8587_v10  ;;  %5651 = vmatprep.subr.mxu1 %v8588_v9  ;;  %v8634_v10 = vld [vmem:[%s16280_s1 + $0xad0] sm:$0xff]  ;;  %v8635_v9 = vld [vmem:[%s16280_s1 + $0x8e8] sm:$0xff] }
0x12c2   : > { %5499 = vmatpush2.msra.mxu0 %v8589_v39  ;;  %5652 = vmatpush2.msra.mxu1 %v8590_v12  ;;  %v8636_v39 = vld [vmem:[%s16280_s1 + $0xac8] sm:$0xff]  ;;  %v8637_v12 = vld [vmem:[%s16280_s1 + $0x8e0] sm:$0xff] }
0x12c3   : > { %5500 = vmatprep.subr.mxu0 %v8591_v41  ;;  %5653 = vmatprep.subr.mxu1 %v8592_v14  ;;  %v8638_v41 = vld [vmem:[%s16280_s1 + $0xac0] sm:$0xff]  ;;  %v8639_v14 = vld [vmem:[%s16280_s1 + $0x8d8] sm:$0xff] }
0x12c4   : > { %5501 = vmatpush2.msra.mxu0 %v8593_v1  ;;  %5654 = vmatpush2.msra.mxu1 %v8594_v11  ;;  %v8640_v1 = vld [vmem:[%s16280_s1 + $0xab8] sm:$0xff]  ;;  %v8641_v11 = vld [vmem:[%s16280_s1 + $0x8d0] sm:$0xff] }
0x12c5   : > { %5502 = vmatprep.subr.mxu0 %v8595_v18  ;;  %5655 = vmatprep.subr.mxu1 %v8596_v42  ;;  %v8642_v18 = vld [vmem:[%s16280_s1 + $0xab0] sm:$0xff]  ;;  %v8643_v42 = vld [vmem:[%s16280_s1 + $0x8c8] sm:$0xff] }
0x12c6   : > { %5503 = vmatpush2.msra.mxu0 %v8597_v43  ;;  %5656 = vmatpush2.msra.mxu1 %v8598_v44  ;;  %v8644_v43 = vld [vmem:[%s16280_s1 + $0xaa8] sm:$0xff]  ;;  %v8645_v44 = vld [vmem:[%s16280_s1 + $0x8c0] sm:$0xff] }
0x12c7   : > { %5504 = vmatprep.subr.mxu0 %v8599_v45  ;;  %5657 = vmatprep.subr.mxu1 %v8600_v47  ;;  %v8646_v45 = vld [vmem:[%s16280_s1 + $0xaa0] sm:$0xff]  ;;  %v8647_v47 = vld [vmem:[%s16280_s1 + $0x8b8] sm:$0xff] }
0x12c8   : > { %5505 = vmatpush2.msra.mxu0 %v8601_v0  ;;  %5658 = vmatpush2.msra.mxu1 %v8602_v58  ;;  %v8648_v0 = vld [vmem:[%s16280_s1 + $0xa98] sm:$0xff]  ;;  %v8649_v58 = vld [vmem:[%s16280_s1 + $0x8b0] sm:$0xff] }
0x12c9   : > { %5506 = vmatprep.subr.mxu0 %v8603_v48  ;;  %5659 = vmatprep.subr.mxu1 %v8604_v53  ;;  %v8650_v48 = vld [vmem:[%s16280_s1 + $0xa90] sm:$0xff]  ;;  %v8651_v53 = vld [vmem:[%s16280_s1 + $0x8a8] sm:$0xff] }
0x12ca   : > { %5507 = vmatpush2.msra.mxu0 %v8605_v54  ;;  %5660 = vmatpush2.msra.mxu1 %v8606_v55  ;;  %v8652_v54 = vld [vmem:[%s16280_s1 + $0xa88] sm:$0xff]  ;;  %v8653_v55 = vld [vmem:[%s16280_s1 + $0x8a0] sm:$0xff] }
0x12cb   : > { %5508 = vmatprep.subr.mxu0 %v8607_v56  ;;  %5661 = vmatprep.subr.mxu1 %v8608_v60  ;;  %v8654_v56 = vld [vmem:[%s16280_s1 + $0xa80] sm:$0xff]  ;;  %v8655_v60 = vld [vmem:[%s16280_s1 + $0x898] sm:$0xff] }
0x12cc   : > { %5509 = vmatpush2.msra.mxu0 %v8609_v19  ;;  %5662 = vmatpush2.msra.mxu1 %v8610_v62  ;;  %v8656_v19 = vld [vmem:[%s16280_s1 + $0xa78] sm:$0xff]  ;;  %v8657_v62 = vld [vmem:[%s16280_s1 + $0x890] sm:$0xff] }
0x12cd   : > { %5510 = vmatprep.subr.mxu0 %v8611_v37  ;;  %5663 = vmatprep.subr.mxu1 %v8612_v2  ;;  %v8658_v37 = vld [vmem:[%s16280_s1 + $0xa70] sm:$0xff]  ;;  %v8659_v2 = vld [vmem:[%s16280_s1 + $0x888] sm:$0xff] }
0x12ce   : > { %5511 = vmatpush2.msra.mxu0 %v8613_v40  ;;  %5664 = vmatpush2.msra.mxu1 %v8614_v13  ;;  %v8660_v40 = vld [vmem:[%s16280_s1 + $0xa68] sm:$0xff]  ;;  %v8661_v13 = vld [vmem:[%s16280_s1 + $0x880] sm:$0xff] }
0x12cf   : > { %5512 = vmatprep.subr.mxu0 %v8615_v3  ;;  %5665 = vmatprep.subr.mxu1 %v8616_v6  ;;  %v8662_v3 = vld [vmem:[%s16280_s1 + $0xa60] sm:$0xff]  ;;  %v8663_v6 = vld [vmem:[%s16280_s1 + $0x878] sm:$0xff] }
0x12d0   : > { %5513 = vmatpush2.msra.mxu0 %v8617_v59  ;;  %5666 = vmatpush2.msra.mxu1 %v8618_v21  ;;  %v8664_v59 = vld [vmem:[%s16280_s1 + $0xa58] sm:$0xff]  ;;  %v8665_v21 = vld [vmem:[%s16280_s1 + $0x870] sm:$0xff] }
0x12d1   : > { %5514 = vmatprep.subr.mxu0 %v8619_v46  ;;  %5667 = vmatprep.subr.mxu1 %v8620_v8  ;;  %v8666_v46 = vld [vmem:[%s16280_s1 + $0xa50] sm:$0xff]  ;;  %v8667_v8 = vld [vmem:[%s16280_s1 + $0x868] sm:$0xff] }
0x12d2   : > { %5515 = vmatpush2.msra.mxu0 %v8621_v57  ;;  %5668 = vmatpush2.msra.mxu1 %v8622_v15  ;;  %v8668_v57 = vld [vmem:[%s16280_s1 + $0xa48] sm:$0xff]  ;;  %v8669_v15 = vld [vmem:[%s16280_s1 + $0x860] sm:$0xff] }
0x12d3   : > { %5516 = vmatprep.subr.mxu0 %v8623_v16  ;;  %5862 = vmatprep.subr.mxu1 %v14665_v52  ;;  %v8670_v16 = vld [vmem:[%s16280_s1 + $0xa40] sm:$0xff] }
0x12d4   : > { %5517 = vmatpush2.msra.mxu0 %v8624_v20  ;;  %v8671_v20 = vld [vmem:[%s16280_s1 + $0x858] sm:$0xff] }
0x12d5   : > { %5518 = vmatprep.subr.mxu0 %v8625_v5  ;;  %v8672_v5 = vld [vmem:[%s16280_s1 + $0xa38] sm:$0xff] }
0x12d6   : > { %5519 = vmatpush2.msra.mxu0 %v8626_v35  ;;  %v8673_v35 = vld [vmem:[%s16280_s1 + $0x850] sm:$0xff] }
0x12d7   : > { %5713 = vmatprep.subr.mxu0 %v14665_v52 }
0x134f   : > { %v5375_v63 = vpop.f32.mrf.mxu1 }
0x1351   : > { %v5377_v7 = vpop.f32.mrf.mxu1 }
0x1353   : > { %v5304_v22 = vpop.f32.mrf.mxu0  ;;  %v5600_v23 = vpop.f32.mrf.mxu1 }
0x1354   : > { %v15264_v61 = vadd.f32 %v5375_v63, %v5304_v22  ;;  %v8674_v63 = vld [vmem:[%s16280_s1 + $0xa30] sm:$0xff]  ;;  %v8676_v22 = vld [vmem:[%s16280_s1 + $0xa28] sm:$0xff] }
0x1355   : > { %v5306_v24 = vpop.f32.mrf.mxu0  ;;  %v5602_v25 = vpop.f32.mrf.mxu1 }
0x1356   : > { %v15266_v26 = vadd.f32 %v5377_v7, %v5306_v24  ;;  %5669 = vmatprep.mubr.f32.mxu1 %v5602_v25  ;;  %v8675_v7 = vld [vmem:[%s16280_s1 + $0x848] sm:$0xff]  ;;  %v8678_v24 = vld [vmem:[%s16280_s1 + $0xa20] sm:$0xff]  ;;  %v8679_v25 = vld [vmem:[%s16280_s1 + $0x838] sm:$0xff] }
0x1357   : > { %v5451_v27 = vpop.f32.mrf.mxu0  ;;  %5670 = vmatmul.mubr.f32.vlgmr.msra.gmra.mxu1 %v5600_v23  ;;  %v8677_v23 = vld [vmem:[%s16280_s1 + $0x840] sm:$0xff] }
0x1358   : > { %5863 = vmatpush1.msra.mxu1 %v14663_v50  ;;  %5896 = vmatprep.mubr.f32.mxu1 %v8955_v4 }
0x1359   : > { %v5453_v29 = vpop.f32.mrf.mxu0  ;;  %5903 = vmatprep.subr.mxu1 %v8627_v30  ;;  %v8683_v30 = vld [vmem:[%s16280_s1 + $0x828] sm:$0xff] }
0x135a   : > { %5520 = vmatprep.mubr.f32.mxu0 %v5453_v29  ;;  %v8682_v29 = vld [vmem:[%s16280_s1 + $0xa10] sm:$0xff] }
0x135b   : > { %5521 = vmatmul.mubr.f32.vlgmr.msra.gmra.mxu0 %v5451_v27  ;;  %7178 = vmatmul.mubr.msk.f32.vlgmr.msra.gmra.mxu1 %vm359_vm0, %v7177_v28  ;;  %v8680_v27 = vld [vmem:[%s16280_s1 + $0xa18] sm:$0xff]  ;;  %v8681_v28 = vld [vmem:[%s16280_s1 + $0x830] sm:$0xff] }
0x135c   : > { %5714 = vmatpush1.msra.mxu0 %v14663_v50  ;;  %5904 = vmatpush1.msra.mxu1 %v8628_v31  ;;  %v8684_v31 = vld [vmem:[%s16280_s1 + $0xa08] sm:$0xff] }
0x135d   : > { %5905 = vmatprep.subr.mxu1 %v8629_v33  ;;  %5747 = vmatprep.mubr.f32.mxu0 %v8955_v4  ;;  %v8686_v33 = vld [vmem:[%s16280_s1 + $0xa00] sm:$0xff] }
0x135e   : > { %5906 = vmatpush1.msra.mxu1 %v8630_v34  ;;  %5754 = vmatprep.subr.mxu0 %v8631_v36  ;;  %v8687_v34 = vld [vmem:[%s16280_s1 + $0x818] sm:$0xff] }
0x135f   : > { %5907 = vmatprep.subr.mxu1 %v8632_v17  ;;  %7176 = vmatmul.mubr.msk.f32.vlgmr.msra.gmra.mxu0 %vm359_vm0, %v7175_v32  ;;  %v8685_v32 = vld [vmem:[%s16280_s1 + $0x820] sm:$0xff]  ;;  %v8688_v36 = vld [vmem:[%s16280_s1 + $0xbf8] sm:$0xff]  ;;  %v8689_v17 = vld [vmem:[%s16280_s1 + $0x810] sm:$0xff] }
0x1360   : > { %5755 = vmatpush1.msra.mxu0 %v8633_v38  ;;  %5908 = vmatpush1.msra.mxu1 %v8634_v10  ;;  %v8690_v38 = vld [vmem:[%s16280_s1 + $0xbf0] sm:$0xff]  ;;  %v8691_v10 = vld [vmem:[%s16280_s1 + $0x808] sm:$0xff] }
0x1361   : > { %5756 = vmatprep.subr.mxu0 %v8635_v9  ;;  %5909 = vmatprep.subr.mxu1 %v8636_v39  ;;  %v8692_v9 = vld [vmem:[%s16280_s1 + $0xbe8] sm:$0xff]  ;;  %v8693_v39 = vld [vmem:[%s16280_s1 + $0x800] sm:$0xff] }
0x1362   : > { %5757 = vmatpush1.msra.mxu0 %v8637_v12  ;;  %5910 = vmatpush1.msra.mxu1 %v8638_v41  ;;  %v8694_v12 = vld [vmem:[%s16280_s1 + $0xbe0] sm:$0xff]  ;;  %v8695_v41 = vld [vmem:[%s16280_s1 + $0x9f8] sm:$0xff] }
0x1363   : > { %5758 = vmatprep.subr.mxu0 %v8639_v14  ;;  %5911 = vmatprep.subr.mxu1 %v8640_v1  ;;  %v8696_v14 = vld [vmem:[%s16280_s1 + $0xbd8] sm:$0xff]  ;;  %v8697_v1 = vld [vmem:[%s16280_s1 + $0x9f0] sm:$0xff] }
0x1364   : > { %5759 = vmatpush1.msra.mxu0 %v8641_v11  ;;  %5912 = vmatpush1.msra.mxu1 %v8642_v18  ;;  %v8698_v11 = vld [vmem:[%s16280_s1 + $0xbd0] sm:$0xff]  ;;  %v8699_v18 = vld [vmem:[%s16280_s1 + $0x9e8] sm:$0xff] }
0x1365   : > { %5760 = vmatprep.subr.mxu0 %v8643_v42  ;;  %5913 = vmatprep.subr.mxu1 %v8644_v43  ;;  %v8700_v42 = vld [vmem:[%s16280_s1 + $0xbc8] sm:$0xff]  ;;  %v8701_v43 = vld [vmem:[%s16280_s1 + $0x9e0] sm:$0xff] }
0x1366   : > { %5761 = vmatpush1.msra.mxu0 %v8645_v44  ;;  %5914 = vmatpush1.msra.mxu1 %v8646_v45  ;;  %v8702_v44 = vld [vmem:[%s16280_s1 + $0xbc0] sm:$0xff]  ;;  %v8703_v45 = vld [vmem:[%s16280_s1 + $0x9d8] sm:$0xff] }
0x1367   : > { %5762 = vmatprep.subr.mxu0 %v8647_v47  ;;  %5915 = vmatprep.subr.mxu1 %v8648_v0  ;;  %v8704_v47 = vld [vmem:[%s16280_s1 + $0xbb8] sm:$0xff]  ;;  %v8705_v0 = vld [vmem:[%s16280_s1 + $0x9d0] sm:$0xff] }
0x1368   : > { %5763 = vmatpush1.msra.mxu0 %v8649_v58  ;;  %5916 = vmatpush1.msra.mxu1 %v8650_v48  ;;  %v8706_v58 = vld [vmem:[%s16280_s1 + $0xbb0] sm:$0xff]  ;;  %v8707_v48 = vld [vmem:[%s16280_s1 + $0x9c8] sm:$0xff] }
0x1369   : > { %5764 = vmatprep.subr.mxu0 %v8651_v53  ;;  %5917 = vmatprep.subr.mxu1 %v8652_v54  ;;  %v8708_v53 = vld [vmem:[%s16280_s1 + $0xba8] sm:$0xff]  ;;  %v8709_v54 = vld [vmem:[%s16280_s1 + $0x9c0] sm:$0xff] }
0x136a   : > { %5765 = vmatpush1.msra.mxu0 %v8653_v55  ;;  %5918 = vmatpush1.msra.mxu1 %v8654_v56  ;;  %v8710_v55 = vld [vmem:[%s16280_s1 + $0xba0] sm:$0xff]  ;;  %v8711_v56 = vld [vmem:[%s16280_s1 + $0x9b8] sm:$0xff] }
0x136b   : > { %5766 = vmatprep.subr.mxu0 %v8655_v60  ;;  %5919 = vmatprep.subr.mxu1 %v8656_v19  ;;  %v8712_v60 = vld [vmem:[%s16280_s1 + $0xb98] sm:$0xff]  ;;  %v8713_v19 = vld [vmem:[%s16280_s1 + $0x9b0] sm:$0xff] }
0x136c   : > { %5767 = vmatpush1.msra.mxu0 %v8657_v62  ;;  %5920 = vmatpush1.msra.mxu1 %v8658_v37  ;;  %v8714_v62 = vld [vmem:[%s16280_s1 + $0xb90] sm:$0xff]  ;;  %v8715_v37 = vld [vmem:[%s16280_s1 + $0x9a8] sm:$0xff] }
0x136d   : > { %5768 = vmatprep.subr.mxu0 %v8659_v2  ;;  %5921 = vmatprep.subr.mxu1 %v8660_v40  ;;  %v8716_v2 = vld [vmem:[%s16280_s1 + $0xb88] sm:$0xff]  ;;  %v8717_v40 = vld [vmem:[%s16280_s1 + $0x9a0] sm:$0xff] }
0x136e   : > { %5769 = vmatpush1.msra.mxu0 %v8661_v13  ;;  %5922 = vmatpush1.msra.mxu1 %v8662_v3  ;;  %v8718_v13 = vld [vmem:[%s16280_s1 + $0xb80] sm:$0xff]  ;;  %v8719_v3 = vld [vmem:[%s16280_s1 + $0x998] sm:$0xff] }
0x136f   : > { %5770 = vmatprep.subr.mxu0 %v8663_v6  ;;  %5923 = vmatprep.subr.mxu1 %v8664_v59  ;;  %v8720_v6 = vld [vmem:[%s16280_s1 + $0xb78] sm:$0xff]  ;;  %v8721_v59 = vld [vmem:[%s16280_s1 + $0x990] sm:$0xff] }
0x1370   : > { %5771 = vmatpush1.msra.mxu0 %v8665_v21  ;;  %5924 = vmatpush1.msra.mxu1 %v8666_v46  ;;  %v8722_v21 = vld [vmem:[%s16280_s1 + $0xb70] sm:$0xff]  ;;  %v8723_v46 = vld [vmem:[%s16280_s1 + $0x988] sm:$0xff] }
0x1371   : > { %5772 = vmatprep.subr.mxu0 %v8667_v8  ;;  %5925 = vmatprep.subr.mxu1 %v8668_v57  ;;  %v8724_v8 = vld [vmem:[%s16280_s1 + $0xb68] sm:$0xff]  ;;  %v8725_v57 = vld [vmem:[%s16280_s1 + $0x980] sm:$0xff] }
0x1372   : > { %5773 = vmatpush1.msra.mxu0 %v8669_v15  ;;  %5926 = vmatpush1.msra.mxu1 %v8670_v16  ;;  %v8726_v15 = vld [vmem:[%s16280_s1 + $0xb60] sm:$0xff]  ;;  %v8727_v16 = vld [vmem:[%s16280_s1 + $0x978] sm:$0xff] }
0x1373   : > { %5774 = vmatprep.subr.mxu0 %v8671_v20  ;;  %5927 = vmatprep.subr.mxu1 %v8672_v5  ;;  %v8728_v20 = vld [vmem:[%s16280_s1 + $0xb58] sm:$0xff]  ;;  %v8729_v5 = vld [vmem:[%s16280_s1 + $0x970] sm:$0xff] }
0x1374   : > { %5775 = vmatpush1.msra.mxu0 %v8673_v35  ;;  %5928 = vmatpush1.msra.mxu1 %v8674_v63  ;;  %v8730_v35 = vld [vmem:[%s16280_s1 + $0xb50] sm:$0xff]  ;;  %v8731_v63 = vld [vmem:[%s16280_s1 + $0x968] sm:$0xff] }
0x1375   : > { %5776 = vmatprep.subr.mxu0 %v8675_v7  ;;  %5929 = vmatprep.subr.mxu1 %v8676_v22  ;;  %v8732_v7 = vld [vmem:[%s16280_s1 + $0xb48] sm:$0xff]  ;;  %v8733_v22 = vld [vmem:[%s16280_s1 + $0x960] sm:$0xff] }
0x1376   : > { %5777 = vmatpush1.msra.mxu0 %v8677_v23  ;;  %5930 = vmatpush1.msra.mxu1 %v8678_v24  ;;  %v8734_v23 = vld [vmem:[%s16280_s1 + $0xb40] sm:$0xff]  ;;  %v8735_v24 = vld [vmem:[%s16280_s1 + $0x958] sm:$0xff] }
0x1377   : > { %5778 = vmatprep.subr.mxu0 %v8679_v25  ;;  %5931 = vmatprep.subr.mxu1 %v8680_v27  ;;  %v8736_v25 = vld [vmem:[%s16280_s1 + $0xb38] sm:$0xff]  ;;  %v8737_v27 = vld [vmem:[%s16280_s1 + $0x950] sm:$0xff] }
0x1378   : > { %5779 = vmatpush1.msra.mxu0 %v8681_v28  ;;  %5932 = vmatpush1.msra.mxu1 %v8682_v29  ;;  %v8738_v28 = vld [vmem:[%s16280_s1 + $0xb30] sm:$0xff]  ;;  %v8739_v29 = vld [vmem:[%s16280_s1 + $0x948] sm:$0xff] }
0x1379   : > { %5780 = vmatprep.subr.mxu0 %v8683_v30  ;;  %5933 = vmatprep.subr.mxu1 %v8684_v31  ;;  %v8740_v30 = vld [vmem:[%s16280_s1 + $0xb28] sm:$0xff]  ;;  %v8741_v31 = vld [vmem:[%s16280_s1 + $0x940] sm:$0xff] }
0x137a   : > { %5781 = vmatpush1.msra.mxu0 %v8685_v32  ;;  %5934 = vmatpush1.msra.mxu1 %v8686_v33  ;;  %v8742_v32 = vld [vmem:[%s16280_s1 + $0xb20] sm:$0xff]  ;;  %v8743_v33 = vld [vmem:[%s16280_s1 + $0x938] sm:$0xff] }
0x137b   : > { %5782 = vmatprep.subr.mxu0 %v8687_v34  ;;  %5935 = vmatprep.subr.mxu1 %v8688_v36  ;;  %v8744_v34 = vld [vmem:[%s16280_s1 + $0xb18] sm:$0xff]  ;;  %v8745_v36 = vld [vmem:[%s16280_s1 + $0x930] sm:$0xff] }
0x137c   : > { %5783 = vmatpush1.msra.mxu0 %v8689_v17  ;;  %5936 = vmatpush2.msra.mxu1 %v8690_v38  ;;  %v8746_v17 = vld [vmem:[%s16280_s1 + $0xb10] sm:$0xff]  ;;  %v8747_v38 = vld [vmem:[%s16280_s1 + $0x928] sm:$0xff] }
0x137d   : > { %5784 = vmatprep.subr.mxu0 %v8691_v10  ;;  %5937 = vmatprep.subr.mxu1 %v8692_v9  ;;  %v8748_v10 = vld [vmem:[%s16280_s1 + $0xb08] sm:$0xff]  ;;  %v8749_v9 = vld [vmem:[%s16280_s1 + $0x920] sm:$0xff] }
0x137e   : > { %5785 = vmatpush1.msra.mxu0 %v8693_v39  ;;  %5938 = vmatpush2.msra.mxu1 %v8694_v12  ;;  %v8750_v39 = vld [vmem:[%s16280_s1 + $0xb00] sm:$0xff]  ;;  %v8751_v12 = vld [vmem:[%s16280_s1 + $0x918] sm:$0xff] }
0x137f   : > { %5786 = vmatprep.subr.mxu0 %v8695_v41  ;;  %5939 = vmatprep.subr.mxu1 %v8696_v14  ;;  %v8752_v41 = vld [vmem:[%s16280_s1 + $0x910] sm:$0xff]  ;;  %v8753_v14 = vld [vmem:[%s16280_s1 + $0x908] sm:$0xff] }
0x1380   : > { %5787 = vmatpush2.msra.mxu0 %v8697_v1  ;;  %5940 = vmatpush2.msra.mxu1 %v8698_v11  ;;  %v8754_v1 = vld [vmem:[%s16280_s1 + $0x900] sm:$0xff] }
0x1381   : > { %5788 = vmatprep.subr.mxu0 %v8699_v18  ;;  %5941 = vmatprep.subr.mxu1 %v8700_v42 }
0x1382   : > { %5789 = vmatpush2.msra.mxu0 %v8701_v43  ;;  %5942 = vmatpush2.msra.mxu1 %v8702_v44 }
0x1383   : > { %5790 = vmatprep.subr.mxu0 %v8703_v45  ;;  %5943 = vmatprep.subr.mxu1 %v8704_v47 }
0x1384   : > { %5791 = vmatpush2.msra.mxu0 %v8705_v0  ;;  %5944 = vmatpush2.msra.mxu1 %v8706_v58 }
0x1385   : > { %5792 = vmatprep.subr.mxu0 %v8707_v48  ;;  %5945 = vmatprep.subr.mxu1 %v8708_v53  ;;  %v7181_v53 = vld [vmem:[%s9033_s14 + $0x110] sm:$0xff] }
0x1386   : > { %5793 = vmatpush2.msra.mxu0 %v8709_v54  ;;  %5946 = vmatpush2.msra.mxu1 %v8710_v55 }
0x1387   : > { %5794 = vmatprep.subr.mxu0 %v8711_v56  ;;  %5947 = vmatprep.subr.mxu1 %v8712_v60  ;;  %v8756_v56 = vld [vmem:[%s16280_s1 + $0xcf8] sm:$0xff]  ;;  %v8757_v60 = vld [vmem:[%s16280_s1 + $0xef0] sm:$0xff] }
0x1388   : > { %5795 = vmatpush2.msra.mxu0 %v8713_v19  ;;  %5948 = vmatpush2.msra.mxu1 %v8714_v62  ;;  %v8758_v19 = vld [vmem:[%s16280_s1 + $0xee8] sm:$0xff]  ;;  %v8759_v62 = vld [vmem:[%s16280_s1 + $0xee0] sm:$0xff] }
0x1389   : > { %5796 = vmatprep.subr.mxu0 %v8715_v37  ;;  %5949 = vmatprep.subr.mxu1 %v8716_v2  ;;  %v8760_v37 = vld [vmem:[%s16280_s1 + $0xcf0] sm:$0xff]  ;;  %v8761_v2 = vld [vmem:[%s16280_s1 + $0xed8] sm:$0xff] }
0x138a   : > { %5797 = vmatpush2.msra.mxu0 %v8717_v40  ;;  %5950 = vmatpush2.msra.mxu1 %v8718_v13  ;;  %v8762_v40 = vld [vmem:[%s16280_s1 + $0xce8] sm:$0xff]  ;;  %v8763_v13 = vld [vmem:[%s16280_s1 + $0xed0] sm:$0xff] }
0x138b   : > { %5798 = vmatprep.subr.mxu0 %v8719_v3  ;;  %5951 = vmatprep.subr.mxu1 %v8720_v6  ;;  %v8764_v3 = vld [vmem:[%s16280_s1 + $0xce0] sm:$0xff]  ;;  %v8765_v6 = vld [vmem:[%s16280_s1 + $0xec8] sm:$0xff] }
0x138c   : > { %5799 = vmatpush2.msra.mxu0 %v8721_v59  ;;  %5952 = vmatpush2.msra.mxu1 %v8722_v21  ;;  %v8766_v59 = vld [vmem:[%s16280_s1 + $0xcd8] sm:$0xff]  ;;  %v8767_v21 = vld [vmem:[%s16280_s1 + $0xec0] sm:$0xff] }
0x138d   : > { %5800 = vmatprep.subr.mxu0 %v8723_v46  ;;  %5953 = vmatprep.subr.mxu1 %v8724_v8  ;;  %v8768_v46 = vld [vmem:[%s16280_s1 + $0xcd0] sm:$0xff]  ;;  %v8769_v8 = vld [vmem:[%s16280_s1 + $0xeb8] sm:$0xff] }
0x138e   : > { %5801 = vmatpush2.msra.mxu0 %v8725_v57  ;;  %5954 = vmatpush2.msra.mxu1 %v8726_v15  ;;  %v8770_v57 = vld [vmem:[%s16280_s1 + $0xcc8] sm:$0xff]  ;;  %v8771_v15 = vld [vmem:[%s16280_s1 + $0xeb0] sm:$0xff] }
0x138f   : > { %5802 = vmatprep.subr.mxu0 %v8727_v16  ;;  %5955 = vmatprep.subr.mxu1 %v8728_v20  ;;  %v8772_v16 = vld [vmem:[%s16280_s1 + $0xcc0] sm:$0xff]  ;;  %v8773_v20 = vld [vmem:[%s16280_s1 + $0xea8] sm:$0xff] }
0x1390   : > { %5803 = vmatpush2.msra.mxu0 %v8729_v5  ;;  %5956 = vmatpush2.msra.mxu1 %v8730_v35  ;;  %v8774_v5 = vld [vmem:[%s16280_s1 + $0xcb8] sm:$0xff]  ;;  %v8775_v35 = vld [vmem:[%s16280_s1 + $0xea0] sm:$0xff] }
0x1391   : > { %5804 = vmatprep.subr.mxu0 %v8731_v63  ;;  %5957 = vmatprep.subr.mxu1 %v8732_v7  ;;  %v8776_v63 = vld [vmem:[%s16280_s1 + $0xcb0] sm:$0xff]  ;;  %v8777_v7 = vld [vmem:[%s16280_s1 + $0xe98] sm:$0xff] }
0x1392   : > { %5805 = vmatpush2.msra.mxu0 %v8733_v22  ;;  %5958 = vmatpush2.msra.mxu1 %v8734_v23  ;;  %v8778_v22 = vld [vmem:[%s16280_s1 + $0xca8] sm:$0xff]  ;;  %v8779_v23 = vld [vmem:[%s16280_s1 + $0xe90] sm:$0xff] }
0x1393   : > { %5806 = vmatprep.subr.mxu0 %v8735_v24  ;;  %5959 = vmatprep.subr.mxu1 %v8736_v25  ;;  %v8780_v24 = vld [vmem:[%s16280_s1 + $0xca0] sm:$0xff]  ;;  %v8781_v25 = vld [vmem:[%s16280_s1 + $0xe88] sm:$0xff] }
0x1394   : > { %5807 = vmatpush2.msra.mxu0 %v8737_v27  ;;  %5960 = vmatpush2.msra.mxu1 %v8738_v28  ;;  %v8782_v27 = vld [vmem:[%s16280_s1 + $0xc98] sm:$0xff]  ;;  %v8783_v28 = vld [vmem:[%s16280_s1 + $0xe80] sm:$0xff] }
0x1395   : > { %5808 = vmatprep.subr.mxu0 %v8739_v29  ;;  %5961 = vmatprep.subr.mxu1 %v8740_v30  ;;  %v8784_v29 = vld [vmem:[%s16280_s1 + $0xc90] sm:$0xff]  ;;  %v8785_v30 = vld [vmem:[%s16280_s1 + $0xe78] sm:$0xff] }
0x1396   : > { %5809 = vmatpush2.msra.mxu0 %v8741_v31  ;;  %5962 = vmatpush2.msra.mxu1 %v8742_v32  ;;  %v8786_v31 = vld [vmem:[%s16280_s1 + $0xc88] sm:$0xff]  ;;  %v8787_v32 = vld [vmem:[%s16280_s1 + $0xe70] sm:$0xff] }
0x1397   : > { %5810 = vmatprep.subr.mxu0 %v8743_v33  ;;  %5963 = vmatprep.subr.mxu1 %v8744_v34  ;;  %v8788_v33 = vld [vmem:[%s16280_s1 + $0xc80] sm:$0xff]  ;;  %v8789_v34 = vld [vmem:[%s16280_s1 + $0xe68] sm:$0xff] }
0x1398   : > { %5811 = vmatpush2.msra.mxu0 %v8745_v36  ;;  %5964 = vmatpush2.msra.mxu1 %v8746_v17  ;;  %v8790_v36 = vld [vmem:[%s16280_s1 + $0xc78] sm:$0xff]  ;;  %v8791_v17 = vld [vmem:[%s16280_s1 + $0xe60] sm:$0xff] }
0x1399   : > { %5812 = vmatprep.subr.mxu0 %v8747_v38  ;;  %5965 = vmatprep.subr.mxu1 %v8748_v10  ;;  %v8792_v38 = vld [vmem:[%s16280_s1 + $0xc70] sm:$0xff]  ;;  %v8793_v10 = vld [vmem:[%s16280_s1 + $0xe58] sm:$0xff] }
0x139a   : > { %5813 = vmatpush2.msra.mxu0 %v8749_v9  ;;  %5966 = vmatpush2.msra.mxu1 %v8750_v39  ;;  %v8794_v9 = vld [vmem:[%s16280_s1 + $0xc68] sm:$0xff]  ;;  %v8795_v39 = vld [vmem:[%s16280_s1 + $0xe50] sm:$0xff] }
0x139b   : > { %5814 = vmatprep.subr.mxu0 %v8751_v12  ;;  %6160 = vmatprep.subr.mxu1 %v14665_v52  ;;  %v8796_v12 = vld [vmem:[%s16280_s1 + $0xc60] sm:$0xff] }
0x139c   : > { %5815 = vmatpush2.msra.mxu0 %v8752_v41  ;;  %v8797_v41 = vld [vmem:[%s16280_s1 + $0xe48] sm:$0xff] }
0x139d   : > { %5816 = vmatprep.subr.mxu0 %v8753_v14  ;;  %v8798_v14 = vld [vmem:[%s16280_s1 + $0xc58] sm:$0xff] }
0x139e   : > { %5817 = vmatpush2.msra.mxu0 %v8754_v1  ;;  %v8799_v1 = vld [vmem:[%s16280_s1 + $0xe40] sm:$0xff] }
0x139f   : > { %6011 = vmatprep.subr.mxu0 %v14665_v52 }
0x1417   : > { %v5671_v11 = vpop.f32.mrf.mxu1 }
0x1419   : > { %v5673_v18 = vpop.f32.mrf.mxu1 }
0x141b   : > { %v5522_v42 = vpop.f32.mrf.mxu0  ;;  %v5898_v43 = vpop.f32.mrf.mxu1 }
0x141c   : > { %v5527_v44 = vadd.f32 %v5522_v42, %v15264_v61  ;;  %v8755_v61 = vld [vmem:[%s16280_s1 + $0xef8] sm:$0xff]  ;;  %v8802_v42 = vld [vmem:[%s16280_s1 + $0xc48] sm:$0xff] }
0x141d   : > { %v5524_v45 = vpop.f32.mrf.mxu0  ;;  %v5900_v47 = vpop.f32.mrf.mxu1 }
0x141e   : > { %v5528_v0 = vadd.f32 %v5524_v45, %v15266_v26  ;;  %5967 = vmatprep.mubr.f32.mxu1 %v5900_v47  ;;  %v15664_v58 = vadd.f32 %v5671_v11, %v5527_v44  ;;  %v7179_v26 = vld [vmem:[%s9033_s14 + $0x108] sm:$0xff]  ;;  %v8800_v11 = vld [vmem:[%s16280_s1 + $0xc50] sm:$0xff]  ;;  %v8804_v44 = vld [vmem:[%s16280_s1 + $0xc40] sm:$0xff] }
0x141f   : > { %v5749_v48 = vpop.f32.mrf.mxu0  ;;  %5968 = vmatmul.mubr.f32.vlgmr.msra.gmra.mxu1 %v5898_v43  ;;  %v8803_v43 = vld [vmem:[%s16280_s1 + $0xe30] sm:$0xff]  ;;  %v8805_v45 = vld [vmem:[%s16280_s1 + $0xe28] sm:$0xff]  ;;  %v8806_v47 = vld [vmem:[%s16280_s1 + $0xc38] sm:$0xff] }
0x1420   : > { %6161 = vmatpush1.msra.mxu1 %v14663_v50  ;;  %6194 = vmatprep.mubr.f32.mxu1 %v8955_v4  ;;  %v15669_v54 = vadd.f32 %v5673_v18, %v5528_v0  ;;  %v8801_v18 = vld [vmem:[%s16280_s1 + $0xe38] sm:$0xff]  ;;  %v8807_v0 = vld [vmem:[%s16280_s1 + $0xe20] sm:$0xff] }
0x1421   : > { %v5751_v55 = vpop.f32.mrf.mxu0  ;;  %6201 = vmatprep.subr.mxu1 %v8755_v61  ;;  %v8811_v61 = vld [vmem:[%s16280_s1 + $0xe10] sm:$0xff] }
0x1422   : > { %5818 = vmatprep.mubr.f32.mxu0 %v5751_v55  ;;  %v8810_v55 = vld [vmem:[%s16280_s1 + $0xc28] sm:$0xff] }
0x1423   : > { %5819 = vmatmul.mubr.f32.vlgmr.msra.gmra.mxu0 %v5749_v48  ;;  %7182 = vmatmul.mubr.msk.f32.vlgmr.msra.gmra.mxu1 %vm359_vm0, %v7181_v53  ;;  %v8808_v48 = vld [vmem:[%s16280_s1 + $0xc30] sm:$0xff]  ;;  %v8809_v53 = vld [vmem:[%s16280_s1 + $0xe18] sm:$0xff] }
0x1424   : > { %6012 = vmatpush1.msra.mxu0 %v14663_v50  ;;  %6045 = vmatprep.mubr.f32.mxu0 %v8955_v4 }
0x1425   : > { %6052 = vmatprep.subr.mxu0 %v8756_v56  ;;  %6202 = vmatpush1.msra.mxu1 %v8757_v60  ;;  %v8813_v56 = vld [vmem:[%s16280_s1 + $0xe08] sm:$0xff]  ;;  %v8814_v60 = vld [vmem:[%s16280_s1 + $0xc18] sm:$0xff] }
0x1426   : > { %6203 = vmatprep.subr.mxu1 %v8758_v19  ;;  %v8815_v19 = vld [vmem:[%s16280_s1 + $0xe00] sm:$0xff] }
0x1427   : > { %7180 = vmatmul.mubr.msk.f32.vlgmr.msra.gmra.mxu0 %vm359_vm0, %v7179_v26  ;;  %6204 = vmatpush1.msra.mxu1 %v8759_v62  ;;  %v8812_v26 = vld [vmem:[%s16280_s1 + $0xc20] sm:$0xff]  ;;  %v8816_v62 = vld [vmem:[%s16280_s1 + $0xc10] sm:$0xff] }
0x1428   : > { %6053 = vmatpush1.msra.mxu0 %v8760_v37  ;;  %6205 = vmatprep.subr.mxu1 %v8761_v2  ;;  %v8817_v37 = vld [vmem:[%s16280_s1 + $0xff8] sm:$0xff]  ;;  %v8818_v2 = vld [vmem:[%s16280_s1 + $0xc08] sm:$0xff] }
0x1429   : > { %6054 = vmatprep.subr.mxu0 %v8762_v40  ;;  %6206 = vmatpush1.msra.mxu1 %v8763_v13  ;;  %v8819_v40 = vld [vmem:[%s16280_s1 + $0xff0] sm:$0xff]  ;;  %v8820_v13 = vld [vmem:[%s16280_s1 + $0xc00] sm:$0xff] }
0x142a   : > { %6055 = vmatpush1.msra.mxu0 %v8764_v3  ;;  %6207 = vmatprep.subr.mxu1 %v8765_v6  ;;  %v8821_v3 = vld [vmem:[%s16280_s1 + $0xfe8] sm:$0xff]  ;;  %v8822_v6 = vld [vmem:[%s16280_s1 + $0xdf8] sm:$0xff] }
0x142b   : > { %6056 = vmatprep.subr.mxu0 %v8766_v59  ;;  %6208 = vmatpush1.msra.mxu1 %v8767_v21  ;;  %v8823_v59 = vld [vmem:[%s16280_s1 + $0xfe0] sm:$0xff]  ;;  %v8824_v21 = vld [vmem:[%s16280_s1 + $0xdf0] sm:$0xff] }
0x142c   : > { %6057 = vmatpush1.msra.mxu0 %v8768_v46  ;;  %6209 = vmatprep.subr.mxu1 %v8769_v8  ;;  %v8825_v46 = vld [vmem:[%s16280_s1 + $0xfd8] sm:$0xff]  ;;  %v8826_v8 = vld [vmem:[%s16280_s1 + $0xde8] sm:$0xff] }
0x142d   : > { %6058 = vmatprep.subr.mxu0 %v8770_v57  ;;  %6210 = vmatpush1.msra.mxu1 %v8771_v15  ;;  %v8827_v57 = vld [vmem:[%s16280_s1 + $0xfd0] sm:$0xff]  ;;  %v8828_v15 = vld [vmem:[%s16280_s1 + $0xde0] sm:$0xff] }
0x142e   : > { %6059 = vmatpush1.msra.mxu0 %v8772_v16  ;;  %6211 = vmatprep.subr.mxu1 %v8773_v20  ;;  %v8829_v16 = vld [vmem:[%s16280_s1 + $0xfc8] sm:$0xff]  ;;  %v8830_v20 = vld [vmem:[%s16280_s1 + $0xdd8] sm:$0xff] }
0x142f   : > { %6060 = vmatprep.subr.mxu0 %v8774_v5  ;;  %6212 = vmatpush1.msra.mxu1 %v8775_v35  ;;  %v8831_v5 = vld [vmem:[%s16280_s1 + $0xfc0] sm:$0xff]  ;;  %v8832_v35 = vld [vmem:[%s16280_s1 + $0xdd0] sm:$0xff] }
0x1430   : > { %6061 = vmatpush1.msra.mxu0 %v8776_v63  ;;  %6213 = vmatprep.subr.mxu1 %v8777_v7  ;;  %v8833_v63 = vld [vmem:[%s16280_s1 + $0xfb8] sm:$0xff]  ;;  %v8834_v7 = vld [vmem:[%s16280_s1 + $0xdc8] sm:$0xff] }
0x1431   : > { %6062 = vmatprep.subr.mxu0 %v8778_v22  ;;  %6214 = vmatpush1.msra.mxu1 %v8779_v23  ;;  %v8835_v22 = vld [vmem:[%s16280_s1 + $0xfb0] sm:$0xff]  ;;  %v8836_v23 = vld [vmem:[%s16280_s1 + $0xdc0] sm:$0xff] }
0x1432   : > { %6063 = vmatpush1.msra.mxu0 %v8780_v24  ;;  %6215 = vmatprep.subr.mxu1 %v8781_v25  ;;  %v8837_v24 = vld [vmem:[%s16280_s1 + $0xfa8] sm:$0xff]  ;;  %v8838_v25 = vld [vmem:[%s16280_s1 + $0xdb8] sm:$0xff] }
0x1433   : > { %6064 = vmatprep.subr.mxu0 %v8782_v27  ;;  %6216 = vmatpush1.msra.mxu1 %v8783_v28  ;;  %v8839_v27 = vld [vmem:[%s16280_s1 + $0xfa0] sm:$0xff]  ;;  %v8840_v28 = vld [vmem:[%s16280_s1 + $0xdb0] sm:$0xff] }
0x1434   : > { %6065 = vmatpush1.msra.mxu0 %v8784_v29  ;;  %6217 = vmatprep.subr.mxu1 %v8785_v30  ;;  %v8841_v29 = vld [vmem:[%s16280_s1 + $0xf98] sm:$0xff]  ;;  %v8842_v30 = vld [vmem:[%s16280_s1 + $0xda8] sm:$0xff] }
0x1435   : > { %6066 = vmatprep.subr.mxu0 %v8786_v31  ;;  %6218 = vmatpush1.msra.mxu1 %v8787_v32  ;;  %v8843_v31 = vld [vmem:[%s16280_s1 + $0xf90] sm:$0xff]  ;;  %v8844_v32 = vld [vmem:[%s16280_s1 + $0xda0] sm:$0xff] }
0x1436   : > { %6067 = vmatpush1.msra.mxu0 %v8788_v33  ;;  %6219 = vmatprep.subr.mxu1 %v8789_v34  ;;  %v8845_v33 = vld [vmem:[%s16280_s1 + $0xf88] sm:$0xff]  ;;  %v8846_v34 = vld [vmem:[%s16280_s1 + $0xd98] sm:$0xff] }
0x1437   : > { %6068 = vmatprep.subr.mxu0 %v8790_v36  ;;  %6220 = vmatpush1.msra.mxu1 %v8791_v17  ;;  %v8847_v36 = vld [vmem:[%s16280_s1 + $0xf80] sm:$0xff]  ;;  %v8848_v17 = vld [vmem:[%s16280_s1 + $0xd90] sm:$0xff] }
0x1438   : > { %6069 = vmatpush1.msra.mxu0 %v8792_v38  ;;  %6221 = vmatprep.subr.mxu1 %v8793_v10  ;;  %v8849_v38 = vld [vmem:[%s16280_s1 + $0xf78] sm:$0xff]  ;;  %v8850_v10 = vld [vmem:[%s16280_s1 + $0xd88] sm:$0xff] }
0x1439   : > { %6070 = vmatprep.subr.mxu0 %v8794_v9  ;;  %6222 = vmatpush1.msra.mxu1 %v8795_v39  ;;  %v8851_v9 = vld [vmem:[%s16280_s1 + $0xf70] sm:$0xff]  ;;  %v8852_v39 = vld [vmem:[%s16280_s1 + $0xd80] sm:$0xff] }
0x143a   : > { %6071 = vmatpush1.msra.mxu0 %v8796_v12  ;;  %6223 = vmatprep.subr.mxu1 %v8797_v41  ;;  %v8853_v12 = vld [vmem:[%s16280_s1 + $0xf68] sm:$0xff]  ;;  %v8854_v41 = vld [vmem:[%s16280_s1 + $0xd78] sm:$0xff] }
0x143b   : > { %6072 = vmatprep.subr.mxu0 %v8798_v14  ;;  %6224 = vmatpush1.msra.mxu1 %v8799_v1  ;;  %v8855_v14 = vld [vmem:[%s16280_s1 + $0xf60] sm:$0xff]  ;;  %v8856_v1 = vld [vmem:[%s16280_s1 + $0xd70] sm:$0xff] }
0x143c   : > { %6073 = vmatpush1.msra.mxu0 %v8800_v11  ;;  %6225 = vmatprep.subr.mxu1 %v8801_v18  ;;  %v8857_v11 = vld [vmem:[%s16280_s1 + $0xf58] sm:$0xff]  ;;  %v8858_v18 = vld [vmem:[%s16280_s1 + $0xd68] sm:$0xff] }
0x143d   : > { %6074 = vmatprep.subr.mxu0 %v8802_v42  ;;  %6226 = vmatpush1.msra.mxu1 %v8803_v43  ;;  %v8859_v42 = vld [vmem:[%s16280_s1 + $0xf50] sm:$0xff]  ;;  %v8860_v43 = vld [vmem:[%s16280_s1 + $0xd60] sm:$0xff] }
0x143e   : > { %6075 = vmatpush1.msra.mxu0 %v8804_v44  ;;  %6227 = vmatprep.subr.mxu1 %v8805_v45  ;;  %v8861_v44 = vld [vmem:[%s16280_s1 + $0xf48] sm:$0xff]  ;;  %v8862_v45 = vld [vmem:[%s16280_s1 + $0xd58] sm:$0xff] }
0x143f   : > { %6076 = vmatprep.subr.mxu0 %v8806_v47  ;;  %6228 = vmatpush1.msra.mxu1 %v8807_v0  ;;  %v8863_v47 = vld [vmem:[%s16280_s1 + $0xf40] sm:$0xff]  ;;  %v8864_v0 = vld [vmem:[%s16280_s1 + $0xd50] sm:$0xff] }
0x1440   : > { %6077 = vmatpush1.msra.mxu0 %v8808_v48  ;;  %6229 = vmatprep.subr.mxu1 %v8809_v53  ;;  %v8865_v48 = vld [vmem:[%s16280_s1 + $0xf38] sm:$0xff]  ;;  %v8866_v53 = vld [vmem:[%s16280_s1 + $0xd48] sm:$0xff] }
0x1441   : > { %6078 = vmatprep.subr.mxu0 %v8810_v55  ;;  %6230 = vmatpush1.msra.mxu1 %v8811_v61  ;;  %v8867_v55 = vld [vmem:[%s16280_s1 + $0xf30] sm:$0xff]  ;;  %v8868_v61 = vld [vmem:[%s16280_s1 + $0xd40] sm:$0xff] }
0x1442   : > { %6079 = vmatpush1.msra.mxu0 %v8812_v26  ;;  %6231 = vmatprep.subr.mxu1 %v8813_v56  ;;  %v8869_v26 = vld [vmem:[%s16280_s1 + $0xf28] sm:$0xff]  ;;  %v8870_v56 = vld [vmem:[%s16280_s1 + $0xd38] sm:$0xff] }
0x1443   : > { %6080 = vmatprep.subr.mxu0 %v8814_v60  ;;  %6232 = vmatpush1.msra.mxu1 %v8815_v19  ;;  %v8871_v60 = vld [vmem:[%s16280_s1 + $0xf20] sm:$0xff]  ;;  %v8872_v19 = vld [vmem:[%s16280_s1 + $0xd30] sm:$0xff] }
0x1444   : > { %6081 = vmatpush1.msra.mxu0 %v8816_v62  ;;  %6233 = vmatprep.subr.mxu1 %v8817_v37  ;;  %v8873_v62 = vld [vmem:[%s16280_s1 + $0xf18] sm:$0xff]  ;;  %v8874_v37 = vld [vmem:[%s16280_s1 + $0xd28] sm:$0xff] }
0x1445   : > { %6082 = vmatprep.subr.mxu0 %v8818_v2  ;;  %6234 = vmatpush2.msra.mxu1 %v8819_v40  ;;  %v8875_v2 = vld [vmem:[%s16280_s1 + $0xf10] sm:$0xff]  ;;  %v8876_v40 = vld [vmem:[%s16280_s1 + $0xd20] sm:$0xff] }
0x1446   : > { %6083 = vmatpush1.msra.mxu0 %v8820_v13  ;;  %6235 = vmatprep.subr.mxu1 %v8821_v3  ;;  %v8877_v13 = vld [vmem:[%s16280_s1 + $0xf08] sm:$0xff]  ;;  %v8878_v3 = vld [vmem:[%s16280_s1 + $0xd18] sm:$0xff] }
0x1447   : > { %6084 = vmatprep.subr.mxu0 %v8822_v6  ;;  %6236 = vmatpush2.msra.mxu1 %v8823_v59  ;;  %v8879_v6 = vld [vmem:[%s16280_s1 + $0xf00] sm:$0xff]  ;;  %v8880_v59 = vld [vmem:[%s16280_s1 + $0xd10] sm:$0xff] }
0x1448   : > { %6085 = vmatpush2.msra.mxu0 %v8824_v21  ;;  %6237 = vmatprep.subr.mxu1 %v8825_v46  ;;  %v8881_v21 = vld [vmem:[%s16280_s1 + $0xd08] sm:$0xff]  ;;  %v8882_v46 = vld [vmem:[%s16280_s1 + $0xd00] sm:$0xff] }
0x1449   : > { %6086 = vmatprep.subr.mxu0 %v8826_v8  ;;  %6238 = vmatpush2.msra.mxu1 %v8827_v57 }
0x144a   : > { %6087 = vmatpush2.msra.mxu0 %v8828_v15  ;;  %6239 = vmatprep.subr.mxu1 %v8829_v16 }
0x144b   : > { %6088 = vmatprep.subr.mxu0 %v8830_v20  ;;  %6240 = vmatpush2.msra.mxu1 %v8831_v5 }
0x144c   : > { %6089 = vmatpush2.msra.mxu0 %v8832_v35  ;;  %6241 = vmatprep.subr.mxu1 %v8833_v63 }
0x144d   : > { %6090 = vmatprep.subr.mxu0 %v8834_v7  ;;  %6242 = vmatpush2.msra.mxu1 %v8835_v22 }
0x144e   : > { %6091 = vmatpush2.msra.mxu0 %v8836_v23  ;;  %6243 = vmatprep.subr.mxu1 %v8837_v24 }
0x144f   : > { %6092 = vmatprep.subr.mxu0 %v8838_v25  ;;  %6244 = vmatpush2.msra.mxu1 %v8839_v27  ;;  %v8885_v25 = vld [vmem:[%s16280_s1 + $0x10e8] sm:$0xff]  ;;  %v8888_v27 = vld [vmem:[%s16280_s1 + $0x10d0] sm:$0xff] }
0x1450   : > { %6093 = vmatpush2.msra.mxu0 %v8840_v28  ;;  %6245 = vmatprep.subr.mxu1 %v8841_v29  ;;  %v8889_v28 = vld [vmem:[%s16280_s1 + $0x10c8] sm:$0xff]  ;;  %v8890_v29 = vld [vmem:[%s16280_s1 + $0x10c0] sm:$0xff] }
0x1451   : > { %6094 = vmatprep.subr.mxu0 %v8842_v30  ;;  %6246 = vmatpush2.msra.mxu1 %v8843_v31  ;;  %v8891_v30 = vld [vmem:[%s16280_s1 + $0x10b8] sm:$0xff]  ;;  %v8892_v31 = vld [vmem:[%s16280_s1 + $0x10b0] sm:$0xff] }
0x1452   : > { %6095 = vmatpush2.msra.mxu0 %v8844_v32  ;;  %6247 = vmatprep.subr.mxu1 %v8845_v33  ;;  %v8893_v32 = vld [vmem:[%s16280_s1 + $0x10a8] sm:$0xff]  ;;  %v8894_v33 = vld [vmem:[%s16280_s1 + $0x10a0] sm:$0xff] }
0x1453   : > { %6096 = vmatprep.subr.mxu0 %v8846_v34  ;;  %6248 = vmatpush2.msra.mxu1 %v8847_v36  ;;  %v8895_v34 = vld [vmem:[%s16280_s1 + $0x1098] sm:$0xff]  ;;  %v8896_v36 = vld [vmem:[%s16280_s1 + $0x1090] sm:$0xff] }
0x1454   : > { %6097 = vmatpush2.msra.mxu0 %v8848_v17  ;;  %6249 = vmatprep.subr.mxu1 %v8849_v38  ;;  %v8897_v17 = vld [vmem:[%s16280_s1 + $0x1088] sm:$0xff]  ;;  %v8898_v38 = vld [vmem:[%s16280_s1 + $0x1080] sm:$0xff] }
0x1455   : > { %6098 = vmatprep.subr.mxu0 %v8850_v10  ;;  %6250 = vmatpush2.msra.mxu1 %v8851_v9  ;;  %v8899_v10 = vld [vmem:[%s16280_s1 + $0x1078] sm:$0xff]  ;;  %v8900_v9 = vld [vmem:[%s16280_s1 + $0x1070] sm:$0xff] }
0x1456   : > { %6099 = vmatpush2.msra.mxu0 %v8852_v39  ;;  %6251 = vmatprep.subr.mxu1 %v8853_v12  ;;  %v8901_v39 = vld [vmem:[%s16280_s1 + $0x1068] sm:$0xff]  ;;  %v8902_v12 = vld [vmem:[%s16280_s1 + $0x1060] sm:$0xff] }
0x1457   : > { %6100 = vmatprep.subr.mxu0 %v8854_v41  ;;  %6252 = vmatpush2.msra.mxu1 %v8855_v14  ;;  %v8903_v41 = vld [vmem:[%s16280_s1 + $0x1058] sm:$0xff]  ;;  %v8904_v14 = vld [vmem:[%s16280_s1 + $0x1050] sm:$0xff] }
0x1458   : > { %6101 = vmatpush2.msra.mxu0 %v8856_v1  ;;  %6253 = vmatprep.subr.mxu1 %v8857_v11  ;;  %v8905_v1 = vld [vmem:[%s16280_s1 + $0x1048] sm:$0xff]  ;;  %v8906_v11 = vld [vmem:[%s16280_s1 + $0x1040] sm:$0xff] }
0x1459   : > { %6102 = vmatprep.subr.mxu0 %v8858_v18  ;;  %6254 = vmatpush2.msra.mxu1 %v8859_v42  ;;  %v8907_v18 = vld [vmem:[%s16280_s1 + $0x1038] sm:$0xff]  ;;  %v8908_v42 = vld [vmem:[%s16280_s1 + $0x1030] sm:$0xff] }
0x145a   : > { %6103 = vmatpush2.msra.mxu0 %v8860_v43  ;;  %6255 = vmatprep.subr.mxu1 %v8861_v44  ;;  %v8909_v43 = vld [vmem:[%s16280_s1 + $0x1028] sm:$0xff]  ;;  %v8910_v44 = vld [vmem:[%s16280_s1 + $0x1020] sm:$0xff] }
0x145b   : > { %6104 = vmatprep.subr.mxu0 %v8862_v45  ;;  %6256 = vmatpush2.msra.mxu1 %v8863_v47  ;;  %v8911_v45 = vld [vmem:[%s16280_s1 + $0x1018] sm:$0xff]  ;;  %v8912_v47 = vld [vmem:[%s16280_s1 + $0x1010] sm:$0xff] }
0x145c   : > { %6105 = vmatpush2.msra.mxu0 %v8864_v0  ;;  %6257 = vmatprep.subr.mxu1 %v8865_v48  ;;  %v8913_v0 = vld [vmem:[%s16280_s1 + $0x1008] sm:$0xff]  ;;  %v8914_v48 = vld [vmem:[%s16280_s1 + $0x1000] sm:$0xff] }
0x145d   : > { %6106 = vmatprep.subr.mxu0 %v8866_v53  ;;  %6258 = vmatpush2.msra.mxu1 %v8867_v55  ;;  %v8915_v53 = vld [vmem:[%s16280_s1 + $0x11f8] sm:$0xff]  ;;  %v8916_v55 = vld [vmem:[%s16280_s1 + $0x11f0] sm:$0xff] }
0x145e   : > { %6107 = vmatpush2.msra.mxu0 %v8868_v61  ;;  %6259 = vmatprep.subr.mxu1 %v8869_v26  ;;  %v8917_v61 = vld [vmem:[%s16280_s1 + $0x11e8] sm:$0xff]  ;;  %v8918_v26 = vld [vmem:[%s16280_s1 + $0x11e0] sm:$0xff] }
0x145f   : > { %6108 = vmatprep.subr.mxu0 %v8870_v56  ;;  %6260 = vmatpush2.msra.mxu1 %v8871_v60  ;;  %v8919_v56 = vld [vmem:[%s16280_s1 + $0x11d8] sm:$0xff]  ;;  %v8920_v60 = vld [vmem:[%s16280_s1 + $0x11d0] sm:$0xff] }
0x1460   : > { %6109 = vmatpush2.msra.mxu0 %v8872_v19  ;;  %6261 = vmatprep.subr.mxu1 %v8873_v62  ;;  %v8921_v19 = vld [vmem:[%s16280_s1 + $0x11c8] sm:$0xff]  ;;  %v8922_v62 = vld [vmem:[%s16280_s1 + $0x11c0] sm:$0xff] }
0x1461   : > { %6110 = vmatprep.subr.mxu0 %v8874_v37  ;;  %6262 = vmatpush2.msra.mxu1 %v8875_v2  ;;  %v8923_v37 = vld [vmem:[%s16280_s1 + $0x11b8] sm:$0xff]  ;;  %v8924_v2 = vld [vmem:[%s16280_s1 + $0x11b0] sm:$0xff] }
0x1462   : > { %6111 = vmatpush2.msra.mxu0 %v8876_v40  ;;  %6263 = vmatprep.subr.mxu1 %v8877_v13  ;;  %v8925_v40 = vld [vmem:[%s16280_s1 + $0x11a8] sm:$0xff]  ;;  %v8926_v13 = vld [vmem:[%s16280_s1 + $0x11a0] sm:$0xff] }
0x1463   : > { %6112 = vmatprep.subr.mxu0 %v8878_v3  ;;  %6264 = vmatpush2.msra.mxu1 %v8879_v6  ;;  %v8927_v3 = vld [vmem:[%s16280_s1 + $0x1198] sm:$0xff]  ;;  %v8928_v6 = vld [vmem:[%s16280_s1 + $0x1190] sm:$0xff] }
0x1464   : > { %6113 = vmatpush2.msra.mxu0 %v8880_v59  ;;  %v8929_v59 = vld [vmem:[%s16280_s1 + $0x1188] sm:$0xff] }
0x1465   : > { %6114 = vmatprep.subr.mxu0 %v8881_v21  ;;  %v8930_v21 = vld [vmem:[%s16280_s1 + $0x1180] sm:$0xff] }
0x1466   : > { %6115 = vmatpush2.msra.mxu0 %v8882_v46  ;;  %v8931_v46 = vld [vmem:[%s16280_s1 + $0x1178] sm:$0xff] }
0x1467   : > { %6309 = vmatprep.subr.mxu0 %v14665_v52  ;;  %v7183_v52 = vld [vmem:[%s9033_s14 + $0x118] sm:$0xff]  ;;  %s6593_s14 = sshll.u32 %s16288_s25, 3 }
0x1468   : > { %s350_s27 = scalar_lea.vmem %s16285_s6, %s6593_s14 }
0x14df   : > { %v5969_v8 = vpop.f32.mrf.mxu1 }
0x14e1   : > { %v5971_v57 = vpop.f32.mrf.mxu1 }
0x14e3   : > { %v5820_v15 = vpop.f32.mrf.mxu0  ;;  %v6196_v16 = vpop.f32.mrf.mxu1 }
0x14e4   : > { %v5825_v20 = vadd.f32 %v5820_v15, %v15664_v58  ;;  %v8883_v58 = vld [vmem:[%s16280_s1 + $0x10f8] sm:$0xff]  ;;  %v8934_v15 = vld [vmem:[%s16280_s1 + $0x1160] sm:$0xff] }
0x14e5   : > { %v5822_v5 = vpop.f32.mrf.mxu0  ;;  %v6198_v35 = vpop.f32.mrf.mxu1 }
0x14e6   : > { %v5826_v63 = vadd.f32 %v5822_v5, %v15669_v54  ;;  %v16063_v7 = vadd.f32 %v5969_v8, %v5825_v20  ;;  %6265 = vmatprep.mubr.f32.mxu1 %v6198_v35  ;;  %v8884_v54 = vld [vmem:[%s16280_s1 + $0x10f0] sm:$0xff]  ;;  %v8937_v5 = vld [vmem:[%s16280_s1 + $0x1148] sm:$0xff]  ;;  %v8938_v35 = vld [vmem:[%s16280_s1 + $0x1140] sm:$0xff] }
0x14e7   : > { %v6047_v22 = vpop.f32.mrf.mxu0  ;;  %6266 = vmatmul.mubr.f32.vlgmr.msra.gmra.mxu1 %v6196_v16  ;;  %v8932_v8 = vld [vmem:[%s16280_s1 + $0x1170] sm:$0xff]  ;;  %v8935_v16 = vld [vmem:[%s16280_s1 + $0x1158] sm:$0xff] }
0x14e8   : > { %v16065_v23 = vadd.f32 %v5971_v57, %v5826_v63  ;;  %v8933_v57 = vld [vmem:[%s16280_s1 + $0x1168] sm:$0xff]  ;;  %v8936_v20 = vld [vmem:[%s16280_s1 + $0x1150] sm:$0xff]  ;;  %v8939_v63 = vld [vmem:[%s16280_s1 + $0x1138] sm:$0xff] }
0x14e9   : > { %v6049_v24 = vpop.f32.mrf.mxu0 }
0x14ea   : > { %6116 = vmatprep.mubr.f32.mxu0 %v6049_v24  ;;  %v8941_v24 = vld [vmem:[%s16280_s1 + $0x1128] sm:$0xff] }
0x14eb   : > { %6117 = vmatmul.mubr.f32.vlgmr.msra.gmra.mxu0 %v6047_v22  ;;  %v8940_v22 = vld [vmem:[%s16280_s1 + $0x1130] sm:$0xff] }
0x14ec   : > { %6310 = vmatpush1.msra.mxu0 %v14663_v50  ;;  %6343 = vmatprep.mubr.f32.mxu0 %v8955_v4  ;;  %v8886_v4 = vld [vmem:[%s16280_s1 + $0x10e0] sm:$0xff]  ;;  %v8887_v50 = vld [vmem:[%s16280_s1 + $0x10d8] sm:$0xff] }
0x14ed   : > { %6350 = vmatprep.subr.mxu0 %v8883_v58  ;;  %v8943_v58 = vld [vmem:[%s16280_s1 + $0x1118] sm:$0xff] }
0x14ef   : > { %7184 = vmatmul.mubr.msk.f32.vlgmr.msra.gmra.mxu0 %vm359_vm0, %v7183_v52  ;;  %v8942_v52 = vld [vmem:[%s16280_s1 + $0x1120] sm:$0xff] }
0x14f0   : > { %6351 = vmatpush1.msra.mxu0 %v8884_v54  ;;  %v8944_v54 = vld [vmem:[%s16280_s1 + $0x1110] sm:$0xff] }
0x14f1   : > { %6352 = vmatprep.subr.mxu0 %v8885_v25  ;;  %v8945_v25 = vld [vmem:[%s16280_s1 + $0x1108] sm:$0xff] }
0x14f2   : > { %6353 = vmatpush1.msra.mxu0 %v8886_v4  ;;  %v8946_v4 = vld [vmem:[%s16280_s1 + $0x1100] sm:$0xff] }
0x14f3   : > { %6354 = vmatprep.subr.mxu0 %v8887_v50 }
0x14f4   : > { %6355 = vmatpush1.msra.mxu0 %v8888_v27 }
0x14f5   : > { %6356 = vmatprep.subr.mxu0 %v8889_v28 }
0x14f6   : > { %6357 = vmatpush1.msra.mxu0 %v8890_v29 }
0x14f7   : > { %6358 = vmatprep.subr.mxu0 %v8891_v30 }
0x14f8   : > { %6359 = vmatpush1.msra.mxu0 %v8892_v31 }
0x14f9   : > { %6360 = vmatprep.subr.mxu0 %v8893_v32 }
0x14fa   : > { %6361 = vmatpush1.msra.mxu0 %v8894_v33 }
0x14fb   : > { %6362 = vmatprep.subr.mxu0 %v8895_v34 }
0x14fc   : > { %6363 = vmatpush1.msra.mxu0 %v8896_v36 }
0x14fd   : > { %6364 = vmatprep.subr.mxu0 %v8897_v17 }
0x14fe   : > { %6365 = vmatpush1.msra.mxu0 %v8898_v38 }
0x14ff   : > { %6366 = vmatprep.subr.mxu0 %v8899_v10 }
0x1500   : > { %6367 = vmatpush1.msra.mxu0 %v8900_v9 }
0x1501   : > { %6368 = vmatprep.subr.mxu0 %v8901_v39  ;;  %v6428_v39 = vpop.permute.xlu1 %6427 }
0x1502   : > { %6369 = vmatpush1.msra.mxu0 %v8902_v12 }
0x1503   : > { %6370 = vmatprep.subr.mxu0 %v8903_v41 }
0x1504   : > { %6371 = vmatpush1.msra.mxu0 %v8904_v14 }
0x1505   : > { %6372 = vmatprep.subr.mxu0 %v8905_v1 }
0x1506   : > { %6373 = vmatpush1.msra.mxu0 %v8906_v11 }
0x1507   : > { %6374 = vmatprep.subr.mxu0 %v8907_v18 }
0x1508   : > { %6375 = vmatpush1.msra.mxu0 %v8908_v42 }
0x1509   : > { %6376 = vmatprep.subr.mxu0 %v8909_v43 }
0x150a   : > { %6377 = vmatpush1.msra.mxu0 %v8910_v44  ;;  %v7187_v44 = vld [vmem:[%s11045_s18 + $0x18] sm:$0xff]  ;;  %s7193_s18 = sshll.u32 %s16288_s25, 4 }
0x150b   : > { %6378 = vmatprep.subr.mxu0 %v8911_v45  ;;  %v6468_v45 = vld [vmem:[%s350_s27] sm:$0xff]  ;;  %s355_s8 = scalar_lea.vmem %s16286_s7, %s7193_s18 }
0x150c   : > { %6379 = vmatpush1.msra.mxu0 %v8912_v47  ;;  %v6453_v47 = vpop.permute.xlu0 %6452 }
0x150d   : > { %6380 = vmatprep.subr.mxu0 %v8913_v0 }
0x150e   : > { %6381 = vmatpush1.msra.mxu0 %v8914_v48 }
0x150f   : > { %6382 = vmatprep.subr.mxu0 %v8915_v53 }
0x1510   : > { %6383 = vmatpush2.msra.mxu0 %v8916_v55 }
0x1511   : > { %6384 = vmatprep.subr.mxu0 %v8917_v61 }
0x1512   : > { %6385 = vmatpush2.msra.mxu0 %v8918_v26 }
0x1513   : > { %6386 = vmatprep.subr.mxu0 %v8919_v56 }
0x1514   : > { %6387 = vmatpush2.msra.mxu0 %v8920_v60 }
0x1515   : > { %6388 = vmatprep.subr.mxu0 %v8921_v19 }
0x1516   : > { %6389 = vmatpush2.msra.mxu0 %v8922_v62 }
0x1517   : > { %6390 = vmatprep.subr.mxu0 %v8923_v37 }
0x1518   : > { %6391 = vmatpush2.msra.mxu0 %v8924_v2 }
0x1519   : > { %6392 = vmatprep.subr.mxu0 %v8925_v40 }
0x151a   : > { %6393 = vmatpush2.msra.mxu0 %v8926_v13 }
0x151b   : > { %6394 = vmatprep.subr.mxu0 %v8927_v3 }
0x151c   : > { %6395 = vmatpush2.msra.mxu0 %v8928_v6 }
0x151d   : > { %6396 = vmatprep.subr.mxu0 %v8929_v59 }
0x151e   : > { %6397 = vmatpush2.msra.mxu0 %v8930_v21 }
0x151f   : > { %6398 = vmatprep.subr.mxu0 %v8931_v46 }
0x1520   : > { %6399 = vmatpush2.msra.mxu0 %v8932_v8 }
0x1521   : > { %6400 = vmatprep.subr.mxu0 %v8933_v57 }
0x1522   : > { %6401 = vmatpush2.msra.mxu0 %v8934_v15 }
0x1523   : > { %6402 = vmatprep.subr.mxu0 %v8935_v16 }
0x1524   : > { %6403 = vmatpush2.msra.mxu0 %v8936_v20 }
0x1525   : > { %6404 = vmatprep.subr.mxu0 %v8937_v5 }
0x1526   : > { %6405 = vmatpush2.msra.mxu0 %v8938_v35 }
0x1527   : > { %6406 = vmatprep.subr.mxu0 %v8939_v63 }
0x1528   : > { %6407 = vmatpush2.msra.mxu0 %v8940_v22 }
0x1529   : > { %6408 = vmatprep.subr.mxu0 %v8941_v24 }
0x152a   : > { %6409 = vmatpush2.msra.mxu0 %v8942_v52 }
0x152b   : > { %6410 = vmatprep.subr.mxu0 %v8943_v58 }
0x152c   : > { %6411 = vmatpush2.msra.mxu0 %v8944_v54 }
0x152d   : > { %6412 = vmatprep.subr.mxu0 %v8945_v25 }
0x152e   : > { %6413 = vmatpush2.msra.mxu0 %v8946_v4 }
0x15a7   : > { %v6267_v32 = vpop.f32.mrf.mxu1 }
0x15a9   : > { %v6269_v33 = vpop.f32.mrf.mxu1 }
0x15ab   : > { %v6118_v50 = vpop.f32.mrf.mxu0 }
0x15ac   : > { %v6123_v27 = vadd.f32 %v6118_v50, %v16063_v7 }
0x15ad   : > { %v6120_v28 = vpop.f32.mrf.mxu0 }
0x15ae   : > { %v6124_v29 = vadd.f32 %v6120_v28, %v16065_v23  ;;  %v6272_v34 = vadd.f32 %v6267_v32, %v6123_v27 }
0x15af   : > { %v6345_v30 = vpop.f32.mrf.mxu0 }
0x15b0   : > { %v6273_v17 = vadd.f32 %v6269_v33, %v6124_v29 }
0x15b1   : > { %v6347_v31 = vpop.f32.mrf.mxu0 }
0x15b2   : > { %6414 = vmatprep.mubr.f32.mxu0 %v6347_v31 }
0x15b3   : > { %6415 = vmatmul.mubr.f32.vlgmr.msra.gmra.mxu0 %v6345_v30 }
0x1673   : > { %v6416_v36 = vpop.f32.mrf.mxu0 }
0x1674   : > { %v6421_v38 = vadd.f32 %v6416_v36, %v6272_v34 }
0x1675   : > { %v6418_v10 = vpop.f32.mrf.mxu0 }
0x1676   : > { %v6422_v9 = vadd.f32 %v6418_v10, %v6273_v17  ;;  %v6430_v12 = vadd.f32 %v6428_v39, %v6421_v38 }
0x1678   : > { %v6431_v7 = vadd.f32 %v6428_v39, %v6422_v9 }
0x167a   : > { %v6432_v41 = vadd.f32 %v6431_v7, %v6430_v12 }
0x167c   : > { %6433 = vadd.xlane.f32.xlu1 %v6432_v41 }
0x1705   : > { %v6434_v23 = vpop.xlane.xlu1 %6433 }
0x1706   : > { %v6435_v14 = vmul.f32 0.00390625, %v6434_v23 }
0x1708   : > { %v6436_v1 = vsub.f32 %v6430_v12, %v6435_v14  ;;  %v6437_v11 = vsub.f32 %v6431_v7, %v6435_v14 }
0x170a   : > { %v6438_v18 = vmul.f32 %v6436_v1, %v6436_v1  ;;  %v6439_v42 = vmul.f32 %v6437_v11, %v6437_v11 }
0x170c   : > { %v6440_v43 = vadd.f32 %v6439_v42, %v6438_v18 }
0x170e   : > { %6441 = vadd.xlane.f32.xlu0 %v6440_v43 }
0x1724   : > { %6461 = vperm.xlu0 %7205, %v7187_v44  }
0x1728   : > { %6471 = vperm.xlu0 %7205, %v6468_v45  }
0x1797   : > { %v6442_v0 = vpop.xlane.xlu0 %6441 }
0x1798   : > { %v6443_v48 = vmul.f32 0.00390625, %v6442_v0 }
0x179a   : > { %v6446_v53 = vadd.f32 1e-05, %v6443_v48 }
0x179c   : > { %7213 = vrsqrt.f32 %v6446_v53 }
0x179f   : > { %v6462_v56 = vpop.permute.xlu0 %6461 }
0x17a3   : > { %v6472_v13 = vpop.permute.xlu0 %6471 }
0x17a9   : > { %v7214_v55 = vpop.eup %7213 }
0x17aa   : > { %v6448_v61 = vmul.f32 %v7214_v55, %v6436_v1  ;;  %v6449_v26 = vmul.f32 %v7214_v55, %v6437_v11 }
0x17ac   : > { %v6455_v60 = vmul.f32 %v6453_v47, %v6448_v61  ;;  %v6456_v19 = vmul.f32 %v6453_v47, %v6449_v26 }
0x17ae   : > { %v6464_v62 = vadd.f32 %v6462_v56, %v6455_v60  ;;  %v6465_v37 = vadd.f32 %v6462_v56, %v6456_v19 }
0x17b0   : > { %v6466_v2 = vadd.f32 %v6464_v62, %v12855_v49  ;;  %v6467_v40 = vadd.f32 %v6465_v37, %v12860_v51 }
0x17b2   : > { %v6474_v3 = vmul.f32 %v6472_v13, %v6466_v2  ;;  %v6475_v6 = vmul.f32 %v6472_v13, %v6467_v40 }
0x17b4   : > { %6476 = vst [vmem:[%s355_s8] sm:$0xff] %v6474_v3  ;;  %6477 = vst [vmem:[%s355_s8 + $0x8] sm:$0xff] %v6475_v6 }
0x17b5 PF: > { %s17_s24 = sadd.s32 1, %s8953_s24  }
0x17b6   : > { %p14_p4 = scmp.ge.s32.totalorder %s17_s24, 5  }
0x17b8   :  { %16 = sbr.rel (!%p14_p4) target bundleno = 1 (0x1), region = 142 }

</bundles_post_ra>
